<compile_context>
chip_gen: v6e
topology: v6e:2x2x1
jax: 0.10.0
libtpu: 0.0.40
codegen_flags: <defaults>
</compile_context>

<pallas_src>
import functools

import jax
import jax.numpy as jnp
from jax.experimental import pallas as pl
from jax.experimental.pallas import tpu as pltpu

_BF16 = jnp.bfloat16


# ----------------------------------------------------------------------------
# Pallas kernels
# ----------------------------------------------------------------------------
def _gemm_bn_act_kernel(x_ref, w_ref, s_ref, b_ref, o_ref, *, relu, single_k):
    """Fused out = act((x @ w) * scale + bias); bf16 operands, f32 accumulate.

    The f32 output block is resident across the K grid axis, so it doubles as
    the accumulator (no VMEM scratch buffer).
    """
    if single_k:
        acc = jnp.dot(x_ref[...], w_ref[...],
                      preferred_element_type=jnp.float32)
        y = acc * s_ref[...] + b_ref[...]
        if relu:
            y = jnp.maximum(y, 0.0)
        o_ref[...] = y.astype(o_ref.dtype)
    else:
        k = pl.program_id(2)

        @pl.when(k == 0)
        def _():
            o_ref[...] = jnp.zeros(o_ref.shape, o_ref.dtype)

        o_ref[...] += jnp.dot(x_ref[...], w_ref[...],
                              preferred_element_type=jnp.float32)

        @pl.when(k == pl.num_programs(2) - 1)
        def _():
            y = o_ref[...] * s_ref[...] + b_ref[...]
            if relu:
                y = jnp.maximum(y, 0.0)
            o_ref[...] = y.astype(o_ref.dtype)


def _score_kernel(s_ref, w_ref, o_ref):
    """weight = relu(w)+eps ; normalize per image ; out = sum(score*weight)."""
    w = jnp.maximum(w_ref[...], 0.0) + 1e-8
    wsum = jnp.sum(w, axis=1, keepdims=True)
    num = jnp.sum(s_ref[...] * w, axis=1, keepdims=True)
    # TODO(synk): add an HW grid axis with running accumulators for large HW.
    o_ref[...] = num * pl.reciprocal(wsum, approx=True)


# ----------------------------------------------------------------------------
# Pallas wrappers
# ----------------------------------------------------------------------------
def _round_up(x, m):
    return ((x + m - 1) // m) * m


def _pick_tile(dim, cap, align):
    """Return (padded_dim, tile); tile divides padded_dim.

    If dim fits in one tile the block equals the full dim (no padding, no
    divisibility requirement).  Otherwise prefer an aligned divisor of dim;
    pad only as a last resort.
    """
    if dim <= cap:
        return dim, dim
    t = cap
    while t >= align:
        if dim % t == 0:
            return dim, t
        t -= align
    return _round_up(dim, cap), cap


@functools.lru_cache(maxsize=None)
def _get_gemm_call(Mp, Kp, Np, tm, tk, tn, relu):
    nm, nn, nk = Mp // tm, Np // tn, Kp // tk
    kernel = functools.partial(_gemm_bn_act_kernel, relu=relu,
                               single_k=(nk == 1))
    return pl.pallas_call(
        kernel,
        out_shape=jax.ShapeDtypeStruct((Mp, Np), jnp.float32),
        grid_spec=pltpu.PrefetchScalarGridSpec(
            num_scalar_prefetch=0,
            grid=(nm, nn, nk),
            in_specs=[
                pl.BlockSpec((tm, tk), lambda i, j, k: (i, k)),
                pl.BlockSpec((tk, tn), lambda i, j, k: (k, j)),
                pl.BlockSpec((1, tn), lambda i, j, k: (0, j)),
                pl.BlockSpec((1, tn), lambda i, j, k: (0, j)),
            ],
            out_specs=pl.BlockSpec((tm, tn), lambda i, j, k: (i, j)),
        ),
        compiler_params=pltpu.CompilerParams(
            dimension_semantics=("parallel", "parallel", "arbitrary"),
            vmem_limit_bytes=32 * 1024 * 1024,
        ),
    )


def fused_gemm_bn_act(x, w, scale, bias, relu=True):
    """x:(M,K) w:(K,N) scale/bias:(N,) -> (M,N) f32, one fused Pallas GEMM."""
    M, K = x.shape
    N = w.shape[1]
    Mp, tm = _pick_tile(M, 256, 16)     # 16: bf16 sublane packing
    Kp, tk = _pick_tile(K, 2048, 128)
    Np, tn = _pick_tile(N, 256, 128)

    xb = x.astype(_BF16)
    wb = w.astype(_BF16)
    s2 = scale.reshape(1, N).astype(jnp.float32)
    b2 = bias.reshape(1, N).astype(jnp.float32)

    if (Mp, Kp) != (M, K):
        xb = jnp.zeros((Mp, Kp), _BF16).at[:M, :K].set(xb)
    if (Kp, Np) != (K, N):
        wb = jnp.zeros((Kp, Np), _BF16).at[:K, :N].set(wb)
    if Np != N:
        s2 = jnp.zeros((1, Np), jnp.float32).at[:, :N].set(s2)
        b2 = jnp.zeros((1, Np), jnp.float32).at[:, :N].set(b2)

    out = _get_gemm_call(Mp, Kp, Np, tm, tk, tn, bool(relu))(xb, wb, s2, b2)
    if (Mp, Np) != (M, N):
        out = out[:M, :N]
    return out


def weighted_score(s2d, w2d):
    """s2d/w2d: (B, HW) -> (B,) final score, computed in a Pallas kernel."""
    B, HW = s2d.shape
    out = pl.pallas_call(
        _score_kernel,
        out_shape=jax.ShapeDtypeStruct((B, 1), jnp.float32),
        grid=(1,),
        in_specs=[pl.BlockSpec((B, HW), lambda i: (0, 0)),
                  pl.BlockSpec((B, HW), lambda i: (0, 0))],
        out_specs=pl.BlockSpec((B, 1), lambda i: (0, 0)),
    )(s2d, w2d)
    return out.reshape(B)


# ----------------------------------------------------------------------------
# Conv / deconv glue (im2col, padding, sub-pixel interleave) — plain JAX
# ----------------------------------------------------------------------------
def _im2col(xp, k, stride):
    """xp: spatially padded NHWC -> patches (N*Ho*Wo, k*k*C), order (kh,kw,c)."""
    N, Hp, Wp, C = xp.shape
    Ho = (Hp - k) // stride + 1
    Wo = (Wp - k) // stride + 1
    rows = jnp.stack(
        [xp[:, dh:dh + (Ho - 1) * stride + 1:stride, :, :] for dh in range(k)],
        axis=3)                                    # (N, Ho, Wp, k, C)
    cols = jnp.stack(
        [rows[:, :, dw:dw + (Wo - 1) * stride + 1:stride, :, :]
         for dw in range(k)],
        axis=4)                                    # (N, Ho, Wo, k, k, C)
    return cols.reshape(N * Ho * Wo, k * k * C), (N, Ho, Wo)


def conv_bn_relu(x, p, padding=0, stride=1):
    """Conv2d(no bias) + BN(folded) + ReLU.  x: NHWC."""
    k = p['k']
    cin = x.shape[-1]
    cout = p['w'].shape[-1]
    xb = x.astype(_BF16)                       # bf16 patches: half the bytes
    if padding:
        xb = jnp.pad(xb, ((0, 0), (padding, padding),
                          (padding, padding), (0, 0)))
    if k == 1 and stride == 1 and padding == 0:
        N, H, W, _ = x.shape
        patches, shape = xb.reshape(N * H * W, cin), (N, H, W)
    else:
        patches, shape = _im2col(xb, k, stride)
    w2d = p['w'].reshape(k * k * cin, cout)
    y = fused_gemm_bn_act(patches, w2d, p['scale'], p['bias'], relu=True)
    N, Ho, Wo = shape
    return y.reshape(N, Ho, Wo, cout)


def deconv_bn_relu(x, p):
    """ConvTranspose2d(k=2, s=2, bias) + BN(folded) + ReLU.  x: NHWC."""
    N, H, W, Cin = x.shape
    Cout = p['w'].shape[1]
    # (Cin, Cout, 2, 2) -> (Cin, a, b, Cout) -> (Cin, 4*Cout)
    w2d = jnp.transpose(p['w'], (0, 2, 3, 1)).reshape(Cin, 4 * Cout)
    scale4 = jnp.tile(p['scale'], 4)
    bias4 = jnp.tile(p['bias'], 4)
    y = fused_gemm_bn_act(x.reshape(N * H * W, Cin), w2d, scale4, bias4,
                          relu=True)
    y = y.reshape(N, H, W, 2, 2, Cout)
    y = jnp.transpose(y, (0, 1, 3, 2, 4, 5)).reshape(N, 2 * H, 2 * W, Cout)
    return y


def center_crop(a, b):
    """Same as module._center_crop, but on NHWC (spatial dims 1, 2)."""
    _, h1, w1, _ = a.shape
    _, h2, w2, _ = b.shape
    ht, wt = min(h1, h2), min(w1, w2)
    dh1 = (h1 - ht) // 2 if h1 > ht else 0
    dw1 = (w1 - wt) // 2 if w1 > wt else 0
    dh2 = (h2 - ht) // 2 if h2 > ht else 0
    dw2 = (w2 - wt) // 2 if w2 > wt else 0
    return (a[:, dh1:dh1 + ht, dw1:dw1 + wt, :],
            b[:, dh2:dh2 + ht, dw2:dw2 + wt, :])


# ----------------------------------------------------------------------------
# Deterministic parameter construction (BN folded into scale/bias)
# ----------------------------------------------------------------------------
class ParamGen:
    def __init__(self, seed=0):
        self._key = jax.random.PRNGKey(seed)

    def _split(self):
        self._key, sub = jax.random.split(self._key)
        return sub

    def normal(self, shape, std=1.0):
        return std * jax.random.normal(self._split(), shape, dtype=jnp.float32)

    def uniform(self, shape, lo, hi):
        return jax.random.uniform(self._split(), shape, dtype=jnp.float32,
                                  minval=lo, maxval=hi)


def _fold_bn(pg, cout):
    gamma = pg.uniform((cout,), 0.5, 1.5)
    beta = pg.normal((cout,), 0.1)
    mean = pg.normal((cout,), 0.1)
    var = pg.uniform((cout,), 0.5, 1.5)
    scale = gamma / jnp.sqrt(var + 1e-5)
    shift = beta - mean * scale
    return scale, shift


def make_conv(pg, cin, cout, k):
    w = pg.normal((k, k, cin, cout), std=(cin * k * k) ** -0.5)
    scale, shift = _fold_bn(pg, cout)
    return dict(w=w, scale=scale, bias=shift, k=k)


def make_deconv(pg, cin, cout):
    w = pg.normal((cin, cout, 2, 2), std=(cin * 4) ** -0.5)
    b = pg.normal((cout,), 0.05)
    scale, shift = _fold_bn(pg, cout)
    bias = b * scale + shift          # deconv bias folded through BN
    return dict(w=w, scale=scale, bias=bias)


def _concat_out_conv(layers):
    """Fuse convs sharing the SAME input into one conv (concat out channels)."""
    k = layers[0]['k']
    w = jnp.concatenate([l['w'] for l in layers], axis=-1)
    scale = jnp.concatenate([l['scale'] for l in layers])
    bias = jnp.concatenate([l['bias'] for l in layers])
    return dict(w=w, scale=scale, bias=bias, k=k)


def _block_diag_conv(layers):
    """Fuse convs acting on DISJOINT input-channel groups into one conv with a
    block-diagonal weight (exact: cross blocks are zero)."""
    k = layers[0]['k']
    cins = [l['w'].shape[2] for l in layers]
    couts = [l['w'].shape[3] for l in layers]
    w = jnp.zeros((k, k, sum(cins), sum(couts)), jnp.float32)
    ci = co = 0
    for l, a, b in zip(layers, cins, couts):
        w = w.at[:, :, ci:ci + a, co:co + b].set(l['w'])
        ci += a
        co += b
    scale = jnp.concatenate([l['scale'] for l in layers])
    bias = jnp.concatenate([l['bias'] for l in layers])
    return dict(w=w, scale=scale, bias=bias, k=k)


def init_params(seed=0):
    pg = ParamGen(seed)
    p = {}
    # TODO(synk): stand-in backbone for timm efficientnet_b2 feature taps.
    bb_cfg = [(3, 16), (16, 24), (24, 48), (48, 120)]
    p['backbone'] = [make_conv(pg, ci, co, 3) for ci, co in bb_cfg]

    p['conv1_1'] = make_conv(pg, 16, 16, 1)
    p['conv1_2'] = make_conv(pg, 16, 16, 3)
    c1_3 = make_conv(pg, 16, 1, 1)
    p['conv2_1'] = make_conv(pg, 24, 24, 3)
    p['conv2_2'] = make_deconv(pg, 24, 24)
    c2_3 = make_conv(pg, 24, 1, 1)
    p['conv3_1'] = make_conv(pg, 48, 48, 3)
    p['conv3_2'] = make_deconv(pg, 48, 48)
    p['conv3_3'] = make_deconv(pg, 48, 48)
    c3_4 = make_conv(pg, 48, 1, 1)
    p['conv4_1'] = make_conv(pg, 120, 64, 3)
    p['conv4_2'] = make_deconv(pg, 64, 64)
    p['conv4_3'] = make_deconv(pg, 64, 64)
    p['conv4_4'] = make_deconv(pg, 64, 64)
    c4_5 = make_conv(pg, 64, 1, 1)

    # The four Cout=1 per-branch 1x1 heads as ONE block-diagonal GEMM that
    # directly produces the 4-channel concat feature.
    p['head1x1'] = _block_diag_conv([c1_3, c2_3, c3_4, c4_5])

    c5_1 = make_conv(pg, 4, 32, 1)
    c5_2 = make_conv(pg, 32, 16, 3)
    c5_3 = make_conv(pg, 16, 1, 3)
    c6_1 = make_conv(pg, 4, 32, 1)
    c6_2 = make_conv(pg, 32, 16, 3)
    c6_3 = make_conv(pg, 16, 1, 3)
    p['conv56_1'] = _concat_out_conv([c5_1, c6_1])     # shared input: 4 -> 64
    p['conv56_2'] = _block_diag_conv([c5_2, c6_2])     # 64 -> 32 (block-diag)
    p['conv56_3'] = _block_diag_conv([c5_3, c6_3])     # 32 -> 2  (block-diag)
    return p


# ----------------------------------------------------------------------------
# Forward pass (mirrors the PyTorch module)
# ----------------------------------------------------------------------------
def forward(params, dis_nchw):
    x = jnp.transpose(dis_nchw, (0, 2, 3, 1)).astype(jnp.float32)  # -> NHWC

    feats = []
    for bp in params['backbone']:
        x = conv_bn_relu(x, bp, padding=1, stride=2)
        feats.append(x)
    f1, f2, f3, f4 = feats

    c1 = conv_bn_relu(f1, params['conv1_1'], padding=0)
    c1 = conv_bn_relu(c1, params['conv1_2'], padding=1)

    c2 = conv_bn_relu(f2, params['conv2_1'], padding=1)
    c2 = deconv_bn_relu(c2, params['conv2_2'])

    c3 = conv_bn_relu(f3, params['conv3_1'], padding=1)
    c3 = deconv_bn_relu(c3, params['conv3_2'])
    c3 = deconv_bn_relu(c3, params['conv3_3'])

    c4 = conv_bn_relu(f4, params['conv4_1'], padding=1)
    c4 = deconv_bn_relu(c4, params['conv4_2'])
    c4 = deconv_bn_relu(c4, params['conv4_3'])
    c4 = deconv_bn_relu(c4, params['conv4_4'])

    # The original crops the 1-channel heads; 1x1 convs are pointwise and
    # spatial-preserving, so cropping BEFORE the (fused) 1x1 heads is exact
    # and lets the four heads run as one block-diagonal GEMM.
    c1, c2 = center_crop(c1, c2)
    c1, c3 = center_crop(c1, c3)
    c1, c4 = center_crop(c1, c4)

    branch_cat = jnp.concatenate([c1, c2, c3, c4], axis=-1)     # (B,H,W,152)
    cat = conv_bn_relu(branch_cat, params['head1x1'], padding=0)  # (B,H,W,4)

    sw = conv_bn_relu(cat, params['conv56_1'], padding=0)   # (B,H,W,64)
    sw = conv_bn_relu(sw, params['conv56_2'], padding=1)    # (B,H,W,32)
    sw = conv_bn_relu(sw, params['conv56_3'], padding=1)    # (B,H,W,2)

    B, H, W, _ = sw.shape
    score_map = sw[..., 0].reshape(B, H * W)
    weight_map = sw[..., 1].reshape(B, H * W)
    return weighted_score(score_map, weight_map)             # (B,)


# ----------------------------------------------------------------------------
if __name__ == "__main__":
    key = jax.random.PRNGKey(0)
    dis = jax.random.normal(key, (2, 3, 32, 32), dtype=jnp.float32)  # NCHW
    params = init_params(seed=0)
    fwd = jax.jit(lambda d: forward(params, d))
    score = jax.block_until_ready(fwd(dis))
    assert score.shape == (2,), score.shape
    assert bool(jnp.all(jnp.isfinite(score)))
    print("KERNEL_OK")
</pallas_src>

<mosaic_0001>
module attributes {stable_mosaic.version = 11 : i64} {
  func.func @_gemm_bn_act_kernel(%arg0: i32, %arg1: i32, %arg2: i32, %arg3: memref<256x27xbf16, #tpu.memory_space<vmem>>, %arg4: memref<27x16xbf16, #tpu.memory_space<vmem>>, %arg5: memref<1x16xf32, #tpu.memory_space<vmem>>, %arg6: memref<1x16xf32, #tpu.memory_space<vmem>>, %arg7: memref<256x16xf32, #tpu.memory_space<vmem>>) attributes {dimension_semantics = [#tpu.dimension_semantics<parallel>, #tpu.dimension_semantics<parallel>, #tpu.dimension_semantics<arbitrary>], iteration_bounds = array<i64: 2, 1, 1>, scalar_prefetch = 0 : i64, scratch_operands = 0 : i64, tpu.core_type = #tpu.core_type<tc>, window_params = [{transform_indices = @transform_0, window_bounds = array<i64: 256, 27>}, {transform_indices = @transform_1, window_bounds = array<i64: 27, 16>}, {transform_indices = @transform_2, window_bounds = array<i64: 1, 16>}, {transform_indices = @transform_3, window_bounds = array<i64: 1, 16>}, {transform_indices = @transform_4, window_bounds = array<i64: 256, 16>}]} {
    %c0 = arith.constant 0 : index
    %c0_0 = arith.constant 0 : index
    %0 = vector.load %arg3[%c0, %c0_0] : memref<256x27xbf16, #tpu.memory_space<vmem>>, vector<256x27xbf16>
    %c0_1 = arith.constant 0 : index
    %c0_2 = arith.constant 0 : index
    %1 = vector.load %arg4[%c0_1, %c0_2] : memref<27x16xbf16, #tpu.memory_space<vmem>>, vector<27x16xbf16>
    %cst = arith.constant dense<0.000000e+00> : vector<256x16xf32>
    %2 = tpu.matmul %0, %1, %cst {dimension_numbers = #tpu.dot_dimension_numbers<[1], [0], [0], [1], [0, 0, 1, 1], [], []>} : vector<256x27xbf16>, vector<27x16xbf16>, vector<256x16xf32> -> vector<256x16xf32>
    %c0_3 = arith.constant 0 : index
    %c0_4 = arith.constant 0 : index
    %3 = vector.load %arg5[%c0_3, %c0_4] : memref<1x16xf32, #tpu.memory_space<vmem>>, vector<1x16xf32>
    %4 = vector.broadcast %3 : vector<1x16xf32> to vector<256x16xf32>
    %5 = arith.mulf %2, %4 : vector<256x16xf32>
    %c0_5 = arith.constant 0 : index
    %c0_6 = arith.constant 0 : index
    %6 = vector.load %arg6[%c0_5, %c0_6] : memref<1x16xf32, #tpu.memory_space<vmem>>, vector<1x16xf32>
    %7 = vector.broadcast %6 : vector<1x16xf32> to vector<256x16xf32>
    %8 = arith.addf %5, %7 : vector<256x16xf32>
    %cst_7 = arith.constant 0.000000e+00 : f32
    %9 = vector.broadcast %cst_7 : f32 to vector<256x16xf32>
    %10 = arith.maximumf %8, %9 : vector<256x16xf32>
    %c0_8 = arith.constant 0 : index
    %c0_9 = arith.constant 0 : index
    %11 = vector.load %arg7[%c0_8, %c0_9] : memref<256x16xf32, #tpu.memory_space<vmem>>, vector<256x16xf32>
    tpu.vector_store %arg7[%c0_8, %c0_9], %10 {strides = array<i32>} : memref<256x16xf32, #tpu.memory_space<vmem>>, vector<256x16xf32>,
    return
  }
  func.func @transform_0(%arg0: i32, %arg1: i32, %arg2: i32) -> (i32, i32) {
    %c0_i32 = arith.constant 0 : i32
    return %arg0, %arg2 : i32, i32
  }
  func.func @transform_1(%arg0: i32, %arg1: i32, %arg2: i32) -> (i32, i32) {
    %c0_i32 = arith.constant 0 : i32
    return %arg2, %arg1 : i32, i32
  }
  func.func @transform_2(%arg0: i32, %arg1: i32, %arg2: i32) -> (i32, i32) {
    %c0_i32 = arith.constant 0 : i32
    %c0_i32_0 = arith.constant 0 : i32
    return %c0_i32, %arg1 : i32, i32
  }
  func.func @transform_3(%arg0: i32, %arg1: i32, %arg2: i32) -> (i32, i32) {
    %c0_i32 = arith.constant 0 : i32
    %c0_i32_0 = arith.constant 0 : i32
    return %c0_i32, %arg1 : i32, i32
  }
  func.func @transform_4(%arg0: i32, %arg1: i32, %arg2: i32) -> (i32, i32) {
    %c0_i32 = arith.constant 0 : i32
    return %arg0, %arg1 : i32, i32
  }
}

module attributes {stable_mosaic.version = 11 : i64} {
  func.func @_gemm_bn_act_kernel(%arg0: i32, %arg1: i32, %arg2: i32, %arg3: memref<128x144xbf16, #tpu.memory_space<vmem>>, %arg4: memref<144x24xbf16, #tpu.memory_space<vmem>>, %arg5: memref<1x24xf32, #tpu.memory_space<vmem>>, %arg6: memref<1x24xf32, #tpu.memory_space<vmem>>, %arg7: memref<128x24xf32, #tpu.memory_space<vmem>>) attributes {dimension_semantics = [#tpu.dimension_semantics<parallel>, #tpu.dimension_semantics<parallel>, #tpu.dimension_semantics<arbitrary>], iteration_bounds = array<i64: 1, 1, 1>, scalar_prefetch = 0 : i64, scratch_operands = 0 : i64, tpu.core_type = #tpu.core_type<tc>, window_params = [{transform_indices = @transform_0, window_bounds = array<i64: 128, 144>}, {transform_indices = @transform_1, window_bounds = array<i64: 144, 24>}, {transform_indices = @transform_2, window_bounds = array<i64: 1, 24>}, {transform_indices = @transform_3, window_bounds = array<i64: 1, 24>}, {transform_indices = @transform_4, window_bounds = array<i64: 128, 24>}]} {
    %c0 = arith.constant 0 : index
    %c0_0 = arith.constant 0 : index
    %0 = vector.load %arg3[%c0, %c0_0] : memref<128x144xbf16, #tpu.memory_space<vmem>>, vector<128x144xbf16>
    %c0_1 = arith.constant 0 : index
    %c0_2 = arith.constant 0 : index
    %1 = vector.load %arg4[%c0_1, %c0_2] : memref<144x24xbf16, #tpu.memory_space<vmem>>, vector<144x24xbf16>
    %cst = arith.constant dense<0.000000e+00> : vector<128x24xf32>
    %2 = tpu.matmul %0, %1, %cst {dimension_numbers = #tpu.dot_dimension_numbers<[1], [0], [0], [1], [0, 0, 1, 1], [], []>} : vector<128x144xbf16>, vector<144x24xbf16>, vector<128x24xf32> -> vector<128x24xf32>
    %c0_3 = arith.constant 0 : index
    %c0_4 = arith.constant 0 : index
    %3 = vector.load %arg5[%c0_3, %c0_4] : memref<1x24xf32, #tpu.memory_space<vmem>>, vector<1x24xf32>
    %4 = vector.broadcast %3 : vector<1x24xf32> to vector<128x24xf32>
    %5 = arith.mulf %2, %4 : vector<128x24xf32>
    %c0_5 = arith.constant 0 : index
    %c0_6 = arith.constant 0 : index
    %6 = vector.load %arg6[%c0_5, %c0_6] : memref<1x24xf32, #tpu.memory_space<vmem>>, vector<1x24xf32>
    %7 = vector.broadcast %6 : vector<1x24xf32> to vector<128x24xf32>
    %8 = arith.addf %5, %7 : vector<128x24xf32>
    %cst_7 = arith.constant 0.000000e+00 : f32
    %9 = vector.broadcast %cst_7 : f32 to vector<128x24xf32>
    %10 = arith.maximumf %8, %9 : vector<128x24xf32>
    %c0_8 = arith.constant 0 : index
    %c0_9 = arith.constant 0 : index
    %11 = vector.load %arg7[%c0_8, %c0_9] : memref<128x24xf32, #tpu.memory_space<vmem>>, vector<128x24xf32>
    tpu.vector_store %arg7[%c0_8, %c0_9], %10 {strides = array<i32>} : memref<128x24xf32, #tpu.memory_space<vmem>>, vector<128x24xf32>,
    return
  }
  func.func @transform_0(%arg0: i32, %arg1: i32, %arg2: i32) -> (i32, i32) {
    %c0_i32 = arith.constant 0 : i32
    return %arg0, %arg2 : i32, i32
  }
  func.func @transform_1(%arg0: i32, %arg1: i32, %arg2: i32) -> (i32, i32) {
    %c0_i32 = arith.constant 0 : i32
    return %arg2, %arg1 : i32, i32
  }
  func.func @transform_2(%arg0: i32, %arg1: i32, %arg2: i32) -> (i32, i32) {
    %c0_i32 = arith.constant 0 : i32
    %c0_i32_0 = arith.constant 0 : i32
    return %c0_i32, %arg1 : i32, i32
  }
  func.func @transform_3(%arg0: i32, %arg1: i32, %arg2: i32) -> (i32, i32) {
    %c0_i32 = arith.constant 0 : i32
    %c0_i32_0 = arith.constant 0 : i32
    return %c0_i32, %arg1 : i32, i32
  }
  func.func @transform_4(%arg0: i32, %arg1: i32, %arg2: i32) -> (i32, i32) {
    %c0_i32 = arith.constant 0 : i32
    return %arg0, %arg1 : i32, i32
  }
}

module attributes {stable_mosaic.version = 11 : i64} {
  func.func @_gemm_bn_act_kernel(%arg0: i32, %arg1: i32, %arg2: i32, %arg3: memref<32x216xbf16, #tpu.memory_space<vmem>>, %arg4: memref<216x48xbf16, #tpu.memory_space<vmem>>, %arg5: memref<1x48xf32, #tpu.memory_space<vmem>>, %arg6: memref<1x48xf32, #tpu.memory_space<vmem>>, %arg7: memref<32x48xf32, #tpu.memory_space<vmem>>) attributes {dimension_semantics = [#tpu.dimension_semantics<parallel>, #tpu.dimension_semantics<parallel>, #tpu.dimension_semantics<arbitrary>], iteration_bounds = array<i64: 1, 1, 1>, scalar_prefetch = 0 : i64, scratch_operands = 0 : i64, tpu.core_type = #tpu.core_type<tc>, window_params = [{transform_indices = @transform_0, window_bounds = array<i64: 32, 216>}, {transform_indices = @transform_1, window_bounds = array<i64: 216, 48>}, {transform_indices = @transform_2, window_bounds = array<i64: 1, 48>}, {transform_indices = @transform_3, window_bounds = array<i64: 1, 48>}, {transform_indices = @transform_4, window_bounds = array<i64: 32, 48>}]} {
    %c0 = arith.constant 0 : index
    %c0_0 = arith.constant 0 : index
    %0 = vector.load %arg3[%c0, %c0_0] : memref<32x216xbf16, #tpu.memory_space<vmem>>, vector<32x216xbf16>
    %c0_1 = arith.constant 0 : index
    %c0_2 = arith.constant 0 : index
    %1 = vector.load %arg4[%c0_1, %c0_2] : memref<216x48xbf16, #tpu.memory_space<vmem>>, vector<216x48xbf16>
    %cst = arith.constant dense<0.000000e+00> : vector<32x48xf32>
    %2 = tpu.matmul %0, %1, %cst {dimension_numbers = #tpu.dot_dimension_numbers<[1], [0], [0], [1], [0, 0, 1, 1], [], []>} : vector<32x216xbf16>, vector<216x48xbf16>, vector<32x48xf32> -> vector<32x48xf32>
    %c0_3 = arith.constant 0 : index
    %c0_4 = arith.constant 0 : index
    %3 = vector.load %arg5[%c0_3, %c0_4] : memref<1x48xf32, #tpu.memory_space<vmem>>, vector<1x48xf32>
    %4 = vector.broadcast %3 : vector<1x48xf32> to vector<32x48xf32>
    %5 = arith.mulf %2, %4 : vector<32x48xf32>
    %c0_5 = arith.constant 0 : index
    %c0_6 = arith.constant 0 : index
    %6 = vector.load %arg6[%c0_5, %c0_6] : memref<1x48xf32, #tpu.memory_space<vmem>>, vector<1x48xf32>
    %7 = vector.broadcast %6 : vector<1x48xf32> to vector<32x48xf32>
    %8 = arith.addf %5, %7 : vector<32x48xf32>
    %cst_7 = arith.constant 0.000000e+00 : f32
    %9 = vector.broadcast %cst_7 : f32 to vector<32x48xf32>
    %10 = arith.maximumf %8, %9 : vector<32x48xf32>
    %c0_8 = arith.constant 0 : index
    %c0_9 = arith.constant 0 : index
    %11 = vector.load %arg7[%c0_8, %c0_9] : memref<32x48xf32, #tpu.memory_space<vmem>>, vector<32x48xf32>
    tpu.vector_store %arg7[%c0_8, %c0_9], %10 {strides = array<i32>} : memref<32x48xf32, #tpu.memory_space<vmem>>, vector<32x48xf32>,
    return
  }
  func.func @transform_0(%arg0: i32, %arg1: i32, %arg2: i32) -> (i32, i32) {
    %c0_i32 = arith.constant 0 : i32
    return %arg0, %arg2 : i32, i32
  }
  func.func @transform_1(%arg0: i32, %arg1: i32, %arg2: i32) -> (i32, i32) {
    %c0_i32 = arith.constant 0 : i32
    return %arg2, %arg1 : i32, i32
  }
  func.func @transform_2(%arg0: i32, %arg1: i32, %arg2: i32) -> (i32, i32) {
    %c0_i32 = arith.constant 0 : i32
    %c0_i32_0 = arith.constant 0 : i32
    return %c0_i32, %arg1 : i32, i32
  }
  func.func @transform_3(%arg0: i32, %arg1: i32, %arg2: i32) -> (i32, i32) {
    %c0_i32 = arith.constant 0 : i32
    %c0_i32_0 = arith.constant 0 : i32
    return %c0_i32, %arg1 : i32, i32
  }
  func.func @transform_4(%arg0: i32, %arg1: i32, %arg2: i32) -> (i32, i32) {
    %c0_i32 = arith.constant 0 : i32
    return %arg0, %arg1 : i32, i32
  }
}

module attributes {stable_mosaic.version = 11 : i64} {
  func.func @_gemm_bn_act_kernel(%arg0: i32, %arg1: i32, %arg2: i32, %arg3: memref<8x432xbf16, #tpu.memory_space<vmem>>, %arg4: memref<432x120xbf16, #tpu.memory_space<vmem>>, %arg5: memref<1x120xf32, #tpu.memory_space<vmem>>, %arg6: memref<1x120xf32, #tpu.memory_space<vmem>>, %arg7: memref<8x120xf32, #tpu.memory_space<vmem>>) attributes {dimension_semantics = [#tpu.dimension_semantics<parallel>, #tpu.dimension_semantics<parallel>, #tpu.dimension_semantics<arbitrary>], iteration_bounds = array<i64: 1, 1, 1>, scalar_prefetch = 0 : i64, scratch_operands = 0 : i64, tpu.core_type = #tpu.core_type<tc>, window_params = [{transform_indices = @transform_0, window_bounds = array<i64: 8, 432>}, {transform_indices = @transform_1, window_bounds = array<i64: 432, 120>}, {transform_indices = @transform_2, window_bounds = array<i64: 1, 120>}, {transform_indices = @transform_3, window_bounds = array<i64: 1, 120>}, {transform_indices = @transform_4, window_bounds = array<i64: 8, 120>}]} {
    %c0 = arith.constant 0 : index
    %c0_0 = arith.constant 0 : index
    %0 = vector.load %arg3[%c0, %c0_0] : memref<8x432xbf16, #tpu.memory_space<vmem>>, vector<8x432xbf16>
    %c0_1 = arith.constant 0 : index
    %c0_2 = arith.constant 0 : index
    %1 = vector.load %arg4[%c0_1, %c0_2] : memref<432x120xbf16, #tpu.memory_space<vmem>>, vector<432x120xbf16>
    %cst = arith.constant dense<0.000000e+00> : vector<8x120xf32>
    %2 = tpu.matmul %0, %1, %cst {dimension_numbers = #tpu.dot_dimension_numbers<[1], [0], [0], [1], [0, 0, 1, 1], [], []>} : vector<8x432xbf16>, vector<432x120xbf16>, vector<8x120xf32> -> vector<8x120xf32>
    %c0_3 = arith.constant 0 : index
    %c0_4 = arith.constant 0 : index
    %3 = vector.load %arg5[%c0_3, %c0_4] : memref<1x120xf32, #tpu.memory_space<vmem>>, vector<1x120xf32>
    %4 = vector.broadcast %3 : vector<1x120xf32> to vector<8x120xf32>
    %5 = arith.mulf %2, %4 : vector<8x120xf32>
    %c0_5 = arith.constant 0 : index
    %c0_6 = arith.constant 0 : index
    %6 = vector.load %arg6[%c0_5, %c0_6] : memref<1x120xf32, #tpu.memory_space<vmem>>, vector<1x120xf32>
    %7 = vector.broadcast %6 : vector<1x120xf32> to vector<8x120xf32>
    %8 = arith.addf %5, %7 : vector<8x120xf32>
    %cst_7 = arith.constant 0.000000e+00 : f32
    %9 = vector.broadcast %cst_7 : f32 to vector<8x120xf32>
    %10 = arith.maximumf %8, %9 : vector<8x120xf32>
    %c0_8 = arith.constant 0 : index
    %c0_9 = arith.constant 0 : index
    %11 = vector.load %arg7[%c0_8, %c0_9] : memref<8x120xf32, #tpu.memory_space<vmem>>, vector<8x120xf32>
    tpu.vector_store %arg7[%c0_8, %c0_9], %10 {strides = array<i32>} : memref<8x120xf32, #tpu.memory_space<vmem>>, vector<8x120xf32>,
    return
  }
  func.func @transform_0(%arg0: i32, %arg1: i32, %arg2: i32) -> (i32, i32) {
    %c0_i32 = arith.constant 0 : i32
    return %arg0, %arg2 : i32, i32
  }
  func.func @transform_1(%arg0: i32, %arg1: i32, %arg2: i32) -> (i32, i32) {
    %c0_i32 = arith.constant 0 : i32
    return %arg2, %arg1 : i32, i32
  }
  func.func @transform_2(%arg0: i32, %arg1: i32, %arg2: i32) -> (i32, i32) {
    %c0_i32 = arith.constant 0 : i32
    %c0_i32_0 = arith.constant 0 : i32
    return %c0_i32, %arg1 : i32, i32
  }
  func.func @transform_3(%arg0: i32, %arg1: i32, %arg2: i32) -> (i32, i32) {
    %c0_i32 = arith.constant 0 : i32
    %c0_i32_0 = arith.constant 0 : i32
    return %c0_i32, %arg1 : i32, i32
  }
  func.func @transform_4(%arg0: i32, %arg1: i32, %arg2: i32) -> (i32, i32) {
    %c0_i32 = arith.constant 0 : i32
    return %arg0, %arg1 : i32, i32
  }
}

module attributes {stable_mosaic.version = 11 : i64} {
  func.func @_gemm_bn_act_kernel(%arg0: i32, %arg1: i32, %arg2: i32, %arg3: memref<8x64xbf16, #tpu.memory_space<vmem>>, %arg4: memref<64x256xbf16, #tpu.memory_space<vmem>>, %arg5: memref<1x256xf32, #tpu.memory_space<vmem>>, %arg6: memref<1x256xf32, #tpu.memory_space<vmem>>, %arg7: memref<8x256xf32, #tpu.memory_space<vmem>>) attributes {dimension_semantics = [#tpu.dimension_semantics<parallel>, #tpu.dimension_semantics<parallel>, #tpu.dimension_semantics<arbitrary>], iteration_bounds = array<i64: 1, 1, 1>, scalar_prefetch = 0 : i64, scratch_operands = 0 : i64, tpu.core_type = #tpu.core_type<tc>, window_params = [{transform_indices = @transform_0, window_bounds = array<i64: 8, 64>}, {transform_indices = @transform_1, window_bounds = array<i64: 64, 256>}, {transform_indices = @transform_2, window_bounds = array<i64: 1, 256>}, {transform_indices = @transform_3, window_bounds = array<i64: 1, 256>}, {transform_indices = @transform_4, window_bounds = array<i64: 8, 256>}]} {
    %c0 = arith.constant 0 : index
    %c0_0 = arith.constant 0 : index
    %0 = vector.load %arg3[%c0, %c0_0] : memref<8x64xbf16, #tpu.memory_space<vmem>>, vector<8x64xbf16>
    %c0_1 = arith.constant 0 : index
    %c0_2 = arith.constant 0 : index
    %1 = vector.load %arg4[%c0_1, %c0_2] : memref<64x256xbf16, #tpu.memory_space<vmem>>, vector<64x256xbf16>
    %cst = arith.constant dense<0.000000e+00> : vector<8x256xf32>
    %2 = tpu.matmul %0, %1, %cst {dimension_numbers = #tpu.dot_dimension_numbers<[1], [0], [0], [1], [0, 0, 1, 1], [], []>} : vector<8x64xbf16>, vector<64x256xbf16>, vector<8x256xf32> -> vector<8x256xf32>
    %c0_3 = arith.constant 0 : index
    %c0_4 = arith.constant 0 : index
    %3 = vector.load %arg5[%c0_3, %c0_4] : memref<1x256xf32, #tpu.memory_space<vmem>>, vector<1x256xf32>
    %4 = vector.broadcast %3 : vector<1x256xf32> to vector<8x256xf32>
    %5 = arith.mulf %2, %4 : vector<8x256xf32>
    %c0_5 = arith.constant 0 : index
    %c0_6 = arith.constant 0 : index
    %6 = vector.load %arg6[%c0_5, %c0_6] : memref<1x256xf32, #tpu.memory_space<vmem>>, vector<1x256xf32>
    %7 = vector.broadcast %6 : vector<1x256xf32> to vector<8x256xf32>
    %8 = arith.addf %5, %7 : vector<8x256xf32>
    %cst_7 = arith.constant 0.000000e+00 : f32
    %9 = vector.broadcast %cst_7 : f32 to vector<8x256xf32>
    %10 = arith.maximumf %8, %9 : vector<8x256xf32>
    %c0_8 = arith.constant 0 : index
    %c0_9 = arith.constant 0 : index
    %11 = vector.load %arg7[%c0_8, %c0_9] : memref<8x256xf32, #tpu.memory_space<vmem>>, vector<8x256xf32>
    tpu.vector_store %arg7[%c0_8, %c0_9], %10 {strides = array<i32>} : memref<8x256xf32, #tpu.memory_space<vmem>>, vector<8x256xf32>,
    return
  }
  func.func @transform_0(%arg0: i32, %arg1: i32, %arg2: i32) -> (i32, i32) {
    %c0_i32 = arith.constant 0 : i32
    return %arg0, %arg2 : i32, i32
  }
  func.func @transform_1(%arg0: i32, %arg1: i32, %arg2: i32) -> (i32, i32) {
    %c0_i32 = arith.constant 0 : i32
    return %arg2, %arg1 : i32, i32
  }
  func.func @transform_2(%arg0: i32, %arg1: i32, %arg2: i32) -> (i32, i32) {
    %c0_i32 = arith.constant 0 : i32
    %c0_i32_0 = arith.constant 0 : i32
    return %c0_i32, %arg1 : i32, i32
  }
  func.func @transform_3(%arg0: i32, %arg1: i32, %arg2: i32) -> (i32, i32) {
    %c0_i32 = arith.constant 0 : i32
    %c0_i32_0 = arith.constant 0 : i32
    return %c0_i32, %arg1 : i32, i32
  }
  func.func @transform_4(%arg0: i32, %arg1: i32, %arg2: i32) -> (i32, i32) {
    %c0_i32 = arith.constant 0 : i32
    return %arg0, %arg1 : i32, i32
  }
}

module attributes {stable_mosaic.version = 11 : i64} {
  func.func @_gemm_bn_act_kernel(%arg0: i32, %arg1: i32, %arg2: i32, %arg3: memref<8x1080xbf16, #tpu.memory_space<vmem>>, %arg4: memref<1080x64xbf16, #tpu.memory_space<vmem>>, %arg5: memref<1x64xf32, #tpu.memory_space<vmem>>, %arg6: memref<1x64xf32, #tpu.memory_space<vmem>>, %arg7: memref<8x64xf32, #tpu.memory_space<vmem>>) attributes {dimension_semantics = [#tpu.dimension_semantics<parallel>, #tpu.dimension_semantics<parallel>, #tpu.dimension_semantics<arbitrary>], iteration_bounds = array<i64: 1, 1, 1>, scalar_prefetch = 0 : i64, scratch_operands = 0 : i64, tpu.core_type = #tpu.core_type<tc>, window_params = [{transform_indices = @transform_0, window_bounds = array<i64: 8, 1080>}, {transform_indices = @transform_1, window_bounds = array<i64: 1080, 64>}, {transform_indices = @transform_2, window_bounds = array<i64: 1, 64>}, {transform_indices = @transform_3, window_bounds = array<i64: 1, 64>}, {transform_indices = @transform_4, window_bounds = array<i64: 8, 64>}]} {
    %c0 = arith.constant 0 : index
    %c0_0 = arith.constant 0 : index
    %0 = vector.load %arg3[%c0, %c0_0] : memref<8x1080xbf16, #tpu.memory_space<vmem>>, vector<8x1080xbf16>
    %c0_1 = arith.constant 0 : index
    %c0_2 = arith.constant 0 : index
    %1 = vector.load %arg4[%c0_1, %c0_2] : memref<1080x64xbf16, #tpu.memory_space<vmem>>, vector<1080x64xbf16>
    %cst = arith.constant dense<0.000000e+00> : vector<8x64xf32>
    %2 = tpu.matmul %0, %1, %cst {dimension_numbers = #tpu.dot_dimension_numbers<[1], [0], [0], [1], [0, 0, 1, 1], [], []>} : vector<8x1080xbf16>, vector<1080x64xbf16>, vector<8x64xf32> -> vector<8x64xf32>
    %c0_3 = arith.constant 0 : index
    %c0_4 = arith.constant 0 : index
    %3 = vector.load %arg5[%c0_3, %c0_4] : memref<1x64xf32, #tpu.memory_space<vmem>>, vector<1x64xf32>
    %4 = vector.broadcast %3 : vector<1x64xf32> to vector<8x64xf32>
    %5 = arith.mulf %2, %4 : vector<8x64xf32>
    %c0_5 = arith.constant 0 : index
    %c0_6 = arith.constant 0 : index
    %6 = vector.load %arg6[%c0_5, %c0_6] : memref<1x64xf32, #tpu.memory_space<vmem>>, vector<1x64xf32>
    %7 = vector.broadcast %6 : vector<1x64xf32> to vector<8x64xf32>
    %8 = arith.addf %5, %7 : vector<8x64xf32>
    %cst_7 = arith.constant 0.000000e+00 : f32
    %9 = vector.broadcast %cst_7 : f32 to vector<8x64xf32>
    %10 = arith.maximumf %8, %9 : vector<8x64xf32>
    %c0_8 = arith.constant 0 : index
    %c0_9 = arith.constant 0 : index
    %11 = vector.load %arg7[%c0_8, %c0_9] : memref<8x64xf32, #tpu.memory_space<vmem>>, vector<8x64xf32>
    tpu.vector_store %arg7[%c0_8, %c0_9], %10 {strides = array<i32>} : memref<8x64xf32, #tpu.memory_space<vmem>>, vector<8x64xf32>,
    return
  }
  func.func @transform_0(%arg0: i32, %arg1: i32, %arg2: i32) -> (i32, i32) {
    %c0_i32 = arith.constant 0 : i32
    return %arg0, %arg2 : i32, i32
  }
  func.func @transform_1(%arg0: i32, %arg1: i32, %arg2: i32) -> (i32, i32) {
    %c0_i32 = arith.constant 0 : i32
    return %arg2, %arg1 : i32, i32
  }
  func.func @transform_2(%arg0: i32, %arg1: i32, %arg2: i32) -> (i32, i32) {
    %c0_i32 = arith.constant 0 : i32
    %c0_i32_0 = arith.constant 0 : i32
    return %c0_i32, %arg1 : i32, i32
  }
  func.func @transform_3(%arg0: i32, %arg1: i32, %arg2: i32) -> (i32, i32) {
    %c0_i32 = arith.constant 0 : i32
    %c0_i32_0 = arith.constant 0 : i32
    return %c0_i32, %arg1 : i32, i32
  }
  func.func @transform_4(%arg0: i32, %arg1: i32, %arg2: i32) -> (i32, i32) {
    %c0_i32 = arith.constant 0 : i32
    return %arg0, %arg1 : i32, i32
  }
}

module attributes {stable_mosaic.version = 11 : i64} {
  func.func @_gemm_bn_act_kernel(%arg0: i32, %arg1: i32, %arg2: i32, %arg3: memref<32x64xbf16, #tpu.memory_space<vmem>>, %arg4: memref<64x256xbf16, #tpu.memory_space<vmem>>, %arg5: memref<1x256xf32, #tpu.memory_space<vmem>>, %arg6: memref<1x256xf32, #tpu.memory_space<vmem>>, %arg7: memref<32x256xf32, #tpu.memory_space<vmem>>) attributes {dimension_semantics = [#tpu.dimension_semantics<parallel>, #tpu.dimension_semantics<parallel>, #tpu.dimension_semantics<arbitrary>], iteration_bounds = array<i64: 1, 1, 1>, scalar_prefetch = 0 : i64, scratch_operands = 0 : i64, tpu.core_type = #tpu.core_type<tc>, window_params = [{transform_indices = @transform_0, window_bounds = array<i64: 32, 64>}, {transform_indices = @transform_1, window_bounds = array<i64: 64, 256>}, {transform_indices = @transform_2, window_bounds = array<i64: 1, 256>}, {transform_indices = @transform_3, window_bounds = array<i64: 1, 256>}, {transform_indices = @transform_4, window_bounds = array<i64: 32, 256>}]} {
    %c0 = arith.constant 0 : index
    %c0_0 = arith.constant 0 : index
    %0 = vector.load %arg3[%c0, %c0_0] : memref<32x64xbf16, #tpu.memory_space<vmem>>, vector<32x64xbf16>
    %c0_1 = arith.constant 0 : index
    %c0_2 = arith.constant 0 : index
    %1 = vector.load %arg4[%c0_1, %c0_2] : memref<64x256xbf16, #tpu.memory_space<vmem>>, vector<64x256xbf16>
    %cst = arith.constant dense<0.000000e+00> : vector<32x256xf32>
    %2 = tpu.matmul %0, %1, %cst {dimension_numbers = #tpu.dot_dimension_numbers<[1], [0], [0], [1], [0, 0, 1, 1], [], []>} : vector<32x64xbf16>, vector<64x256xbf16>, vector<32x256xf32> -> vector<32x256xf32>
    %c0_3 = arith.constant 0 : index
    %c0_4 = arith.constant 0 : index
    %3 = vector.load %arg5[%c0_3, %c0_4] : memref<1x256xf32, #tpu.memory_space<vmem>>, vector<1x256xf32>
    %4 = vector.broadcast %3 : vector<1x256xf32> to vector<32x256xf32>
    %5 = arith.mulf %2, %4 : vector<32x256xf32>
    %c0_5 = arith.constant 0 : index
    %c0_6 = arith.constant 0 : index
    %6 = vector.load %arg6[%c0_5, %c0_6] : memref<1x256xf32, #tpu.memory_space<vmem>>, vector<1x256xf32>
    %7 = vector.broadcast %6 : vector<1x256xf32> to vector<32x256xf32>
    %8 = arith.addf %5, %7 : vector<32x256xf32>
    %cst_7 = arith.constant 0.000000e+00 : f32
    %9 = vector.broadcast %cst_7 : f32 to vector<32x256xf32>
    %10 = arith.maximumf %8, %9 : vector<32x256xf32>
    %c0_8 = arith.constant 0 : index
    %c0_9 = arith.constant 0 : index
    %11 = vector.load %arg7[%c0_8, %c0_9] : memref<32x256xf32, #tpu.memory_space<vmem>>, vector<32x256xf32>
    tpu.vector_store %arg7[%c0_8, %c0_9], %10 {strides = array<i32>} : memref<32x256xf32, #tpu.memory_space<vmem>>, vector<32x256xf32>,
    return
  }
  func.func @transform_0(%arg0: i32, %arg1: i32, %arg2: i32) -> (i32, i32) {
    %c0_i32 = arith.constant 0 : i32
    return %arg0, %arg2 : i32, i32
  }
  func.func @transform_1(%arg0: i32, %arg1: i32, %arg2: i32) -> (i32, i32) {
    %c0_i32 = arith.constant 0 : i32
    return %arg2, %arg1 : i32, i32
  }
  func.func @transform_2(%arg0: i32, %arg1: i32, %arg2: i32) -> (i32, i32) {
    %c0_i32 = arith.constant 0 : i32
    %c0_i32_0 = arith.constant 0 : i32
    return %c0_i32, %arg1 : i32, i32
  }
  func.func @transform_3(%arg0: i32, %arg1: i32, %arg2: i32) -> (i32, i32) {
    %c0_i32 = arith.constant 0 : i32
    %c0_i32_0 = arith.constant 0 : i32
    return %c0_i32, %arg1 : i32, i32
  }
  func.func @transform_4(%arg0: i32, %arg1: i32, %arg2: i32) -> (i32, i32) {
    %c0_i32 = arith.constant 0 : i32
    return %arg0, %arg1 : i32, i32
  }
}

module attributes {stable_mosaic.version = 11 : i64} {
  func.func @_gemm_bn_act_kernel(%arg0: i32, %arg1: i32, %arg2: i32, %arg3: memref<32x432xbf16, #tpu.memory_space<vmem>>, %arg4: memref<432x48xbf16, #tpu.memory_space<vmem>>, %arg5: memref<1x48xf32, #tpu.memory_space<vmem>>, %arg6: memref<1x48xf32, #tpu.memory_space<vmem>>, %arg7: memref<32x48xf32, #tpu.memory_space<vmem>>) attributes {dimension_semantics = [#tpu.dimension_semantics<parallel>, #tpu.dimension_semantics<parallel>, #tpu.dimension_semantics<arbitrary>], iteration_bounds = array<i64: 1, 1, 1>, scalar_prefetch = 0 : i64, scratch_operands = 0 : i64, tpu.core_type = #tpu.core_type<tc>, window_params = [{transform_indices = @transform_0, window_bounds = array<i64: 32, 432>}, {transform_indices = @transform_1, window_bounds = array<i64: 432, 48>}, {transform_indices = @transform_2, window_bounds = array<i64: 1, 48>}, {transform_indices = @transform_3, window_bounds = array<i64: 1, 48>}, {transform_indices = @transform_4, window_bounds = array<i64: 32, 48>}]} {
    %c0 = arith.constant 0 : index
    %c0_0 = arith.constant 0 : index
    %0 = vector.load %arg3[%c0, %c0_0] : memref<32x432xbf16, #tpu.memory_space<vmem>>, vector<32x432xbf16>
    %c0_1 = arith.constant 0 : index
    %c0_2 = arith.constant 0 : index
    %1 = vector.load %arg4[%c0_1, %c0_2] : memref<432x48xbf16, #tpu.memory_space<vmem>>, vector<432x48xbf16>
    %cst = arith.constant dense<0.000000e+00> : vector<32x48xf32>
    %2 = tpu.matmul %0, %1, %cst {dimension_numbers = #tpu.dot_dimension_numbers<[1], [0], [0], [1], [0, 0, 1, 1], [], []>} : vector<32x432xbf16>, vector<432x48xbf16>, vector<32x48xf32> -> vector<32x48xf32>
    %c0_3 = arith.constant 0 : index
    %c0_4 = arith.constant 0 : index
    %3 = vector.load %arg5[%c0_3, %c0_4] : memref<1x48xf32, #tpu.memory_space<vmem>>, vector<1x48xf32>
    %4 = vector.broadcast %3 : vector<1x48xf32> to vector<32x48xf32>
    %5 = arith.mulf %2, %4 : vector<32x48xf32>
    %c0_5 = arith.constant 0 : index
    %c0_6 = arith.constant 0 : index
    %6 = vector.load %arg6[%c0_5, %c0_6] : memref<1x48xf32, #tpu.memory_space<vmem>>, vector<1x48xf32>
    %7 = vector.broadcast %6 : vector<1x48xf32> to vector<32x48xf32>
    %8 = arith.addf %5, %7 : vector<32x48xf32>
    %cst_7 = arith.constant 0.000000e+00 : f32
    %9 = vector.broadcast %cst_7 : f32 to vector<32x48xf32>
    %10 = arith.maximumf %8, %9 : vector<32x48xf32>
    %c0_8 = arith.constant 0 : index
    %c0_9 = arith.constant 0 : index
    %11 = vector.load %arg7[%c0_8, %c0_9] : memref<32x48xf32, #tpu.memory_space<vmem>>, vector<32x48xf32>
    tpu.vector_store %arg7[%c0_8, %c0_9], %10 {strides = array<i32>} : memref<32x48xf32, #tpu.memory_space<vmem>>, vector<32x48xf32>,
    return
  }
  func.func @transform_0(%arg0: i32, %arg1: i32, %arg2: i32) -> (i32, i32) {
    %c0_i32 = arith.constant 0 : i32
    return %arg0, %arg2 : i32, i32
  }
  func.func @transform_1(%arg0: i32, %arg1: i32, %arg2: i32) -> (i32, i32) {
    %c0_i32 = arith.constant 0 : i32
    return %arg2, %arg1 : i32, i32
  }
  func.func @transform_2(%arg0: i32, %arg1: i32, %arg2: i32) -> (i32, i32) {
    %c0_i32 = arith.constant 0 : i32
    %c0_i32_0 = arith.constant 0 : i32
    return %c0_i32, %arg1 : i32, i32
  }
  func.func @transform_3(%arg0: i32, %arg1: i32, %arg2: i32) -> (i32, i32) {
    %c0_i32 = arith.constant 0 : i32
    %c0_i32_0 = arith.constant 0 : i32
    return %c0_i32, %arg1 : i32, i32
  }
  func.func @transform_4(%arg0: i32, %arg1: i32, %arg2: i32) -> (i32, i32) {
    %c0_i32 = arith.constant 0 : i32
    return %arg0, %arg1 : i32, i32
  }
}

module attributes {stable_mosaic.version = 11 : i64} {
  func.func @_gemm_bn_act_kernel(%arg0: i32, %arg1: i32, %arg2: i32, %arg3: memref<32x48xbf16, #tpu.memory_space<vmem>>, %arg4: memref<48x192xbf16, #tpu.memory_space<vmem>>, %arg5: memref<1x192xf32, #tpu.memory_space<vmem>>, %arg6: memref<1x192xf32, #tpu.memory_space<vmem>>, %arg7: memref<32x192xf32, #tpu.memory_space<vmem>>) attributes {dimension_semantics = [#tpu.dimension_semantics<parallel>, #tpu.dimension_semantics<parallel>, #tpu.dimension_semantics<arbitrary>], iteration_bounds = array<i64: 1, 1, 1>, scalar_prefetch = 0 : i64, scratch_operands = 0 : i64, tpu.core_type = #tpu.core_type<tc>, window_params = [{transform_indices = @transform_0, window_bounds = array<i64: 32, 48>}, {transform_indices = @transform_1, window_bounds = array<i64: 48, 192>}, {transform_indices = @transform_2, window_bounds = array<i64: 1, 192>}, {transform_indices = @transform_3, window_bounds = array<i64: 1, 192>}, {transform_indices = @transform_4, window_bounds = array<i64: 32, 192>}]} {
    %c0 = arith.constant 0 : index
    %c0_0 = arith.constant 0 : index
    %0 = vector.load %arg3[%c0, %c0_0] : memref<32x48xbf16, #tpu.memory_space<vmem>>, vector<32x48xbf16>
    %c0_1 = arith.constant 0 : index
    %c0_2 = arith.constant 0 : index
    %1 = vector.load %arg4[%c0_1, %c0_2] : memref<48x192xbf16, #tpu.memory_space<vmem>>, vector<48x192xbf16>
    %cst = arith.constant dense<0.000000e+00> : vector<32x192xf32>
    %2 = tpu.matmul %0, %1, %cst {dimension_numbers = #tpu.dot_dimension_numbers<[1], [0], [0], [1], [0, 0, 1, 1], [], []>} : vector<32x48xbf16>, vector<48x192xbf16>, vector<32x192xf32> -> vector<32x192xf32>
    %c0_3 = arith.constant 0 : index
    %c0_4 = arith.constant 0 : index
    %3 = vector.load %arg5[%c0_3, %c0_4] : memref<1x192xf32, #tpu.memory_space<vmem>>, vector<1x192xf32>
    %4 = vector.broadcast %3 : vector<1x192xf32> to vector<32x192xf32>
    %5 = arith.mulf %2, %4 : vector<32x192xf32>
    %c0_5 = arith.constant 0 : index
    %c0_6 = arith.constant 0 : index
    %6 = vector.load %arg6[%c0_5, %c0_6] : memref<1x192xf32, #tpu.memory_space<vmem>>, vector<1x192xf32>
    %7 = vector.broadcast %6 : vector<1x192xf32> to vector<32x192xf32>
    %8 = arith.addf %5, %7 : vector<32x192xf32>
    %cst_7 = arith.constant 0.000000e+00 : f32
    %9 = vector.broadcast %cst_7 : f32 to vector<32x192xf32>
    %10 = arith.maximumf %8, %9 : vector<32x192xf32>
    %c0_8 = arith.constant 0 : index
    %c0_9 = arith.constant 0 : index
    %11 = vector.load %arg7[%c0_8, %c0_9] : memref<32x192xf32, #tpu.memory_space<vmem>>, vector<32x192xf32>
    tpu.vector_store %arg7[%c0_8, %c0_9], %10 {strides = array<i32>} : memref<32x192xf32, #tpu.memory_space<vmem>>, vector<32x192xf32>,
    return
  }
  func.func @transform_0(%arg0: i32, %arg1: i32, %arg2: i32) -> (i32, i32) {
    %c0_i32 = arith.constant 0 : i32
    return %arg0, %arg2 : i32, i32
  }
  func.func @transform_1(%arg0: i32, %arg1: i32, %arg2: i32) -> (i32, i32) {
    %c0_i32 = arith.constant 0 : i32
    return %arg2, %arg1 : i32, i32
  }
  func.func @transform_2(%arg0: i32, %arg1: i32, %arg2: i32) -> (i32, i32) {
    %c0_i32 = arith.constant 0 : i32
    %c0_i32_0 = arith.constant 0 : i32
    return %c0_i32, %arg1 : i32, i32
  }
  func.func @transform_3(%arg0: i32, %arg1: i32, %arg2: i32) -> (i32, i32) {
    %c0_i32 = arith.constant 0 : i32
    %c0_i32_0 = arith.constant 0 : i32
    return %c0_i32, %arg1 : i32, i32
  }
  func.func @transform_4(%arg0: i32, %arg1: i32, %arg2: i32) -> (i32, i32) {
    %c0_i32 = arith.constant 0 : i32
    return %arg0, %arg1 : i32, i32
  }
}

module attributes {stable_mosaic.version = 11 : i64} {
  func.func @_gemm_bn_act_kernel(%arg0: i32, %arg1: i32, %arg2: i32, %arg3: memref<128x48xbf16, #tpu.memory_space<vmem>>, %arg4: memref<48x192xbf16, #tpu.memory_space<vmem>>, %arg5: memref<1x192xf32, #tpu.memory_space<vmem>>, %arg6: memref<1x192xf32, #tpu.memory_space<vmem>>, %arg7: memref<128x192xf32, #tpu.memory_space<vmem>>) attributes {dimension_semantics = [#tpu.dimension_semantics<parallel>, #tpu.dimension_semantics<parallel>, #tpu.dimension_semantics<arbitrary>], iteration_bounds = array<i64: 1, 1, 1>, scalar_prefetch = 0 : i64, scratch_operands = 0 : i64, tpu.core_type = #tpu.core_type<tc>, window_params = [{transform_indices = @transform_0, window_bounds = array<i64: 128, 48>}, {transform_indices = @transform_1, window_bounds = array<i64: 48, 192>}, {transform_indices = @transform_2, window_bounds = array<i64: 1, 192>}, {transform_indices = @transform_3, window_bounds = array<i64: 1, 192>}, {transform_indices = @transform_4, window_bounds = array<i64: 128, 192>}]} {
    %c0 = arith.constant 0 : index
    %c0_0 = arith.constant 0 : index
    %0 = vector.load %arg3[%c0, %c0_0] : memref<128x48xbf16, #tpu.memory_space<vmem>>, vector<128x48xbf16>
    %c0_1 = arith.constant 0 : index
    %c0_2 = arith.constant 0 : index
    %1 = vector.load %arg4[%c0_1, %c0_2] : memref<48x192xbf16, #tpu.memory_space<vmem>>, vector<48x192xbf16>
    %cst = arith.constant dense<0.000000e+00> : vector<128x192xf32>
    %2 = tpu.matmul %0, %1, %cst {dimension_numbers = #tpu.dot_dimension_numbers<[1], [0], [0], [1], [0, 0, 1, 1], [], []>} : vector<128x48xbf16>, vector<48x192xbf16>, vector<128x192xf32> -> vector<128x192xf32>
    %c0_3 = arith.constant 0 : index
    %c0_4 = arith.constant 0 : index
    %3 = vector.load %arg5[%c0_3, %c0_4] : memref<1x192xf32, #tpu.memory_space<vmem>>, vector<1x192xf32>
    %4 = vector.broadcast %3 : vector<1x192xf32> to vector<128x192xf32>
    %5 = arith.mulf %2, %4 : vector<128x192xf32>
    %c0_5 = arith.constant 0 : index
    %c0_6 = arith.constant 0 : index
    %6 = vector.load %arg6[%c0_5, %c0_6] : memref<1x192xf32, #tpu.memory_space<vmem>>, vector<1x192xf32>
    %7 = vector.broadcast %6 : vector<1x192xf32> to vector<128x192xf32>
    %8 = arith.addf %5, %7 : vector<128x192xf32>
    %cst_7 = arith.constant 0.000000e+00 : f32
    %9 = vector.broadcast %cst_7 : f32 to vector<128x192xf32>
    %10 = arith.maximumf %8, %9 : vector<128x192xf32>
    %c0_8 = arith.constant 0 : index
    %c0_9 = arith.constant 0 : index
    %11 = vector.load %arg7[%c0_8, %c0_9] : memref<128x192xf32, #tpu.memory_space<vmem>>, vector<128x192xf32>
    tpu.vector_store %arg7[%c0_8, %c0_9], %10 {strides = array<i32>} : memref<128x192xf32, #tpu.memory_space<vmem>>, vector<128x192xf32>,
    return
  }
  func.func @transform_0(%arg0: i32, %arg1: i32, %arg2: i32) -> (i32, i32) {
    %c0_i32 = arith.constant 0 : i32
    return %arg0, %arg2 : i32, i32
  }
  func.func @transform_1(%arg0: i32, %arg1: i32, %arg2: i32) -> (i32, i32) {
    %c0_i32 = arith.constant 0 : i32
    return %arg2, %arg1 : i32, i32
  }
  func.func @transform_2(%arg0: i32, %arg1: i32, %arg2: i32) -> (i32, i32) {
    %c0_i32 = arith.constant 0 : i32
    %c0_i32_0 = arith.constant 0 : i32
    return %c0_i32, %arg1 : i32, i32
  }
  func.func @transform_3(%arg0: i32, %arg1: i32, %arg2: i32) -> (i32, i32) {
    %c0_i32 = arith.constant 0 : i32
    %c0_i32_0 = arith.constant 0 : i32
    return %c0_i32, %arg1 : i32, i32
  }
  func.func @transform_4(%arg0: i32, %arg1: i32, %arg2: i32) -> (i32, i32) {
    %c0_i32 = arith.constant 0 : i32
    return %arg0, %arg1 : i32, i32
  }
}

module attributes {stable_mosaic.version = 11 : i64} {
  func.func @_gemm_bn_act_kernel(%arg0: i32, %arg1: i32, %arg2: i32, %arg3: memref<128x64xbf16, #tpu.memory_space<vmem>>, %arg4: memref<64x256xbf16, #tpu.memory_space<vmem>>, %arg5: memref<1x256xf32, #tpu.memory_space<vmem>>, %arg6: memref<1x256xf32, #tpu.memory_space<vmem>>, %arg7: memref<128x256xf32, #tpu.memory_space<vmem>>) attributes {dimension_semantics = [#tpu.dimension_semantics<parallel>, #tpu.dimension_semantics<parallel>, #tpu.dimension_semantics<arbitrary>], iteration_bounds = array<i64: 1, 1, 1>, scalar_prefetch = 0 : i64, scratch_operands = 0 : i64, tpu.core_type = #tpu.core_type<tc>, window_params = [{transform_indices = @transform_0, window_bounds = array<i64: 128, 64>}, {transform_indices = @transform_1, window_bounds = array<i64: 64, 256>}, {transform_indices = @transform_2, window_bounds = array<i64: 1, 256>}, {transform_indices = @transform_3, window_bounds = array<i64: 1, 256>}, {transform_indices = @transform_4, window_bounds = array<i64: 128, 256>}]} {
    %c0 = arith.constant 0 : index
    %c0_0 = arith.constant 0 : index
    %0 = vector.load %arg3[%c0, %c0_0] : memref<128x64xbf16, #tpu.memory_space<vmem>>, vector<128x64xbf16>
    %c0_1 = arith.constant 0 : index
    %c0_2 = arith.constant 0 : index
    %1 = vector.load %arg4[%c0_1, %c0_2] : memref<64x256xbf16, #tpu.memory_space<vmem>>, vector<64x256xbf16>
    %cst = arith.constant dense<0.000000e+00> : vector<128x256xf32>
    %2 = tpu.matmul %0, %1, %cst {dimension_numbers = #tpu.dot_dimension_numbers<[1], [0], [0], [1], [0, 0, 1, 1], [], []>} : vector<128x64xbf16>, vector<64x256xbf16>, vector<128x256xf32> -> vector<128x256xf32>
    %c0_3 = arith.constant 0 : index
    %c0_4 = arith.constant 0 : index
    %3 = vector.load %arg5[%c0_3, %c0_4] : memref<1x256xf32, #tpu.memory_space<vmem>>, vector<1x256xf32>
    %4 = vector.broadcast %3 : vector<1x256xf32> to vector<128x256xf32>
    %5 = arith.mulf %2, %4 : vector<128x256xf32>
    %c0_5 = arith.constant 0 : index
    %c0_6 = arith.constant 0 : index
    %6 = vector.load %arg6[%c0_5, %c0_6] : memref<1x256xf32, #tpu.memory_space<vmem>>, vector<1x256xf32>
    %7 = vector.broadcast %6 : vector<1x256xf32> to vector<128x256xf32>
    %8 = arith.addf %5, %7 : vector<128x256xf32>
    %cst_7 = arith.constant 0.000000e+00 : f32
    %9 = vector.broadcast %cst_7 : f32 to vector<128x256xf32>
    %10 = arith.maximumf %8, %9 : vector<128x256xf32>
    %c0_8 = arith.constant 0 : index
    %c0_9 = arith.constant 0 : index
    %11 = vector.load %arg7[%c0_8, %c0_9] : memref<128x256xf32, #tpu.memory_space<vmem>>, vector<128x256xf32>
    tpu.vector_store %arg7[%c0_8, %c0_9], %10 {strides = array<i32>} : memref<128x256xf32, #tpu.memory_space<vmem>>, vector<128x256xf32>,
    return
  }
  func.func @transform_0(%arg0: i32, %arg1: i32, %arg2: i32) -> (i32, i32) {
    %c0_i32 = arith.constant 0 : i32
    return %arg0, %arg2 : i32, i32
  }
  func.func @transform_1(%arg0: i32, %arg1: i32, %arg2: i32) -> (i32, i32) {
    %c0_i32 = arith.constant 0 : i32
    return %arg2, %arg1 : i32, i32
  }
  func.func @transform_2(%arg0: i32, %arg1: i32, %arg2: i32) -> (i32, i32) {
    %c0_i32 = arith.constant 0 : i32
    %c0_i32_0 = arith.constant 0 : i32
    return %c0_i32, %arg1 : i32, i32
  }
  func.func @transform_3(%arg0: i32, %arg1: i32, %arg2: i32) -> (i32, i32) {
    %c0_i32 = arith.constant 0 : i32
    %c0_i32_0 = arith.constant 0 : i32
    return %c0_i32, %arg1 : i32, i32
  }
  func.func @transform_4(%arg0: i32, %arg1: i32, %arg2: i32) -> (i32, i32) {
    %c0_i32 = arith.constant 0 : i32
    return %arg0, %arg1 : i32, i32
  }
}

module attributes {stable_mosaic.version = 11 : i64} {
  func.func @_gemm_bn_act_kernel(%arg0: i32, %arg1: i32, %arg2: i32, %arg3: memref<128x216xbf16, #tpu.memory_space<vmem>>, %arg4: memref<216x24xbf16, #tpu.memory_space<vmem>>, %arg5: memref<1x24xf32, #tpu.memory_space<vmem>>, %arg6: memref<1x24xf32, #tpu.memory_space<vmem>>, %arg7: memref<128x24xf32, #tpu.memory_space<vmem>>) attributes {dimension_semantics = [#tpu.dimension_semantics<parallel>, #tpu.dimension_semantics<parallel>, #tpu.dimension_semantics<arbitrary>], iteration_bounds = array<i64: 1, 1, 1>, scalar_prefetch = 0 : i64, scratch_operands = 0 : i64, tpu.core_type = #tpu.core_type<tc>, window_params = [{transform_indices = @transform_0, window_bounds = array<i64: 128, 216>}, {transform_indices = @transform_1, window_bounds = array<i64: 216, 24>}, {transform_indices = @transform_2, window_bounds = array<i64: 1, 24>}, {transform_indices = @transform_3, window_bounds = array<i64: 1, 24>}, {transform_indices = @transform_4, window_bounds = array<i64: 128, 24>}]} {
    %c0 = arith.constant 0 : index
    %c0_0 = arith.constant 0 : index
    %0 = vector.load %arg3[%c0, %c0_0] : memref<128x216xbf16, #tpu.memory_space<vmem>>, vector<128x216xbf16>
    %c0_1 = arith.constant 0 : index
    %c0_2 = arith.constant 0 : index
    %1 = vector.load %arg4[%c0_1, %c0_2] : memref<216x24xbf16, #tpu.memory_space<vmem>>, vector<216x24xbf16>
    %cst = arith.constant dense<0.000000e+00> : vector<128x24xf32>
    %2 = tpu.matmul %0, %1, %cst {dimension_numbers = #tpu.dot_dimension_numbers<[1], [0], [0], [1], [0, 0, 1, 1], [], []>} : vector<128x216xbf16>, vector<216x24xbf16>, vector<128x24xf32> -> vector<128x24xf32>
    %c0_3 = arith.constant 0 : index
    %c0_4 = arith.constant 0 : index
    %3 = vector.load %arg5[%c0_3, %c0_4] : memref<1x24xf32, #tpu.memory_space<vmem>>, vector<1x24xf32>
    %4 = vector.broadcast %3 : vector<1x24xf32> to vector<128x24xf32>
    %5 = arith.mulf %2, %4 : vector<128x24xf32>
    %c0_5 = arith.constant 0 : index
    %c0_6 = arith.constant 0 : index
    %6 = vector.load %arg6[%c0_5, %c0_6] : memref<1x24xf32, #tpu.memory_space<vmem>>, vector<1x24xf32>
    %7 = vector.broadcast %6 : vector<1x24xf32> to vector<128x24xf32>
    %8 = arith.addf %5, %7 : vector<128x24xf32>
    %cst_7 = arith.constant 0.000000e+00 : f32
    %9 = vector.broadcast %cst_7 : f32 to vector<128x24xf32>
    %10 = arith.maximumf %8, %9 : vector<128x24xf32>
    %c0_8 = arith.constant 0 : index
    %c0_9 = arith.constant 0 : index
    %11 = vector.load %arg7[%c0_8, %c0_9] : memref<128x24xf32, #tpu.memory_space<vmem>>, vector<128x24xf32>
    tpu.vector_store %arg7[%c0_8, %c0_9], %10 {strides = array<i32>} : memref<128x24xf32, #tpu.memory_space<vmem>>, vector<128x24xf32>,
    return
  }
  func.func @transform_0(%arg0: i32, %arg1: i32, %arg2: i32) -> (i32, i32) {
    %c0_i32 = arith.constant 0 : i32
    return %arg0, %arg2 : i32, i32
  }
  func.func @transform_1(%arg0: i32, %arg1: i32, %arg2: i32) -> (i32, i32) {
    %c0_i32 = arith.constant 0 : i32
    return %arg2, %arg1 : i32, i32
  }
  func.func @transform_2(%arg0: i32, %arg1: i32, %arg2: i32) -> (i32, i32) {
    %c0_i32 = arith.constant 0 : i32
    %c0_i32_0 = arith.constant 0 : i32
    return %c0_i32, %arg1 : i32, i32
  }
  func.func @transform_3(%arg0: i32, %arg1: i32, %arg2: i32) -> (i32, i32) {
    %c0_i32 = arith.constant 0 : i32
    %c0_i32_0 = arith.constant 0 : i32
    return %c0_i32, %arg1 : i32, i32
  }
  func.func @transform_4(%arg0: i32, %arg1: i32, %arg2: i32) -> (i32, i32) {
    %c0_i32 = arith.constant 0 : i32
    return %arg0, %arg1 : i32, i32
  }
}

module attributes {stable_mosaic.version = 11 : i64} {
  func.func @_gemm_bn_act_kernel(%arg0: i32, %arg1: i32, %arg2: i32, %arg3: memref<128x24xbf16, #tpu.memory_space<vmem>>, %arg4: memref<24x96xbf16, #tpu.memory_space<vmem>>, %arg5: memref<1x96xf32, #tpu.memory_space<vmem>>, %arg6: memref<1x96xf32, #tpu.memory_space<vmem>>, %arg7: memref<128x96xf32, #tpu.memory_space<vmem>>) attributes {dimension_semantics = [#tpu.dimension_semantics<parallel>, #tpu.dimension_semantics<parallel>, #tpu.dimension_semantics<arbitrary>], iteration_bounds = array<i64: 1, 1, 1>, scalar_prefetch = 0 : i64, scratch_operands = 0 : i64, tpu.core_type = #tpu.core_type<tc>, window_params = [{transform_indices = @transform_0, window_bounds = array<i64: 128, 24>}, {transform_indices = @transform_1, window_bounds = array<i64: 24, 96>}, {transform_indices = @transform_2, window_bounds = array<i64: 1, 96>}, {transform_indices = @transform_3, window_bounds = array<i64: 1, 96>}, {transform_indices = @transform_4, window_bounds = array<i64: 128, 96>}]} {
    %c0 = arith.constant 0 : index
    %c0_0 = arith.constant 0 : index
    %0 = vector.load %arg3[%c0, %c0_0] : memref<128x24xbf16, #tpu.memory_space<vmem>>, vector<128x24xbf16>
    %c0_1 = arith.constant 0 : index
    %c0_2 = arith.constant 0 : index
    %1 = vector.load %arg4[%c0_1, %c0_2] : memref<24x96xbf16, #tpu.memory_space<vmem>>, vector<24x96xbf16>
    %cst = arith.constant dense<0.000000e+00> : vector<128x96xf32>
    %2 = tpu.matmul %0, %1, %cst {dimension_numbers = #tpu.dot_dimension_numbers<[1], [0], [0], [1], [0, 0, 1, 1], [], []>} : vector<128x24xbf16>, vector<24x96xbf16>, vector<128x96xf32> -> vector<128x96xf32>
    %c0_3 = arith.constant 0 : index
    %c0_4 = arith.constant 0 : index
    %3 = vector.load %arg5[%c0_3, %c0_4] : memref<1x96xf32, #tpu.memory_space<vmem>>, vector<1x96xf32>
    %4 = vector.broadcast %3 : vector<1x96xf32> to vector<128x96xf32>
    %5 = arith.mulf %2, %4 : vector<128x96xf32>
    %c0_5 = arith.constant 0 : index
    %c0_6 = arith.constant 0 : index
    %6 = vector.load %arg6[%c0_5, %c0_6] : memref<1x96xf32, #tpu.memory_space<vmem>>, vector<1x96xf32>
    %7 = vector.broadcast %6 : vector<1x96xf32> to vector<128x96xf32>
    %8 = arith.addf %5, %7 : vector<128x96xf32>
    %cst_7 = arith.constant 0.000000e+00 : f32
    %9 = vector.broadcast %cst_7 : f32 to vector<128x96xf32>
    %10 = arith.maximumf %8, %9 : vector<128x96xf32>
    %c0_8 = arith.constant 0 : index
    %c0_9 = arith.constant 0 : index
    %11 = vector.load %arg7[%c0_8, %c0_9] : memref<128x96xf32, #tpu.memory_space<vmem>>, vector<128x96xf32>
    tpu.vector_store %arg7[%c0_8, %c0_9], %10 {strides = array<i32>} : memref<128x96xf32, #tpu.memory_space<vmem>>, vector<128x96xf32>,
    return
  }
  func.func @transform_0(%arg0: i32, %arg1: i32, %arg2: i32) -> (i32, i32) {
    %c0_i32 = arith.constant 0 : i32
    return %arg0, %arg2 : i32, i32
  }
  func.func @transform_1(%arg0: i32, %arg1: i32, %arg2: i32) -> (i32, i32) {
    %c0_i32 = arith.constant 0 : i32
    return %arg2, %arg1 : i32, i32
  }
  func.func @transform_2(%arg0: i32, %arg1: i32, %arg2: i32) -> (i32, i32) {
    %c0_i32 = arith.constant 0 : i32
    %c0_i32_0 = arith.constant 0 : i32
    return %c0_i32, %arg1 : i32, i32
  }
  func.func @transform_3(%arg0: i32, %arg1: i32, %arg2: i32) -> (i32, i32) {
    %c0_i32 = arith.constant 0 : i32
    %c0_i32_0 = arith.constant 0 : i32
    return %c0_i32, %arg1 : i32, i32
  }
  func.func @transform_4(%arg0: i32, %arg1: i32, %arg2: i32) -> (i32, i32) {
    %c0_i32 = arith.constant 0 : i32
    return %arg0, %arg1 : i32, i32
  }
}

module attributes {stable_mosaic.version = 11 : i64} {
  func.func @_gemm_bn_act_kernel(%arg0: i32, %arg1: i32, %arg2: i32, %arg3: memref<256x16xbf16, #tpu.memory_space<vmem>>, %arg4: memref<16x16xbf16, #tpu.memory_space<vmem>>, %arg5: memref<1x16xf32, #tpu.memory_space<vmem>>, %arg6: memref<1x16xf32, #tpu.memory_space<vmem>>, %arg7: memref<256x16xf32, #tpu.memory_space<vmem>>) attributes {dimension_semantics = [#tpu.dimension_semantics<parallel>, #tpu.dimension_semantics<parallel>, #tpu.dimension_semantics<arbitrary>], iteration_bounds = array<i64: 2, 1, 1>, scalar_prefetch = 0 : i64, scratch_operands = 0 : i64, tpu.core_type = #tpu.core_type<tc>, window_params = [{transform_indices = @transform_0, window_bounds = array<i64: 256, 16>}, {transform_indices = @transform_1, window_bounds = array<i64: 16, 16>}, {transform_indices = @transform_2, window_bounds = array<i64: 1, 16>}, {transform_indices = @transform_3, window_bounds = array<i64: 1, 16>}, {transform_indices = @transform_4, window_bounds = array<i64: 256, 16>}]} {
    %c0 = arith.constant 0 : index
    %c0_0 = arith.constant 0 : index
    %0 = vector.load %arg3[%c0, %c0_0] : memref<256x16xbf16, #tpu.memory_space<vmem>>, vector<256x16xbf16>
    %c0_1 = arith.constant 0 : index
    %c0_2 = arith.constant 0 : index
    %1 = vector.load %arg4[%c0_1, %c0_2] : memref<16x16xbf16, #tpu.memory_space<vmem>>, vector<16x16xbf16>
    %cst = arith.constant dense<0.000000e+00> : vector<256x16xf32>
    %2 = tpu.matmul %0, %1, %cst {dimension_numbers = #tpu.dot_dimension_numbers<[1], [0], [0], [1], [0, 0, 1, 1], [], []>} : vector<256x16xbf16>, vector<16x16xbf16>, vector<256x16xf32> -> vector<256x16xf32>
    %c0_3 = arith.constant 0 : index
    %c0_4 = arith.constant 0 : index
    %3 = vector.load %arg5[%c0_3, %c0_4] : memref<1x16xf32, #tpu.memory_space<vmem>>, vector<1x16xf32>
    %4 = vector.broadcast %3 : vector<1x16xf32> to vector<256x16xf32>
    %5 = arith.mulf %2, %4 : vector<256x16xf32>
    %c0_5 = arith.constant 0 : index
    %c0_6 = arith.constant 0 : index
    %6 = vector.load %arg6[%c0_5, %c0_6] : memref<1x16xf32, #tpu.memory_space<vmem>>, vector<1x16xf32>
    %7 = vector.broadcast %6 : vector<1x16xf32> to vector<256x16xf32>
    %8 = arith.addf %5, %7 : vector<256x16xf32>
    %cst_7 = arith.constant 0.000000e+00 : f32
    %9 = vector.broadcast %cst_7 : f32 to vector<256x16xf32>
    %10 = arith.maximumf %8, %9 : vector<256x16xf32>
    %c0_8 = arith.constant 0 : index
    %c0_9 = arith.constant 0 : index
    %11 = vector.load %arg7[%c0_8, %c0_9] : memref<256x16xf32, #tpu.memory_space<vmem>>, vector<256x16xf32>
    tpu.vector_store %arg7[%c0_8, %c0_9], %10 {strides = array<i32>} : memref<256x16xf32, #tpu.memory_space<vmem>>, vector<256x16xf32>,
    return
  }
  func.func @transform_0(%arg0: i32, %arg1: i32, %arg2: i32) -> (i32, i32) {
    %c0_i32 = arith.constant 0 : i32
    return %arg0, %arg2 : i32, i32
  }
  func.func @transform_1(%arg0: i32, %arg1: i32, %arg2: i32) -> (i32, i32) {
    %c0_i32 = arith.constant 0 : i32
    return %arg2, %arg1 : i32, i32
  }
  func.func @transform_2(%arg0: i32, %arg1: i32, %arg2: i32) -> (i32, i32) {
    %c0_i32 = arith.constant 0 : i32
    %c0_i32_0 = arith.constant 0 : i32
    return %c0_i32, %arg1 : i32, i32
  }
  func.func @transform_3(%arg0: i32, %arg1: i32, %arg2: i32) -> (i32, i32) {
    %c0_i32 = arith.constant 0 : i32
    %c0_i32_0 = arith.constant 0 : i32
    return %c0_i32, %arg1 : i32, i32
  }
  func.func @transform_4(%arg0: i32, %arg1: i32, %arg2: i32) -> (i32, i32) {
    %c0_i32 = arith.constant 0 : i32
    return %arg0, %arg1 : i32, i32
  }
}

module attributes {stable_mosaic.version = 11 : i64} {
  func.func @_gemm_bn_act_kernel(%arg0: i32, %arg1: i32, %arg2: i32, %arg3: memref<256x144xbf16, #tpu.memory_space<vmem>>, %arg4: memref<144x16xbf16, #tpu.memory_space<vmem>>, %arg5: memref<1x16xf32, #tpu.memory_space<vmem>>, %arg6: memref<1x16xf32, #tpu.memory_space<vmem>>, %arg7: memref<256x16xf32, #tpu.memory_space<vmem>>) attributes {dimension_semantics = [#tpu.dimension_semantics<parallel>, #tpu.dimension_semantics<parallel>, #tpu.dimension_semantics<arbitrary>], iteration_bounds = array<i64: 2, 1, 1>, scalar_prefetch = 0 : i64, scratch_operands = 0 : i64, tpu.core_type = #tpu.core_type<tc>, window_params = [{transform_indices = @transform_0, window_bounds = array<i64: 256, 144>}, {transform_indices = @transform_1, window_bounds = array<i64: 144, 16>}, {transform_indices = @transform_2, window_bounds = array<i64: 1, 16>}, {transform_indices = @transform_3, window_bounds = array<i64: 1, 16>}, {transform_indices = @transform_4, window_bounds = array<i64: 256, 16>}]} {
    %c0 = arith.constant 0 : index
    %c0_0 = arith.constant 0 : index
    %0 = vector.load %arg3[%c0, %c0_0] : memref<256x144xbf16, #tpu.memory_space<vmem>>, vector<256x144xbf16>
    %c0_1 = arith.constant 0 : index
    %c0_2 = arith.constant 0 : index
    %1 = vector.load %arg4[%c0_1, %c0_2] : memref<144x16xbf16, #tpu.memory_space<vmem>>, vector<144x16xbf16>
    %cst = arith.constant dense<0.000000e+00> : vector<256x16xf32>
    %2 = tpu.matmul %0, %1, %cst {dimension_numbers = #tpu.dot_dimension_numbers<[1], [0], [0], [1], [0, 0, 1, 1], [], []>} : vector<256x144xbf16>, vector<144x16xbf16>, vector<256x16xf32> -> vector<256x16xf32>
    %c0_3 = arith.constant 0 : index
    %c0_4 = arith.constant 0 : index
    %3 = vector.load %arg5[%c0_3, %c0_4] : memref<1x16xf32, #tpu.memory_space<vmem>>, vector<1x16xf32>
    %4 = vector.broadcast %3 : vector<1x16xf32> to vector<256x16xf32>
    %5 = arith.mulf %2, %4 : vector<256x16xf32>
    %c0_5 = arith.constant 0 : index
    %c0_6 = arith.constant 0 : index
    %6 = vector.load %arg6[%c0_5, %c0_6] : memref<1x16xf32, #tpu.memory_space<vmem>>, vector<1x16xf32>
    %7 = vector.broadcast %6 : vector<1x16xf32> to vector<256x16xf32>
    %8 = arith.addf %5, %7 : vector<256x16xf32>
    %cst_7 = arith.constant 0.000000e+00 : f32
    %9 = vector.broadcast %cst_7 : f32 to vector<256x16xf32>
    %10 = arith.maximumf %8, %9 : vector<256x16xf32>
    %c0_8 = arith.constant 0 : index
    %c0_9 = arith.constant 0 : index
    %11 = vector.load %arg7[%c0_8, %c0_9] : memref<256x16xf32, #tpu.memory_space<vmem>>, vector<256x16xf32>
    tpu.vector_store %arg7[%c0_8, %c0_9], %10 {strides = array<i32>} : memref<256x16xf32, #tpu.memory_space<vmem>>, vector<256x16xf32>,
    return
  }
  func.func @transform_0(%arg0: i32, %arg1: i32, %arg2: i32) -> (i32, i32) {
    %c0_i32 = arith.constant 0 : i32
    return %arg0, %arg2 : i32, i32
  }
  func.func @transform_1(%arg0: i32, %arg1: i32, %arg2: i32) -> (i32, i32) {
    %c0_i32 = arith.constant 0 : i32
    return %arg2, %arg1 : i32, i32
  }
  func.func @transform_2(%arg0: i32, %arg1: i32, %arg2: i32) -> (i32, i32) {
    %c0_i32 = arith.constant 0 : i32
    %c0_i32_0 = arith.constant 0 : i32
    return %c0_i32, %arg1 : i32, i32
  }
  func.func @transform_3(%arg0: i32, %arg1: i32, %arg2: i32) -> (i32, i32) {
    %c0_i32 = arith.constant 0 : i32
    %c0_i32_0 = arith.constant 0 : i32
    return %c0_i32, %arg1 : i32, i32
  }
  func.func @transform_4(%arg0: i32, %arg1: i32, %arg2: i32) -> (i32, i32) {
    %c0_i32 = arith.constant 0 : i32
    return %arg0, %arg1 : i32, i32
  }
}

module attributes {stable_mosaic.version = 11 : i64} {
  func.func @_gemm_bn_act_kernel(%arg0: i32, %arg1: i32, %arg2: i32, %arg3: memref<256x152xbf16, #tpu.memory_space<vmem>>, %arg4: memref<152x4xbf16, #tpu.memory_space<vmem>>, %arg5: memref<1x4xf32, #tpu.memory_space<vmem>>, %arg6: memref<1x4xf32, #tpu.memory_space<vmem>>, %arg7: memref<256x4xf32, #tpu.memory_space<vmem>>) attributes {dimension_semantics = [#tpu.dimension_semantics<parallel>, #tpu.dimension_semantics<parallel>, #tpu.dimension_semantics<arbitrary>], iteration_bounds = array<i64: 2, 1, 1>, scalar_prefetch = 0 : i64, scratch_operands = 0 : i64, tpu.core_type = #tpu.core_type<tc>, window_params = [{transform_indices = @transform_0, window_bounds = array<i64: 256, 152>}, {transform_indices = @transform_1, window_bounds = array<i64: 152, 4>}, {transform_indices = @transform_2, window_bounds = array<i64: 1, 4>}, {transform_indices = @transform_3, window_bounds = array<i64: 1, 4>}, {transform_indices = @transform_4, window_bounds = array<i64: 256, 4>}]} {
    %c0 = arith.constant 0 : index
    %c0_0 = arith.constant 0 : index
    %0 = vector.load %arg3[%c0, %c0_0] : memref<256x152xbf16, #tpu.memory_space<vmem>>, vector<256x152xbf16>
    %c0_1 = arith.constant 0 : index
    %c0_2 = arith.constant 0 : index
    %1 = vector.load %arg4[%c0_1, %c0_2] : memref<152x4xbf16, #tpu.memory_space<vmem>>, vector<152x4xbf16>
    %cst = arith.constant dense<0.000000e+00> : vector<256x4xf32>
    %2 = tpu.matmul %0, %1, %cst {dimension_numbers = #tpu.dot_dimension_numbers<[1], [0], [0], [1], [0, 0, 1, 1], [], []>} : vector<256x152xbf16>, vector<152x4xbf16>, vector<256x4xf32> -> vector<256x4xf32>
    %c0_3 = arith.constant 0 : index
    %c0_4 = arith.constant 0 : index
    %3 = vector.load %arg5[%c0_3, %c0_4] : memref<1x4xf32, #tpu.memory_space<vmem>>, vector<1x4xf32>
    %4 = vector.broadcast %3 : vector<1x4xf32> to vector<256x4xf32>
    %5 = arith.mulf %2, %4 : vector<256x4xf32>
    %c0_5 = arith.constant 0 : index
    %c0_6 = arith.constant 0 : index
    %6 = vector.load %arg6[%c0_5, %c0_6] : memref<1x4xf32, #tpu.memory_space<vmem>>, vector<1x4xf32>
    %7 = vector.broadcast %6 : vector<1x4xf32> to vector<256x4xf32>
    %8 = arith.addf %5, %7 : vector<256x4xf32>
    %cst_7 = arith.constant 0.000000e+00 : f32
    %9 = vector.broadcast %cst_7 : f32 to vector<256x4xf32>
    %10 = arith.maximumf %8, %9 : vector<256x4xf32>
    %c0_8 = arith.constant 0 : index
    %c0_9 = arith.constant 0 : index
    %11 = vector.load %arg7[%c0_8, %c0_9] : memref<256x4xf32, #tpu.memory_space<vmem>>, vector<256x4xf32>
    tpu.vector_store %arg7[%c0_8, %c0_9], %10 {strides = array<i32>} : memref<256x4xf32, #tpu.memory_space<vmem>>, vector<256x4xf32>,
    return
  }
  func.func @transform_0(%arg0: i32, %arg1: i32, %arg2: i32) -> (i32, i32) {
    %c0_i32 = arith.constant 0 : i32
    return %arg0, %arg2 : i32, i32
  }
  func.func @transform_1(%arg0: i32, %arg1: i32, %arg2: i32) -> (i32, i32) {
    %c0_i32 = arith.constant 0 : i32
    return %arg2, %arg1 : i32, i32
  }
  func.func @transform_2(%arg0: i32, %arg1: i32, %arg2: i32) -> (i32, i32) {
    %c0_i32 = arith.constant 0 : i32
    %c0_i32_0 = arith.constant 0 : i32
    return %c0_i32, %arg1 : i32, i32
  }
  func.func @transform_3(%arg0: i32, %arg1: i32, %arg2: i32) -> (i32, i32) {
    %c0_i32 = arith.constant 0 : i32
    %c0_i32_0 = arith.constant 0 : i32
    return %c0_i32, %arg1 : i32, i32
  }
  func.func @transform_4(%arg0: i32, %arg1: i32, %arg2: i32) -> (i32, i32) {
    %c0_i32 = arith.constant 0 : i32
    return %arg0, %arg1 : i32, i32
  }
}

module attributes {stable_mosaic.version = 11 : i64} {
  func.func @_gemm_bn_act_kernel(%arg0: i32, %arg1: i32, %arg2: i32, %arg3: memref<256x4xbf16, #tpu.memory_space<vmem>>, %arg4: memref<4x64xbf16, #tpu.memory_space<vmem>>, %arg5: memref<1x64xf32, #tpu.memory_space<vmem>>, %arg6: memref<1x64xf32, #tpu.memory_space<vmem>>, %arg7: memref<256x64xf32, #tpu.memory_space<vmem>>) attributes {dimension_semantics = [#tpu.dimension_semantics<parallel>, #tpu.dimension_semantics<parallel>, #tpu.dimension_semantics<arbitrary>], iteration_bounds = array<i64: 2, 1, 1>, scalar_prefetch = 0 : i64, scratch_operands = 0 : i64, tpu.core_type = #tpu.core_type<tc>, window_params = [{transform_indices = @transform_0, window_bounds = array<i64: 256, 4>}, {transform_indices = @transform_1, window_bounds = array<i64: 4, 64>}, {transform_indices = @transform_2, window_bounds = array<i64: 1, 64>}, {transform_indices = @transform_3, window_bounds = array<i64: 1, 64>}, {transform_indices = @transform_4, window_bounds = array<i64: 256, 64>}]} {
    %c0 = arith.constant 0 : index
    %c0_0 = arith.constant 0 : index
    %0 = vector.load %arg3[%c0, %c0_0] : memref<256x4xbf16, #tpu.memory_space<vmem>>, vector<256x4xbf16>
    %c0_1 = arith.constant 0 : index
    %c0_2 = arith.constant 0 : index
    %1 = vector.load %arg4[%c0_1, %c0_2] : memref<4x64xbf16, #tpu.memory_space<vmem>>, vector<4x64xbf16>
    %cst = arith.constant dense<0.000000e+00> : vector<256x64xf32>
    %2 = tpu.matmul %0, %1, %cst {dimension_numbers = #tpu.dot_dimension_numbers<[1], [0], [0], [1], [0, 0, 1, 1], [], []>} : vector<256x4xbf16>, vector<4x64xbf16>, vector<256x64xf32> -> vector<256x64xf32>
    %c0_3 = arith.constant 0 : index
    %c0_4 = arith.constant 0 : index
    %3 = vector.load %arg5[%c0_3, %c0_4] : memref<1x64xf32, #tpu.memory_space<vmem>>, vector<1x64xf32>
    %4 = vector.broadcast %3 : vector<1x64xf32> to vector<256x64xf32>
    %5 = arith.mulf %2, %4 : vector<256x64xf32>
    %c0_5 = arith.constant 0 : index
    %c0_6 = arith.constant 0 : index
    %6 = vector.load %arg6[%c0_5, %c0_6] : memref<1x64xf32, #tpu.memory_space<vmem>>, vector<1x64xf32>
    %7 = vector.broadcast %6 : vector<1x64xf32> to vector<256x64xf32>
    %8 = arith.addf %5, %7 : vector<256x64xf32>
    %cst_7 = arith.constant 0.000000e+00 : f32
    %9 = vector.broadcast %cst_7 : f32 to vector<256x64xf32>
    %10 = arith.maximumf %8, %9 : vector<256x64xf32>
    %c0_8 = arith.constant 0 : index
    %c0_9 = arith.constant 0 : index
    %11 = vector.load %arg7[%c0_8, %c0_9] : memref<256x64xf32, #tpu.memory_space<vmem>>, vector<256x64xf32>
    tpu.vector_store %arg7[%c0_8, %c0_9], %10 {strides = array<i32>} : memref<256x64xf32, #tpu.memory_space<vmem>>, vector<256x64xf32>,
    return
  }
  func.func @transform_0(%arg0: i32, %arg1: i32, %arg2: i32) -> (i32, i32) {
    %c0_i32 = arith.constant 0 : i32
    return %arg0, %arg2 : i32, i32
  }
  func.func @transform_1(%arg0: i32, %arg1: i32, %arg2: i32) -> (i32, i32) {
    %c0_i32 = arith.constant 0 : i32
    return %arg2, %arg1 : i32, i32
  }
  func.func @transform_2(%arg0: i32, %arg1: i32, %arg2: i32) -> (i32, i32) {
    %c0_i32 = arith.constant 0 : i32
    %c0_i32_0 = arith.constant 0 : i32
    return %c0_i32, %arg1 : i32, i32
  }
  func.func @transform_3(%arg0: i32, %arg1: i32, %arg2: i32) -> (i32, i32) {
    %c0_i32 = arith.constant 0 : i32
    %c0_i32_0 = arith.constant 0 : i32
    return %c0_i32, %arg1 : i32, i32
  }
  func.func @transform_4(%arg0: i32, %arg1: i32, %arg2: i32) -> (i32, i32) {
    %c0_i32 = arith.constant 0 : i32
    return %arg0, %arg1 : i32, i32
  }
}

module attributes {stable_mosaic.version = 11 : i64} {
  func.func @_gemm_bn_act_kernel(%arg0: i32, %arg1: i32, %arg2: i32, %arg3: memref<256x576xbf16, #tpu.memory_space<vmem>>, %arg4: memref<576x32xbf16, #tpu.memory_space<vmem>>, %arg5: memref<1x32xf32, #tpu.memory_space<vmem>>, %arg6: memref<1x32xf32, #tpu.memory_space<vmem>>, %arg7: memref<256x32xf32, #tpu.memory_space<vmem>>) attributes {dimension_semantics = [#tpu.dimension_semantics<parallel>, #tpu.dimension_semantics<parallel>, #tpu.dimension_semantics<arbitrary>], iteration_bounds = array<i64: 2, 1, 1>, scalar_prefetch = 0 : i64, scratch_operands = 0 : i64, tpu.core_type = #tpu.core_type<tc>, window_params = [{transform_indices = @transform_0, window_bounds = array<i64: 256, 576>}, {transform_indices = @transform_1, window_bounds = array<i64: 576, 32>}, {transform_indices = @transform_2, window_bounds = array<i64: 1, 32>}, {transform_indices = @transform_3, window_bounds = array<i64: 1, 32>}, {transform_indices = @transform_4, window_bounds = array<i64: 256, 32>}]} {
    %c0 = arith.constant 0 : index
    %c0_0 = arith.constant 0 : index
    %0 = vector.load %arg3[%c0, %c0_0] : memref<256x576xbf16, #tpu.memory_space<vmem>>, vector<256x576xbf16>
    %c0_1 = arith.constant 0 : index
    %c0_2 = arith.constant 0 : index
    %1 = vector.load %arg4[%c0_1, %c0_2] : memref<576x32xbf16, #tpu.memory_space<vmem>>, vector<576x32xbf16>
    %cst = arith.constant dense<0.000000e+00> : vector<256x32xf32>
    %2 = tpu.matmul %0, %1, %cst {dimension_numbers = #tpu.dot_dimension_numbers<[1], [0], [0], [1], [0, 0, 1, 1], [], []>} : vector<256x576xbf16>, vector<576x32xbf16>, vector<256x32xf32> -> vector<256x32xf32>
    %c0_3 = arith.constant 0 : index
    %c0_4 = arith.constant 0 : index
    %3 = vector.load %arg5[%c0_3, %c0_4] : memref<1x32xf32, #tpu.memory_space<vmem>>, vector<1x32xf32>
    %4 = vector.broadcast %3 : vector<1x32xf32> to vector<256x32xf32>
    %5 = arith.mulf %2, %4 : vector<256x32xf32>
    %c0_5 = arith.constant 0 : index
    %c0_6 = arith.constant 0 : index
    %6 = vector.load %arg6[%c0_5, %c0_6] : memref<1x32xf32, #tpu.memory_space<vmem>>, vector<1x32xf32>
    %7 = vector.broadcast %6 : vector<1x32xf32> to vector<256x32xf32>
    %8 = arith.addf %5, %7 : vector<256x32xf32>
    %cst_7 = arith.constant 0.000000e+00 : f32
    %9 = vector.broadcast %cst_7 : f32 to vector<256x32xf32>
    %10 = arith.maximumf %8, %9 : vector<256x32xf32>
    %c0_8 = arith.constant 0 : index
    %c0_9 = arith.constant 0 : index
    %11 = vector.load %arg7[%c0_8, %c0_9] : memref<256x32xf32, #tpu.memory_space<vmem>>, vector<256x32xf32>
    tpu.vector_store %arg7[%c0_8, %c0_9], %10 {strides = array<i32>} : memref<256x32xf32, #tpu.memory_space<vmem>>, vector<256x32xf32>,
    return
  }
  func.func @transform_0(%arg0: i32, %arg1: i32, %arg2: i32) -> (i32, i32) {
    %c0_i32 = arith.constant 0 : i32
    return %arg0, %arg2 : i32, i32
  }
  func.func @transform_1(%arg0: i32, %arg1: i32, %arg2: i32) -> (i32, i32) {
    %c0_i32 = arith.constant 0 : i32
    return %arg2, %arg1 : i32, i32
  }
  func.func @transform_2(%arg0: i32, %arg1: i32, %arg2: i32) -> (i32, i32) {
    %c0_i32 = arith.constant 0 : i32
    %c0_i32_0 = arith.constant 0 : i32
    return %c0_i32, %arg1 : i32, i32
  }
  func.func @transform_3(%arg0: i32, %arg1: i32, %arg2: i32) -> (i32, i32) {
    %c0_i32 = arith.constant 0 : i32
    %c0_i32_0 = arith.constant 0 : i32
    return %c0_i32, %arg1 : i32, i32
  }
  func.func @transform_4(%arg0: i32, %arg1: i32, %arg2: i32) -> (i32, i32) {
    %c0_i32 = arith.constant 0 : i32
    return %arg0, %arg1 : i32, i32
  }
}

module attributes {stable_mosaic.version = 11 : i64} {
  func.func @_gemm_bn_act_kernel(%arg0: i32, %arg1: i32, %arg2: i32, %arg3: memref<256x288xbf16, #tpu.memory_space<vmem>>, %arg4: memref<288x2xbf16, #tpu.memory_space<vmem>>, %arg5: memref<1x2xf32, #tpu.memory_space<vmem>>, %arg6: memref<1x2xf32, #tpu.memory_space<vmem>>, %arg7: memref<256x2xf32, #tpu.memory_space<vmem>>) attributes {dimension_semantics = [#tpu.dimension_semantics<parallel>, #tpu.dimension_semantics<parallel>, #tpu.dimension_semantics<arbitrary>], iteration_bounds = array<i64: 2, 1, 1>, scalar_prefetch = 0 : i64, scratch_operands = 0 : i64, tpu.core_type = #tpu.core_type<tc>, window_params = [{transform_indices = @transform_0, window_bounds = array<i64: 256, 288>}, {transform_indices = @transform_1, window_bounds = array<i64: 288, 2>}, {transform_indices = @transform_2, window_bounds = array<i64: 1, 2>}, {transform_indices = @transform_3, window_bounds = array<i64: 1, 2>}, {transform_indices = @transform_4, window_bounds = array<i64: 256, 2>}]} {
    %c0 = arith.constant 0 : index
    %c0_0 = arith.constant 0 : index
    %0 = vector.load %arg3[%c0, %c0_0] : memref<256x288xbf16, #tpu.memory_space<vmem>>, vector<256x288xbf16>
    %c0_1 = arith.constant 0 : index
    %c0_2 = arith.constant 0 : index
    %1 = vector.load %arg4[%c0_1, %c0_2] : memref<288x2xbf16, #tpu.memory_space<vmem>>, vector<288x2xbf16>
    %cst = arith.constant dense<0.000000e+00> : vector<256x2xf32>
    %2 = tpu.matmul %0, %1, %cst {dimension_numbers = #tpu.dot_dimension_numbers<[1], [0], [0], [1], [0, 0, 1, 1], [], []>} : vector<256x288xbf16>, vector<288x2xbf16>, vector<256x2xf32> -> vector<256x2xf32>
    %c0_3 = arith.constant 0 : index
    %c0_4 = arith.constant 0 : index
    %3 = vector.load %arg5[%c0_3, %c0_4] : memref<1x2xf32, #tpu.memory_space<vmem>>, vector<1x2xf32>
    %4 = vector.broadcast %3 : vector<1x2xf32> to vector<256x2xf32>
    %5 = arith.mulf %2, %4 : vector<256x2xf32>
    %c0_5 = arith.constant 0 : index
    %c0_6 = arith.constant 0 : index
    %6 = vector.load %arg6[%c0_5, %c0_6] : memref<1x2xf32, #tpu.memory_space<vmem>>, vector<1x2xf32>
    %7 = vector.broadcast %6 : vector<1x2xf32> to vector<256x2xf32>
    %8 = arith.addf %5, %7 : vector<256x2xf32>
    %cst_7 = arith.constant 0.000000e+00 : f32
    %9 = vector.broadcast %cst_7 : f32 to vector<256x2xf32>
    %10 = arith.maximumf %8, %9 : vector<256x2xf32>
    %c0_8 = arith.constant 0 : index
    %c0_9 = arith.constant 0 : index
    %11 = vector.load %arg7[%c0_8, %c0_9] : memref<256x2xf32, #tpu.memory_space<vmem>>, vector<256x2xf32>
    tpu.vector_store %arg7[%c0_8, %c0_9], %10 {strides = array<i32>} : memref<256x2xf32, #tpu.memory_space<vmem>>, vector<256x2xf32>,
    return
  }
  func.func @transform_0(%arg0: i32, %arg1: i32, %arg2: i32) -> (i32, i32) {
    %c0_i32 = arith.constant 0 : i32
    return %arg0, %arg2 : i32, i32
  }
  func.func @transform_1(%arg0: i32, %arg1: i32, %arg2: i32) -> (i32, i32) {
    %c0_i32 = arith.constant 0 : i32
    return %arg2, %arg1 : i32, i32
  }
  func.func @transform_2(%arg0: i32, %arg1: i32, %arg2: i32) -> (i32, i32) {
    %c0_i32 = arith.constant 0 : i32
    %c0_i32_0 = arith.constant 0 : i32
    return %c0_i32, %arg1 : i32, i32
  }
  func.func @transform_3(%arg0: i32, %arg1: i32, %arg2: i32) -> (i32, i32) {
    %c0_i32 = arith.constant 0 : i32
    %c0_i32_0 = arith.constant 0 : i32
    return %c0_i32, %arg1 : i32, i32
  }
  func.func @transform_4(%arg0: i32, %arg1: i32, %arg2: i32) -> (i32, i32) {
    %c0_i32 = arith.constant 0 : i32
    return %arg0, %arg1 : i32, i32
  }
}

module attributes {stable_mosaic.version = 11 : i64} {
  func.func @_score_kernel(%arg0: i32, %arg1: memref<2x256xf32, #tpu.memory_space<vmem>>, %arg2: memref<2x256xf32, #tpu.memory_space<vmem>>, %arg3: memref<2x1xf32, #tpu.memory_space<vmem>>) attributes {dimension_semantics = [#tpu.dimension_semantics<arbitrary>], iteration_bounds = array<i64: 1>, scalar_prefetch = 0 : i64, scratch_operands = 0 : i64, tpu.core_type = #tpu.core_type<tc>, window_params = [{pipeline_mode = #tpu.pipeline_mode<synchronous>, transform_indices = @transform_0, window_bounds = array<i64: 2, 256>}, {pipeline_mode = #tpu.pipeline_mode<synchronous>, transform_indices = @transform_1, window_bounds = array<i64: 2, 256>}, {pipeline_mode = #tpu.pipeline_mode<synchronous>, transform_indices = @transform_2, window_bounds = array<i64: 2, 1>}]} {
    %c0 = arith.constant 0 : index
    %c0_0 = arith.constant 0 : index
    %0 = vector.load %arg2[%c0, %c0_0] : memref<2x256xf32, #tpu.memory_space<vmem>>, vector<2x256xf32>
    %cst = arith.constant 0.000000e+00 : f32
    %1 = vector.broadcast %cst : f32 to vector<2x256xf32>
    %2 = arith.maximumf %0, %1 : vector<2x256xf32>
    %cst_1 = arith.constant 9.99999993E-9 : f32
    %3 = vector.broadcast %cst_1 : f32 to vector<2x256xf32>
    %4 = arith.addf %2, %3 : vector<2x256xf32>
    %cst_2 = arith.constant dense<0.000000e+00> : vector<2xf32>
    %5 = vector.multi_reduction <add>, %4, %cst_2 [1] : vector<2x256xf32> to vector<2xf32>
    %6 = vector.shape_cast %5 : vector<2xf32> to vector<2x1xf32>
    %c0_3 = arith.constant 0 : index
    %c0_4 = arith.constant 0 : index
    %7 = vector.load %arg1[%c0_3, %c0_4] : memref<2x256xf32, #tpu.memory_space<vmem>>, vector<2x256xf32>
    %8 = arith.mulf %7, %4 : vector<2x256xf32>
    %cst_5 = arith.constant dense<0.000000e+00> : vector<2xf32>
    %9 = vector.multi_reduction <add>, %8, %cst_5 [1] : vector<2x256xf32> to vector<2xf32>
    %10 = vector.shape_cast %9 : vector<2xf32> to vector<2x1xf32>
    %11 = tpu.reciprocal %6 {approx = true} : vector<2x1xf32> -> vector<2x1xf32>
    %12 = arith.mulf %10, %11 : vector<2x1xf32>
    %c0_6 = arith.constant 0 : index
    %c0_7 = arith.constant 0 : index
    %13 = vector.load %arg3[%c0_6, %c0_7] : memref<2x1xf32, #tpu.memory_space<vmem>>, vector<2x1xf32>
    tpu.vector_store %arg3[%c0_6, %c0_7], %12 {strides = array<i32>} : memref<2x1xf32, #tpu.memory_space<vmem>>, vector<2x1xf32>,
    return
  }
  func.func @transform_0(%arg0: i32) -> (i32, i32) {
    %c0_i32 = arith.constant 0 : i32
    %c0_i32_0 = arith.constant 0 : i32
    %c0_i32_1 = arith.constant 0 : i32
    return %c0_i32, %c0_i32_0 : i32, i32
  }
  func.func @transform_1(%arg0: i32) -> (i32, i32) {
    %c0_i32 = arith.constant 0 : i32
    %c0_i32_0 = arith.constant 0 : i32
    %c0_i32_1 = arith.constant 0 : i32
    return %c0_i32, %c0_i32_0 : i32, i32
  }
  func.func @transform_2(%arg0: i32) -> (i32, i32) {
    %c0_i32 = arith.constant 0 : i32
    %c0_i32_0 = arith.constant 0 : i32
    %c0_i32_1 = arith.constant 0 : i32
    return %c0_i32, %c0_i32_0 : i32, i32
  }
}

</mosaic_0001>

<bundles_post_ra>
// kernel: tile.54
= control target key start
LH: loop header
LB: loop body
LE: loop exit
PB: predicated region body
PF: predicated region fallthrough
CT: control target
= control target key end

     0   :  { %vm8_vm0 = vcmask 195584   ;;  %s40_s8 = smov 24   ;;  %s41_s9 = smov 48   ;;  %vm14_vm1 = vcmask 785984   ;;  %vm20_vm2 = vcmask 589184   ;;  %vm26_vm3 = vcmask 392384   ;;  %s58_s0 = inlined_call_operand.vmem [shape: f32[4,24], index: 0, kind: input, shape index: {}]   ;;  %s59_s1 = inlined_call_operand.vmem [shape: f32[1,96], index: 1, kind: output, shape index: {}]  }
   0x1   :  { %v5_v0 = vld [vmem:[%s58_s0] sm:$0xf]  ;;  %s39_s0 = smov 72  }
   0x2   :  { %6 = vst [vmem:[#allocation1] sm:$0xf] %v5_v0 }
   0x9   :  { %v11_v1 = vld [vmem:[#allocation1 + $0x3] sm:$0x1]   ;;  %v23_v2 = vld [vmem:[#allocation1 + $0x1] sm:$0x1]   ;;  %v7_v3 = vld [vmem:[#allocation1] sm:$0x1]  }
   0xa   :  { %12 = vrot.lane.b32.xlu0 %v11_v1, %s39_s0  ;;  %24 = vrot.lane.b32.xlu1 %v23_v2, %s40_s8  ;;  %v17_v4 = vld [vmem:[#allocation1 + $0x2] sm:$0x1]   ;;  %9 = vst.msk [vmem:[#allocation0] sm:$0x1] %vm8_vm0, %v7_v3  }
   0xe   :  { %18 = vrot.lane.b32.xlu0 %v17_v4, %s41_s9 }
  0x7c   :  { %v13_v5 = vpop.permute.xlu0 %12   ;;  %v25_v6 = vpop.permute.xlu1 %24  }
  0x7d   :  { %15 = vst.msk [vmem:[#allocation0] sm:$0x1] %vm14_vm1, %v13_v5  }
  0x80   :  { %v19_v7 = vpop.permute.xlu0 %18  }
  0x81   :  { %21 = vst.msk [vmem:[#allocation0] sm:$0x1] %vm20_vm2, %v19_v7  }
  0x82   :  { %27 = vst.msk [vmem:[#allocation0] sm:$0x1] %vm26_vm3, %v25_v6  }
  0x89   :  { %v32_v8 = vld [vmem:[#allocation0] sm:$0x1] }
  0x8a   :  { %35 = vst [vmem:[%s59_s1] sm:$0x1] %v32_v8 }

// kernel: tile.62
= control target key start
LH: loop header
LB: loop body
LE: loop exit
PB: predicated region body
PF: predicated region fallthrough
CT: control target
= control target key end

     0   :  { %vm14_vm0 = vcmask 261120   ;;  %vm8_vm1 = vcmask 392192   ;;  %s55_s8 = smov 96   ;;  %s56_s9 = smov 48   ;;  %vm18_vm2 = vcmask 130048   ;;  %vm21_vm3 = vcmask 1048320   ;;  %s76_s0 = inlined_call_operand.vmem [shape: f32[4,48], index: 0, kind: input, shape index: {}]   ;;  %s77_s1 = inlined_call_operand.vmem [shape: f32[1,192], index: 1, kind: output, shape index: {}]  }
   0x1   :  { %v5_v0 = vld [vmem:[%s76_s0] sm:$0xf]  ;;  %s54_s0 = smov 16   ;;  %vm33_vm4 = vcmask 523392   ;;  %vm27_vm5 = vcmask 785792  }
   0x2   :  { %6 = vst [vmem:[#allocation1] sm:$0xf] %v5_v0 }
   0x9   :  { %v11_v1 = vld [vmem:[#allocation1 + $0x2] sm:$0x1]   ;;  %v30_v3 = vld [vmem:[#allocation1 + $0x3] sm:$0x1]   ;;  %v7_v5 = vld [vmem:[#allocation1] sm:$0x1]  }
   0xa   :  { %v13_v2 = vld [vmem:[#allocation1 + $0x2] sm:$0x1]   ;;  %31 = vrot.lane.b32.xlu1 %v30_v3, %s54_s0  ;;  %9 = vst.msk [vmem:[#allocation0] sm:$0x1] %vm8_vm1, %v7_v5   ;;  %v24_v6 = vld [vmem:[#allocation1 + $0x1] sm:$0x1]  }
   0xb   :  { %v15_v4 = vsel %vm14_vm0, %v13_v2, %v11_v1 }
   0xc   :  { %16 = vrot.lane.b32.xlu0 %v15_v4, %s55_s8 }
  0x10   :  { %25 = vrot.lane.b32.xlu0 %v24_v6, %s56_s9 }
  0x7c   :  { %v32_v7 = vpop.permute.xlu1 %31  }
  0x7e   :  { %v17_v8 = vpop.permute.xlu0 %16  }
  0x7f   :  { %20 = vst.msk [vmem:[#allocation0 + $0x8] sm:$0x1] %vm18_vm2, %v17_v8  }
  0x80   :  { %22 = vst.msk [vmem:[#allocation0] sm:$0x1] %vm21_vm3, %v17_v8  }
  0x81   :  { %35 = vst.msk [vmem:[#allocation0 + $0x8] sm:$0x1] %vm33_vm4, %v32_v7  }
  0x82   :  { %v26_v9 = vpop.permute.xlu0 %25  }
  0x83   :  { %28 = vst.msk [vmem:[#allocation0] sm:$0x1] %vm27_vm5, %v26_v9  }
  0x88   :  { %v45_v10 = vld [vmem:[#allocation0 + $0x8] sm:$0x1] }
  0x89   :  { %50 = vst [vmem:[%s77_s1 + $0x1] sm:$0x1] %v45_v10 }
  0x8a   :  { %v40_v11 = vld [vmem:[#allocation0] sm:$0x1] }
  0x8b   :  { %43 = vst [vmem:[%s77_s1] sm:$0x1] %v40_v11 }

// kernel: tile.50
= control target key start
LH: loop header
LB: loop body
LE: loop exit
PB: predicated region body
PF: predicated region fallthrough
CT: control target
= control target key end

     0   :  { %2 = vsyncpa [#allocation1], 0  ;;  %s42_s6 = smov [#allocation0]   ;;  %s59_s0 = inlined_call_operand.hbm [shape: f32[24], index: 0, kind: input, shape index: {}]   ;;  %s60_s1 = inlined_call_operand.vmem [shape: f32[4,24], index: 1, kind: output, shape index: {}]  }
   0x1   :  { %s9_s7 = sshll.u32 %s42_s6, 4  ;;  %s10_s7 = int_to_ptr.vmem [resolvable:$true] %s9_s7 }
   0x2   :  { %s28_s8 = scalar_lea.vmem %s10_s7, 16  ;;  %s32_s9 = scalar_lea.vmem %s10_s7, 32 }
   0x3   :  { %p29_p0 = scmp.ne.s32.totalorder %s10_s7, %s28_s8  ;;  %p33_p1 = scmp.lt.s32.totalorder %s10_s7, %s10_s7 }
   0x4   :  { %p34_p2 = scmp.lt.s32.totalorder %s32_s9, %s28_s8 }
   0x6   :  { %p35_p3 = por %p34_p2, %p33_p1 }
   0x8   :  { %p36_p4 = pnand %p35_p3, %p29_p0 }
   0xa   :  { %39 = shalt.err (!%p36_p4)
}
   0xb   :  { %12 = dma.hbm_to_vmem [thread:$0]  %s59_s0, 16, %s10_s7, [#allocation1]  }
   0xc   :  { %40 = dma.done.wait [#allocation1], 16  }
   0xd   :  { %41 = vsyncadd [#allocation1], 4294967280  ;;  %v16_v0 = vld [vmem:[#allocation0] ss:$0 sm:$0xff] }
   0xe   :  { %17 = vst [vmem:[%s60_s1] sm:$0xf] %v16_v0 }
   0xf   :  { %18 = vsyncpa [#allocation1], 1 }

// kernel: tile.58
= control target key start
LH: loop header
LB: loop body
LE: loop exit
PB: predicated region body
PF: predicated region fallthrough
CT: control target
= control target key end

     0   :  { %2 = vsyncpa [#allocation1], 0  ;;  %s42_s6 = smov [#allocation0]   ;;  %s59_s0 = inlined_call_operand.hbm [shape: f32[48], index: 0, kind: input, shape index: {}]   ;;  %s60_s1 = inlined_call_operand.vmem [shape: f32[4,48], index: 1, kind: output, shape index: {}]  }
   0x1   :  { %s9_s7 = sshll.u32 %s42_s6, 4  ;;  %s10_s7 = int_to_ptr.vmem [resolvable:$true] %s9_s7 }
   0x2   :  { %s28_s8 = scalar_lea.vmem %s10_s7, 16  ;;  %s32_s9 = scalar_lea.vmem %s10_s7, 32 }
   0x3   :  { %p29_p0 = scmp.ne.s32.totalorder %s10_s7, %s28_s8  ;;  %p33_p1 = scmp.lt.s32.totalorder %s10_s7, %s10_s7 }
   0x4   :  { %p34_p2 = scmp.lt.s32.totalorder %s32_s9, %s28_s8 }
   0x6   :  { %p35_p3 = por %p34_p2, %p33_p1 }
   0x8   :  { %p36_p4 = pnand %p35_p3, %p29_p0 }
   0xa   :  { %39 = shalt.err (!%p36_p4)
}
   0xb   :  { %12 = dma.hbm_to_vmem [thread:$0]  %s59_s0, 16, %s10_s7, [#allocation1]  }
   0xc   :  { %40 = dma.done.wait [#allocation1], 16  }
   0xd   :  { %41 = vsyncadd [#allocation1], 4294967280  ;;  %v16_v0 = vld [vmem:[#allocation0] ss:$0 sm:$0xff] }
   0xe   :  { %17 = vst [vmem:[%s60_s1] sm:$0xf] %v16_v0 }
   0xf   :  { %18 = vsyncpa [#allocation1], 1 }

// kernel: tile.74
= control target key start
LH: loop header
LB: loop body
LE: loop exit
PB: predicated region body
PF: predicated region fallthrough
CT: control target
= control target key end

     0   :  { %2 = vsyncpa [#allocation1], 0  ;;  %s42_s6 = smov [#allocation0]   ;;  %s59_s0 = inlined_call_operand.hbm [shape: f32[64], index: 0, kind: input, shape index: {}]   ;;  %s60_s1 = inlined_call_operand.vmem [shape: f32[4,64], index: 1, kind: output, shape index: {}]  }
   0x1   :  { %s9_s7 = sshll.u32 %s42_s6, 4  ;;  %s10_s7 = int_to_ptr.vmem [resolvable:$true] %s9_s7 }
   0x2   :  { %s28_s8 = scalar_lea.vmem %s10_s7, 16  ;;  %s32_s9 = scalar_lea.vmem %s10_s7, 32 }
   0x3   :  { %p29_p0 = scmp.ne.s32.totalorder %s10_s7, %s28_s8  ;;  %p33_p1 = scmp.lt.s32.totalorder %s10_s7, %s10_s7 }
   0x4   :  { %p34_p2 = scmp.lt.s32.totalorder %s32_s9, %s28_s8 }
   0x6   :  { %p35_p3 = por %p34_p2, %p33_p1 }
   0x8   :  { %p36_p4 = pnand %p35_p3, %p29_p0 }
   0xa   :  { %39 = shalt.err (!%p36_p4)
}
   0xb   :  { %12 = dma.hbm_to_vmem [thread:$0]  %s59_s0, 16, %s10_s7, [#allocation1]  }
   0xc   :  { %40 = dma.done.wait [#allocation1], 16  }
   0xd   :  { %41 = vsyncadd [#allocation1], 4294967280  ;;  %v16_v0 = vld [vmem:[#allocation0] ss:$0 sm:$0xff] }
   0xe   :  { %17 = vst [vmem:[%s60_s1] sm:$0xf] %v16_v0 }
   0xf   :  { %18 = vsyncpa [#allocation1], 1 }

// kernel: tile.78
= control target key start
LH: loop header
LB: loop body
LE: loop exit
PB: predicated region body
PF: predicated region fallthrough
CT: control target
= control target key end

     0   :  { %s7_s8 = smov 3  ;;  %vm9_vm0 = vcmask 523264   ;;  %s34_s9 = smov 64   ;;  %vm16_vm1 = vcmask 1048064   ;;  %s54_s0 = inlined_call_operand.vmem [shape: f32[4,64], index: 0, kind: input, shape index: {}]   ;;  %s55_s1 = inlined_call_operand.vmem [shape: f32[1,256], index: 1, kind: output, shape index: {}]  }
   0x1   :  { %v5_v0 = vld [vmem:[%s54_s0] sm:$0xf]  ;;  %s12_s0 = smov 3 }
   0x2   :  { %6 = vst [vmem:[#allocation1] sm:$0xf] %v5_v0 }
   0x9   :  { %v13_v1 = vld [vmem:[#allocation1 + $0x1] ss:$2 sm:%s12_s0]   ;;  %v8_v2 = vld [vmem:[#allocation1] ss:$2 sm:%s7_s8]  }
   0xa   :  { %14 = vrot.lane.b32.xlu0 %v13_v1, %s34_s9  ;;  %10 = vst.msk [vmem:[#allocation0] ss:$8 sm:$0x3] %vm9_vm0, %v8_v2  }
  0x7c   :  { %v15_v3 = vpop.permute.xlu0 %14  }
  0x7d   :  { %17 = vst.msk [vmem:[#allocation0] ss:$8 sm:$0x3] %vm16_vm1, %v15_v3  }
  0x84   :  { %v22_v4 = vld [vmem:[#allocation0] sm:$0x1]  ;;  %v27_v5 = vld [vmem:[#allocation0 + $0x8] sm:$0x1] }
  0x85   :  { %25 = vst [vmem:[%s55_s1] sm:$0x1] %v22_v4  ;;  %32 = vst [vmem:[%s55_s1 + $0x1] sm:$0x1] %v27_v5 }

// kernel: _lambda_.20
= control target key start
LH: loop header
LB: loop body
LE: loop exit
PB: predicated region body
PF: predicated region fallthrough
CT: control target
= control target key end

     0   :  { %s1112_s15 = smov 0   ;;  %s1114_s16 = smov 0   ;;  %s1329_s0 = inlined_call_operand.vmem [shape: bf16[512,27], index: 0, kind: input, shape index: {}]   ;;  %s1330_s1 = inlined_call_operand.vmem [shape: bf16[27,16], index: 1, kind: input, shape index: {}]   ;;  %s1331_s2 = inlined_call_operand.vmem [shape: f32[1,16], index: 2, kind: input, shape index: {}]   ;;  %s1332_s3 = inlined_call_operand.vmem [shape: f32[1,16], index: 3, kind: input, shape index: {}]   ;;  %s1333_s4 = inlined_call_operand.vmem [shape: f32[512,16], index: 4, kind: output, shape index: {}]  }
   0x1   :  { %s1116_s17 = smov 0  }
   0x2 LB: > { %s33_s18 = sadd.s32 1, %s1080_s16  ;;  %p918_p0 = scmp.ge.s32.totalorder %s1084_s17, 1  ;;  %s1084_s17 = sphi %s1116_s17, %s14_s17   ;;  %s1080_s16 = sphi %s1114_s16, %s1335_s16   ;;  %s1076_s15 = sphi %s1112_s15, %s1334_s15  }
   0x3   : > { %p35_p1 = scmp.ge.s32.totalorder %s33_s18, 2  ;;  %p221_p2 = scmp.lt.s32.totalorder %s1084_s17, 3 }
   0x5   : > { %s1337_s18 = smov (%p35_p1, %s33_s18), 0  ;;  %p222_p3 = pnand %p918_p0, %p221_p2 }
   0x6   : > { %s919_s21 = sshll.u32 (!%p222_p3), %s1076_s15, 5 }
   0x7   : > { %225 = sbr.rel (%p222_p3) target bundleno = 255 (0xff), region = 36  ;;  %p268_p4 = scmp.lt.s32.totalorder (!%p222_p3), %s919_s21, 63 }
   0xc   : > { %v1044_v0 = vld [vmem:[%s1330_s1 + $0x8] sm:$0x3f]   ;;  %vm477_vm0 = vcmask 1044480   ;;  %vm478_vm1 = vcmask 1045504   ;;  %v1086_v1 = vmov 65535   ;;  %v1045_v5 = vld [vmem:[%s1330_s1] sm:$0xff]  }
   0xd   : > { %v479_v2 = vsel %vm477_vm0, 4294967295, %v1086_v1  ;;  %s1339_s21 = smov (!%p268_p4, %s919_s21), 63  ;;  %vm428_vm2 = vcmask 220160   ;;  %v1179_v22 = vld [vmem:[%s1331_s2] ss:$0 sm:$0xff]  ;;  %vm755_vm3 = vcmask 130048  }
   0xe   : > { %v480_v3 = vsel %vm478_vm1, %v479_v2, 0  ;;  %s920_s24 = sshll.u32 %s1339_s21, 2  ;;  %v1184_v24 = vld [vmem:[%s1332_s3] ss:$0 sm:$0xff]  ;;  %s922_s6 = sshll.u32 %s1339_s21, 3 }
   0xf   : > { %v482_v4 = vand.u32 %v1044_v0, %v480_v3  ;;  %s1142_s27 = scalar_lea.vmem %s1329_s0, %s920_s24  ;;  %s1196_s9 = scalar_lea.vmem %s1333_s4, %s922_s6 }
  0x10   : > { %v1046_v6 = vld [vmem:[%s1142_s27] sm:$0xff]   ;;  %v1048_v8 = vld [vmem:[%s1142_s27 + $0x8] sm:$0xff]   ;;  %v1050_v10 = vld [vmem:[%s1142_s27 + $0x10] sm:$0xff]  }
  0x11   : > { %979 = vmatprep.subr.bf16.mxu0 %v482_v4  ;;  %1015 = vmatprep.subr.bf16.mxu1 %v482_v4  ;;  %v1047_v7 = vld [vmem:[%s1142_s27 + $0x40] sm:$0xff]   ;;  %v1049_v9 = vld [vmem:[%s1142_s27 + $0x48] sm:$0xff]   ;;  %v1051_v11 = vld [vmem:[%s1142_s27 + $0x50] sm:$0xff]  }
  0x12   : > { %980 = vmatpush3.bf16.msra.mxu0 %v482_v4  ;;  %1017 = vmatpush3.bf16.msra.mxu1 %v482_v4  ;;  %v1052_v12 = vld [vmem:[%s1142_s27 + $0x18] sm:$0xff]   ;;  %v1054_v14 = vld [vmem:[%s1142_s27 + $0x20] sm:$0xff]   ;;  %v1056_v16 = vld [vmem:[%s1142_s27 + $0x28] sm:$0xff]  }
  0x13   : > { %981 = vmatprep.subr.bf16.mxu0 %v1045_v5  ;;  %1016 = vmatprep.subr.bf16.mxu1 %v1045_v5  ;;  %v1053_v13 = vld [vmem:[%s1142_s27 + $0x58] sm:$0xff]   ;;  %v1055_v15 = vld [vmem:[%s1142_s27 + $0x60] sm:$0xff]   ;;  %v1057_v17 = vld [vmem:[%s1142_s27 + $0x68] sm:$0xff]  }
  0x14   : > { %983 = vmatprep.mubr.msk.bf16.mxu0 %vm428_vm2, %v1046_v6  ;;  %999 = vmatprep.mubr.msk.bf16.mxu1 %vm428_vm2, %v1047_v7  ;;  %v1058_v18 = vld [vmem:[%s1142_s27 + $0x30] sm:$0xff]   ;;  %v1060_v20 = vld [vmem:[%s1142_s27 + $0x38] sm:$0xff]  }
  0x15   : > { %v1059_v19 = vld [vmem:[%s1142_s27 + $0x70] sm:$0xff]   ;;  %v1061_v21 = vld [vmem:[%s1142_s27 + $0x78] sm:$0xff]  }
  0x16   : > { %982 = vmatpush3.bf16.msra.mxu0 %v1045_v5  ;;  %1018 = vmatpush3.bf16.msra.mxu1 %v1045_v5 }
  0x19   : > { %984 = vmatmul.mubr.msk.bf16.vlgmr.msra.gmra.mxu0 %vm428_vm2, %v1048_v8  ;;  %1000 = vmatmul.mubr.msk.bf16.vlgmr.msra.gmra.mxu1 %vm428_vm2, %v1049_v9 }
  0x1a   : > { %987 = vmatprep.mubr.msk.bf16.mxu0 %vm428_vm2, %v1050_v10  ;;  %1003 = vmatprep.mubr.msk.bf16.mxu1 %vm428_vm2, %v1051_v11 }
  0x21   : > { %988 = vmatmul.mubr.msk.bf16.gmra.mxu0 %vm428_vm2, %v1052_v12  ;;  %1004 = vmatmul.mubr.msk.bf16.gmra.mxu1 %vm428_vm2, %v1053_v13 }
  0x22   : > { %991 = vmatprep.mubr.msk.bf16.mxu0 %vm428_vm2, %v1054_v14  ;;  %1007 = vmatprep.mubr.msk.bf16.mxu1 %vm428_vm2, %v1055_v15 }
  0x29   : > { %992 = vmatmul.mubr.msk.bf16.gmra.mxu0 %vm428_vm2, %v1056_v16  ;;  %1008 = vmatmul.mubr.msk.bf16.gmra.mxu1 %vm428_vm2, %v1057_v17 }
  0x2a   : > { %995 = vmatprep.mubr.msk.bf16.mxu0 %vm428_vm2, %v1058_v18  ;;  %1011 = vmatprep.mubr.msk.bf16.mxu1 %vm428_vm2, %v1059_v19 }
  0x31   : > { %996 = vmatmul.mubr.msk.bf16.gmra.mxu0 %vm428_vm2, %v1060_v20  ;;  %1012 = vmatmul.mubr.msk.bf16.gmra.mxu1 %vm428_vm2, %v1061_v21 }
  0xd9   : > { %v985_v23 = vpop.f32.mrf.mxu0  ;;  %v1001_v25 = vpop.f32.mrf.mxu1 }
  0xda   : > { %v654_v26 = vmul.f32 %v985_v23, %v1179_v22  ;;  %v670_v27 = vmul.f32 %v1001_v25, %v1179_v22 }
  0xdb   : > { %v518_v28 = vpop.f32.mrf.mxu0  ;;  %v582_v29 = vpop.f32.mrf.mxu1 }
  0xdc   : > { %v693_v30 = vadd.f32 %v1184_v24, %v654_v26  ;;  %v709_v31 = vadd.f32 %v1184_v24, %v670_v27  ;;  %v652_v32 = vmul.f32 %v1179_v22, %v518_v28  ;;  %v668_v33 = vmul.f32 %v1179_v22, %v582_v29 }
  0xdd   : > { %v986_v34 = vpop.f32.mrf.mxu0  ;;  %v1002_v35 = vpop.f32.mrf.mxu1 }
  0xde   : > { %v725_v36 = vmax.f32 %v693_v30, 0.0  ;;  %v741_v37 = vmax.f32 %v709_v31, 0.0  ;;  %v691_v38 = vadd.f32 %v1184_v24, %v652_v32  ;;  %v707_v39 = vadd.f32 %v1184_v24, %v668_v33 }
  0xdf   : > { %v655_v40 = vmul.f32 %v986_v34, %v1179_v22  ;;  %v671_v41 = vmul.f32 %v1002_v35, %v1179_v22  ;;  %v521_v42 = vpop.f32.mrf.mxu0  ;;  %v585_v43 = vpop.f32.mrf.mxu1 }
  0xe0   : > { %758 = vst.msk [vmem:[%s1196_s9 + $0x10] sm:$0xff] %vm755_vm3, %v725_v36  ;;  %774 = vst.msk [vmem:[%s1196_s9 + $0x90] sm:$0xff] %vm755_vm3, %v741_v37  ;;  %v723_v44 = vmax.f32 %v691_v38, 0.0  ;;  %v739_v45 = vmax.f32 %v707_v39, 0.0  ;;  %v653_v46 = vmul.f32 %v1179_v22, %v521_v42  ;;  %v669_v47 = vmul.f32 %v1179_v22, %v585_v43 }
  0xe1   : > { %v694_v48 = vadd.f32 %v1184_v24, %v655_v40  ;;  %v710_v49 = vadd.f32 %v1184_v24, %v671_v41  ;;  %v989_v50 = vpop.f32.mrf.mxu0  ;;  %v1005_v51 = vpop.f32.mrf.mxu1 }
  0xe2   : > { %756 = vst.msk [vmem:[%s1196_s9] sm:$0xff] %vm755_vm3, %v723_v44  ;;  %772 = vst.msk [vmem:[%s1196_s9 + $0x80] sm:$0xff] %vm755_vm3, %v739_v45  ;;  %v692_v52 = vadd.f32 %v1184_v24, %v653_v46  ;;  %v708_v53 = vadd.f32 %v1184_v24, %v669_v47  ;;  %v658_v54 = vmul.f32 %v989_v50, %v1179_v22 }
  0xe3   : > { %v674_v55 = vmul.f32 %v1005_v51, %v1179_v22  ;;  %v726_v56 = vmax.f32 %v694_v48, 0.0  ;;  %v742_v57 = vmax.f32 %v710_v49, 0.0  ;;  %v534_v58 = vpop.f32.mrf.mxu0  ;;  %v598_v59 = vpop.f32.mrf.mxu1 }
  0xe4   : > { %v724_v60 = vmax.f32 %v692_v52, 0.0  ;;  %v740_v61 = vmax.f32 %v708_v53, 0.0  ;;  %v697_v62 = vadd.f32 %v1184_v24, %v658_v54  ;;  %v656_v0 = vmul.f32 %v1179_v22, %v534_v58 }
  0xe5   : > { %v713_v63 = vadd.f32 %v1184_v24, %v674_v55  ;;  %759 = vst.msk [vmem:[%s1196_s9 + $0x18] sm:$0xff] %vm755_vm3, %v726_v56  ;;  %775 = vst.msk [vmem:[%s1196_s9 + $0x98] sm:$0xff] %vm755_vm3, %v742_v57  ;;  %v672_v1 = vmul.f32 %v1179_v22, %v598_v59  ;;  %v990_v2 = vpop.f32.mrf.mxu0  ;;  %v1006_v3 = vpop.f32.mrf.mxu1 }
  0xe6   : > { %757 = vst.msk [vmem:[%s1196_s9 + $0x8] sm:$0xff] %vm755_vm3, %v724_v60  ;;  %773 = vst.msk [vmem:[%s1196_s9 + $0x88] sm:$0xff] %vm755_vm3, %v740_v61  ;;  %v729_v4 = vmax.f32 %v697_v62, 0.0  ;;  %v659_v6 = vmul.f32 %v990_v2, %v1179_v22  ;;  %v675_v7 = vmul.f32 %v1006_v3, %v1179_v22  ;;  %v695_v8 = vadd.f32 %v1184_v24, %v656_v0 }
  0xe7   : > { %v745_v5 = vmax.f32 %v713_v63, 0.0  ;;  %v711_v9 = vadd.f32 %v1184_v24, %v672_v1  ;;  %v537_v10 = vpop.f32.mrf.mxu0  ;;  %v601_v11 = vpop.f32.mrf.mxu1 }
  0xe8   : > { %762 = vst.msk [vmem:[%s1196_s9 + $0x30] sm:$0xff] %vm755_vm3, %v729_v4  ;;  %v698_v12 = vadd.f32 %v1184_v24, %v659_v6  ;;  %v714_v13 = vadd.f32 %v1184_v24, %v675_v7  ;;  %v657_v14 = vmul.f32 %v1179_v22, %v537_v10  ;;  %v673_v15 = vmul.f32 %v1179_v22, %v601_v11 }
  0xe9   : > { %778 = vst.msk [vmem:[%s1196_s9 + $0xb0] sm:$0xff] %vm755_vm3, %v745_v5  ;;  %v727_v16 = vmax.f32 %v695_v8, 0.0  ;;  %v743_v17 = vmax.f32 %v711_v9, 0.0  ;;  %v993_v18 = vpop.f32.mrf.mxu0  ;;  %v1009_v19 = vpop.f32.mrf.mxu1 }
  0xea   : > { %v730_v20 = vmax.f32 %v698_v12, 0.0  ;;  %v746_v21 = vmax.f32 %v714_v13, 0.0  ;;  %v696_v23 = vadd.f32 %v1184_v24, %v657_v14  ;;  %v712_v25 = vadd.f32 %v1184_v24, %v673_v15 }
  0xeb   : > { %760 = vst.msk [vmem:[%s1196_s9 + $0x20] sm:$0xff] %vm755_vm3, %v727_v16  ;;  %776 = vst.msk [vmem:[%s1196_s9 + $0xa0] sm:$0xff] %vm755_vm3, %v743_v17  ;;  %v662_v26 = vmul.f32 %v993_v18, %v1179_v22  ;;  %v678_v27 = vmul.f32 %v1009_v19, %v1179_v22  ;;  %v550_v28 = vpop.f32.mrf.mxu0  ;;  %v614_v29 = vpop.f32.mrf.mxu1 }
  0xec   : > { %763 = vst.msk [vmem:[%s1196_s9 + $0x38] sm:$0xff] %vm755_vm3, %v730_v20  ;;  %779 = vst.msk [vmem:[%s1196_s9 + $0xb8] sm:$0xff] %vm755_vm3, %v746_v21  ;;  %v728_v30 = vmax.f32 %v696_v23, 0.0  ;;  %v744_v31 = vmax.f32 %v712_v25, 0.0  ;;  %v660_v32 = vmul.f32 %v1179_v22, %v550_v28  ;;  %v676_v33 = vmul.f32 %v1179_v22, %v614_v29 }
  0xed   : > { %v701_v34 = vadd.f32 %v1184_v24, %v662_v26  ;;  %v717_v35 = vadd.f32 %v1184_v24, %v678_v27  ;;  %v994_v36 = vpop.f32.mrf.mxu0  ;;  %v1010_v37 = vpop.f32.mrf.mxu1 }
  0xee   : > { %761 = vst.msk [vmem:[%s1196_s9 + $0x28] sm:$0xff] %vm755_vm3, %v728_v30  ;;  %777 = vst.msk [vmem:[%s1196_s9 + $0xa8] sm:$0xff] %vm755_vm3, %v744_v31  ;;  %v699_v38 = vadd.f32 %v1184_v24, %v660_v32  ;;  %v715_v39 = vadd.f32 %v1184_v24, %v676_v33  ;;  %v663_v40 = vmul.f32 %v994_v36, %v1179_v22 }
  0xef   : > { %v679_v41 = vmul.f32 %v1010_v37, %v1179_v22  ;;  %v733_v42 = vmax.f32 %v701_v34, 0.0  ;;  %v749_v43 = vmax.f32 %v717_v35, 0.0  ;;  %v553_v44 = vpop.f32.mrf.mxu0  ;;  %v617_v45 = vpop.f32.mrf.mxu1 }
  0xf0   : > { %v731_v46 = vmax.f32 %v699_v38, 0.0  ;;  %v747_v47 = vmax.f32 %v715_v39, 0.0  ;;  %v702_v48 = vadd.f32 %v1184_v24, %v663_v40  ;;  %v661_v50 = vmul.f32 %v1179_v22, %v553_v44 }
  0xf1   : > { %v718_v49 = vadd.f32 %v1184_v24, %v679_v41  ;;  %766 = vst.msk [vmem:[%s1196_s9 + $0x50] sm:$0xff] %vm755_vm3, %v733_v42  ;;  %782 = vst.msk [vmem:[%s1196_s9 + $0xd0] sm:$0xff] %vm755_vm3, %v749_v43  ;;  %v677_v51 = vmul.f32 %v1179_v22, %v617_v45  ;;  %v997_v52 = vpop.f32.mrf.mxu0  ;;  %v1013_v53 = vpop.f32.mrf.mxu1 }
  0xf2   : > { %764 = vst.msk [vmem:[%s1196_s9 + $0x40] sm:$0xff] %vm755_vm3, %v731_v46  ;;  %780 = vst.msk [vmem:[%s1196_s9 + $0xc0] sm:$0xff] %vm755_vm3, %v747_v47  ;;  %v734_v54 = vmax.f32 %v702_v48, 0.0  ;;  %v666_v56 = vmul.f32 %v997_v52, %v1179_v22  ;;  %v682_v57 = vmul.f32 %v1013_v53, %v1179_v22  ;;  %v700_v58 = vadd.f32 %v1184_v24, %v661_v50 }
  0xf3   : > { %v750_v55 = vmax.f32 %v718_v49, 0.0  ;;  %v716_v59 = vadd.f32 %v1184_v24, %v677_v51  ;;  %v566_v60 = vpop.f32.mrf.mxu0  ;;  %v630_v61 = vpop.f32.mrf.mxu1 }
  0xf4   : > { %767 = vst.msk [vmem:[%s1196_s9 + $0x58] sm:$0xff] %vm755_vm3, %v734_v54  ;;  %v705_v62 = vadd.f32 %v1184_v24, %v666_v56  ;;  %v721_v63 = vadd.f32 %v1184_v24, %v682_v57  ;;  %v664_v0 = vmul.f32 %v1179_v22, %v566_v60  ;;  %v680_v1 = vmul.f32 %v1179_v22, %v630_v61 }
  0xf5   : > { %783 = vst.msk [vmem:[%s1196_s9 + $0xd8] sm:$0xff] %vm755_vm3, %v750_v55  ;;  %v732_v2 = vmax.f32 %v700_v58, 0.0  ;;  %v748_v3 = vmax.f32 %v716_v59, 0.0  ;;  %v998_v4 = vpop.f32.mrf.mxu0  ;;  %v1014_v5 = vpop.f32.mrf.mxu1 }
  0xf6   : > { %v737_v6 = vmax.f32 %v705_v62, 0.0  ;;  %v753_v7 = vmax.f32 %v721_v63, 0.0  ;;  %v703_v8 = vadd.f32 %v1184_v24, %v664_v0  ;;  %v719_v9 = vadd.f32 %v1184_v24, %v680_v1 }
  0xf7   : > { %765 = vst.msk [vmem:[%s1196_s9 + $0x48] sm:$0xff] %vm755_vm3, %v732_v2  ;;  %781 = vst.msk [vmem:[%s1196_s9 + $0xc8] sm:$0xff] %vm755_vm3, %v748_v3  ;;  %v667_v10 = vmul.f32 %v998_v4, %v1179_v22  ;;  %v683_v11 = vmul.f32 %v1014_v5, %v1179_v22  ;;  %v569_v12 = vpop.f32.mrf.mxu0  ;;  %v633_v13 = vpop.f32.mrf.mxu1 }
  0xf8   : > { %770 = vst.msk [vmem:[%s1196_s9 + $0x70] sm:$0xff] %vm755_vm3, %v737_v6  ;;  %786 = vst.msk [vmem:[%s1196_s9 + $0xf0] sm:$0xff] %vm755_vm3, %v753_v7  ;;  %v735_v14 = vmax.f32 %v703_v8, 0.0  ;;  %v751_v15 = vmax.f32 %v719_v9, 0.0  ;;  %v665_v16 = vmul.f32 %v1179_v22, %v569_v12  ;;  %v681_v17 = vmul.f32 %v1179_v22, %v633_v13 }
  0xf9   : > { %v706_v18 = vadd.f32 %v1184_v24, %v667_v10  ;;  %v722_v19 = vadd.f32 %v1184_v24, %v683_v11 }
  0xfa   : > { %768 = vst.msk [vmem:[%s1196_s9 + $0x60] sm:$0xff] %vm755_vm3, %v735_v14  ;;  %784 = vst.msk [vmem:[%s1196_s9 + $0xe0] sm:$0xff] %vm755_vm3, %v751_v15  ;;  %v704_v20 = vadd.f32 %v1184_v24, %v665_v16  ;;  %v720_v21 = vadd.f32 %v1184_v24, %v681_v17 }
  0xfb   : > { %v738_v23 = vmax.f32 %v706_v18, 0.0  ;;  %v754_v25 = vmax.f32 %v722_v19, 0.0 }
  0xfc   : > { %v736_v26 = vmax.f32 %v704_v20, 0.0  ;;  %v752_v27 = vmax.f32 %v720_v21, 0.0 }
  0xfd   : > { %771 = vst.msk [vmem:[%s1196_s9 + $0x78] sm:$0xff] %vm755_vm3, %v738_v23  ;;  %787 = vst.msk [vmem:[%s1196_s9 + $0xf8] sm:$0xff] %vm755_vm3, %v754_v25 }
  0xfe   : > { %769 = vst.msk [vmem:[%s1196_s9 + $0x68] sm:$0xff] %vm755_vm3, %v736_v26  ;;  %785 = vst.msk [vmem:[%s1196_s9 + $0xe8] sm:$0xff] %vm755_vm3, %v752_v27 }
  0xff PF: > { %s14_s17 = sadd.s32 1, %s1084_s17   ;;  %s1334_s15 = smov %s1080_s16 }
 0x100   : > { %p11_p5 = scmp.ge.s32.totalorder %s14_s17, 4   ;;  %s1335_s16 = smov %s1337_s18 }
 0x102   :  { %13 = sbr.rel (!%p11_p5) target bundleno = 2 (0x2), region = 75 }

// kernel: _lambda_.21
= control target key start
LH: loop header
LB: loop body
LE: loop exit
PB: predicated region body
PF: predicated region fallthrough
CT: control target
= control target key end

     0   :  { %v470_v0 = vmov 0   ;;  %vm178_vm0 = vcmask 130048   ;;  %vm362_vm1 = vcmask 195584   ;;  %s685_s1 = inlined_call_operand.vmem [shape: bf16[144,24], index: 1, kind: input, shape index: {}]   ;;  %s686_s0 = inlined_call_operand.vmem [shape: bf16[128,144], index: 0, kind: input, shape index: {}]   ;;  %s687_s2 = inlined_call_operand.vmem [shape: f32[1,24], index: 2, kind: input, shape index: {}]   ;;  %s688_s3 = inlined_call_operand.vmem [shape: f32[1,24], index: 3, kind: input, shape index: {}]   ;;  %s689_s4 = inlined_call_operand.vmem [shape: f32[128,24], index: 4, kind: output, shape index: {}]  }
   0x1   :  { %203 = vmatprep.subr.bf16.mxu0 %v470_v0  ;;  %418 = vmatprep.subr.bf16.mxu1 %v470_v0  ;;  %v437_v1 = vld [vmem:[%s685_s1 + $0x38] sm:$0xff]   ;;  %v438_v2 = vld [vmem:[%s685_s1 + $0x30] sm:$0xff]   ;;  %v439_v3 = vld [vmem:[%s685_s1 + $0x28] sm:$0xff]  }
   0x2   :  { %204 = vmatpush1.bf16.msra.mxu0 %v437_v1  ;;  %427 = vmatpush1.bf16.msra.mxu1 %v437_v1  ;;  %v440_v4 = vld [vmem:[%s685_s1 + $0x20] sm:$0xff]   ;;  %v441_v7 = vld [vmem:[%s685_s1 + $0x18] sm:$0xff]   ;;  %v442_v8 = vld [vmem:[%s685_s1 + $0x10] sm:$0xff]  }
   0x3   :  { %205 = vmatprep.subr.bf16.mxu0 %v470_v0  ;;  %419 = vmatprep.subr.bf16.mxu1 %v470_v0  ;;  %v448_v5 = vld [vmem:[%s686_s0 + $0x4] ss:$8 sps:$4 sm:$0xff]   ;;  %v446_v12 = vld [vmem:[%s686_s0] ss:$8 sps:$4 sm:$0xff]   ;;  %v452_v14 = vld [vmem:[%s686_s0 + $0x14] ss:$8 sps:$4 sm:$0xff]  }
   0x4   :  { %v451_v6 = vld [vmem:[%s686_s0 + $0x44] ss:$8 sps:$4 sm:$0xff]   ;;  %408 = vmatprep.mubr.msk.bf16.mxu0 %vm178_vm0, %v448_v5  ;;  %v449_v13 = vld [vmem:[%s686_s0 + $0x40] ss:$8 sps:$4 sm:$0xff]   ;;  %v454_v15 = vld [vmem:[%s686_s0 + $0x54] ss:$8 sps:$4 sm:$0xff]  }
   0x5   :  { %412 = vmatprep.mubr.msk.bf16.mxu1 %vm178_vm0, %v451_v6  ;;  %v443_v9 = vld [vmem:[%s685_s1 + $0x8] sm:$0xff]   ;;  %v444_v10 = vld [vmem:[%s685_s1] sm:$0xff]   ;;  %v456_v16 = vld [vmem:[%s686_s0 + $0x10] ss:$8 sps:$4 sm:$0xff]  }
   0x6   :  { %206 = vmatpush1.bf16.msra.mxu0 %v438_v2  ;;  %428 = vmatpush1.bf16.msra.mxu1 %v438_v2  ;;  %v445_v11 = vld [vmem:[%s685_s1 + $0x40] sm:$0xff]   ;;  %v457_v17 = vld [vmem:[%s686_s0 + $0x50] ss:$8 sps:$4 sm:$0xff]   ;;  %v464_v22 = vld [vmem:[%s686_s0 + $0x34] ss:$8 sps:$4 sm:$0xff]  }
   0x7   :  { %207 = vmatprep.subr.bf16.mxu0 %v470_v0  ;;  %420 = vmatprep.subr.bf16.mxu1 %v470_v0  ;;  %v458_v18 = vld [vmem:[%s686_s0 + $0x24] ss:$8 sps:$4 sm:$0xff]   ;;  %v462_v20 = vld [vmem:[%s686_s0 + $0x20] ss:$8 sps:$4 sm:$0xff]   ;;  %v466_v23 = vld [vmem:[%s686_s0 + $0x74] ss:$8 sps:$4 sm:$0xff]  }
   0x8   :  { %v460_v19 = vld [vmem:[%s686_s0 + $0x64] ss:$8 sps:$4 sm:$0xff]   ;;  %v463_v21 = vld [vmem:[%s686_s0 + $0x60] ss:$8 sps:$4 sm:$0xff]   ;;  %v468_v24 = vld [vmem:[%s686_s0 + $0x30] ss:$8 sps:$4 sm:$0xff]  }
   0x9   :  { %v469_v25 = vld [vmem:[%s686_s0 + $0x70] ss:$8 sps:$4 sm:$0xff]   ;;  %v582_v26 = vld [vmem:[%s687_s2] ss:$0 sm:$0xff] }
   0xa   :  { %208 = vmatpush1.bf16.msra.mxu0 %v439_v3  ;;  %429 = vmatpush1.bf16.msra.mxu1 %v439_v3  ;;  %v587_v28 = vld [vmem:[%s688_s3] ss:$0 sm:$0xff] }
   0xb   :  { %209 = vmatprep.subr.bf16.mxu0 %v470_v0  ;;  %421 = vmatprep.subr.bf16.mxu1 %v470_v0 }
   0xe   :  { %210 = vmatpush1.bf16.msra.mxu0 %v440_v4  ;;  %430 = vmatpush1.bf16.msra.mxu1 %v440_v4 }
   0xf   :  { %211 = vmatprep.subr.bf16.mxu0 %v470_v0  ;;  %422 = vmatprep.subr.bf16.mxu1 %v470_v0 }
  0x12   :  { %212 = vmatpush1.bf16.msra.mxu0 %v441_v7  ;;  %431 = vmatpush1.bf16.msra.mxu1 %v441_v7 }
  0x13   :  { %213 = vmatprep.subr.bf16.mxu0 %v470_v0  ;;  %423 = vmatprep.subr.bf16.mxu1 %v470_v0 }
  0x16   :  { %214 = vmatpush1.bf16.msra.mxu0 %v442_v8  ;;  %432 = vmatpush1.bf16.msra.mxu1 %v442_v8 }
  0x17   :  { %215 = vmatprep.subr.bf16.mxu0 %v470_v0  ;;  %424 = vmatprep.subr.bf16.mxu1 %v470_v0 }
  0x1a   :  { %216 = vmatpush1.bf16.msra.mxu0 %v443_v9  ;;  %433 = vmatpush1.bf16.msra.mxu1 %v443_v9 }
  0x1b   :  { %217 = vmatprep.subr.bf16.mxu0 %v470_v0  ;;  %425 = vmatprep.subr.bf16.mxu1 %v470_v0 }
  0x1e   :  { %218 = vmatpush1.bf16.msra.mxu0 %v444_v10  ;;  %434 = vmatpush1.bf16.msra.mxu1 %v444_v10 }
  0x1f   :  { %233 = vmatprep.subr.bf16.mxu0 %v470_v0  ;;  %426 = vmatprep.subr.bf16.mxu1 %v470_v0 }
  0x22   :  { %234 = vmatpush2.bf16.msra.mxu0 %v445_v11  ;;  %435 = vmatpush2.bf16.msra.mxu1 %v445_v11 }
  0x25   :  { %236 = vmatmul.mubr.bf16.vlgmr.msra.gmra.mxu0 %v446_v12  ;;  %268 = vmatmul.mubr.bf16.vlgmr.msra.gmra.mxu1 %v449_v13 }
  0x26   :  { %409 = vmatprep.mubr.msk.bf16.mxu0 %vm178_vm0, %v452_v14  ;;  %413 = vmatprep.mubr.msk.bf16.mxu1 %vm178_vm0, %v454_v15 }
  0x2d   :  { %244 = vmatmul.mubr.bf16.gmra.mxu0 %v456_v16  ;;  %276 = vmatmul.mubr.bf16.gmra.mxu1 %v457_v17 }
  0x2e   :  { %410 = vmatprep.mubr.msk.bf16.mxu0 %vm178_vm0, %v458_v18  ;;  %414 = vmatprep.mubr.msk.bf16.mxu1 %vm178_vm0, %v460_v19 }
  0x35   :  { %252 = vmatmul.mubr.bf16.gmra.mxu0 %v462_v20  ;;  %284 = vmatmul.mubr.bf16.gmra.mxu1 %v463_v21 }
  0x36   :  { %411 = vmatprep.mubr.msk.bf16.mxu0 %vm178_vm0, %v464_v22  ;;  %415 = vmatprep.mubr.msk.bf16.mxu1 %vm178_vm0, %v466_v23 }
  0x3d   :  { %260 = vmatmul.mubr.bf16.gmra.mxu0 %v468_v24  ;;  %292 = vmatmul.mubr.bf16.gmra.mxu1 %v469_v25 }
  0xe5   :  { %v237_v27 = vpop.f32.mrf.mxu0  ;;  %v269_v29 = vpop.f32.mrf.mxu1 }
  0xe6   :  { %v307_v30 = vmul.f32 %v582_v26, %v237_v27  ;;  %v315_v31 = vmul.f32 %v582_v26, %v269_v29 }
  0xe7   :  { %v239_v32 = vpop.f32.mrf.mxu0  ;;  %v271_v33 = vpop.f32.mrf.mxu1 }
  0xe8   :  { %v330_v34 = vadd.f32 %v587_v28, %v307_v30  ;;  %v338_v35 = vadd.f32 %v587_v28, %v315_v31 }
  0xe9   :  { %v240_v36 = vpop.f32.mrf.mxu0  ;;  %v272_v37 = vpop.f32.mrf.mxu1 }
  0xea   :  { %v346_v38 = vmax.f32 %v330_v34, 0.0  ;;  %v354_v39 = vmax.f32 %v338_v35, 0.0  ;;  %v308_v40 = vmul.f32 %v582_v26, %v240_v36  ;;  %v316_v41 = vmul.f32 %v582_v26, %v272_v37 }
  0xeb   :  { %v242_v42 = vpop.f32.mrf.mxu0  ;;  %v274_v43 = vpop.f32.mrf.mxu1 }
  0xec   :  { %363 = vst.msk [vmem:[%s689_s4] sm:$0xff] %vm362_vm1, %v346_v38  ;;  %371 = vst.msk [vmem:[%s689_s4 + $0x40] sm:$0xff] %vm362_vm1, %v354_v39  ;;  %v331_v44 = vadd.f32 %v587_v28, %v308_v40  ;;  %v339_v45 = vadd.f32 %v587_v28, %v316_v41 }
  0xed   :  { %v245_v46 = vpop.f32.mrf.mxu0  ;;  %v277_v47 = vpop.f32.mrf.mxu1 }
  0xee   :  { %v347_v48 = vmax.f32 %v331_v44, 0.0  ;;  %v355_v49 = vmax.f32 %v339_v45, 0.0  ;;  %v309_v50 = vmul.f32 %v582_v26, %v245_v46  ;;  %v317_v51 = vmul.f32 %v582_v26, %v277_v47 }
  0xef   :  { %v247_v52 = vpop.f32.mrf.mxu0  ;;  %v279_v53 = vpop.f32.mrf.mxu1 }
  0xf0   :  { %364 = vst.msk [vmem:[%s689_s4 + $0x8] sm:$0xff] %vm362_vm1, %v347_v48  ;;  %372 = vst.msk [vmem:[%s689_s4 + $0x48] sm:$0xff] %vm362_vm1, %v355_v49  ;;  %v332_v54 = vadd.f32 %v587_v28, %v309_v50  ;;  %v340_v55 = vadd.f32 %v587_v28, %v317_v51 }
  0xf1   :  { %v248_v56 = vpop.f32.mrf.mxu0  ;;  %v280_v57 = vpop.f32.mrf.mxu1 }
  0xf2   :  { %v348_v58 = vmax.f32 %v332_v54, 0.0  ;;  %v356_v59 = vmax.f32 %v340_v55, 0.0  ;;  %v310_v60 = vmul.f32 %v582_v26, %v248_v56  ;;  %v318_v61 = vmul.f32 %v582_v26, %v280_v57 }
  0xf3   :  { %v250_v62 = vpop.f32.mrf.mxu0  ;;  %v282_v63 = vpop.f32.mrf.mxu1 }
  0xf4   :  { %365 = vst.msk [vmem:[%s689_s4 + $0x10] sm:$0xff] %vm362_vm1, %v348_v58  ;;  %373 = vst.msk [vmem:[%s689_s4 + $0x50] sm:$0xff] %vm362_vm1, %v356_v59  ;;  %v333_v0 = vadd.f32 %v587_v28, %v310_v60  ;;  %v341_v1 = vadd.f32 %v587_v28, %v318_v61 }
  0xf5   :  { %v253_v2 = vpop.f32.mrf.mxu0  ;;  %v285_v3 = vpop.f32.mrf.mxu1 }
  0xf6   :  { %v349_v4 = vmax.f32 %v333_v0, 0.0  ;;  %v357_v5 = vmax.f32 %v341_v1, 0.0  ;;  %v311_v6 = vmul.f32 %v582_v26, %v253_v2  ;;  %v319_v7 = vmul.f32 %v582_v26, %v285_v3 }
  0xf7   :  { %v255_v8 = vpop.f32.mrf.mxu0  ;;  %v287_v9 = vpop.f32.mrf.mxu1 }
  0xf8   :  { %366 = vst.msk [vmem:[%s689_s4 + $0x18] sm:$0xff] %vm362_vm1, %v349_v4  ;;  %374 = vst.msk [vmem:[%s689_s4 + $0x58] sm:$0xff] %vm362_vm1, %v357_v5  ;;  %v334_v10 = vadd.f32 %v587_v28, %v311_v6  ;;  %v342_v11 = vadd.f32 %v587_v28, %v319_v7 }
  0xf9   :  { %v256_v12 = vpop.f32.mrf.mxu0  ;;  %v288_v13 = vpop.f32.mrf.mxu1 }
  0xfa   :  { %v350_v14 = vmax.f32 %v334_v10, 0.0  ;;  %v358_v15 = vmax.f32 %v342_v11, 0.0  ;;  %v312_v16 = vmul.f32 %v582_v26, %v256_v12  ;;  %v320_v17 = vmul.f32 %v582_v26, %v288_v13 }
  0xfb   :  { %v258_v18 = vpop.f32.mrf.mxu0  ;;  %v290_v19 = vpop.f32.mrf.mxu1 }
  0xfc   :  { %367 = vst.msk [vmem:[%s689_s4 + $0x20] sm:$0xff] %vm362_vm1, %v350_v14  ;;  %375 = vst.msk [vmem:[%s689_s4 + $0x60] sm:$0xff] %vm362_vm1, %v358_v15  ;;  %v335_v20 = vadd.f32 %v587_v28, %v312_v16  ;;  %v343_v21 = vadd.f32 %v587_v28, %v320_v17 }
  0xfd   :  { %v261_v22 = vpop.f32.mrf.mxu0  ;;  %v293_v23 = vpop.f32.mrf.mxu1 }
  0xfe   :  { %v351_v24 = vmax.f32 %v335_v20, 0.0  ;;  %v359_v25 = vmax.f32 %v343_v21, 0.0  ;;  %v313_v27 = vmul.f32 %v582_v26, %v261_v22  ;;  %v321_v29 = vmul.f32 %v582_v26, %v293_v23 }
  0xff   :  { %v263_v30 = vpop.f32.mrf.mxu0  ;;  %v295_v31 = vpop.f32.mrf.mxu1 }
 0x100   :  { %368 = vst.msk [vmem:[%s689_s4 + $0x28] sm:$0xff] %vm362_vm1, %v351_v24  ;;  %376 = vst.msk [vmem:[%s689_s4 + $0x68] sm:$0xff] %vm362_vm1, %v359_v25  ;;  %v336_v32 = vadd.f32 %v587_v28, %v313_v27  ;;  %v344_v33 = vadd.f32 %v587_v28, %v321_v29 }
 0x101   :  { %v264_v34 = vpop.f32.mrf.mxu0  ;;  %v296_v35 = vpop.f32.mrf.mxu1 }
 0x102   :  { %v352_v36 = vmax.f32 %v336_v32, 0.0  ;;  %v360_v37 = vmax.f32 %v344_v33, 0.0  ;;  %v314_v38 = vmul.f32 %v582_v26, %v264_v34  ;;  %v322_v39 = vmul.f32 %v582_v26, %v296_v35 }
 0x103   :  { %v266_v40 = vpop.f32.mrf.mxu0  ;;  %v298_v41 = vpop.f32.mrf.mxu1 }
 0x104   :  { %369 = vst.msk [vmem:[%s689_s4 + $0x30] sm:$0xff] %vm362_vm1, %v352_v36  ;;  %377 = vst.msk [vmem:[%s689_s4 + $0x70] sm:$0xff] %vm362_vm1, %v360_v37  ;;  %v337_v42 = vadd.f32 %v587_v28, %v314_v38  ;;  %v345_v43 = vadd.f32 %v587_v28, %v322_v39 }
 0x106   :  { %v353_v44 = vmax.f32 %v337_v42, 0.0  ;;  %v361_v45 = vmax.f32 %v345_v43, 0.0 }
 0x108   :  { %370 = vst.msk [vmem:[%s689_s4 + $0x38] sm:$0xff] %vm362_vm1, %v353_v44  ;;  %378 = vst.msk [vmem:[%s689_s4 + $0x78] sm:$0xff] %vm362_vm1, %v361_v45 }

// kernel: _lambda_.22
= control target key start
LH: loop header
LB: loop body
LE: loop exit
PB: predicated region body
PF: predicated region fallthrough
CT: control target
= control target key end

     0   :  { %v314_v0 = vmov 0   ;;  %vm148_vm0 = vcmask 719872   ;;  %vm155_vm1 = vcmask 1043456   ;;  %vm234_vm2 = vcmask 392192   ;;  %s444_s1 = inlined_call_operand.vmem [shape: bf16[216,48], index: 1, kind: input, shape index: {}]   ;;  %s445_s0 = inlined_call_operand.vmem [shape: bf16[32,216], index: 0, kind: input, shape index: {}]   ;;  %s446_s2 = inlined_call_operand.vmem [shape: f32[1,48], index: 2, kind: input, shape index: {}]   ;;  %s447_s3 = inlined_call_operand.vmem [shape: f32[1,48], index: 3, kind: input, shape index: {}]   ;;  %s448_s4 = inlined_call_operand.vmem [shape: f32[32,48], index: 4, kind: output, shape index: {}]  }
   0x1   :  { %159 = vmatprep.subr.bf16.mxu0 %v314_v0  ;;  %265 = vmatprep.subr.bf16.mxu1 %v314_v0  ;;  %v294_v1 = vld [vmem:[%s444_s1 + $0x38] sm:$0xff]   ;;  %v295_v2 = vld [vmem:[%s444_s1 + $0x30] sm:$0xff]   ;;  %v296_v3 = vld [vmem:[%s444_s1 + $0x28] sm:$0xff]  }
   0x2   :  { %160 = vmatpush1.bf16.msra.mxu0 %v294_v1  ;;  %279 = vmatpush1.bf16.msra.mxu1 %v294_v1  ;;  %v297_v4 = vld [vmem:[%s444_s1 + $0x20] sm:$0xff]   ;;  %v298_v5 = vld [vmem:[%s444_s1 + $0x18] sm:$0xff]   ;;  %v299_v8 = vld [vmem:[%s444_s1 + $0x10] sm:$0xff]  }
   0x3   :  { %161 = vmatprep.subr.bf16.mxu0 %v314_v0  ;;  %266 = vmatprep.subr.bf16.mxu1 %v314_v0  ;;  %v310_v6 = vld [vmem:[%s445_s0 + $0x4] ss:$8 sps:$4 sm:$0xff]   ;;  %v313_v7 = vld [vmem:[%s445_s0 + $0x14] ss:$8 sps:$4 sm:$0xff]   ;;  %v302_v11 = vld [vmem:[%s444_s1 + $0x68] ss:$0 sps:$4 sm:$0xff]  }
   0x4   :  { %261 = vmatprep.mubr.msk.bf16.mxu0 %vm148_vm0, %v310_v6  ;;  %262 = vmatprep.mubr.msk.bf16.mxu1 %vm148_vm0, %v313_v7  ;;  %v300_v9 = vld [vmem:[%s444_s1 + $0x8] sm:$0xff]   ;;  %v301_v10 = vld [vmem:[%s444_s1] sm:$0xff]   ;;  %v157_v12 = vsel %vm155_vm1, %v302_v11, 0  ;;  %v304_v14 = vld [vmem:[%s444_s1 + $0x58] sm:$0xff]  }
   0x5   :  { %v303_v13 = vld [vmem:[%s444_s1 + $0x60] sm:$0xff]   ;;  %v305_v15 = vld [vmem:[%s444_s1 + $0x50] sm:$0xff]   ;;  %v306_v16 = vld [vmem:[%s444_s1 + $0x48] sm:$0xff]  }
   0x6   :  { %162 = vmatpush1.bf16.msra.mxu0 %v295_v2  ;;  %280 = vmatpush1.bf16.msra.mxu1 %v295_v2  ;;  %v307_v17 = vld [vmem:[%s444_s1 + $0x40] sm:$0xff]   ;;  %v311_v19 = vld [vmem:[%s445_s0 + $0x10] ss:$8 sps:$4 sm:$0xff]  }
   0x7   :  { %163 = vmatprep.subr.bf16.mxu0 %v314_v0  ;;  %267 = vmatprep.subr.bf16.mxu1 %v314_v0  ;;  %v308_v18 = vld [vmem:[%s445_s0] ss:$8 sps:$4 sm:$0xff]  }
   0x8   :  { %v263_v20 = vld [vmem:[%s446_s2] ss:$0 sm:$0xff] }
   0x9   :  { %v264_v22 = vld [vmem:[%s447_s3] ss:$0 sm:$0xff] }
   0xa   :  { %164 = vmatpush1.bf16.msra.mxu0 %v296_v3  ;;  %281 = vmatpush1.bf16.msra.mxu1 %v296_v3 }
   0xb   :  { %165 = vmatprep.subr.bf16.mxu0 %v314_v0  ;;  %268 = vmatprep.subr.bf16.mxu1 %v314_v0 }
   0xe   :  { %166 = vmatpush1.bf16.msra.mxu0 %v297_v4  ;;  %282 = vmatpush1.bf16.msra.mxu1 %v297_v4 }
   0xf   :  { %167 = vmatprep.subr.bf16.mxu0 %v314_v0  ;;  %269 = vmatprep.subr.bf16.mxu1 %v314_v0 }
  0x12   :  { %168 = vmatpush1.bf16.msra.mxu0 %v298_v5  ;;  %283 = vmatpush1.bf16.msra.mxu1 %v298_v5 }
  0x13   :  { %169 = vmatprep.subr.bf16.mxu0 %v314_v0  ;;  %270 = vmatprep.subr.bf16.mxu1 %v314_v0 }
  0x16   :  { %170 = vmatpush1.bf16.msra.mxu0 %v299_v8  ;;  %284 = vmatpush1.bf16.msra.mxu1 %v299_v8 }
  0x17   :  { %171 = vmatprep.subr.bf16.mxu0 %v314_v0  ;;  %271 = vmatprep.subr.bf16.mxu1 %v314_v0 }
  0x1a   :  { %172 = vmatpush1.bf16.msra.mxu0 %v300_v9  ;;  %285 = vmatpush1.bf16.msra.mxu1 %v300_v9 }
  0x1b   :  { %173 = vmatprep.subr.bf16.mxu0 %v314_v0  ;;  %272 = vmatprep.subr.bf16.mxu1 %v314_v0 }
  0x1e   :  { %174 = vmatpush1.bf16.msra.mxu0 %v301_v10  ;;  %286 = vmatpush1.bf16.msra.mxu1 %v301_v10 }
  0x1f   :  { %179 = vmatprep.subr.bf16.mxu0 %v314_v0  ;;  %273 = vmatprep.subr.bf16.mxu1 %v314_v0 }
  0x22   :  { %180 = vmatpush2.bf16.msra.mxu0 %v157_v12  ;;  %287 = vmatpush2.bf16.msra.mxu1 %v157_v12 }
  0x23   :  { %181 = vmatprep.subr.bf16.mxu0 %v314_v0  ;;  %274 = vmatprep.subr.bf16.mxu1 %v314_v0 }
  0x26   :  { %182 = vmatpush2.bf16.msra.mxu0 %v303_v13  ;;  %288 = vmatpush2.bf16.msra.mxu1 %v303_v13 }
  0x27   :  { %183 = vmatprep.subr.bf16.mxu0 %v314_v0  ;;  %275 = vmatprep.subr.bf16.mxu1 %v314_v0 }
  0x2a   :  { %184 = vmatpush2.bf16.msra.mxu0 %v304_v14  ;;  %289 = vmatpush2.bf16.msra.mxu1 %v304_v14 }
  0x2b   :  { %185 = vmatprep.subr.bf16.mxu0 %v314_v0  ;;  %276 = vmatprep.subr.bf16.mxu1 %v314_v0 }
  0x2e   :  { %186 = vmatpush2.bf16.msra.mxu0 %v305_v15  ;;  %290 = vmatpush2.bf16.msra.mxu1 %v305_v15 }
  0x2f   :  { %187 = vmatprep.subr.bf16.mxu0 %v314_v0  ;;  %277 = vmatprep.subr.bf16.mxu1 %v314_v0 }
  0x32   :  { %188 = vmatpush2.bf16.msra.mxu0 %v306_v16  ;;  %291 = vmatpush2.bf16.msra.mxu1 %v306_v16 }
  0x33   :  { %189 = vmatprep.subr.bf16.mxu0 %v314_v0  ;;  %278 = vmatprep.subr.bf16.mxu1 %v314_v0 }
  0x36   :  { %190 = vmatpush2.bf16.msra.mxu0 %v307_v17  ;;  %292 = vmatpush2.bf16.msra.mxu1 %v307_v17 }
  0x39   :  { %192 = vmatmul.mubr.bf16.vlgmr.msra.gmra.mxu0 %v308_v18  ;;  %200 = vmatmul.mubr.bf16.vlgmr.msra.gmra.mxu1 %v311_v19 }
  0xf9   :  { %v193_v21 = vpop.f32.mrf.mxu0  ;;  %v201_v23 = vpop.f32.mrf.mxu1 }
  0xfa   :  { %v215_v24 = vmul.f32 %v263_v20, %v193_v21  ;;  %v217_v25 = vmul.f32 %v263_v20, %v201_v23 }
  0xfb   :  { %v195_v26 = vpop.f32.mrf.mxu0  ;;  %v203_v27 = vpop.f32.mrf.mxu1 }
  0xfc   :  { %v226_v28 = vadd.f32 %v264_v22, %v215_v24  ;;  %v228_v29 = vadd.f32 %v264_v22, %v217_v25 }
  0xfd   :  { %v196_v30 = vpop.f32.mrf.mxu0  ;;  %v204_v31 = vpop.f32.mrf.mxu1 }
  0xfe   :  { %v230_v32 = vmax.f32 %v226_v28, 0.0  ;;  %v232_v33 = vmax.f32 %v228_v29, 0.0  ;;  %v216_v34 = vmul.f32 %v263_v20, %v196_v30  ;;  %v218_v35 = vmul.f32 %v263_v20, %v204_v31 }
  0xff   :  { %v198_v36 = vpop.f32.mrf.mxu0  ;;  %v206_v37 = vpop.f32.mrf.mxu1 }
 0x100   :  { %235 = vst.msk [vmem:[%s448_s4] sm:$0xff] %vm234_vm2, %v230_v32  ;;  %237 = vst.msk [vmem:[%s448_s4 + $0x10] sm:$0xff] %vm234_vm2, %v232_v33  ;;  %v227_v38 = vadd.f32 %v264_v22, %v216_v34  ;;  %v229_v39 = vadd.f32 %v264_v22, %v218_v35 }
 0x102   :  { %v231_v40 = vmax.f32 %v227_v38, 0.0  ;;  %v233_v41 = vmax.f32 %v229_v39, 0.0 }
 0x104   :  { %236 = vst.msk [vmem:[%s448_s4 + $0x8] sm:$0xff] %vm234_vm2, %v231_v40  ;;  %238 = vst.msk [vmem:[%s448_s4 + $0x18] sm:$0xff] %vm234_vm2, %v233_v41 }

// kernel: _lambda_.23
= control target key start
LH: loop header
LB: loop body
LE: loop exit
PB: predicated region body
PF: predicated region fallthrough
CT: control target
= control target key end

     0   :  { %v444_v0 = vmov 0   ;;  %vm249_vm0 = vcmask 392192   ;;  %vm350_vm1 = vcmask 982016   ;;  %s577_s1 = inlined_call_operand.vmem [shape: bf16[432,120], index: 1, kind: input, shape index: {}]   ;;  %s578_s0 = inlined_call_operand.vmem [shape: bf16[8,432], index: 0, kind: input, shape index: {}]   ;;  %s579_s2 = inlined_call_operand.vmem [shape: f32[1,120], index: 2, kind: input, shape index: {}]   ;;  %s580_s3 = inlined_call_operand.vmem [shape: f32[1,120], index: 3, kind: input, shape index: {}]   ;;  %s581_s4 = inlined_call_operand.vmem [shape: f32[8,120], index: 4, kind: output, shape index: {}]  }
   0x1   :  { %293 = vmatprep.subr.bf16.mxu1 %v444_v0  ;;  %v413_v1 = vld [vmem:[%s577_s1 + $0xb8] sm:$0xff]   ;;  %v416_v4 = vld [vmem:[%s577_s1 + $0xb0] sm:$0xff]   ;;  %v419_v7 = vld [vmem:[%s577_s1 + $0xa8] sm:$0xff]  }
   0x2   :  { %v414_v2 = vld [vmem:[%s577_s1 + $0x78] sm:$0xff]   ;;  %294 = vmatpush1.bf16.msra.mxu1 %v413_v1  ;;  %v417_v5 = vld [vmem:[%s577_s1 + $0x70] sm:$0xff]   ;;  %v420_v8 = vld [vmem:[%s577_s1 + $0x68] sm:$0xff]  }
   0x3   :  { %v415_v3 = vld [vmem:[%s577_s1 + $0x38] sm:$0xff]   ;;  %390 = vmatprep.subr.bf16.mxu0 %v414_v2  ;;  %295 = vmatprep.subr.bf16.mxu1 %v444_v0  ;;  %v418_v6 = vld [vmem:[%s577_s1 + $0x30] sm:$0xff]   ;;  %v421_v9 = vld [vmem:[%s577_s1 + $0x28] sm:$0xff]  }
   0x4   :  { %391 = vmatpush3.bf16.msra.mxu0 %v415_v3  ;;  %v422_v10 = vld [vmem:[%s577_s1 + $0xa0] sm:$0xff]   ;;  %v426_v13 = vld [vmem:[%s577_s1 + $0x58] sm:$0xff]   ;;  %v429_v16 = vld [vmem:[%s577_s1 + $0x50] sm:$0xff]  }
   0x5   :  { %392 = vmatprep.subr.bf16.mxu0 %v417_v5  ;;  %v423_v11 = vld [vmem:[%s577_s1 + $0x60] sm:$0xff]   ;;  %v425_v14 = vld [vmem:[%s577_s1 + $0x98] sm:$0xff]   ;;  %v428_v17 = vld [vmem:[%s577_s1 + $0x90] sm:$0xff]  }
   0x6   :  { %296 = vmatpush1.bf16.msra.mxu1 %v416_v4  ;;  %v424_v12 = vld [vmem:[%s577_s1 + $0x20] sm:$0xff]   ;;  %v427_v15 = vld [vmem:[%s577_s1 + $0x18] sm:$0xff]   ;;  %v430_v18 = vld [vmem:[%s577_s1 + $0x10] sm:$0xff]  }
   0x7   :  { %297 = vmatprep.subr.bf16.mxu1 %v444_v0  ;;  %v432_v19 = vld [vmem:[%s577_s1 + $0x48] sm:$0xff]   ;;  %v18_v22 = vld [vmem:[%s578_s0] sm:$0xff]  ;;  %v439_v29 = vld [vmem:[%s577_s1 + $0xd0] sm:$0xff]  }
   0x8   :  { %393 = vmatpush3.bf16.msra.mxu0 %v418_v6  ;;  %v431_v20 = vld [vmem:[%s577_s1 + $0x88] sm:$0xff]   ;;  %v435_v23 = vld [vmem:[%s577_s1 + $0x40] sm:$0xff]   ;;  %v357_v24 = vcombine.high %v18_v22, %v18_v22  ;;  %v356_v30 = vcombine.low %v18_v22, %v18_v22 }
   0x9   :  { %394 = vmatprep.subr.bf16.mxu0 %v420_v8  ;;  %v433_v21 = vld [vmem:[%s577_s1 + $0x8] sm:$0xff]   ;;  %v434_v25 = vld [vmem:[%s577_s1 + $0x80] sm:$0xff]  }
   0xa   :  { %298 = vmatpush1.bf16.msra.mxu1 %v419_v7  ;;  %285 = vmatprep.mubr.bf16.mxu0 %v357_v24  ;;  %v19_v26 = vld [vmem:[%s578_s0 + $0x8] sm:$0xff]  ;;  %v436_v27 = vld [vmem:[%s577_s1] sm:$0xff]  }
   0xb   :  { %299 = vmatprep.subr.bf16.mxu1 %v444_v0  ;;  %v359_v28 = vcombine.high %v19_v26, %v19_v26  ;;  %v440_v31 = vld [vmem:[%s577_s1 + $0xc8] sm:$0xff]   ;;  %v441_v32 = vld [vmem:[%s577_s1 + $0xc0] sm:$0xff]   ;;  %v358_v33 = vcombine.low %v19_v26, %v19_v26 }
   0xc   :  { %395 = vmatpush3.bf16.msra.mxu0 %v421_v9  ;;  %v388_v40 = vld [vmem:[%s579_s2] ss:$0 sm:$0xff] }
   0xd   :  { %396 = vmatprep.subr.bf16.mxu0 %v423_v11  ;;  %387 = vmatprep.mubr.msk.bf16.mxu1 %vm249_vm0, %v359_v28  ;;  %v389_v42 = vld [vmem:[%s580_s3] ss:$0 sm:$0xff] }
   0xe   :  { %300 = vmatpush1.bf16.msra.mxu1 %v422_v10 }
   0xf   :  { %301 = vmatprep.subr.bf16.mxu1 %v444_v0 }
  0x10   :  { %397 = vmatpush3.bf16.msra.mxu0 %v424_v12 }
  0x11   :  { %398 = vmatprep.subr.bf16.mxu0 %v426_v13 }
  0x12   :  { %302 = vmatpush1.bf16.msra.mxu1 %v425_v14 }
  0x13   :  { %303 = vmatprep.subr.bf16.mxu1 %v444_v0 }
  0x14   :  { %399 = vmatpush3.bf16.msra.mxu0 %v427_v15 }
  0x15   :  { %400 = vmatprep.subr.bf16.mxu0 %v429_v16 }
  0x16   :  { %304 = vmatpush1.bf16.msra.mxu1 %v428_v17 }
  0x17   :  { %305 = vmatprep.subr.bf16.mxu1 %v444_v0 }
  0x18   :  { %401 = vmatpush3.bf16.msra.mxu0 %v430_v18 }
  0x19   :  { %402 = vmatprep.subr.bf16.mxu0 %v432_v19 }
  0x1a   :  { %306 = vmatpush1.bf16.msra.mxu1 %v431_v20 }
  0x1b   :  { %307 = vmatprep.subr.bf16.mxu1 %v444_v0 }
  0x1c   :  { %403 = vmatpush3.bf16.msra.mxu0 %v433_v21 }
  0x1d   :  { %404 = vmatprep.subr.bf16.mxu0 %v435_v23 }
  0x1e   :  { %308 = vmatpush1.bf16.msra.mxu1 %v434_v25 }
  0x1f   :  { %319 = vmatprep.subr.bf16.mxu1 %v444_v0 }
  0x20   :  { %405 = vmatpush3.bf16.msra.mxu0 %v436_v27 }
  0x22   :  { %320 = vmatpush2.bf16.msra.mxu1 %v439_v29 }
  0x23   :  { %286 = vmatmul.mubr.bf16.vlgmr.msra.gmra.mxu0 %v356_v30  ;;  %321 = vmatprep.subr.bf16.mxu1 %v444_v0 }
  0x26   :  { %322 = vmatpush2.bf16.msra.mxu1 %v440_v31 }
  0x27   :  { %323 = vmatprep.subr.bf16.mxu1 %v444_v0 }
  0x2a   :  { %324 = vmatpush2.bf16.msra.mxu1 %v441_v32 }
  0x2d   :  { %326 = vmatmul.mubr.bf16.vlgmr.msra.gmra.mxu1 %v358_v33 }
  0xe3   :  { %v406_v34 = vpop.f32.mrf.mxu0 }
  0xe5   :  { %v407_v35 = vpop.f32.mrf.mxu0 }
  0xe6   :  { %v408_v38 = vadd.f32 %v407_v35, %v406_v34 }
  0xe7   :  { %v409_v36 = vpop.f32.mrf.mxu0 }
  0xe9   :  { %v410_v37 = vpop.f32.mrf.mxu0 }
  0xed   :  { %v327_v39 = vpop.f32.mrf.mxu1 }
  0xee   :  { %v328_v41 = vadd.f32 %v408_v38, %v327_v39 }
  0xef   :  { %v329_v43 = vpop.f32.mrf.mxu1 }
  0xf0   :  { %v340_v44 = vmul.f32 %v388_v40, %v328_v41 }
  0xf1   :  { %v330_v45 = vpop.f32.mrf.mxu1 }
  0xf2   :  { %v348_v46 = vadd.f32 %v389_v42, %v340_v44 }
  0xf3   :  { %v331_v47 = vpop.f32.mrf.mxu1 }
  0xf4   :  { %v349_v48 = vmax.f32 %v348_v46, 0.0 }
  0xf6   :  { %351 = vst.msk [vmem:[%s581_s4] sm:$0xff] %vm350_vm1, %v349_v48 }

// kernel: _lambda_.32
= control target key start
LH: loop header
LB: loop body
LE: loop exit
PB: predicated region body
PF: predicated region fallthrough
CT: control target
= control target key end

     0   :  { %v170_v1 = vmov 0   ;;  %vm67_vm0 = vcmask 523264   ;;  %v114_v10 = vlaneseq  ;;  %s235_s1 = inlined_call_operand.vmem [shape: bf16[64,256], index: 1, kind: input, shape index: {}]   ;;  %s236_s0 = inlined_call_operand.vmem [shape: bf16[8,64], index: 0, kind: input, shape index: {}]   ;;  %s237_s2 = inlined_call_operand.vmem [shape: f32[1,256], index: 2, kind: input, shape index: {}]   ;;  %s238_s3 = inlined_call_operand.vmem [shape: f32[1,256], index: 3, kind: input, shape index: {}]   ;;  %s239_s4 = inlined_call_operand.vmem [shape: f32[8,256], index: 4, kind: output, shape index: {}]  }
   0x1   :  { %v158_v0 = vld [vmem:[%s235_s1 + $0x34] ss:$8 sps:$4 sm:$0xff]   ;;  %103 = vmatprep.mubr.bf16.mxu0 %v170_v1  ;;  %v160_v2 = vld [vmem:[%s235_s1 + $0x30] ss:$8 sps:$4 sm:$0xff]   ;;  %v161_v3 = vld [vmem:[%s235_s1 + $0x24] ss:$8 sps:$4 sm:$0xff]  }
   0x2   :  { %79 = vmatprep.subr.bf16.mxu0 %v158_v0  ;;  %v163_v4 = vld [vmem:[%s235_s1 + $0x20] ss:$8 sps:$4 sm:$0xff]   ;;  %v164_v5 = vld [vmem:[%s235_s1 + $0x14] ss:$8 sps:$4 sm:$0xff]   ;;  %v166_v6 = vld [vmem:[%s235_s1 + $0x10] ss:$8 sps:$4 sm:$0xff]  }
   0x3   :  { %80 = vmatpush1.bf16.msra.mxu0 %v160_v2  ;;  %v167_v7 = vld [vmem:[%s235_s1 + $0x4] ss:$8 sps:$4 sm:$0xff]   ;;  %v169_v8 = vld [vmem:[%s235_s1] ss:$8 sps:$4 sm:$0xff]   ;;  %v115_v11 = vshrl.u32 %v114_v10, 7 }
   0x4   :  { %81 = vmatprep.subr.bf16.mxu0 %v161_v3  ;;  %v18_v9 = vld [vmem:[%s236_s0] sm:$0xf] }
   0x5   :  { %v116_v12 = vsub.s32 0, %v115_v11  ;;  %v112_v13 = vld [vmem:[%s237_s2] sm:$0x3]  ;;  %v120_v14 = vsub.s32 1, %v115_v11 }
   0x6   :  { %v126_v15 = vld [vmem:[%s238_s3] sm:$0x3] }
   0x7   :  { %82 = vmatpush1.bf16.msra.mxu0 %v163_v4  ;;  %v117_v16 = vrot.slane %v112_v13, %v116_v12  ;;  %v131_v17 = vrot.slane %v126_v15, %v116_v12  ;;  %v121_v18 = vrot.slane %v112_v13, %v120_v14  ;;  %v135_v21 = vrot.slane %v126_v15, %v120_v14 }
   0x8   :  { %83 = vmatprep.subr.bf16.mxu0 %v164_v5 }
   0xb   :  { %84 = vmatpush1.bf16.msra.mxu0 %v166_v6 }
   0xc   :  { %85 = vmatprep.subr.bf16.mxu0 %v167_v7 }
   0xf   :  { %86 = vmatpush1.bf16.msra.mxu0 %v169_v8 }
  0x12   :  { %156 = vmatmul.mubr.msk.bf16.vlgmr.msra.gmra.mxu0 %vm67_vm0, %v18_v9 }
  0xd2   :  { %v105_v19 = vpop.f32.mrf.mxu0 }
  0xd3   :  { %v124_v20 = vmul.f32 %v117_v16, %v105_v19 }
  0xd4   :  { %v107_v22 = vpop.f32.mrf.mxu0 }
  0xd5   :  { %v138_v23 = vadd.f32 %v131_v17, %v124_v20  ;;  %v125_v24 = vmul.f32 %v121_v18, %v107_v22 }
  0xd6   :  { %v109_v25 = vpop.f32.mrf.mxu0 }
  0xd7   :  { %v140_v26 = vmax.f32 %v138_v23, 0.0  ;;  %v139_v27 = vadd.f32 %v135_v21, %v125_v24 }
  0xd8   :  { %v110_v28 = vpop.f32.mrf.mxu0 }
  0xd9   :  { %142 = vst [vmem:[%s239_s4] sm:$0xff] %v140_v26  ;;  %v141_v29 = vmax.f32 %v139_v27, 0.0 }
  0xdb   :  { %143 = vst [vmem:[%s239_s4 + $0x8] sm:$0xff] %v141_v29 }

// kernel: _lambda_.33
= control target key start
LH: loop header
LB: loop body
LE: loop exit
PB: predicated region body
PF: predicated region fallthrough
CT: control target
= control target key end

     0   :  { %v235_v1 = vmov 0   ;;  %vm80_vm0 = vcmask 523264   ;;  %v142_v11 = vlaneseq  ;;  %s321_s1 = inlined_call_operand.vmem [shape: bf16[64,256], index: 1, kind: input, shape index: {}]   ;;  %s322_s0 = inlined_call_operand.vmem [shape: bf16[32,64], index: 0, kind: input, shape index: {}]   ;;  %s323_s2 = inlined_call_operand.vmem [shape: f32[1,256], index: 2, kind: input, shape index: {}]   ;;  %s324_s3 = inlined_call_operand.vmem [shape: f32[1,256], index: 3, kind: input, shape index: {}]   ;;  %s325_s4 = inlined_call_operand.vmem [shape: f32[32,256], index: 4, kind: output, shape index: {}]  }
   0x1   :  { %v221_v0 = vld [vmem:[%s321_s1 + $0x34] ss:$8 sps:$4 sm:$0xff]   ;;  %119 = vmatprep.mubr.bf16.mxu0 %v235_v1  ;;  %129 = vmatprep.mubr.bf16.mxu1 %v235_v1  ;;  %v223_v2 = vld [vmem:[%s321_s1 + $0x30] ss:$8 sps:$4 sm:$0xff]   ;;  %v224_v3 = vld [vmem:[%s321_s1 + $0x24] ss:$8 sps:$4 sm:$0xff]  }
   0x2   :  { %95 = vmatprep.subr.bf16.mxu0 %v221_v0  ;;  %212 = vmatprep.subr.bf16.mxu1 %v221_v0  ;;  %v226_v4 = vld [vmem:[%s321_s1 + $0x20] ss:$8 sps:$4 sm:$0xff]   ;;  %v227_v5 = vld [vmem:[%s321_s1 + $0x14] ss:$8 sps:$4 sm:$0xff]   ;;  %v229_v6 = vld [vmem:[%s321_s1 + $0x10] ss:$8 sps:$4 sm:$0xff]  }
   0x3   :  { %96 = vmatpush1.bf16.msra.mxu0 %v223_v2  ;;  %216 = vmatpush1.bf16.msra.mxu1 %v223_v2  ;;  %v230_v7 = vld [vmem:[%s321_s1 + $0x4] ss:$8 sps:$4 sm:$0xff]   ;;  %v232_v8 = vld [vmem:[%s321_s1] ss:$8 sps:$4 sm:$0xff]   ;;  %v143_v12 = vshrl.u32 %v142_v11, 7 }
   0x4   :  { %97 = vmatprep.subr.bf16.mxu0 %v224_v3  ;;  %213 = vmatprep.subr.bf16.mxu1 %v224_v3  ;;  %v233_v9 = vld [vmem:[%s322_s0] sm:$0xff]   ;;  %v234_v10 = vld [vmem:[%s322_s0 + $0x8] sm:$0xff]  }
   0x5   :  { %v144_v13 = vsub.s32 0, %v143_v12  ;;  %v140_v14 = vld [vmem:[%s323_s2] sm:$0x3]  ;;  %v148_v15 = vsub.s32 1, %v143_v12 }
   0x6   :  { %v160_v16 = vld [vmem:[%s324_s3] sm:$0x3] }
   0x7   :  { %98 = vmatpush1.bf16.msra.mxu0 %v226_v4  ;;  %217 = vmatpush1.bf16.msra.mxu1 %v226_v4  ;;  %v145_v17 = vrot.slane %v140_v14, %v144_v13  ;;  %v165_v18 = vrot.slane %v160_v16, %v144_v13  ;;  %v149_v19 = vrot.slane %v140_v14, %v148_v15 }
   0x8   :  { %99 = vmatprep.subr.bf16.mxu0 %v227_v5  ;;  %214 = vmatprep.subr.bf16.mxu1 %v227_v5  ;;  %v169_v24 = vrot.slane %v160_v16, %v148_v15 }
   0xb   :  { %100 = vmatpush1.bf16.msra.mxu0 %v229_v6  ;;  %218 = vmatpush1.bf16.msra.mxu1 %v229_v6 }
   0xc   :  { %101 = vmatprep.subr.bf16.mxu0 %v230_v7  ;;  %215 = vmatprep.subr.bf16.mxu1 %v230_v7 }
   0xf   :  { %102 = vmatpush1.bf16.msra.mxu0 %v232_v8  ;;  %219 = vmatpush1.bf16.msra.mxu1 %v232_v8 }
  0x12   :  { %210 = vmatmul.mubr.msk.bf16.vlgmr.msra.gmra.mxu0 %vm80_vm0, %v233_v9  ;;  %211 = vmatmul.mubr.msk.bf16.vlgmr.msra.gmra.mxu1 %vm80_vm0, %v234_v10 }
  0xd2   :  { %v121_v20 = vpop.f32.mrf.mxu0  ;;  %v131_v21 = vpop.f32.mrf.mxu1 }
  0xd3   :  { %v152_v22 = vmul.f32 %v145_v17, %v121_v20  ;;  %v156_v23 = vmul.f32 %v145_v17, %v131_v21 }
  0xd4   :  { %v123_v25 = vpop.f32.mrf.mxu0  ;;  %v133_v26 = vpop.f32.mrf.mxu1 }
  0xd5   :  { %v172_v27 = vadd.f32 %v165_v18, %v152_v22  ;;  %v176_v28 = vadd.f32 %v165_v18, %v156_v23  ;;  %v153_v29 = vmul.f32 %v149_v19, %v123_v25  ;;  %v157_v30 = vmul.f32 %v149_v19, %v133_v26 }
  0xd6   :  { %v125_v31 = vpop.f32.mrf.mxu0  ;;  %v135_v32 = vpop.f32.mrf.mxu1 }
  0xd7   :  { %v180_v33 = vmax.f32 %v172_v27, 0.0  ;;  %v184_v34 = vmax.f32 %v176_v28, 0.0  ;;  %v173_v35 = vadd.f32 %v169_v24, %v153_v29  ;;  %v177_v36 = vadd.f32 %v169_v24, %v157_v30 }
  0xd8   :  { %v154_v37 = vmul.f32 %v145_v17, %v125_v31  ;;  %v158_v38 = vmul.f32 %v145_v17, %v135_v32  ;;  %v127_v39 = vpop.f32.mrf.mxu0  ;;  %v137_v40 = vpop.f32.mrf.mxu1 }
  0xd9   :  { %188 = vst [vmem:[%s325_s4] sm:$0xff] %v180_v33  ;;  %192 = vst [vmem:[%s325_s4 + $0x20] sm:$0xff] %v184_v34  ;;  %v181_v41 = vmax.f32 %v173_v35, 0.0  ;;  %v185_v42 = vmax.f32 %v177_v36, 0.0  ;;  %v155_v43 = vmul.f32 %v149_v19, %v127_v39  ;;  %v159_v44 = vmul.f32 %v149_v19, %v137_v40 }
  0xda   :  { %v174_v45 = vadd.f32 %v165_v18, %v154_v37  ;;  %v178_v46 = vadd.f32 %v165_v18, %v158_v38 }
  0xdb   :  { %189 = vst [vmem:[%s325_s4 + $0x8] sm:$0xff] %v181_v41  ;;  %193 = vst [vmem:[%s325_s4 + $0x28] sm:$0xff] %v185_v42  ;;  %v175_v47 = vadd.f32 %v169_v24, %v155_v43  ;;  %v179_v48 = vadd.f32 %v169_v24, %v159_v44 }
  0xdc   :  { %v182_v49 = vmax.f32 %v174_v45, 0.0  ;;  %v186_v50 = vmax.f32 %v178_v46, 0.0 }
  0xdd   :  { %v183_v51 = vmax.f32 %v175_v47, 0.0  ;;  %v187_v52 = vmax.f32 %v179_v48, 0.0 }
  0xde   :  { %190 = vst [vmem:[%s325_s4 + $0x10] sm:$0xff] %v182_v49  ;;  %194 = vst [vmem:[%s325_s4 + $0x30] sm:$0xff] %v186_v50 }
  0xdf   :  { %191 = vst [vmem:[%s325_s4 + $0x18] sm:$0xff] %v183_v51  ;;  %195 = vst [vmem:[%s325_s4 + $0x38] sm:$0xff] %v187_v52 }

// kernel: _lambda_.31
= control target key start
LH: loop header
LB: loop body
LE: loop exit
PB: predicated region body
PF: predicated region fallthrough
CT: control target
= control target key end

     0   :  { %vm598_vm0 = vcmask 1043456   ;;  %vm1090_vm1 = vmmov 0   ;;  %vm594_vm2 = vcmask 457728   ;;  %vm819_vm3 = vcmask 523264   ;;  %s1344_s1 = inlined_call_operand.vmem [shape: bf16[1080,64], index: 1, kind: input, shape index: {}]   ;;  %s1345_s0 = inlined_call_operand.vmem [shape: bf16[8,1080], index: 0, kind: input, shape index: {}]   ;;  %s1346_s2 = inlined_call_operand.vmem [shape: f32[1,64], index: 2, kind: input, shape index: {}]   ;;  %s1347_s3 = inlined_call_operand.vmem [shape: f32[1,64], index: 3, kind: input, shape index: {}]   ;;  %s1348_s4 = inlined_call_operand.vmem [shape: f32[8,64], index: 4, kind: output, shape index: {}]  }
   0x1   :  { %v1012_v0 = vld [vmem:[%s1344_s1 + $0x78] sm:$0xff]   ;;  %v1016_v4 = vld [vmem:[%s1344_s1 + $0x70] sm:$0xff]   ;;  %v1020_v8 = vld [vmem:[%s1344_s1 + $0x68] sm:$0xff]  }
   0x2   :  { %v1013_v1 = vld [vmem:[%s1344_s1 + $0xf8] sm:$0xff]   ;;  %905 = vmatprep.subr.bf16.mxu0 %v1012_v0  ;;  %v1017_v5 = vld [vmem:[%s1344_s1 + $0xf0] sm:$0xff]   ;;  %v1021_v9 = vld [vmem:[%s1344_s1 + $0xe8] sm:$0xff]  }
   0x3   :  { %v1014_v2 = vld [vmem:[%s1344_s1 + $0x38] sm:$0xff]   ;;  %927 = vmatprep.subr.bf16.mxu1 %v1013_v1  ;;  %v1018_v6 = vld [vmem:[%s1344_s1 + $0x30] sm:$0xff]   ;;  %v1022_v10 = vld [vmem:[%s1344_s1 + $0x28] sm:$0xff]  }
   0x4   :  { %v1015_v3 = vld [vmem:[%s1344_s1 + $0xb8] sm:$0xff]   ;;  %906 = vmatpush3.bf16.msra.mxu0 %v1014_v2  ;;  %v1019_v7 = vld [vmem:[%s1344_s1 + $0xb0] sm:$0xff]   ;;  %v1023_v11 = vld [vmem:[%s1344_s1 + $0xa8] sm:$0xff]  }
   0x5   :  { %928 = vmatpush3.bf16.msra.mxu1 %v1015_v3  ;;  %907 = vmatprep.subr.bf16.mxu0 %v1016_v4  ;;  %v1024_v12 = vld [vmem:[%s1344_s1 + $0x60] sm:$0xff]   ;;  %v1028_v16 = vld [vmem:[%s1344_s1 + $0x58] sm:$0xff]   ;;  %v1032_v20 = vld [vmem:[%s1344_s1 + $0x50] sm:$0xff]  }
   0x6   :  { %929 = vmatprep.subr.bf16.mxu1 %v1017_v5  ;;  %v1025_v13 = vld [vmem:[%s1344_s1 + $0xe0] sm:$0xff]   ;;  %v1029_v17 = vld [vmem:[%s1344_s1 + $0xd8] sm:$0xff]   ;;  %v1033_v21 = vld [vmem:[%s1344_s1 + $0xd0] sm:$0xff]  }
   0x7   :  { %v1026_v14 = vld [vmem:[%s1344_s1 + $0x20] sm:$0xff]   ;;  %v1030_v18 = vld [vmem:[%s1344_s1 + $0x18] sm:$0xff]   ;;  %v1034_v22 = vld [vmem:[%s1344_s1 + $0x10] sm:$0xff]  }
   0x8   :  { %908 = vmatpush3.bf16.msra.mxu0 %v1018_v6  ;;  %v1027_v15 = vld [vmem:[%s1344_s1 + $0xa0] sm:$0xff]   ;;  %v1031_v19 = vld [vmem:[%s1344_s1 + $0x98] sm:$0xff]   ;;  %v1035_v23 = vld [vmem:[%s1344_s1 + $0x90] sm:$0xff]  }
   0x9   :  { %930 = vmatpush3.bf16.msra.mxu1 %v1019_v7  ;;  %909 = vmatprep.subr.bf16.mxu0 %v1020_v8  ;;  %v1036_v24 = vld [vmem:[%s1344_s1 + $0x48] sm:$0xff]   ;;  %v1040_v28 = vld [vmem:[%s1344_s1 + $0x40] sm:$0xff]   ;;  %v1048_v38 = vld [vmem:[%s1344_s1 + $0x178] sm:$0xff]  }
   0xa   :  { %931 = vmatprep.subr.bf16.mxu1 %v1021_v9  ;;  %v1037_v25 = vld [vmem:[%s1344_s1 + $0xc8] sm:$0xff]   ;;  %v1041_v29 = vld [vmem:[%s1344_s1 + $0xc0] sm:$0xff]   ;;  %v1049_v39 = vld [vmem:[%s1344_s1 + $0x138] sm:$0xff]  }
   0xb   :  { %v1038_v26 = vld [vmem:[%s1344_s1 + $0x8] sm:$0xff]   ;;  %v1042_v30 = vld [vmem:[%s1344_s1] sm:$0xff]   ;;  %v1050_v40 = vld [vmem:[%s1344_s1 + $0x1f8] sm:$0xff]  }
   0xc   :  { %910 = vmatpush3.bf16.msra.mxu0 %v1022_v10  ;;  %v1039_v27 = vld [vmem:[%s1344_s1 + $0x88] sm:$0xff]   ;;  %v1043_v31 = vld [vmem:[%s1344_s1 + $0x80] sm:$0xff]   ;;  %v1051_v41 = vld [vmem:[%s1344_s1 + $0x1b8] sm:$0xff]  }
   0xd   :  { %932 = vmatpush3.bf16.msra.mxu1 %v1023_v11  ;;  %911 = vmatprep.subr.bf16.mxu0 %v1024_v12  ;;  %v18_v32 = vld [vmem:[%s1345_s0] sm:$0xff]  ;;  %v19_v33 = vld [vmem:[%s1345_s0 + $0x8] sm:$0xff]  ;;  %v1052_v42 = vld [vmem:[%s1344_s1 + $0x170] sm:$0xff]  }
   0xe   :  { %933 = vmatprep.subr.bf16.mxu1 %v1025_v13  ;;  %v825_v34 = vcombine.low %v18_v32, %v18_v32  ;;  %v826_v35 = vcombine.high %v18_v32, %v18_v32  ;;  %v827_v36 = vcombine.low %v19_v33, %v19_v33  ;;  %v828_v37 = vcombine.high %v19_v33, %v19_v33  ;;  %v1053_v43 = vld [vmem:[%s1344_s1 + $0x130] sm:$0xff]   ;;  %v1056_v46 = vld [vmem:[%s1344_s1 + $0x168] sm:$0xff]   ;;  %v1060_v50 = vld [vmem:[%s1344_s1 + $0x160] sm:$0xff]  }
   0xf   :  { %v1054_v44 = vld [vmem:[%s1344_s1 + $0x1f0] sm:$0xff]   ;;  %v1057_v47 = vld [vmem:[%s1344_s1 + $0x128] sm:$0xff]   ;;  %v1061_v51 = vld [vmem:[%s1344_s1 + $0x120] sm:$0xff]   ;;  %v1089_v13 = vmov 0.0  }
  0x10   :  { %912 = vmatpush3.bf16.msra.mxu0 %v1026_v14  ;;  %634 = vmatprep.mubr.bf16.mxu0 %v826_v35  ;;  %v1055_v45 = vld [vmem:[%s1344_s1 + $0x1b0] sm:$0xff]   ;;  %v1058_v48 = vld [vmem:[%s1344_s1 + $0x1e8] sm:$0xff]   ;;  %v1062_v52 = vld [vmem:[%s1344_s1 + $0x1e0] sm:$0xff]  }
  0x11   :  { %934 = vmatpush3.bf16.msra.mxu1 %v1027_v15  ;;  %913 = vmatprep.subr.bf16.mxu0 %v1028_v16  ;;  %v1059_v49 = vld [vmem:[%s1344_s1 + $0x1a8] sm:$0xff]   ;;  %v1063_v53 = vld [vmem:[%s1344_s1 + $0x1a0] sm:$0xff]   ;;  %v1064_v54 = vld [vmem:[%s1344_s1 + $0x158] sm:$0xff]  }
  0x12   :  { %935 = vmatprep.subr.bf16.mxu1 %v1029_v17  ;;  %674 = vmatprep.mubr.bf16.mxu1 %v828_v37  ;;  %v1065_v55 = vld [vmem:[%s1344_s1 + $0x118] sm:$0xff]   ;;  %v1068_v58 = vld [vmem:[%s1344_s1 + $0x150] sm:$0xff]   ;;  %v1072_v62 = vld [vmem:[%s1344_s1 + $0x148] sm:$0xff]  }
  0x13   :  { %v1066_v56 = vld [vmem:[%s1344_s1 + $0x1d8] sm:$0xff]   ;;  %v1069_v59 = vld [vmem:[%s1344_s1 + $0x110] sm:$0xff]   ;;  %v1073_v63 = vld [vmem:[%s1344_s1 + $0x108] sm:$0xff]  }
  0x14   :  { %914 = vmatpush3.bf16.msra.mxu0 %v1030_v18  ;;  %v1067_v57 = vld [vmem:[%s1344_s1 + $0x198] sm:$0xff]   ;;  %v1070_v60 = vld [vmem:[%s1344_s1 + $0x1d0] sm:$0xff]   ;;  %v1074_v0 = vld [vmem:[%s1344_s1 + $0x1c8] sm:$0xff]  }
  0x15   :  { %936 = vmatpush3.bf16.msra.mxu1 %v1031_v19  ;;  %915 = vmatprep.subr.bf16.mxu0 %v1032_v20  ;;  %v1071_v61 = vld [vmem:[%s1344_s1 + $0x190] sm:$0xff]   ;;  %v1075_v1 = vld [vmem:[%s1344_s1 + $0x188] sm:$0xff]   ;;  %v1076_v2 = vld [vmem:[%s1344_s1 + $0x140] sm:$0xff]  }
  0x16   :  { %937 = vmatprep.subr.bf16.mxu1 %v1033_v21  ;;  %v1077_v3 = vld [vmem:[%s1344_s1 + $0x100] sm:$0xff]   ;;  %v20_v5 = vld [vmem:[%s1345_s0 + $0x10] sm:$0xff]  ;;  %v21_v9 = vld [vmem:[%s1345_s0 + $0x18] sm:$0xff] }
  0x17   :  { %v1078_v4 = vld [vmem:[%s1344_s1 + $0x1c0] sm:$0xff]   ;;  %v830_v6 = vcombine.high %v20_v5, %v20_v5  ;;  %v829_v8 = vcombine.low %v20_v5, %v20_v5  ;;  %v1084_v10 = vld [vmem:[%s1344_s1 + $0x218] ss:$0 sps:$4 sm:$0xff]   ;;  %v831_v11 = vcombine.low %v21_v9, %v21_v9  ;;  %v832_v12 = vcombine.high %v21_v9, %v21_v9  ;;  %v1085_v15 = vld [vmem:[%s1344_s1 + $0x210] sm:$0xff]  }
  0x18   :  { %916 = vmatpush3.bf16.msra.mxu0 %v1034_v22  ;;  %v1081_v7 = vld [vmem:[%s1344_s1 + $0x180] sm:$0xff]   ;;  %v600_v14 = vsel %vm598_vm0, %v1084_v10, 0  ;;  %v1086_v16 = vld [vmem:[%s1344_s1 + $0x208] sm:$0xff]  }
  0x19   :  { %938 = vmatpush3.bf16.msra.mxu1 %v1035_v23  ;;  %917 = vmatprep.subr.bf16.mxu0 %v1036_v24  ;;  %v1087_v17 = vld [vmem:[%s1344_s1 + $0x200] sm:$0xff]  }
  0x1a   :  { %939 = vmatprep.subr.bf16.mxu1 %v1037_v25  ;;  %v1088_v18 = vld [vmem:[%s1345_s0 + $0x20] ss:$0 sps:$4 sm:$0xff]  }
  0x1c   :  { %918 = vmatpush3.bf16.msra.mxu0 %v1038_v26 }
  0x1d   :  { %940 = vmatpush3.bf16.msra.mxu1 %v1039_v27  ;;  %919 = vmatprep.subr.bf16.mxu0 %v1040_v28 }
  0x1e   :  { %941 = vmatprep.subr.bf16.mxu1 %v1041_v29 }
  0x20   :  { %920 = vmatpush3.bf16.msra.mxu0 %v1042_v30 }
  0x21   :  { %942 = vmatpush3.bf16.msra.mxu1 %v1043_v31  ;;  %949 = vmatprep.subr.bf16.mxu0 %v1048_v38 }
  0x22   :  { %971 = vmatprep.subr.bf16.mxu1 %v1050_v40 }
  0x23   :  { %635 = vmatmul.mubr.bf16.vlgmr.msra.gmra.mxu0 %v825_v34 }
  0x24   :  { %675 = vmatmul.mubr.bf16.vlgmr.msra.gmra.mxu1 %v827_v36  ;;  %950 = vmatpush3.bf16.msra.mxu0 %v1049_v39 }
  0x25   :  { %972 = vmatpush3.bf16.msra.mxu1 %v1051_v41  ;;  %951 = vmatprep.subr.bf16.mxu0 %v1052_v42 }
  0x26   :  { %973 = vmatprep.subr.bf16.mxu1 %v1054_v44  ;;  %714 = vmatprep.mubr.bf16.mxu0 %v830_v6 }
  0x27   :  { %754 = vmatprep.mubr.bf16.mxu1 %v832_v12 }
  0x28   :  { %952 = vmatpush3.bf16.msra.mxu0 %v1053_v43  ;;  %v903_v43 = vld [vmem:[%s1346_s2] ss:$0 sm:$0xff] }
  0x29   :  { %974 = vmatpush3.bf16.msra.mxu1 %v1055_v45  ;;  %953 = vmatprep.subr.bf16.mxu0 %v1056_v46  ;;  %v904_v45 = vld [vmem:[%s1347_s3] ss:$0 sm:$0xff] }
  0x2a   :  { %975 = vmatprep.subr.bf16.mxu1 %v1058_v48 }
  0x2c   :  { %954 = vmatpush3.bf16.msra.mxu0 %v1057_v47 }
  0x2d   :  { %976 = vmatpush3.bf16.msra.mxu1 %v1059_v49  ;;  %955 = vmatprep.subr.bf16.mxu0 %v1060_v50 }
  0x2e   :  { %977 = vmatprep.subr.bf16.mxu1 %v1062_v52 }
  0x30   :  { %956 = vmatpush3.bf16.msra.mxu0 %v1061_v51 }
  0x31   :  { %978 = vmatpush3.bf16.msra.mxu1 %v1063_v53  ;;  %957 = vmatprep.subr.bf16.mxu0 %v1064_v54 }
  0x32   :  { %979 = vmatprep.subr.bf16.mxu1 %v1066_v56 }
  0x34   :  { %958 = vmatpush3.bf16.msra.mxu0 %v1065_v55 }
  0x35   :  { %980 = vmatpush3.bf16.msra.mxu1 %v1067_v57  ;;  %959 = vmatprep.subr.bf16.mxu0 %v1068_v58 }
  0x36   :  { %981 = vmatprep.subr.bf16.mxu1 %v1070_v60 }
  0x38   :  { %960 = vmatpush3.bf16.msra.mxu0 %v1069_v59 }
  0x39   :  { %982 = vmatpush3.bf16.msra.mxu1 %v1071_v61  ;;  %961 = vmatprep.subr.bf16.mxu0 %v1072_v62 }
  0x3a   :  { %983 = vmatprep.subr.bf16.mxu1 %v1074_v0 }
  0x3c   :  { %962 = vmatpush3.bf16.msra.mxu0 %v1073_v63 }
  0x3d   :  { %984 = vmatpush3.bf16.msra.mxu1 %v1075_v1  ;;  %963 = vmatprep.subr.bf16.mxu0 %v1076_v2 }
  0x3e   :  { %985 = vmatprep.subr.bf16.mxu1 %v1078_v4 }
  0x40   :  { %964 = vmatpush3.bf16.msra.mxu0 %v1077_v3 }
  0x41   :  { %986 = vmatpush3.bf16.msra.mxu1 %v1081_v7  ;;  %998 = vmatprep.subr.bf16.mxu0 %v1089_v13 }
  0x43   :  { %715 = vmatmul.mubr.bf16.vlgmr.msra.gmra.mxu0 %v829_v8 }
  0x44   :  { %999 = vmatpush3.bf16.msra.mxu0 %v600_v14  ;;  %755 = vmatmul.mubr.bf16.vlgmr.msra.gmra.mxu1 %v831_v11 }
  0x45   :  { %1000 = vmatprep.subr.bf16.mxu0 %v1089_v13  ;;  %1006 = vmatprep.mubr.msk.bf16.mxu0 %vm1090_vm1, %v1089_v13 }
  0x48   :  { %1001 = vmatpush3.bf16.msra.mxu0 %v1085_v15 }
  0x49   :  { %1002 = vmatprep.subr.bf16.mxu0 %v1089_v13 }
  0x4c   :  { %1003 = vmatpush3.bf16.msra.mxu0 %v1086_v16 }
  0x4d   :  { %1004 = vmatprep.subr.bf16.mxu0 %v1089_v13 }
  0x50   :  { %1005 = vmatpush3.bf16.msra.mxu0 %v1087_v17 }
  0x53   :  { %1007 = vmatmul.mubr.msk.bf16.vlgmr.msra.gmra.mxu0 %vm594_vm2, %v1088_v18 }
  0xe3   :  { %v921_v19 = vpop.f32.mrf.mxu0 }
  0xe4   :  { %v943_v20 = vpop.f32.mrf.mxu1 }
  0xe5   :  { %v922_v21 = vpop.f32.mrf.mxu0 }
  0xe6   :  { %v944_v22 = vpop.f32.mrf.mxu1  ;;  %v923_v32 = vadd.f32 %v922_v21, %v921_v19 }
  0xe7   :  { %v924_v23 = vpop.f32.mrf.mxu0  ;;  %v945_v33 = vadd.f32 %v944_v22, %v943_v20 }
  0xe8   :  { %v946_v24 = vpop.f32.mrf.mxu1 }
  0xe9   :  { %v925_v25 = vpop.f32.mrf.mxu0  ;;  %v677_v38 = vadd.f32 %v945_v33, %v923_v32 }
  0xea   :  { %v947_v26 = vpop.f32.mrf.mxu1 }
 0x103   :  { %v965_v27 = vpop.f32.mrf.mxu0 }
 0x104   :  { %v987_v28 = vpop.f32.mrf.mxu1 }
 0x105   :  { %v966_v29 = vpop.f32.mrf.mxu0 }
 0x106   :  { %v988_v30 = vpop.f32.mrf.mxu1  ;;  %v967_v36 = vadd.f32 %v966_v29, %v965_v27 }
 0x107   :  { %v968_v31 = vpop.f32.mrf.mxu0  ;;  %v989_v40 = vadd.f32 %v988_v30, %v987_v28 }
 0x108   :  { %v990_v34 = vpop.f32.mrf.mxu1  ;;  %v717_v39 = vadd.f32 %v967_v36, %v677_v38 }
 0x109   :  { %v969_v35 = vpop.f32.mrf.mxu0 }
 0x10a   :  { %v991_v37 = vpop.f32.mrf.mxu1  ;;  %v757_v41 = vadd.f32 %v989_v40, %v717_v39 }
 0x113   :  { %v796_v42 = vpop.f32.mrf.mxu0 }
 0x114   :  { %v797_v44 = vadd.f32 %v796_v42, %v757_v41 }
 0x115   :  { %v1008_v46 = vpop.f32.mrf.mxu0 }
 0x116   :  { %v809_v47 = vmul.f32 %v903_v43, %v797_v44 }
 0x117   :  { %v799_v48 = vpop.f32.mrf.mxu0 }
 0x118   :  { %v817_v49 = vadd.f32 %v904_v45, %v809_v47 }
 0x119   :  { %v1009_v50 = vpop.f32.mrf.mxu0 }
 0x11a   :  { %v818_v51 = vmax.f32 %v817_v49, 0.0 }
 0x11c   :  { %820 = vst.msk [vmem:[%s1348_s4] sm:$0xff] %vm819_vm3, %v818_v51 }

// kernel: _lambda_.28
= control target key start
LH: loop header
LB: loop body
LE: loop exit
PB: predicated region body
PF: predicated region fallthrough
CT: control target
= control target key end

     0   :  { %v526_v0 = vmov 0   ;;  %vm280_vm0 = vcmask 392192   ;;  %s692_s1 = inlined_call_operand.vmem [shape: bf16[432,48], index: 1, kind: input, shape index: {}]   ;;  %s693_s0 = inlined_call_operand.vmem [shape: bf16[32,432], index: 0, kind: input, shape index: {}]   ;;  %s694_s2 = inlined_call_operand.vmem [shape: f32[1,48], index: 2, kind: input, shape index: {}]   ;;  %s695_s3 = inlined_call_operand.vmem [shape: f32[1,48], index: 3, kind: input, shape index: {}]   ;;  %s696_s4 = inlined_call_operand.vmem [shape: f32[32,48], index: 4, kind: output, shape index: {}]  }
   0x1   :  { %336 = vmatprep.subr.bf16.mxu1 %v526_v0  ;;  %v487_v1 = vld [vmem:[%s692_s1 + $0xb8] sm:$0xff]   ;;  %v490_v4 = vld [vmem:[%s692_s1 + $0xb0] sm:$0xff]   ;;  %v493_v7 = vld [vmem:[%s692_s1 + $0xa8] sm:$0xff]  }
   0x2   :  { %v488_v2 = vld [vmem:[%s692_s1 + $0x78] sm:$0xff]   ;;  %337 = vmatpush1.bf16.msra.mxu1 %v487_v1  ;;  %v491_v5 = vld [vmem:[%s692_s1 + $0x70] sm:$0xff]   ;;  %v494_v8 = vld [vmem:[%s692_s1 + $0x68] sm:$0xff]  }
   0x3   :  { %v489_v3 = vld [vmem:[%s692_s1 + $0x38] sm:$0xff]   ;;  %458 = vmatprep.subr.bf16.mxu0 %v488_v2  ;;  %338 = vmatprep.subr.bf16.mxu1 %v526_v0  ;;  %v492_v6 = vld [vmem:[%s692_s1 + $0x30] sm:$0xff]   ;;  %v495_v9 = vld [vmem:[%s692_s1 + $0x28] sm:$0xff]  }
   0x4   :  { %459 = vmatpush3.bf16.msra.mxu0 %v489_v3  ;;  %v496_v10 = vld [vmem:[%s692_s1 + $0xa0] sm:$0xff]   ;;  %v500_v13 = vld [vmem:[%s692_s1 + $0x58] sm:$0xff]   ;;  %v503_v16 = vld [vmem:[%s692_s1 + $0x50] sm:$0xff]  }
   0x5   :  { %460 = vmatprep.subr.bf16.mxu0 %v491_v5  ;;  %v497_v11 = vld [vmem:[%s692_s1 + $0x60] sm:$0xff]   ;;  %v499_v14 = vld [vmem:[%s692_s1 + $0x98] sm:$0xff]   ;;  %v502_v17 = vld [vmem:[%s692_s1 + $0x90] sm:$0xff]  }
   0x6   :  { %339 = vmatpush1.bf16.msra.mxu1 %v490_v4  ;;  %v498_v12 = vld [vmem:[%s692_s1 + $0x20] sm:$0xff]   ;;  %v501_v15 = vld [vmem:[%s692_s1 + $0x18] sm:$0xff]   ;;  %v504_v18 = vld [vmem:[%s692_s1 + $0x10] sm:$0xff]  }
   0x7   :  { %340 = vmatprep.subr.bf16.mxu1 %v526_v0  ;;  %v506_v19 = vld [vmem:[%s692_s1 + $0x48] sm:$0xff]   ;;  %v509_v22 = vld [vmem:[%s692_s1 + $0x40] sm:$0xff]   ;;  %v514_v26 = vld [vmem:[%s692_s1 + $0xd0] sm:$0xff]  }
   0x8   :  { %461 = vmatpush3.bf16.msra.mxu0 %v492_v6  ;;  %v505_v20 = vld [vmem:[%s692_s1 + $0x88] sm:$0xff]   ;;  %v513_v23 = vld [vmem:[%s693_s0 + $0x4] ss:$16 sps:$4 sm:$0xff]   ;;  %v511_v28 = vld [vmem:[%s693_s0] ss:$16 sps:$4 sm:$0xff]  }
   0x9   :  { %462 = vmatprep.subr.bf16.mxu0 %v494_v8  ;;  %v507_v21 = vld [vmem:[%s692_s1 + $0x8] sm:$0xff]   ;;  %v508_v24 = vld [vmem:[%s692_s1 + $0x80] sm:$0xff]   ;;  %319 = vmatprep.mubr.bf16.mxu0 %v513_v23 }
   0xa   :  { %341 = vmatpush1.bf16.msra.mxu1 %v493_v7  ;;  %v510_v25 = vld [vmem:[%s692_s1] sm:$0xff]   ;;  %v522_v27 = vld [vmem:[%s693_s0 + $0xc] ss:$16 sps:$4 sm:$0xff]   ;;  %v520_v33 = vld [vmem:[%s693_s0 + $0x8] ss:$16 sps:$4 sm:$0xff]  }
   0xb   :  { %342 = vmatprep.subr.bf16.mxu1 %v526_v0  ;;  %v516_v29 = vld [vmem:[%s693_s0 + $0x24] ss:$16 sps:$4 sm:$0xff]   ;;  %454 = vmatprep.mubr.msk.bf16.mxu1 %vm280_vm0, %v522_v27  ;;  %v515_v30 = vld [vmem:[%s692_s1 + $0xc8] sm:$0xff]   ;;  %v519_v32 = vld [vmem:[%s693_s0 + $0x20] ss:$16 sps:$4 sm:$0xff]  }
   0xc   :  { %463 = vmatpush3.bf16.msra.mxu0 %v495_v9  ;;  %v518_v31 = vld [vmem:[%s692_s1 + $0xc0] sm:$0xff]   ;;  %v523_v34 = vld [vmem:[%s693_s0 + $0x2c] ss:$16 sps:$4 sm:$0xff]   ;;  %v525_v35 = vld [vmem:[%s693_s0 + $0x28] ss:$16 sps:$4 sm:$0xff]  }
   0xd   :  { %464 = vmatprep.subr.bf16.mxu0 %v497_v11  ;;  %v456_v44 = vld [vmem:[%s694_s2] ss:$0 sm:$0xff] }
   0xe   :  { %343 = vmatpush1.bf16.msra.mxu1 %v496_v10  ;;  %v457_v46 = vld [vmem:[%s695_s3] ss:$0 sm:$0xff] }
   0xf   :  { %344 = vmatprep.subr.bf16.mxu1 %v526_v0 }
  0x10   :  { %465 = vmatpush3.bf16.msra.mxu0 %v498_v12 }
  0x11   :  { %466 = vmatprep.subr.bf16.mxu0 %v500_v13 }
  0x12   :  { %345 = vmatpush1.bf16.msra.mxu1 %v499_v14 }
  0x13   :  { %346 = vmatprep.subr.bf16.mxu1 %v526_v0 }
  0x14   :  { %467 = vmatpush3.bf16.msra.mxu0 %v501_v15 }
  0x15   :  { %468 = vmatprep.subr.bf16.mxu0 %v503_v16 }
  0x16   :  { %347 = vmatpush1.bf16.msra.mxu1 %v502_v17 }
  0x17   :  { %348 = vmatprep.subr.bf16.mxu1 %v526_v0 }
  0x18   :  { %469 = vmatpush3.bf16.msra.mxu0 %v504_v18 }
  0x19   :  { %470 = vmatprep.subr.bf16.mxu0 %v506_v19 }
  0x1a   :  { %349 = vmatpush1.bf16.msra.mxu1 %v505_v20 }
  0x1b   :  { %350 = vmatprep.subr.bf16.mxu1 %v526_v0 }
  0x1c   :  { %471 = vmatpush3.bf16.msra.mxu0 %v507_v21 }
  0x1d   :  { %472 = vmatprep.subr.bf16.mxu0 %v509_v22 }
  0x1e   :  { %351 = vmatpush1.bf16.msra.mxu1 %v508_v24 }
  0x1f   :  { %362 = vmatprep.subr.bf16.mxu1 %v526_v0 }
  0x20   :  { %473 = vmatpush3.bf16.msra.mxu0 %v510_v25 }
  0x22   :  { %363 = vmatpush2.bf16.msra.mxu1 %v514_v26 }
  0x23   :  { %320 = vmatmul.mubr.bf16.vlgmr.msra.gmra.mxu0 %v511_v28  ;;  %364 = vmatprep.subr.bf16.mxu1 %v526_v0 }
  0x24   :  { %327 = vmatprep.mubr.bf16.mxu0 %v516_v29 }
  0x26   :  { %365 = vmatpush2.bf16.msra.mxu1 %v515_v30 }
  0x27   :  { %366 = vmatprep.subr.bf16.mxu1 %v526_v0 }
  0x2a   :  { %367 = vmatpush2.bf16.msra.mxu1 %v518_v31 }
  0x2b   :  { %328 = vmatmul.mubr.bf16.gmra.mxu0 %v519_v32 }
  0x2d   :  { %369 = vmatmul.mubr.bf16.vlgmr.msra.gmra.mxu1 %v520_v33 }
  0x2e   :  { %455 = vmatprep.mubr.msk.bf16.mxu1 %vm280_vm0, %v523_v34 }
  0x35   :  { %377 = vmatmul.mubr.bf16.gmra.mxu1 %v525_v35 }
  0xe3   :  { %v474_v36 = vpop.f32.mrf.mxu0 }
  0xe5   :  { %v475_v37 = vpop.f32.mrf.mxu0 }
  0xe6   :  { %v476_v41 = vadd.f32 %v475_v37, %v474_v36 }
  0xe7   :  { %v477_v38 = vpop.f32.mrf.mxu0 }
  0xe9   :  { %v478_v39 = vpop.f32.mrf.mxu0 }
  0xea   :  { %v479_v48 = vadd.f32 %v478_v39, %v477_v38 }
  0xeb   :  { %v480_v40 = vpop.f32.mrf.mxu0 }
  0xed   :  { %v481_v42 = vpop.f32.mrf.mxu0  ;;  %v370_v43 = vpop.f32.mrf.mxu1 }
  0xee   :  { %v371_v45 = vadd.f32 %v476_v41, %v370_v43  ;;  %v482_v55 = vadd.f32 %v481_v42, %v480_v40 }
  0xef   :  { %v372_v47 = vpop.f32.mrf.mxu1  ;;  %v483_v50 = vpop.f32.mrf.mxu0 }
  0xf0   :  { %v392_v49 = vmul.f32 %v456_v44, %v371_v45 }
  0xf1   :  { %v373_v51 = vpop.f32.mrf.mxu1  ;;  %v484_v58 = vpop.f32.mrf.mxu0 }
  0xf2   :  { %v403_v52 = vadd.f32 %v457_v46, %v392_v49  ;;  %v374_v53 = vadd.f32 %v479_v48, %v373_v51  ;;  %v485_v63 = vadd.f32 %v484_v58, %v483_v50 }
  0xf3   :  { %v375_v54 = vpop.f32.mrf.mxu1 }
  0xf4   :  { %v407_v56 = vmax.f32 %v403_v52, 0.0  ;;  %v393_v57 = vmul.f32 %v456_v44, %v374_v53 }
  0xf5   :  { %v378_v59 = vpop.f32.mrf.mxu1 }
  0xf6   :  { %411 = vst.msk [vmem:[%s696_s4] sm:$0xff] %vm280_vm0, %v407_v56  ;;  %v404_v60 = vadd.f32 %v457_v46, %v393_v57  ;;  %v379_v61 = vadd.f32 %v482_v55, %v378_v59 }
  0xf7   :  { %v380_v62 = vpop.f32.mrf.mxu1 }
  0xf8   :  { %v408_v0 = vmax.f32 %v404_v60, 0.0  ;;  %v394_v1 = vmul.f32 %v456_v44, %v379_v61 }
  0xf9   :  { %v381_v2 = vpop.f32.mrf.mxu1 }
  0xfa   :  { %412 = vst.msk [vmem:[%s696_s4 + $0x8] sm:$0xff] %vm280_vm0, %v408_v0  ;;  %v405_v3 = vadd.f32 %v457_v46, %v394_v1  ;;  %v382_v4 = vadd.f32 %v485_v63, %v381_v2 }
  0xfb   :  { %v383_v5 = vpop.f32.mrf.mxu1 }
  0xfc   :  { %v409_v6 = vmax.f32 %v405_v3, 0.0  ;;  %v395_v7 = vmul.f32 %v456_v44, %v382_v4 }
  0xfe   :  { %413 = vst.msk [vmem:[%s696_s4 + $0x10] sm:$0xff] %vm280_vm0, %v409_v6  ;;  %v406_v8 = vadd.f32 %v457_v46, %v395_v7 }
 0x100   :  { %v410_v9 = vmax.f32 %v406_v8, 0.0 }
 0x102   :  { %414 = vst.msk [vmem:[%s696_s4 + $0x18] sm:$0xff] %vm280_vm0, %v410_v9 }

// kernel: _lambda_.29
= control target key start
LH: loop header
LB: loop body
LE: loop exit
PB: predicated region body
PF: predicated region fallthrough
CT: control target
= control target key end

     0   :  { %v217_v1 = vmov 0   ;;  %vm68_vm0 = vcmask 392192   ;;  %v130_v9 = vlaneseq  ;;  %vm177_vm1 = vcmask 523264   ;;  %s301_s1 = inlined_call_operand.vmem [shape: bf16[48,192], index: 1, kind: input, shape index: {}]   ;;  %s302_s0 = inlined_call_operand.vmem [shape: bf16[32,48], index: 0, kind: input, shape index: {}]   ;;  %s303_s2 = inlined_call_operand.vmem [shape: f32[1,192], index: 2, kind: input, shape index: {}]   ;;  %s304_s3 = inlined_call_operand.vmem [shape: f32[1,192], index: 3, kind: input, shape index: {}]   ;;  %s305_s4 = inlined_call_operand.vmem [shape: f32[32,192], index: 4, kind: output, shape index: {}]  }
   0x1   :  { %v206_v0 = vld [vmem:[%s301_s1 + $0x24] ss:$8 sps:$4 sm:$0xff]   ;;  %107 = vmatprep.mubr.bf16.mxu0 %v217_v1  ;;  %117 = vmatprep.mubr.bf16.mxu1 %v217_v1  ;;  %v208_v2 = vld [vmem:[%s301_s1 + $0x20] ss:$8 sps:$4 sm:$0xff]   ;;  %v209_v3 = vld [vmem:[%s301_s1 + $0x14] ss:$8 sps:$4 sm:$0xff]  }
   0x2   :  { %85 = vmatprep.subr.bf16.mxu0 %v206_v0  ;;  %199 = vmatprep.subr.bf16.mxu1 %v206_v0  ;;  %v211_v4 = vld [vmem:[%s301_s1 + $0x10] ss:$8 sps:$4 sm:$0xff]   ;;  %v212_v5 = vld [vmem:[%s301_s1 + $0x4] ss:$8 sps:$4 sm:$0xff]   ;;  %v214_v6 = vld [vmem:[%s301_s1] ss:$8 sps:$4 sm:$0xff]  }
   0x3   :  { %86 = vmatpush1.bf16.msra.mxu0 %v208_v2  ;;  %202 = vmatpush1.bf16.msra.mxu1 %v208_v2  ;;  %v215_v7 = vld [vmem:[%s302_s0] sm:$0xff]   ;;  %v216_v8 = vld [vmem:[%s302_s0 + $0x8] sm:$0xff]   ;;  %v131_v10 = vshrl.u32 %v130_v9, 7 }
   0x4   :  { %87 = vmatprep.subr.bf16.mxu0 %v209_v3  ;;  %200 = vmatprep.subr.bf16.mxu1 %v209_v3  ;;  %v128_v12 = vld [vmem:[%s303_s2] sm:$0x3] }
   0x5   :  { %v132_v11 = vsub.s32 0, %v131_v10  ;;  %v136_v13 = vsub.s32 1, %v131_v10  ;;  %v148_v14 = vld [vmem:[%s304_s3] sm:$0x3] }
   0x7   :  { %88 = vmatpush1.bf16.msra.mxu0 %v211_v4  ;;  %203 = vmatpush1.bf16.msra.mxu1 %v211_v4  ;;  %v133_v15 = vrot.slane %v128_v12, %v132_v11  ;;  %v153_v16 = vrot.slane %v148_v14, %v132_v11  ;;  %v137_v17 = vrot.slane %v128_v12, %v136_v13 }
   0x8   :  { %89 = vmatprep.subr.bf16.mxu0 %v212_v5  ;;  %201 = vmatprep.subr.bf16.mxu1 %v212_v5  ;;  %v157_v22 = vrot.slane %v148_v14, %v136_v13 }
   0xb   :  { %90 = vmatpush1.bf16.msra.mxu0 %v214_v6  ;;  %204 = vmatpush1.bf16.msra.mxu1 %v214_v6 }
   0xe   :  { %197 = vmatmul.mubr.msk.bf16.vlgmr.msra.gmra.mxu0 %vm68_vm0, %v215_v7  ;;  %198 = vmatmul.mubr.msk.bf16.vlgmr.msra.gmra.mxu1 %vm68_vm0, %v216_v8 }
  0xce   :  { %v109_v18 = vpop.f32.mrf.mxu0  ;;  %v119_v19 = vpop.f32.mrf.mxu1 }
  0xcf   :  { %v140_v20 = vmul.f32 %v133_v15, %v109_v18  ;;  %v144_v21 = vmul.f32 %v133_v15, %v119_v19 }
  0xd0   :  { %v111_v23 = vpop.f32.mrf.mxu0  ;;  %v121_v24 = vpop.f32.mrf.mxu1 }
  0xd1   :  { %v160_v25 = vadd.f32 %v153_v16, %v140_v20  ;;  %v164_v26 = vadd.f32 %v153_v16, %v144_v21  ;;  %v141_v27 = vmul.f32 %v137_v17, %v111_v23  ;;  %v145_v28 = vmul.f32 %v137_v17, %v121_v24 }
  0xd2   :  { %v113_v29 = vpop.f32.mrf.mxu0  ;;  %v123_v30 = vpop.f32.mrf.mxu1 }
  0xd3   :  { %v168_v31 = vmax.f32 %v160_v25, 0.0  ;;  %v172_v32 = vmax.f32 %v164_v26, 0.0  ;;  %v161_v33 = vadd.f32 %v157_v22, %v141_v27  ;;  %v165_v34 = vadd.f32 %v157_v22, %v145_v28 }
  0xd4   :  { %v142_v35 = vmul.f32 %v133_v15, %v113_v29  ;;  %v146_v36 = vmul.f32 %v133_v15, %v123_v30  ;;  %v115_v37 = vpop.f32.mrf.mxu0  ;;  %v125_v38 = vpop.f32.mrf.mxu1 }
  0xd5   :  { %176 = vst [vmem:[%s305_s4] sm:$0xff] %v168_v31  ;;  %181 = vst [vmem:[%s305_s4 + $0x20] sm:$0xff] %v172_v32  ;;  %v169_v39 = vmax.f32 %v161_v33, 0.0  ;;  %v173_v40 = vmax.f32 %v165_v34, 0.0  ;;  %v143_v41 = vmul.f32 %v137_v17, %v115_v37  ;;  %v147_v42 = vmul.f32 %v137_v17, %v125_v38 }
  0xd6   :  { %v162_v43 = vadd.f32 %v153_v16, %v142_v35  ;;  %v166_v44 = vadd.f32 %v153_v16, %v146_v36 }
  0xd7   :  { %178 = vst.msk [vmem:[%s305_s4 + $0x8] sm:$0xff] %vm177_vm1, %v169_v39  ;;  %182 = vst.msk [vmem:[%s305_s4 + $0x28] sm:$0xff] %vm177_vm1, %v173_v40  ;;  %v163_v45 = vadd.f32 %v157_v22, %v143_v41  ;;  %v167_v46 = vadd.f32 %v157_v22, %v147_v42 }
  0xd8   :  { %v170_v47 = vmax.f32 %v162_v43, 0.0  ;;  %v174_v48 = vmax.f32 %v166_v44, 0.0 }
  0xd9   :  { %v171_v49 = vmax.f32 %v163_v45, 0.0  ;;  %v175_v50 = vmax.f32 %v167_v46, 0.0 }
  0xda   :  { %179 = vst [vmem:[%s305_s4 + $0x10] sm:$0xff] %v170_v47  ;;  %183 = vst [vmem:[%s305_s4 + $0x30] sm:$0xff] %v174_v48 }
  0xdb   :  { %180 = vst.msk [vmem:[%s305_s4 + $0x18] sm:$0xff] %vm177_vm1, %v171_v49  ;;  %184 = vst.msk [vmem:[%s305_s4 + $0x38] sm:$0xff] %vm177_vm1, %v175_v50 }

// kernel: _lambda_.30
= control target key start
LH: loop header
LB: loop body
LE: loop exit
PB: predicated region body
PF: predicated region fallthrough
CT: control target
= control target key end

     0   :  { %v451_v1 = vmov 0   ;;  %vm110_vm0 = vcmask 392192   ;;  %v250_v15 = vlaneseq  ;;  %vm369_vm1 = vcmask 523264   ;;  %s717_s1 = inlined_call_operand.vmem [shape: bf16[48,192], index: 1, kind: input, shape index: {}]   ;;  %s718_s0 = inlined_call_operand.vmem [shape: bf16[128,48], index: 0, kind: input, shape index: {}]   ;;  %s719_s2 = inlined_call_operand.vmem [shape: f32[1,192], index: 2, kind: input, shape index: {}]   ;;  %s720_s3 = inlined_call_operand.vmem [shape: f32[1,192], index: 3, kind: input, shape index: {}]   ;;  %s721_s4 = inlined_call_operand.vmem [shape: f32[128,192], index: 4, kind: output, shape index: {}]  }
   0x1   :  { %v434_v0 = vld [vmem:[%s717_s1 + $0x24] ss:$8 sps:$4 sm:$0xff]   ;;  %167 = vmatprep.mubr.bf16.mxu0 %v451_v1  ;;  %207 = vmatprep.mubr.bf16.mxu1 %v451_v1  ;;  %v436_v2 = vld [vmem:[%s717_s1 + $0x20] ss:$8 sps:$4 sm:$0xff]   ;;  %v437_v3 = vld [vmem:[%s717_s1 + $0x14] ss:$8 sps:$4 sm:$0xff]  }
   0x2   :  { %145 = vmatprep.subr.bf16.mxu0 %v434_v0  ;;  %427 = vmatprep.subr.bf16.mxu1 %v434_v0  ;;  %v439_v4 = vld [vmem:[%s717_s1 + $0x10] ss:$8 sps:$4 sm:$0xff]   ;;  %v440_v5 = vld [vmem:[%s717_s1 + $0x4] ss:$8 sps:$4 sm:$0xff]   ;;  %v442_v6 = vld [vmem:[%s717_s1] ss:$8 sps:$4 sm:$0xff]  }
   0x3   :  { %146 = vmatpush1.bf16.msra.mxu0 %v436_v2  ;;  %430 = vmatpush1.bf16.msra.mxu1 %v436_v2  ;;  %v443_v7 = vld [vmem:[%s718_s0] sm:$0xff]   ;;  %v445_v9 = vld [vmem:[%s718_s0 + $0x8] sm:$0xff]   ;;  %v447_v11 = vld [vmem:[%s718_s0 + $0x10] sm:$0xff]   ;;  %v251_v16 = vshrl.u32 %v250_v15, 7 }
   0x4   :  { %147 = vmatprep.subr.bf16.mxu0 %v437_v3  ;;  %428 = vmatprep.subr.bf16.mxu1 %v437_v3  ;;  %v444_v8 = vld [vmem:[%s718_s0 + $0x20] sm:$0xff]   ;;  %v446_v10 = vld [vmem:[%s718_s0 + $0x28] sm:$0xff]   ;;  %v448_v12 = vld [vmem:[%s718_s0 + $0x30] sm:$0xff]  }
   0x5   :  { %v449_v13 = vld [vmem:[%s718_s0 + $0x18] sm:$0xff]   ;;  %v252_v17 = vsub.s32 0, %v251_v16  ;;  %v248_v18 = vld [vmem:[%s719_s2] sm:$0x3]  ;;  %v256_v19 = vsub.s32 1, %v251_v16 }
   0x6   :  { %v450_v14 = vld [vmem:[%s718_s0 + $0x38] sm:$0xff]   ;;  %v292_v20 = vld [vmem:[%s720_s3] sm:$0x3] }
   0x7   :  { %148 = vmatpush1.bf16.msra.mxu0 %v439_v4  ;;  %431 = vmatpush1.bf16.msra.mxu1 %v439_v4  ;;  %v533_v21 = vrot.slane %v248_v18, %v252_v17  ;;  %v535_v22 = vrot.slane %v292_v20, %v252_v17  ;;  %v537_v23 = vrot.slane %v248_v18, %v256_v19 }
   0x8   :  { %149 = vmatprep.subr.bf16.mxu0 %v440_v5  ;;  %429 = vmatprep.subr.bf16.mxu1 %v440_v5  ;;  %v541_v28 = vrot.slane %v292_v20, %v256_v19 }
   0xb   :  { %150 = vmatpush1.bf16.msra.mxu0 %v442_v6  ;;  %432 = vmatpush1.bf16.msra.mxu1 %v442_v6 }
   0xe   :  { %419 = vmatmul.mubr.msk.bf16.vlgmr.msra.gmra.mxu0 %vm110_vm0, %v443_v7  ;;  %423 = vmatmul.mubr.msk.bf16.vlgmr.msra.gmra.mxu1 %vm110_vm0, %v444_v8 }
   0xf   :  { %177 = vmatprep.mubr.bf16.mxu0 %v451_v1  ;;  %217 = vmatprep.mubr.bf16.mxu1 %v451_v1 }
  0x16   :  { %420 = vmatmul.mubr.msk.bf16.gmra.mxu0 %vm110_vm0, %v445_v9  ;;  %424 = vmatmul.mubr.msk.bf16.gmra.mxu1 %vm110_vm0, %v446_v10 }
  0x17   :  { %187 = vmatprep.mubr.bf16.mxu0 %v451_v1  ;;  %227 = vmatprep.mubr.bf16.mxu1 %v451_v1 }
  0x1e   :  { %421 = vmatmul.mubr.msk.bf16.gmra.mxu0 %vm110_vm0, %v447_v11  ;;  %425 = vmatmul.mubr.msk.bf16.gmra.mxu1 %vm110_vm0, %v448_v12 }
  0x1f   :  { %197 = vmatprep.mubr.bf16.mxu0 %v451_v1  ;;  %237 = vmatprep.mubr.bf16.mxu1 %v451_v1 }
  0x26   :  { %422 = vmatmul.mubr.msk.bf16.gmra.mxu0 %vm110_vm0, %v449_v13  ;;  %426 = vmatmul.mubr.msk.bf16.gmra.mxu1 %vm110_vm0, %v450_v14 }
  0xce   :  { %v169_v24 = vpop.f32.mrf.mxu0  ;;  %v209_v25 = vpop.f32.mrf.mxu1 }
  0xcf   :  { %v260_v26 = vmul.f32 %v533_v21, %v169_v24  ;;  %v276_v27 = vmul.f32 %v533_v21, %v209_v25 }
  0xd0   :  { %v171_v29 = vpop.f32.mrf.mxu0  ;;  %v211_v30 = vpop.f32.mrf.mxu1 }
  0xd1   :  { %v304_v31 = vadd.f32 %v535_v22, %v260_v26  ;;  %v320_v32 = vadd.f32 %v535_v22, %v276_v27  ;;  %v261_v33 = vmul.f32 %v537_v23, %v171_v29  ;;  %v277_v34 = vmul.f32 %v537_v23, %v211_v30 }
  0xd2   :  { %v173_v35 = vpop.f32.mrf.mxu0  ;;  %v213_v36 = vpop.f32.mrf.mxu1 }
  0xd3   :  { %v336_v37 = vmax.f32 %v304_v31, 0.0  ;;  %v352_v38 = vmax.f32 %v320_v32, 0.0  ;;  %v305_v39 = vadd.f32 %v541_v28, %v261_v33  ;;  %v321_v40 = vadd.f32 %v541_v28, %v277_v34 }
  0xd4   :  { %v262_v41 = vmul.f32 %v533_v21, %v173_v35  ;;  %v278_v42 = vmul.f32 %v533_v21, %v213_v36  ;;  %v175_v43 = vpop.f32.mrf.mxu0  ;;  %v215_v44 = vpop.f32.mrf.mxu1 }
  0xd5   :  { %368 = vst [vmem:[%s721_s4] sm:$0xff] %v336_v37  ;;  %385 = vst [vmem:[%s721_s4 + $0x80] sm:$0xff] %v352_v38  ;;  %v337_v45 = vmax.f32 %v305_v39, 0.0  ;;  %v353_v46 = vmax.f32 %v321_v40, 0.0  ;;  %v263_v47 = vmul.f32 %v537_v23, %v175_v43  ;;  %v279_v48 = vmul.f32 %v537_v23, %v215_v44 }
  0xd6   :  { %v306_v49 = vadd.f32 %v535_v22, %v262_v41  ;;  %v322_v50 = vadd.f32 %v535_v22, %v278_v42  ;;  %v179_v51 = vpop.f32.mrf.mxu0  ;;  %v219_v52 = vpop.f32.mrf.mxu1 }
  0xd7   :  { %370 = vst.msk [vmem:[%s721_s4 + $0x8] sm:$0xff] %vm369_vm1, %v337_v45  ;;  %386 = vst.msk [vmem:[%s721_s4 + $0x88] sm:$0xff] %vm369_vm1, %v353_v46  ;;  %v307_v53 = vadd.f32 %v541_v28, %v263_v47  ;;  %v323_v54 = vadd.f32 %v541_v28, %v279_v48  ;;  %v264_v55 = vmul.f32 %v533_v21, %v179_v51 }
  0xd8   :  { %v280_v56 = vmul.f32 %v533_v21, %v219_v52  ;;  %v338_v57 = vmax.f32 %v306_v49, 0.0  ;;  %v354_v58 = vmax.f32 %v322_v50, 0.0  ;;  %v181_v59 = vpop.f32.mrf.mxu0  ;;  %v221_v60 = vpop.f32.mrf.mxu1 }
  0xd9   :  { %v339_v61 = vmax.f32 %v307_v53, 0.0  ;;  %v355_v62 = vmax.f32 %v323_v54, 0.0  ;;  %v308_v63 = vadd.f32 %v535_v22, %v264_v55  ;;  %v265_v1 = vmul.f32 %v537_v23, %v181_v59 }
  0xda   :  { %v324_v0 = vadd.f32 %v535_v22, %v280_v56  ;;  %371 = vst [vmem:[%s721_s4 + $0x10] sm:$0xff] %v338_v57  ;;  %387 = vst [vmem:[%s721_s4 + $0x90] sm:$0xff] %v354_v58  ;;  %v281_v2 = vmul.f32 %v537_v23, %v221_v60  ;;  %v183_v3 = vpop.f32.mrf.mxu0  ;;  %v223_v4 = vpop.f32.mrf.mxu1 }
  0xdb   :  { %372 = vst.msk [vmem:[%s721_s4 + $0x18] sm:$0xff] %vm369_vm1, %v339_v61  ;;  %388 = vst.msk [vmem:[%s721_s4 + $0x98] sm:$0xff] %vm369_vm1, %v355_v62  ;;  %v340_v5 = vmax.f32 %v308_v63, 0.0  ;;  %v266_v7 = vmul.f32 %v533_v21, %v183_v3  ;;  %v282_v8 = vmul.f32 %v533_v21, %v223_v4  ;;  %v309_v9 = vadd.f32 %v541_v28, %v265_v1 }
  0xdc   :  { %v356_v6 = vmax.f32 %v324_v0, 0.0  ;;  %v325_v10 = vadd.f32 %v541_v28, %v281_v2  ;;  %v185_v11 = vpop.f32.mrf.mxu0  ;;  %v225_v12 = vpop.f32.mrf.mxu1 }
  0xdd   :  { %373 = vst [vmem:[%s721_s4 + $0x20] sm:$0xff] %v340_v5  ;;  %v310_v13 = vadd.f32 %v535_v22, %v266_v7  ;;  %v326_v14 = vadd.f32 %v535_v22, %v282_v8  ;;  %v267_v15 = vmul.f32 %v537_v23, %v185_v11  ;;  %v283_v16 = vmul.f32 %v537_v23, %v225_v12 }
  0xde   :  { %389 = vst [vmem:[%s721_s4 + $0xa0] sm:$0xff] %v356_v6  ;;  %v341_v17 = vmax.f32 %v309_v9, 0.0  ;;  %v357_v18 = vmax.f32 %v325_v10, 0.0  ;;  %v189_v19 = vpop.f32.mrf.mxu0  ;;  %v229_v20 = vpop.f32.mrf.mxu1 }
  0xdf   :  { %v342_v24 = vmax.f32 %v310_v13, 0.0  ;;  %v358_v25 = vmax.f32 %v326_v14, 0.0  ;;  %v311_v26 = vadd.f32 %v541_v28, %v267_v15  ;;  %v327_v27 = vadd.f32 %v541_v28, %v283_v16 }
  0xe0   :  { %374 = vst.msk [vmem:[%s721_s4 + $0x28] sm:$0xff] %vm369_vm1, %v341_v17  ;;  %390 = vst.msk [vmem:[%s721_s4 + $0xa8] sm:$0xff] %vm369_vm1, %v357_v18  ;;  %v268_v29 = vmul.f32 %v533_v21, %v189_v19  ;;  %v284_v30 = vmul.f32 %v533_v21, %v229_v20  ;;  %v191_v31 = vpop.f32.mrf.mxu0  ;;  %v231_v32 = vpop.f32.mrf.mxu1 }
  0xe1   :  { %375 = vst [vmem:[%s721_s4 + $0x30] sm:$0xff] %v342_v24  ;;  %391 = vst [vmem:[%s721_s4 + $0xb0] sm:$0xff] %v358_v25  ;;  %v343_v33 = vmax.f32 %v311_v26, 0.0  ;;  %v359_v34 = vmax.f32 %v327_v27, 0.0  ;;  %v269_v35 = vmul.f32 %v537_v23, %v191_v31  ;;  %v285_v36 = vmul.f32 %v537_v23, %v231_v32 }
  0xe2   :  { %v312_v37 = vadd.f32 %v535_v22, %v268_v29  ;;  %v328_v38 = vadd.f32 %v535_v22, %v284_v30  ;;  %v193_v39 = vpop.f32.mrf.mxu0  ;;  %v233_v40 = vpop.f32.mrf.mxu1 }
  0xe3   :  { %376 = vst.msk [vmem:[%s721_s4 + $0x38] sm:$0xff] %vm369_vm1, %v343_v33  ;;  %392 = vst.msk [vmem:[%s721_s4 + $0xb8] sm:$0xff] %vm369_vm1, %v359_v34  ;;  %v313_v41 = vadd.f32 %v541_v28, %v269_v35  ;;  %v329_v42 = vadd.f32 %v541_v28, %v285_v36  ;;  %v270_v43 = vmul.f32 %v533_v21, %v193_v39 }
  0xe4   :  { %v286_v44 = vmul.f32 %v533_v21, %v233_v40  ;;  %v344_v45 = vmax.f32 %v312_v37, 0.0  ;;  %v360_v46 = vmax.f32 %v328_v38, 0.0  ;;  %v195_v47 = vpop.f32.mrf.mxu0  ;;  %v235_v48 = vpop.f32.mrf.mxu1 }
  0xe5   :  { %v345_v49 = vmax.f32 %v313_v41, 0.0  ;;  %v361_v50 = vmax.f32 %v329_v42, 0.0  ;;  %v314_v51 = vadd.f32 %v535_v22, %v270_v43  ;;  %v271_v53 = vmul.f32 %v537_v23, %v195_v47 }
  0xe6   :  { %v330_v52 = vadd.f32 %v535_v22, %v286_v44  ;;  %377 = vst [vmem:[%s721_s4 + $0x40] sm:$0xff] %v344_v45  ;;  %393 = vst [vmem:[%s721_s4 + $0xc0] sm:$0xff] %v360_v46  ;;  %v287_v54 = vmul.f32 %v537_v23, %v235_v48  ;;  %v199_v55 = vpop.f32.mrf.mxu0  ;;  %v239_v56 = vpop.f32.mrf.mxu1 }
  0xe7   :  { %378 = vst.msk [vmem:[%s721_s4 + $0x48] sm:$0xff] %vm369_vm1, %v345_v49  ;;  %394 = vst.msk [vmem:[%s721_s4 + $0xc8] sm:$0xff] %vm369_vm1, %v361_v50  ;;  %v346_v57 = vmax.f32 %v314_v51, 0.0  ;;  %v272_v59 = vmul.f32 %v533_v21, %v199_v55  ;;  %v288_v60 = vmul.f32 %v533_v21, %v239_v56  ;;  %v315_v61 = vadd.f32 %v541_v28, %v271_v53 }
  0xe8   :  { %v362_v58 = vmax.f32 %v330_v52, 0.0  ;;  %v331_v62 = vadd.f32 %v541_v28, %v287_v54  ;;  %v201_v63 = vpop.f32.mrf.mxu0  ;;  %v241_v0 = vpop.f32.mrf.mxu1 }
  0xe9   :  { %379 = vst [vmem:[%s721_s4 + $0x50] sm:$0xff] %v346_v57  ;;  %v316_v1 = vadd.f32 %v535_v22, %v272_v59  ;;  %v332_v2 = vadd.f32 %v535_v22, %v288_v60  ;;  %v273_v3 = vmul.f32 %v537_v23, %v201_v63  ;;  %v289_v4 = vmul.f32 %v537_v23, %v241_v0 }
  0xea   :  { %395 = vst [vmem:[%s721_s4 + $0xd0] sm:$0xff] %v362_v58  ;;  %v347_v5 = vmax.f32 %v315_v61, 0.0  ;;  %v363_v6 = vmax.f32 %v331_v62, 0.0  ;;  %v203_v7 = vpop.f32.mrf.mxu0  ;;  %v243_v8 = vpop.f32.mrf.mxu1 }
  0xeb   :  { %v348_v9 = vmax.f32 %v316_v1, 0.0  ;;  %v364_v10 = vmax.f32 %v332_v2, 0.0  ;;  %v317_v11 = vadd.f32 %v541_v28, %v273_v3  ;;  %v333_v12 = vadd.f32 %v541_v28, %v289_v4 }
  0xec   :  { %380 = vst.msk [vmem:[%s721_s4 + $0x58] sm:$0xff] %vm369_vm1, %v347_v5  ;;  %396 = vst.msk [vmem:[%s721_s4 + $0xd8] sm:$0xff] %vm369_vm1, %v363_v6  ;;  %v274_v13 = vmul.f32 %v533_v21, %v203_v7  ;;  %v290_v14 = vmul.f32 %v533_v21, %v243_v8  ;;  %v205_v15 = vpop.f32.mrf.mxu0  ;;  %v245_v16 = vpop.f32.mrf.mxu1 }
  0xed   :  { %381 = vst [vmem:[%s721_s4 + $0x60] sm:$0xff] %v348_v9  ;;  %397 = vst [vmem:[%s721_s4 + $0xe0] sm:$0xff] %v364_v10  ;;  %v349_v17 = vmax.f32 %v317_v11, 0.0  ;;  %v365_v18 = vmax.f32 %v333_v12, 0.0  ;;  %v275_v19 = vmul.f32 %v537_v23, %v205_v15  ;;  %v291_v20 = vmul.f32 %v537_v23, %v245_v16 }
  0xee   :  { %v318_v24 = vadd.f32 %v535_v22, %v274_v13  ;;  %v334_v21 = vadd.f32 %v535_v22, %v290_v14 }
  0xef   :  { %382 = vst.msk [vmem:[%s721_s4 + $0x68] sm:$0xff] %vm369_vm1, %v349_v17  ;;  %398 = vst.msk [vmem:[%s721_s4 + $0xe8] sm:$0xff] %vm369_vm1, %v365_v18  ;;  %v319_v25 = vadd.f32 %v541_v28, %v275_v19  ;;  %v335_v26 = vadd.f32 %v541_v28, %v291_v20 }
  0xf0   :  { %v350_v27 = vmax.f32 %v318_v24, 0.0  ;;  %v366_v23 = vmax.f32 %v334_v21, 0.0 }
  0xf1   :  { %v351_v29 = vmax.f32 %v319_v25, 0.0  ;;  %v367_v30 = vmax.f32 %v335_v26, 0.0 }
  0xf2   :  { %383 = vst [vmem:[%s721_s4 + $0x70] sm:$0xff] %v350_v27  ;;  %399 = vst [vmem:[%s721_s4 + $0xf0] sm:$0xff] %v366_v23 }
  0xf3   :  { %384 = vst.msk [vmem:[%s721_s4 + $0x78] sm:$0xff] %vm369_vm1, %v351_v29  ;;  %400 = vst.msk [vmem:[%s721_s4 + $0xf8] sm:$0xff] %vm369_vm1, %v367_v30 }

// kernel: _lambda_.34
= control target key start
LH: loop header
LB: loop body
LE: loop exit
PB: predicated region body
PF: predicated region fallthrough
CT: control target
= control target key end

     0   :  { %v469_v1 = vmov 0   ;;  %vm122_vm0 = vcmask 523264   ;;  %v262_v17 = vlaneseq  ;;  %s725_s1 = inlined_call_operand.vmem [shape: bf16[64,256], index: 1, kind: input, shape index: {}]   ;;  %s726_s0 = inlined_call_operand.vmem [shape: bf16[128,64], index: 0, kind: input, shape index: {}]   ;;  %s727_s2 = inlined_call_operand.vmem [shape: f32[1,256], index: 2, kind: input, shape index: {}]   ;;  %s728_s3 = inlined_call_operand.vmem [shape: f32[1,256], index: 3, kind: input, shape index: {}]   ;;  %s729_s4 = inlined_call_operand.vmem [shape: f32[128,256], index: 4, kind: output, shape index: {}]  }
   0x1   :  { %v449_v0 = vld [vmem:[%s725_s1 + $0x34] ss:$8 sps:$4 sm:$0xff]   ;;  %179 = vmatprep.mubr.bf16.mxu0 %v469_v1  ;;  %219 = vmatprep.mubr.bf16.mxu1 %v469_v1  ;;  %v451_v2 = vld [vmem:[%s725_s1 + $0x30] ss:$8 sps:$4 sm:$0xff]   ;;  %v452_v3 = vld [vmem:[%s725_s1 + $0x24] ss:$8 sps:$4 sm:$0xff]  }
   0x2   :  { %155 = vmatprep.subr.bf16.mxu0 %v449_v0  ;;  %440 = vmatprep.subr.bf16.mxu1 %v449_v0  ;;  %v454_v4 = vld [vmem:[%s725_s1 + $0x20] ss:$8 sps:$4 sm:$0xff]   ;;  %v455_v5 = vld [vmem:[%s725_s1 + $0x14] ss:$8 sps:$4 sm:$0xff]   ;;  %v457_v6 = vld [vmem:[%s725_s1 + $0x10] ss:$8 sps:$4 sm:$0xff]  }
   0x3   :  { %156 = vmatpush1.bf16.msra.mxu0 %v451_v2  ;;  %444 = vmatpush1.bf16.msra.mxu1 %v451_v2  ;;  %v458_v7 = vld [vmem:[%s725_s1 + $0x4] ss:$8 sps:$4 sm:$0xff]   ;;  %v460_v8 = vld [vmem:[%s725_s1] ss:$8 sps:$4 sm:$0xff]   ;;  %v465_v13 = vld [vmem:[%s726_s0 + $0x10] sm:$0xff]   ;;  %v263_v18 = vshrl.u32 %v262_v17, 7 }
   0x4   :  { %157 = vmatprep.subr.bf16.mxu0 %v452_v3  ;;  %441 = vmatprep.subr.bf16.mxu1 %v452_v3  ;;  %v461_v9 = vld [vmem:[%s726_s0] sm:$0xff]   ;;  %v463_v11 = vld [vmem:[%s726_s0 + $0x8] sm:$0xff]   ;;  %v466_v14 = vld [vmem:[%s726_s0 + $0x30] sm:$0xff]  }
   0x5   :  { %v462_v10 = vld [vmem:[%s726_s0 + $0x20] sm:$0xff]   ;;  %v464_v12 = vld [vmem:[%s726_s0 + $0x28] sm:$0xff]   ;;  %v467_v15 = vld [vmem:[%s726_s0 + $0x18] sm:$0xff]   ;;  %v264_v19 = vsub.s32 0, %v263_v18  ;;  %v268_v21 = vsub.s32 1, %v263_v18 }
   0x6   :  { %v468_v16 = vld [vmem:[%s726_s0 + $0x38] sm:$0xff]   ;;  %v260_v20 = vld [vmem:[%s727_s2] sm:$0x3] }
   0x7   :  { %158 = vmatpush1.bf16.msra.mxu0 %v454_v4  ;;  %445 = vmatpush1.bf16.msra.mxu1 %v454_v4  ;;  %v304_v22 = vld [vmem:[%s728_s3] sm:$0x3]  ;;  %v557_v23 = vrot.slane %v260_v20, %v264_v19  ;;  %v561_v25 = vrot.slane %v260_v20, %v268_v21 }
   0x8   :  { %159 = vmatprep.subr.bf16.mxu0 %v455_v5  ;;  %442 = vmatprep.subr.bf16.mxu1 %v455_v5  ;;  %v559_v24 = vrot.slane %v304_v22, %v264_v19  ;;  %v565_v30 = vrot.slane %v304_v22, %v268_v21 }
   0xb   :  { %160 = vmatpush1.bf16.msra.mxu0 %v457_v6  ;;  %446 = vmatpush1.bf16.msra.mxu1 %v457_v6 }
   0xc   :  { %161 = vmatprep.subr.bf16.mxu0 %v458_v7  ;;  %443 = vmatprep.subr.bf16.mxu1 %v458_v7 }
   0xf   :  { %162 = vmatpush1.bf16.msra.mxu0 %v460_v8  ;;  %447 = vmatpush1.bf16.msra.mxu1 %v460_v8 }
  0x12   :  { %432 = vmatmul.mubr.msk.bf16.vlgmr.msra.gmra.mxu0 %vm122_vm0, %v461_v9  ;;  %436 = vmatmul.mubr.msk.bf16.vlgmr.msra.gmra.mxu1 %vm122_vm0, %v462_v10 }
  0x13   :  { %189 = vmatprep.mubr.bf16.mxu0 %v469_v1  ;;  %229 = vmatprep.mubr.bf16.mxu1 %v469_v1 }
  0x1a   :  { %433 = vmatmul.mubr.msk.bf16.gmra.mxu0 %vm122_vm0, %v463_v11  ;;  %437 = vmatmul.mubr.msk.bf16.gmra.mxu1 %vm122_vm0, %v464_v12 }
  0x1b   :  { %199 = vmatprep.mubr.bf16.mxu0 %v469_v1  ;;  %239 = vmatprep.mubr.bf16.mxu1 %v469_v1 }
  0x22   :  { %434 = vmatmul.mubr.msk.bf16.gmra.mxu0 %vm122_vm0, %v465_v13  ;;  %438 = vmatmul.mubr.msk.bf16.gmra.mxu1 %vm122_vm0, %v466_v14 }
  0x23   :  { %209 = vmatprep.mubr.bf16.mxu0 %v469_v1  ;;  %249 = vmatprep.mubr.bf16.mxu1 %v469_v1 }
  0x2a   :  { %435 = vmatmul.mubr.msk.bf16.gmra.mxu0 %vm122_vm0, %v467_v15  ;;  %439 = vmatmul.mubr.msk.bf16.gmra.mxu1 %vm122_vm0, %v468_v16 }
  0xd2   :  { %v181_v26 = vpop.f32.mrf.mxu0  ;;  %v221_v27 = vpop.f32.mrf.mxu1 }
  0xd3   :  { %v272_v28 = vmul.f32 %v557_v23, %v181_v26  ;;  %v288_v29 = vmul.f32 %v557_v23, %v221_v27 }
  0xd4   :  { %v183_v31 = vpop.f32.mrf.mxu0  ;;  %v223_v32 = vpop.f32.mrf.mxu1 }
  0xd5   :  { %v316_v33 = vadd.f32 %v559_v24, %v272_v28  ;;  %v332_v34 = vadd.f32 %v559_v24, %v288_v29  ;;  %v273_v35 = vmul.f32 %v561_v25, %v183_v31  ;;  %v289_v36 = vmul.f32 %v561_v25, %v223_v32 }
  0xd6   :  { %v185_v37 = vpop.f32.mrf.mxu0  ;;  %v225_v38 = vpop.f32.mrf.mxu1 }
  0xd7   :  { %v348_v39 = vmax.f32 %v316_v33, 0.0  ;;  %v364_v40 = vmax.f32 %v332_v34, 0.0  ;;  %v317_v41 = vadd.f32 %v565_v30, %v273_v35  ;;  %v333_v42 = vadd.f32 %v565_v30, %v289_v36 }
  0xd8   :  { %v274_v43 = vmul.f32 %v557_v23, %v185_v37  ;;  %v290_v44 = vmul.f32 %v557_v23, %v225_v38  ;;  %v187_v45 = vpop.f32.mrf.mxu0  ;;  %v227_v46 = vpop.f32.mrf.mxu1 }
  0xd9   :  { %380 = vst [vmem:[%s729_s4] sm:$0xff] %v348_v39  ;;  %396 = vst [vmem:[%s729_s4 + $0x80] sm:$0xff] %v364_v40  ;;  %v349_v47 = vmax.f32 %v317_v41, 0.0  ;;  %v365_v48 = vmax.f32 %v333_v42, 0.0  ;;  %v275_v49 = vmul.f32 %v561_v25, %v187_v45  ;;  %v291_v50 = vmul.f32 %v561_v25, %v227_v46 }
  0xda   :  { %v318_v51 = vadd.f32 %v559_v24, %v274_v43  ;;  %v334_v52 = vadd.f32 %v559_v24, %v290_v44  ;;  %v191_v53 = vpop.f32.mrf.mxu0  ;;  %v231_v54 = vpop.f32.mrf.mxu1 }
  0xdb   :  { %381 = vst [vmem:[%s729_s4 + $0x8] sm:$0xff] %v349_v47  ;;  %397 = vst [vmem:[%s729_s4 + $0x88] sm:$0xff] %v365_v48  ;;  %v319_v55 = vadd.f32 %v565_v30, %v275_v49  ;;  %v335_v56 = vadd.f32 %v565_v30, %v291_v50  ;;  %v276_v57 = vmul.f32 %v557_v23, %v191_v53 }
  0xdc   :  { %v292_v58 = vmul.f32 %v557_v23, %v231_v54  ;;  %v350_v59 = vmax.f32 %v318_v51, 0.0  ;;  %v366_v60 = vmax.f32 %v334_v52, 0.0  ;;  %v193_v61 = vpop.f32.mrf.mxu0  ;;  %v233_v62 = vpop.f32.mrf.mxu1 }
  0xdd   :  { %v351_v63 = vmax.f32 %v319_v55, 0.0  ;;  %v367_v0 = vmax.f32 %v335_v56, 0.0  ;;  %v320_v1 = vadd.f32 %v559_v24, %v276_v57  ;;  %v277_v3 = vmul.f32 %v561_v25, %v193_v61 }
  0xde   :  { %v336_v2 = vadd.f32 %v559_v24, %v292_v58  ;;  %382 = vst [vmem:[%s729_s4 + $0x10] sm:$0xff] %v350_v59  ;;  %398 = vst [vmem:[%s729_s4 + $0x90] sm:$0xff] %v366_v60  ;;  %v293_v4 = vmul.f32 %v561_v25, %v233_v62  ;;  %v195_v5 = vpop.f32.mrf.mxu0  ;;  %v235_v6 = vpop.f32.mrf.mxu1 }
  0xdf   :  { %383 = vst [vmem:[%s729_s4 + $0x18] sm:$0xff] %v351_v63  ;;  %399 = vst [vmem:[%s729_s4 + $0x98] sm:$0xff] %v367_v0  ;;  %v352_v7 = vmax.f32 %v320_v1, 0.0  ;;  %v278_v9 = vmul.f32 %v557_v23, %v195_v5  ;;  %v294_v10 = vmul.f32 %v557_v23, %v235_v6  ;;  %v321_v11 = vadd.f32 %v565_v30, %v277_v3 }
  0xe0   :  { %v368_v8 = vmax.f32 %v336_v2, 0.0  ;;  %v337_v12 = vadd.f32 %v565_v30, %v293_v4  ;;  %v197_v13 = vpop.f32.mrf.mxu0  ;;  %v237_v14 = vpop.f32.mrf.mxu1 }
  0xe1   :  { %384 = vst [vmem:[%s729_s4 + $0x20] sm:$0xff] %v352_v7  ;;  %v322_v15 = vadd.f32 %v559_v24, %v278_v9  ;;  %v338_v16 = vadd.f32 %v559_v24, %v294_v10  ;;  %v279_v17 = vmul.f32 %v561_v25, %v197_v13  ;;  %v295_v18 = vmul.f32 %v561_v25, %v237_v14 }
  0xe2   :  { %400 = vst [vmem:[%s729_s4 + $0xa0] sm:$0xff] %v368_v8  ;;  %v353_v19 = vmax.f32 %v321_v11, 0.0  ;;  %v369_v20 = vmax.f32 %v337_v12, 0.0  ;;  %v201_v21 = vpop.f32.mrf.mxu0  ;;  %v241_v22 = vpop.f32.mrf.mxu1 }
  0xe3   :  { %v354_v26 = vmax.f32 %v322_v15, 0.0  ;;  %v370_v27 = vmax.f32 %v338_v16, 0.0  ;;  %v323_v28 = vadd.f32 %v565_v30, %v279_v17  ;;  %v339_v29 = vadd.f32 %v565_v30, %v295_v18 }
  0xe4   :  { %385 = vst [vmem:[%s729_s4 + $0x28] sm:$0xff] %v353_v19  ;;  %401 = vst [vmem:[%s729_s4 + $0xa8] sm:$0xff] %v369_v20  ;;  %v280_v31 = vmul.f32 %v557_v23, %v201_v21  ;;  %v296_v32 = vmul.f32 %v557_v23, %v241_v22  ;;  %v203_v33 = vpop.f32.mrf.mxu0  ;;  %v243_v34 = vpop.f32.mrf.mxu1 }
  0xe5   :  { %386 = vst [vmem:[%s729_s4 + $0x30] sm:$0xff] %v354_v26  ;;  %402 = vst [vmem:[%s729_s4 + $0xb0] sm:$0xff] %v370_v27  ;;  %v355_v35 = vmax.f32 %v323_v28, 0.0  ;;  %v371_v36 = vmax.f32 %v339_v29, 0.0  ;;  %v281_v37 = vmul.f32 %v561_v25, %v203_v33  ;;  %v297_v38 = vmul.f32 %v561_v25, %v243_v34 }
  0xe6   :  { %v324_v39 = vadd.f32 %v559_v24, %v280_v31  ;;  %v340_v40 = vadd.f32 %v559_v24, %v296_v32  ;;  %v205_v41 = vpop.f32.mrf.mxu0  ;;  %v245_v42 = vpop.f32.mrf.mxu1 }
  0xe7   :  { %387 = vst [vmem:[%s729_s4 + $0x38] sm:$0xff] %v355_v35  ;;  %403 = vst [vmem:[%s729_s4 + $0xb8] sm:$0xff] %v371_v36  ;;  %v325_v43 = vadd.f32 %v565_v30, %v281_v37  ;;  %v341_v44 = vadd.f32 %v565_v30, %v297_v38  ;;  %v282_v45 = vmul.f32 %v557_v23, %v205_v41 }
  0xe8   :  { %v298_v46 = vmul.f32 %v557_v23, %v245_v42  ;;  %v356_v47 = vmax.f32 %v324_v39, 0.0  ;;  %v372_v48 = vmax.f32 %v340_v40, 0.0  ;;  %v207_v49 = vpop.f32.mrf.mxu0  ;;  %v247_v50 = vpop.f32.mrf.mxu1 }
  0xe9   :  { %v357_v51 = vmax.f32 %v325_v43, 0.0  ;;  %v373_v52 = vmax.f32 %v341_v44, 0.0  ;;  %v326_v53 = vadd.f32 %v559_v24, %v282_v45  ;;  %v283_v55 = vmul.f32 %v561_v25, %v207_v49 }
  0xea   :  { %v342_v54 = vadd.f32 %v559_v24, %v298_v46  ;;  %388 = vst [vmem:[%s729_s4 + $0x40] sm:$0xff] %v356_v47  ;;  %404 = vst [vmem:[%s729_s4 + $0xc0] sm:$0xff] %v372_v48  ;;  %v299_v56 = vmul.f32 %v561_v25, %v247_v50  ;;  %v211_v57 = vpop.f32.mrf.mxu0  ;;  %v251_v58 = vpop.f32.mrf.mxu1 }
  0xeb   :  { %389 = vst [vmem:[%s729_s4 + $0x48] sm:$0xff] %v357_v51  ;;  %405 = vst [vmem:[%s729_s4 + $0xc8] sm:$0xff] %v373_v52  ;;  %v358_v59 = vmax.f32 %v326_v53, 0.0  ;;  %v284_v61 = vmul.f32 %v557_v23, %v211_v57  ;;  %v300_v62 = vmul.f32 %v557_v23, %v251_v58  ;;  %v327_v63 = vadd.f32 %v565_v30, %v283_v55 }
  0xec   :  { %v374_v60 = vmax.f32 %v342_v54, 0.0  ;;  %v343_v0 = vadd.f32 %v565_v30, %v299_v56  ;;  %v213_v1 = vpop.f32.mrf.mxu0  ;;  %v253_v2 = vpop.f32.mrf.mxu1 }
  0xed   :  { %390 = vst [vmem:[%s729_s4 + $0x50] sm:$0xff] %v358_v59  ;;  %v328_v3 = vadd.f32 %v559_v24, %v284_v61  ;;  %v344_v4 = vadd.f32 %v559_v24, %v300_v62  ;;  %v285_v5 = vmul.f32 %v561_v25, %v213_v1  ;;  %v301_v6 = vmul.f32 %v561_v25, %v253_v2 }
  0xee   :  { %406 = vst [vmem:[%s729_s4 + $0xd0] sm:$0xff] %v374_v60  ;;  %v359_v7 = vmax.f32 %v327_v63, 0.0  ;;  %v375_v8 = vmax.f32 %v343_v0, 0.0  ;;  %v215_v9 = vpop.f32.mrf.mxu0  ;;  %v255_v10 = vpop.f32.mrf.mxu1 }
  0xef   :  { %v360_v11 = vmax.f32 %v328_v3, 0.0  ;;  %v376_v12 = vmax.f32 %v344_v4, 0.0  ;;  %v329_v13 = vadd.f32 %v565_v30, %v285_v5  ;;  %v345_v14 = vadd.f32 %v565_v30, %v301_v6 }
  0xf0   :  { %391 = vst [vmem:[%s729_s4 + $0x58] sm:$0xff] %v359_v7  ;;  %407 = vst [vmem:[%s729_s4 + $0xd8] sm:$0xff] %v375_v8  ;;  %v286_v15 = vmul.f32 %v557_v23, %v215_v9  ;;  %v302_v16 = vmul.f32 %v557_v23, %v255_v10  ;;  %v217_v17 = vpop.f32.mrf.mxu0  ;;  %v257_v18 = vpop.f32.mrf.mxu1 }
  0xf1   :  { %392 = vst [vmem:[%s729_s4 + $0x60] sm:$0xff] %v360_v11  ;;  %408 = vst [vmem:[%s729_s4 + $0xe0] sm:$0xff] %v376_v12  ;;  %v361_v19 = vmax.f32 %v329_v13, 0.0  ;;  %v377_v20 = vmax.f32 %v345_v14, 0.0  ;;  %v287_v21 = vmul.f32 %v561_v25, %v217_v17  ;;  %v303_v22 = vmul.f32 %v561_v25, %v257_v18 }
  0xf2   :  { %v330_v26 = vadd.f32 %v559_v24, %v286_v15  ;;  %v346_v23 = vadd.f32 %v559_v24, %v302_v16 }
  0xf3   :  { %393 = vst [vmem:[%s729_s4 + $0x68] sm:$0xff] %v361_v19  ;;  %409 = vst [vmem:[%s729_s4 + $0xe8] sm:$0xff] %v377_v20  ;;  %v331_v27 = vadd.f32 %v565_v30, %v287_v21  ;;  %v347_v28 = vadd.f32 %v565_v30, %v303_v22 }
  0xf4   :  { %v362_v29 = vmax.f32 %v330_v26, 0.0  ;;  %v378_v31 = vmax.f32 %v346_v23, 0.0 }
  0xf5   :  { %v363_v32 = vmax.f32 %v331_v27, 0.0  ;;  %v379_v25 = vmax.f32 %v347_v28, 0.0 }
  0xf6   :  { %394 = vst [vmem:[%s729_s4 + $0x70] sm:$0xff] %v362_v29  ;;  %410 = vst [vmem:[%s729_s4 + $0xf0] sm:$0xff] %v378_v31 }
  0xf7   :  { %395 = vst [vmem:[%s729_s4 + $0x78] sm:$0xff] %v363_v32  ;;  %411 = vst [vmem:[%s729_s4 + $0xf8] sm:$0xff] %v379_v25 }

// kernel: _lambda_.27
= control target key start
LH: loop header
LB: loop body
LE: loop exit
PB: predicated region body
PF: predicated region fallthrough
CT: control target
= control target key end

     0   :  { %vm111_vm0 = vcmask 1043456   ;;  %vm86_vm1 = vcmask 195584   ;;  %vm274_vm2 = vcmask 785408   ;;  %s530_s1 = inlined_call_operand.vmem [shape: bf16[24,96], index: 1, kind: input, shape index: {}]   ;;  %s531_s0 = inlined_call_operand.vmem [shape: bf16[128,24], index: 0, kind: input, shape index: {}]   ;;  %s532_s2 = inlined_call_operand.vmem [shape: f32[1,96], index: 2, kind: input, shape index: {}]   ;;  %s533_s3 = inlined_call_operand.vmem [shape: f32[1,96], index: 3, kind: input, shape index: {}]   ;;  %s534_s4 = inlined_call_operand.vmem [shape: f32[128,96], index: 4, kind: output, shape index: {}]  }
   0x1   :  { %v351_v0 = vld [vmem:[%s530_s1 + $0x8] ss:$0 sps:$4 sm:$0xff]   ;;  %v352_v1 = vld [vmem:[%s530_s1] sm:$0xff]   ;;  %v357_v7 = vld [vmem:[%s531_s0 + $0x10] sm:$0xff]  }
   0x2   :  { %349 = vmatprep.subr.msk.bf16.mxu0 %vm111_vm0, %v351_v0  ;;  %350 = vmatprep.subr.msk.bf16.mxu1 %vm111_vm0, %v351_v0  ;;  %v113_v2 = vsel %vm111_vm0, %v351_v0, 0  ;;  %v353_v3 = vld [vmem:[%s531_s0] sm:$0xff]   ;;  %v355_v5 = vld [vmem:[%s531_s0 + $0x8] sm:$0xff]   ;;  %v358_v8 = vld [vmem:[%s531_s0 + $0x30] sm:$0xff]  }
   0x3   :  { %326 = vmatpush3.bf16.msra.mxu0 %v113_v2  ;;  %347 = vmatpush3.bf16.msra.mxu1 %v113_v2  ;;  %v354_v4 = vld [vmem:[%s531_s0 + $0x20] sm:$0xff]   ;;  %v356_v6 = vld [vmem:[%s531_s0 + $0x28] sm:$0xff]   ;;  %v359_v9 = vld [vmem:[%s531_s0 + $0x18] sm:$0xff]  }
   0x4   :  { %327 = vmatprep.subr.bf16.mxu0 %v352_v1  ;;  %346 = vmatprep.subr.bf16.mxu1 %v352_v1  ;;  %v360_v10 = vld [vmem:[%s531_s0 + $0x38] sm:$0xff]   ;;  %v427_v11 = vld [vmem:[%s532_s2] ss:$0 sm:$0xff] }
   0x5   :  { %329 = vmatprep.mubr.msk.bf16.mxu0 %vm86_vm1, %v353_v3  ;;  %337 = vmatprep.mubr.msk.bf16.mxu1 %vm86_vm1, %v354_v4  ;;  %v432_v13 = vld [vmem:[%s533_s3] ss:$0 sm:$0xff] }
   0x7   :  { %328 = vmatpush3.bf16.msra.mxu0 %v352_v1  ;;  %348 = vmatpush3.bf16.msra.mxu1 %v352_v1 }
   0xa   :  { %330 = vmatmul.mubr.msk.bf16.vlgmr.msra.gmra.mxu0 %vm86_vm1, %v355_v5  ;;  %338 = vmatmul.mubr.msk.bf16.vlgmr.msra.gmra.mxu1 %vm86_vm1, %v356_v6 }
   0xb   :  { %333 = vmatprep.mubr.msk.bf16.mxu0 %vm86_vm1, %v357_v7  ;;  %341 = vmatprep.mubr.msk.bf16.mxu1 %vm86_vm1, %v358_v8 }
  0x12   :  { %334 = vmatmul.mubr.msk.bf16.gmra.mxu0 %vm86_vm1, %v359_v9  ;;  %342 = vmatmul.mubr.msk.bf16.gmra.mxu1 %vm86_vm1, %v360_v10 }
  0xca   :  { %v331_v12 = vpop.f32.mrf.mxu0  ;;  %v339_v14 = vpop.f32.mrf.mxu1 }
  0xcb   :  { %v221_v15 = vmul.f32 %v331_v12, %v427_v11  ;;  %v229_v16 = vmul.f32 %v339_v14, %v427_v11 }
  0xcc   :  { %v149_v17 = vpop.f32.mrf.mxu0  ;;  %v181_v18 = vpop.f32.mrf.mxu1 }
  0xcd   :  { %v244_v19 = vadd.f32 %v432_v13, %v221_v15  ;;  %v252_v20 = vadd.f32 %v432_v13, %v229_v16  ;;  %v219_v21 = vmul.f32 %v427_v11, %v149_v17  ;;  %v227_v22 = vmul.f32 %v427_v11, %v181_v18 }
  0xce   :  { %v332_v23 = vpop.f32.mrf.mxu0  ;;  %v340_v24 = vpop.f32.mrf.mxu1 }
  0xcf   :  { %v260_v25 = vmax.f32 %v244_v19, 0.0  ;;  %v268_v26 = vmax.f32 %v252_v20, 0.0  ;;  %v242_v27 = vadd.f32 %v432_v13, %v219_v21  ;;  %v250_v28 = vadd.f32 %v432_v13, %v227_v22 }
  0xd0   :  { %v222_v29 = vmul.f32 %v332_v23, %v427_v11  ;;  %v230_v30 = vmul.f32 %v340_v24, %v427_v11  ;;  %v152_v31 = vpop.f32.mrf.mxu0  ;;  %v184_v32 = vpop.f32.mrf.mxu1 }
  0xd1   :  { %277 = vst.msk [vmem:[%s534_s4 + $0x10] sm:$0xff] %vm274_vm2, %v260_v25  ;;  %285 = vst.msk [vmem:[%s534_s4 + $0x50] sm:$0xff] %vm274_vm2, %v268_v26  ;;  %v258_v33 = vmax.f32 %v242_v27, 0.0  ;;  %v266_v34 = vmax.f32 %v250_v28, 0.0  ;;  %v220_v35 = vmul.f32 %v427_v11, %v152_v31  ;;  %v228_v36 = vmul.f32 %v427_v11, %v184_v32 }
  0xd2   :  { %v245_v37 = vadd.f32 %v432_v13, %v222_v29  ;;  %v253_v38 = vadd.f32 %v432_v13, %v230_v30  ;;  %v335_v39 = vpop.f32.mrf.mxu0  ;;  %v343_v40 = vpop.f32.mrf.mxu1 }
  0xd3   :  { %275 = vst.msk [vmem:[%s534_s4] sm:$0xff] %vm274_vm2, %v258_v33  ;;  %283 = vst.msk [vmem:[%s534_s4 + $0x40] sm:$0xff] %vm274_vm2, %v266_v34  ;;  %v243_v41 = vadd.f32 %v432_v13, %v220_v35  ;;  %v251_v42 = vadd.f32 %v432_v13, %v228_v36  ;;  %v225_v43 = vmul.f32 %v335_v39, %v427_v11 }
  0xd4   :  { %v233_v44 = vmul.f32 %v343_v40, %v427_v11  ;;  %v261_v45 = vmax.f32 %v245_v37, 0.0  ;;  %v269_v46 = vmax.f32 %v253_v38, 0.0  ;;  %v165_v47 = vpop.f32.mrf.mxu0  ;;  %v197_v48 = vpop.f32.mrf.mxu1 }
  0xd5   :  { %v259_v49 = vmax.f32 %v243_v41, 0.0  ;;  %v267_v50 = vmax.f32 %v251_v42, 0.0  ;;  %v248_v51 = vadd.f32 %v432_v13, %v225_v43  ;;  %v223_v53 = vmul.f32 %v427_v11, %v165_v47 }
  0xd6   :  { %v256_v52 = vadd.f32 %v432_v13, %v233_v44  ;;  %278 = vst.msk [vmem:[%s534_s4 + $0x18] sm:$0xff] %vm274_vm2, %v261_v45  ;;  %286 = vst.msk [vmem:[%s534_s4 + $0x58] sm:$0xff] %vm274_vm2, %v269_v46  ;;  %v231_v54 = vmul.f32 %v427_v11, %v197_v48  ;;  %v336_v55 = vpop.f32.mrf.mxu0  ;;  %v344_v56 = vpop.f32.mrf.mxu1 }
  0xd7   :  { %276 = vst.msk [vmem:[%s534_s4 + $0x8] sm:$0xff] %vm274_vm2, %v259_v49  ;;  %284 = vst.msk [vmem:[%s534_s4 + $0x48] sm:$0xff] %vm274_vm2, %v267_v50  ;;  %v264_v57 = vmax.f32 %v248_v51, 0.0  ;;  %v226_v59 = vmul.f32 %v336_v55, %v427_v11  ;;  %v234_v60 = vmul.f32 %v344_v56, %v427_v11  ;;  %v246_v61 = vadd.f32 %v432_v13, %v223_v53 }
  0xd8   :  { %v272_v58 = vmax.f32 %v256_v52, 0.0  ;;  %v254_v62 = vadd.f32 %v432_v13, %v231_v54  ;;  %v168_v63 = vpop.f32.mrf.mxu0  ;;  %v200_v0 = vpop.f32.mrf.mxu1 }
  0xd9   :  { %281 = vst.msk [vmem:[%s534_s4 + $0x30] sm:$0xff] %vm274_vm2, %v264_v57  ;;  %v249_v1 = vadd.f32 %v432_v13, %v226_v59  ;;  %v257_v2 = vadd.f32 %v432_v13, %v234_v60  ;;  %v224_v3 = vmul.f32 %v427_v11, %v168_v63  ;;  %v232_v4 = vmul.f32 %v427_v11, %v200_v0 }
  0xda   :  { %289 = vst.msk [vmem:[%s534_s4 + $0x70] sm:$0xff] %vm274_vm2, %v272_v58  ;;  %v262_v5 = vmax.f32 %v246_v61, 0.0  ;;  %v270_v6 = vmax.f32 %v254_v62, 0.0 }
  0xdb   :  { %v265_v7 = vmax.f32 %v249_v1, 0.0  ;;  %v273_v8 = vmax.f32 %v257_v2, 0.0  ;;  %v247_v9 = vadd.f32 %v432_v13, %v224_v3  ;;  %v255_v10 = vadd.f32 %v432_v13, %v232_v4 }
  0xdc   :  { %279 = vst.msk [vmem:[%s534_s4 + $0x20] sm:$0xff] %vm274_vm2, %v262_v5  ;;  %287 = vst.msk [vmem:[%s534_s4 + $0x60] sm:$0xff] %vm274_vm2, %v270_v6 }
  0xdd   :  { %282 = vst.msk [vmem:[%s534_s4 + $0x38] sm:$0xff] %vm274_vm2, %v265_v7  ;;  %290 = vst.msk [vmem:[%s534_s4 + $0x78] sm:$0xff] %vm274_vm2, %v273_v8  ;;  %v263_v11 = vmax.f32 %v247_v9, 0.0  ;;  %v271_v12 = vmax.f32 %v255_v10, 0.0 }
  0xdf   :  { %280 = vst.msk [vmem:[%s534_s4 + $0x28] sm:$0xff] %vm274_vm2, %v263_v11  ;;  %288 = vst.msk [vmem:[%s534_s4 + $0x68] sm:$0xff] %vm274_vm2, %v271_v12 }

// kernel: _lambda_.26
= control target key start
LH: loop header
LB: loop body
LE: loop exit
PB: predicated region body
PF: predicated region fallthrough
CT: control target
= control target key end

     0   :  { %v530_v0 = vmov 0   ;;  %vm214_vm0 = vcmask 719872   ;;  %vm239_vm1 = vcmask 1043456   ;;  %vm402_vm2 = vcmask 195584   ;;  %s788_s1 = inlined_call_operand.vmem [shape: bf16[216,24], index: 1, kind: input, shape index: {}]   ;;  %s789_s0 = inlined_call_operand.vmem [shape: bf16[128,216], index: 0, kind: input, shape index: {}]   ;;  %s790_s2 = inlined_call_operand.vmem [shape: f32[1,24], index: 2, kind: input, shape index: {}]   ;;  %s791_s3 = inlined_call_operand.vmem [shape: f32[1,24], index: 3, kind: input, shape index: {}]   ;;  %s792_s4 = inlined_call_operand.vmem [shape: f32[128,24], index: 4, kind: output, shape index: {}]  }
   0x1   :  { %243 = vmatprep.subr.bf16.mxu0 %v530_v0  ;;  %463 = vmatprep.subr.bf16.mxu1 %v530_v0  ;;  %v492_v1 = vld [vmem:[%s788_s1 + $0x38] sm:$0xff]   ;;  %v493_v2 = vld [vmem:[%s788_s1 + $0x30] sm:$0xff]   ;;  %v494_v3 = vld [vmem:[%s788_s1 + $0x28] sm:$0xff]  }
   0x2   :  { %244 = vmatpush1.bf16.msra.mxu0 %v492_v1  ;;  %477 = vmatpush1.bf16.msra.mxu1 %v492_v1  ;;  %v495_v4 = vld [vmem:[%s788_s1 + $0x20] sm:$0xff]   ;;  %v496_v5 = vld [vmem:[%s788_s1 + $0x18] sm:$0xff]   ;;  %v497_v8 = vld [vmem:[%s788_s1 + $0x10] sm:$0xff]  }
   0x3   :  { %245 = vmatprep.subr.bf16.mxu0 %v530_v0  ;;  %464 = vmatprep.subr.bf16.mxu1 %v530_v0  ;;  %v508_v6 = vld [vmem:[%s789_s0 + $0x4] ss:$8 sps:$4 sm:$0xff]   ;;  %v500_v11 = vld [vmem:[%s788_s1 + $0x68] ss:$0 sps:$4 sm:$0xff]   ;;  %v502_v14 = vld [vmem:[%s788_s1 + $0x58] sm:$0xff]  }
   0x4   :  { %453 = vmatprep.mubr.msk.bf16.mxu0 %vm214_vm0, %v508_v6  ;;  %v511_v7 = vld [vmem:[%s789_s0 + $0x44] ss:$8 sps:$4 sm:$0xff]   ;;  %v241_v12 = vsel %vm239_vm1, %v500_v11, 0  ;;  %v503_v15 = vld [vmem:[%s788_s1 + $0x50] sm:$0xff]   ;;  %v506_v18 = vld [vmem:[%s789_s0] ss:$8 sps:$4 sm:$0xff]  }
   0x5   :  { %457 = vmatprep.mubr.msk.bf16.mxu1 %vm214_vm0, %v511_v7  ;;  %v498_v9 = vld [vmem:[%s788_s1 + $0x8] sm:$0xff]   ;;  %v499_v10 = vld [vmem:[%s788_s1] sm:$0xff]   ;;  %v512_v20 = vld [vmem:[%s789_s0 + $0x14] ss:$8 sps:$4 sm:$0xff]  }
   0x6   :  { %246 = vmatpush1.bf16.msra.mxu0 %v493_v2  ;;  %478 = vmatpush1.bf16.msra.mxu1 %v493_v2  ;;  %v501_v13 = vld [vmem:[%s788_s1 + $0x60] sm:$0xff]   ;;  %v504_v16 = vld [vmem:[%s788_s1 + $0x48] sm:$0xff]   ;;  %v514_v21 = vld [vmem:[%s789_s0 + $0x54] ss:$8 sps:$4 sm:$0xff]  }
   0x7   :  { %247 = vmatprep.subr.bf16.mxu0 %v530_v0  ;;  %465 = vmatprep.subr.bf16.mxu1 %v530_v0  ;;  %v505_v17 = vld [vmem:[%s788_s1 + $0x40] sm:$0xff]   ;;  %v516_v22 = vld [vmem:[%s789_s0 + $0x10] ss:$8 sps:$4 sm:$0xff]   ;;  %v524_v28 = vld [vmem:[%s789_s0 + $0x34] ss:$8 sps:$4 sm:$0xff]  }
   0x8   :  { %v509_v19 = vld [vmem:[%s789_s0 + $0x40] ss:$8 sps:$4 sm:$0xff]   ;;  %v517_v23 = vld [vmem:[%s789_s0 + $0x50] ss:$8 sps:$4 sm:$0xff]   ;;  %v518_v24 = vld [vmem:[%s789_s0 + $0x24] ss:$8 sps:$4 sm:$0xff]  }
   0x9   :  { %v520_v25 = vld [vmem:[%s789_s0 + $0x64] ss:$8 sps:$4 sm:$0xff]   ;;  %v522_v26 = vld [vmem:[%s789_s0 + $0x20] ss:$8 sps:$4 sm:$0xff]   ;;  %v526_v29 = vld [vmem:[%s789_s0 + $0x74] ss:$8 sps:$4 sm:$0xff]  }
   0xa   :  { %248 = vmatpush1.bf16.msra.mxu0 %v494_v3  ;;  %479 = vmatpush1.bf16.msra.mxu1 %v494_v3  ;;  %v523_v27 = vld [vmem:[%s789_s0 + $0x60] ss:$8 sps:$4 sm:$0xff]   ;;  %v528_v30 = vld [vmem:[%s789_s0 + $0x30] ss:$8 sps:$4 sm:$0xff]  }
   0xb   :  { %249 = vmatprep.subr.bf16.mxu0 %v530_v0  ;;  %466 = vmatprep.subr.bf16.mxu1 %v530_v0  ;;  %v529_v31 = vld [vmem:[%s789_s0 + $0x70] ss:$8 sps:$4 sm:$0xff]   ;;  %v685_v32 = vld [vmem:[%s790_s2] ss:$0 sm:$0xff] }
   0xc   :  { %v690_v34 = vld [vmem:[%s791_s3] ss:$0 sm:$0xff] }
   0xe   :  { %250 = vmatpush1.bf16.msra.mxu0 %v495_v4  ;;  %480 = vmatpush1.bf16.msra.mxu1 %v495_v4 }
   0xf   :  { %251 = vmatprep.subr.bf16.mxu0 %v530_v0  ;;  %467 = vmatprep.subr.bf16.mxu1 %v530_v0 }
  0x12   :  { %252 = vmatpush1.bf16.msra.mxu0 %v496_v5  ;;  %481 = vmatpush1.bf16.msra.mxu1 %v496_v5 }
  0x13   :  { %253 = vmatprep.subr.bf16.mxu0 %v530_v0  ;;  %468 = vmatprep.subr.bf16.mxu1 %v530_v0 }
  0x16   :  { %254 = vmatpush1.bf16.msra.mxu0 %v497_v8  ;;  %482 = vmatpush1.bf16.msra.mxu1 %v497_v8 }
  0x17   :  { %255 = vmatprep.subr.bf16.mxu0 %v530_v0  ;;  %469 = vmatprep.subr.bf16.mxu1 %v530_v0 }
  0x1a   :  { %256 = vmatpush1.bf16.msra.mxu0 %v498_v9  ;;  %483 = vmatpush1.bf16.msra.mxu1 %v498_v9 }
  0x1b   :  { %257 = vmatprep.subr.bf16.mxu0 %v530_v0  ;;  %470 = vmatprep.subr.bf16.mxu1 %v530_v0 }
  0x1e   :  { %258 = vmatpush1.bf16.msra.mxu0 %v499_v10  ;;  %484 = vmatpush1.bf16.msra.mxu1 %v499_v10 }
  0x1f   :  { %263 = vmatprep.subr.bf16.mxu0 %v530_v0  ;;  %471 = vmatprep.subr.bf16.mxu1 %v530_v0 }
  0x22   :  { %264 = vmatpush2.bf16.msra.mxu0 %v241_v12  ;;  %485 = vmatpush2.bf16.msra.mxu1 %v241_v12 }
  0x23   :  { %265 = vmatprep.subr.bf16.mxu0 %v530_v0  ;;  %472 = vmatprep.subr.bf16.mxu1 %v530_v0 }
  0x26   :  { %266 = vmatpush2.bf16.msra.mxu0 %v501_v13  ;;  %486 = vmatpush2.bf16.msra.mxu1 %v501_v13 }
  0x27   :  { %267 = vmatprep.subr.bf16.mxu0 %v530_v0  ;;  %473 = vmatprep.subr.bf16.mxu1 %v530_v0 }
  0x2a   :  { %268 = vmatpush2.bf16.msra.mxu0 %v502_v14  ;;  %487 = vmatpush2.bf16.msra.mxu1 %v502_v14 }
  0x2b   :  { %269 = vmatprep.subr.bf16.mxu0 %v530_v0  ;;  %474 = vmatprep.subr.bf16.mxu1 %v530_v0 }
  0x2e   :  { %270 = vmatpush2.bf16.msra.mxu0 %v503_v15  ;;  %488 = vmatpush2.bf16.msra.mxu1 %v503_v15 }
  0x2f   :  { %271 = vmatprep.subr.bf16.mxu0 %v530_v0  ;;  %475 = vmatprep.subr.bf16.mxu1 %v530_v0 }
  0x32   :  { %272 = vmatpush2.bf16.msra.mxu0 %v504_v16  ;;  %489 = vmatpush2.bf16.msra.mxu1 %v504_v16 }
  0x33   :  { %273 = vmatprep.subr.bf16.mxu0 %v530_v0  ;;  %476 = vmatprep.subr.bf16.mxu1 %v530_v0 }
  0x36   :  { %274 = vmatpush2.bf16.msra.mxu0 %v505_v17  ;;  %490 = vmatpush2.bf16.msra.mxu1 %v505_v17 }
  0x39   :  { %276 = vmatmul.mubr.bf16.vlgmr.msra.gmra.mxu0 %v506_v18  ;;  %308 = vmatmul.mubr.bf16.vlgmr.msra.gmra.mxu1 %v509_v19 }
  0x3a   :  { %454 = vmatprep.mubr.msk.bf16.mxu0 %vm214_vm0, %v512_v20  ;;  %458 = vmatprep.mubr.msk.bf16.mxu1 %vm214_vm0, %v514_v21 }
  0x41   :  { %284 = vmatmul.mubr.bf16.gmra.mxu0 %v516_v22  ;;  %316 = vmatmul.mubr.bf16.gmra.mxu1 %v517_v23 }
  0x42   :  { %455 = vmatprep.mubr.msk.bf16.mxu0 %vm214_vm0, %v518_v24  ;;  %459 = vmatprep.mubr.msk.bf16.mxu1 %vm214_vm0, %v520_v25 }
  0x49   :  { %292 = vmatmul.mubr.bf16.gmra.mxu0 %v522_v26  ;;  %324 = vmatmul.mubr.bf16.gmra.mxu1 %v523_v27 }
  0x4a   :  { %456 = vmatprep.mubr.msk.bf16.mxu0 %vm214_vm0, %v524_v28  ;;  %460 = vmatprep.mubr.msk.bf16.mxu1 %vm214_vm0, %v526_v29 }
  0x51   :  { %300 = vmatmul.mubr.bf16.gmra.mxu0 %v528_v30  ;;  %332 = vmatmul.mubr.bf16.gmra.mxu1 %v529_v31 }
  0xf9   :  { %v277_v33 = vpop.f32.mrf.mxu0  ;;  %v309_v35 = vpop.f32.mrf.mxu1 }
  0xfa   :  { %v347_v36 = vmul.f32 %v685_v32, %v277_v33  ;;  %v355_v37 = vmul.f32 %v685_v32, %v309_v35 }
  0xfb   :  { %v279_v38 = vpop.f32.mrf.mxu0  ;;  %v311_v39 = vpop.f32.mrf.mxu1 }
  0xfc   :  { %v370_v40 = vadd.f32 %v690_v34, %v347_v36  ;;  %v378_v41 = vadd.f32 %v690_v34, %v355_v37 }
  0xfd   :  { %v280_v42 = vpop.f32.mrf.mxu0  ;;  %v312_v43 = vpop.f32.mrf.mxu1 }
  0xfe   :  { %v386_v44 = vmax.f32 %v370_v40, 0.0  ;;  %v394_v45 = vmax.f32 %v378_v41, 0.0  ;;  %v348_v46 = vmul.f32 %v685_v32, %v280_v42  ;;  %v356_v47 = vmul.f32 %v685_v32, %v312_v43 }
  0xff   :  { %v282_v48 = vpop.f32.mrf.mxu0  ;;  %v314_v49 = vpop.f32.mrf.mxu1 }
 0x100   :  { %403 = vst.msk [vmem:[%s792_s4] sm:$0xff] %vm402_vm2, %v386_v44  ;;  %411 = vst.msk [vmem:[%s792_s4 + $0x40] sm:$0xff] %vm402_vm2, %v394_v45  ;;  %v371_v50 = vadd.f32 %v690_v34, %v348_v46  ;;  %v379_v51 = vadd.f32 %v690_v34, %v356_v47 }
 0x101   :  { %v285_v52 = vpop.f32.mrf.mxu0  ;;  %v317_v53 = vpop.f32.mrf.mxu1 }
 0x102   :  { %v387_v54 = vmax.f32 %v371_v50, 0.0  ;;  %v395_v55 = vmax.f32 %v379_v51, 0.0  ;;  %v349_v56 = vmul.f32 %v685_v32, %v285_v52  ;;  %v357_v57 = vmul.f32 %v685_v32, %v317_v53 }
 0x103   :  { %v287_v58 = vpop.f32.mrf.mxu0  ;;  %v319_v59 = vpop.f32.mrf.mxu1 }
 0x104   :  { %404 = vst.msk [vmem:[%s792_s4 + $0x8] sm:$0xff] %vm402_vm2, %v387_v54  ;;  %412 = vst.msk [vmem:[%s792_s4 + $0x48] sm:$0xff] %vm402_vm2, %v395_v55  ;;  %v372_v60 = vadd.f32 %v690_v34, %v349_v56  ;;  %v380_v61 = vadd.f32 %v690_v34, %v357_v57 }
 0x105   :  { %v288_v62 = vpop.f32.mrf.mxu0  ;;  %v320_v63 = vpop.f32.mrf.mxu1 }
 0x106   :  { %v388_v0 = vmax.f32 %v372_v60, 0.0  ;;  %v396_v1 = vmax.f32 %v380_v61, 0.0  ;;  %v350_v2 = vmul.f32 %v685_v32, %v288_v62  ;;  %v358_v3 = vmul.f32 %v685_v32, %v320_v63 }
 0x107   :  { %v290_v4 = vpop.f32.mrf.mxu0  ;;  %v322_v5 = vpop.f32.mrf.mxu1 }
 0x108   :  { %405 = vst.msk [vmem:[%s792_s4 + $0x10] sm:$0xff] %vm402_vm2, %v388_v0  ;;  %413 = vst.msk [vmem:[%s792_s4 + $0x50] sm:$0xff] %vm402_vm2, %v396_v1  ;;  %v373_v6 = vadd.f32 %v690_v34, %v350_v2  ;;  %v381_v7 = vadd.f32 %v690_v34, %v358_v3 }
 0x109   :  { %v293_v8 = vpop.f32.mrf.mxu0  ;;  %v325_v9 = vpop.f32.mrf.mxu1 }
 0x10a   :  { %v389_v10 = vmax.f32 %v373_v6, 0.0  ;;  %v397_v11 = vmax.f32 %v381_v7, 0.0  ;;  %v351_v12 = vmul.f32 %v685_v32, %v293_v8  ;;  %v359_v13 = vmul.f32 %v685_v32, %v325_v9 }
 0x10b   :  { %v295_v14 = vpop.f32.mrf.mxu0  ;;  %v327_v15 = vpop.f32.mrf.mxu1 }
 0x10c   :  { %406 = vst.msk [vmem:[%s792_s4 + $0x18] sm:$0xff] %vm402_vm2, %v389_v10  ;;  %414 = vst.msk [vmem:[%s792_s4 + $0x58] sm:$0xff] %vm402_vm2, %v397_v11  ;;  %v374_v16 = vadd.f32 %v690_v34, %v351_v12  ;;  %v382_v17 = vadd.f32 %v690_v34, %v359_v13 }
 0x10d   :  { %v296_v18 = vpop.f32.mrf.mxu0  ;;  %v328_v19 = vpop.f32.mrf.mxu1 }
 0x10e   :  { %v390_v20 = vmax.f32 %v374_v16, 0.0  ;;  %v398_v21 = vmax.f32 %v382_v17, 0.0  ;;  %v352_v22 = vmul.f32 %v685_v32, %v296_v18  ;;  %v360_v23 = vmul.f32 %v685_v32, %v328_v19 }
 0x10f   :  { %v298_v24 = vpop.f32.mrf.mxu0  ;;  %v330_v25 = vpop.f32.mrf.mxu1 }
 0x110   :  { %407 = vst.msk [vmem:[%s792_s4 + $0x20] sm:$0xff] %vm402_vm2, %v390_v20  ;;  %415 = vst.msk [vmem:[%s792_s4 + $0x60] sm:$0xff] %vm402_vm2, %v398_v21  ;;  %v375_v26 = vadd.f32 %v690_v34, %v352_v22  ;;  %v383_v27 = vadd.f32 %v690_v34, %v360_v23 }
 0x111   :  { %v301_v28 = vpop.f32.mrf.mxu0  ;;  %v333_v29 = vpop.f32.mrf.mxu1 }
 0x112   :  { %v391_v30 = vmax.f32 %v375_v26, 0.0  ;;  %v399_v31 = vmax.f32 %v383_v27, 0.0  ;;  %v353_v33 = vmul.f32 %v685_v32, %v301_v28  ;;  %v361_v35 = vmul.f32 %v685_v32, %v333_v29 }
 0x113   :  { %v303_v36 = vpop.f32.mrf.mxu0  ;;  %v335_v37 = vpop.f32.mrf.mxu1 }
 0x114   :  { %408 = vst.msk [vmem:[%s792_s4 + $0x28] sm:$0xff] %vm402_vm2, %v391_v30  ;;  %416 = vst.msk [vmem:[%s792_s4 + $0x68] sm:$0xff] %vm402_vm2, %v399_v31  ;;  %v376_v38 = vadd.f32 %v690_v34, %v353_v33  ;;  %v384_v39 = vadd.f32 %v690_v34, %v361_v35 }
 0x115   :  { %v304_v40 = vpop.f32.mrf.mxu0  ;;  %v336_v41 = vpop.f32.mrf.mxu1 }
 0x116   :  { %v392_v42 = vmax.f32 %v376_v38, 0.0  ;;  %v400_v43 = vmax.f32 %v384_v39, 0.0  ;;  %v354_v44 = vmul.f32 %v685_v32, %v304_v40  ;;  %v362_v45 = vmul.f32 %v685_v32, %v336_v41 }
 0x117   :  { %v306_v46 = vpop.f32.mrf.mxu0  ;;  %v338_v47 = vpop.f32.mrf.mxu1 }
 0x118   :  { %409 = vst.msk [vmem:[%s792_s4 + $0x30] sm:$0xff] %vm402_vm2, %v392_v42  ;;  %417 = vst.msk [vmem:[%s792_s4 + $0x70] sm:$0xff] %vm402_vm2, %v400_v43  ;;  %v377_v48 = vadd.f32 %v690_v34, %v354_v44  ;;  %v385_v49 = vadd.f32 %v690_v34, %v362_v45 }
 0x11a   :  { %v393_v50 = vmax.f32 %v377_v48, 0.0  ;;  %v401_v51 = vmax.f32 %v385_v49, 0.0 }
 0x11c   :  { %410 = vst.msk [vmem:[%s792_s4 + $0x38] sm:$0xff] %vm402_vm2, %v393_v50  ;;  %418 = vst.msk [vmem:[%s792_s4 + $0x78] sm:$0xff] %vm402_vm2, %v401_v51 }

// kernel: _lambda_.24
= control target key start
LH: loop header
LB: loop body
LE: loop exit
PB: predicated region body
PF: predicated region fallthrough
CT: control target
= control target key end

     0   :  { %s1088_s15 = smov 0   ;;  %s1090_s16 = smov 0   ;;  %s1302_s0 = inlined_call_operand.vmem [shape: bf16[512,16], index: 0, kind: input, shape index: {}]   ;;  %s1303_s1 = inlined_call_operand.vmem [shape: bf16[16,16], index: 1, kind: input, shape index: {}]   ;;  %s1304_s2 = inlined_call_operand.vmem [shape: f32[1,16], index: 2, kind: input, shape index: {}]   ;;  %s1305_s3 = inlined_call_operand.vmem [shape: f32[1,16], index: 3, kind: input, shape index: {}]   ;;  %s1306_s4 = inlined_call_operand.vmem [shape: f32[512,16], index: 4, kind: output, shape index: {}]  }
   0x1   :  { %s1092_s17 = smov 0  }
   0x2 LB: > { %s33_s18 = sadd.s32 1, %s1057_s16  ;;  %p903_p0 = scmp.ge.s32.totalorder %s1061_s17, 1  ;;  %s1061_s17 = sphi %s1092_s17, %s14_s17   ;;  %s1057_s16 = sphi %s1090_s16, %s1308_s16   ;;  %s1053_s15 = sphi %s1088_s15, %s1307_s15  }
   0x3   : > { %p35_p1 = scmp.ge.s32.totalorder %s33_s18, 2  ;;  %p221_p2 = scmp.lt.s32.totalorder %s1061_s17, 3 }
   0x5   : > { %s1310_s18 = smov (%p35_p1, %s33_s18), 0  ;;  %p222_p3 = pnand %p903_p0, %p221_p2 }
   0x6   : > { %s904_s21 = sshll.u32 (!%p222_p3), %s1053_s15, 5 }
   0x7   : > { %225 = sbr.rel (%p222_p3) target bundleno = 248 (0xf8), region = 36  ;;  %p268_p4 = scmp.lt.s32.totalorder (!%p222_p3), %s904_s21, 63 }
   0xc   : > { %v1022_v0 = vld [vmem:[%s1303_s1] sm:$0xff]   ;;  %s1312_s21 = smov (!%p268_p4, %s904_s21), 63  ;;  %vm421_vm0 = vcmask 130048  }
   0xd   : > { %962 = vmatprep.subr.bf16.mxu0 %v1022_v0  ;;  %996 = vmatprep.subr.bf16.mxu1 %v1022_v0  ;;  %s905_s22 = sshll.u32 %s1312_s21, 2  ;;  %v1152_v17 = vld [vmem:[%s1304_s2] ss:$0 sm:$0xff]  ;;  %s907_s30 = sshll.u32 %s1312_s21, 3 }
   0xe   : > { %963 = vmatpush3.bf16.msra.mxu0 %v1022_v0  ;;  %997 = vmatpush3.bf16.msra.mxu1 %v1022_v0  ;;  %s1115_s25 = scalar_lea.vmem %s1302_s0, %s905_s22  ;;  %v1157_v19 = vld [vmem:[%s1305_s3] ss:$0 sm:$0xff]  ;;  %s1167_s7 = scalar_lea.vmem %s1306_s4, %s907_s30 }
   0xf   : > { %v1023_v1 = vld [vmem:[%s1115_s25] sm:$0xff]   ;;  %v1025_v3 = vld [vmem:[%s1115_s25 + $0x8] sm:$0xff]   ;;  %v1027_v5 = vld [vmem:[%s1115_s25 + $0x10] sm:$0xff]  }
  0x10   : > { %v1024_v2 = vld [vmem:[%s1115_s25 + $0x40] sm:$0xff]   ;;  %964 = vmatprep.mubr.msk.bf16.mxu0 %vm421_vm0, %v1023_v1  ;;  %v1026_v4 = vld [vmem:[%s1115_s25 + $0x48] sm:$0xff]   ;;  %v1028_v6 = vld [vmem:[%s1115_s25 + $0x50] sm:$0xff]  }
  0x11   : > { %980 = vmatprep.mubr.msk.bf16.mxu1 %vm421_vm0, %v1024_v2  ;;  %965 = vmatmul.mubr.msk.bf16.vlgmr.msra.gmra.mxu0 %vm421_vm0, %v1025_v3  ;;  %v1029_v7 = vld [vmem:[%s1115_s25 + $0x18] sm:$0xff]   ;;  %v1031_v9 = vld [vmem:[%s1115_s25 + $0x20] sm:$0xff]   ;;  %v1033_v11 = vld [vmem:[%s1115_s25 + $0x28] sm:$0xff]  }
  0x12   : > { %981 = vmatmul.mubr.msk.bf16.vlgmr.msra.gmra.mxu1 %vm421_vm0, %v1026_v4  ;;  %968 = vmatprep.mubr.msk.bf16.mxu0 %vm421_vm0, %v1027_v5  ;;  %v1030_v8 = vld [vmem:[%s1115_s25 + $0x58] sm:$0xff]   ;;  %v1032_v10 = vld [vmem:[%s1115_s25 + $0x60] sm:$0xff]   ;;  %v1034_v12 = vld [vmem:[%s1115_s25 + $0x68] sm:$0xff]  }
  0x13   : > { %984 = vmatprep.mubr.msk.bf16.mxu1 %vm421_vm0, %v1028_v6  ;;  %v1035_v13 = vld [vmem:[%s1115_s25 + $0x30] sm:$0xff]   ;;  %v1037_v15 = vld [vmem:[%s1115_s25 + $0x38] sm:$0xff]  }
  0x14   : > { %v1036_v14 = vld [vmem:[%s1115_s25 + $0x70] sm:$0xff]   ;;  %v1038_v16 = vld [vmem:[%s1115_s25 + $0x78] sm:$0xff]  }
  0x19   : > { %969 = vmatmul.mubr.msk.bf16.gmra.mxu0 %vm421_vm0, %v1029_v7 }
  0x1a   : > { %985 = vmatmul.mubr.msk.bf16.gmra.mxu1 %vm421_vm0, %v1030_v8  ;;  %972 = vmatprep.mubr.msk.bf16.mxu0 %vm421_vm0, %v1031_v9 }
  0x1b   : > { %988 = vmatprep.mubr.msk.bf16.mxu1 %vm421_vm0, %v1032_v10 }
  0x21   : > { %973 = vmatmul.mubr.msk.bf16.gmra.mxu0 %vm421_vm0, %v1033_v11 }
  0x22   : > { %989 = vmatmul.mubr.msk.bf16.gmra.mxu1 %vm421_vm0, %v1034_v12  ;;  %976 = vmatprep.mubr.msk.bf16.mxu0 %vm421_vm0, %v1035_v13 }
  0x23   : > { %992 = vmatprep.mubr.msk.bf16.mxu1 %vm421_vm0, %v1036_v14 }
  0x29   : > { %977 = vmatmul.mubr.msk.bf16.gmra.mxu0 %vm421_vm0, %v1037_v15 }
  0x2a   : > { %993 = vmatmul.mubr.msk.bf16.gmra.mxu1 %vm421_vm0, %v1038_v16 }
  0xd1   : > { %v966_v18 = vpop.f32.mrf.mxu0 }
  0xd2   : > { %v640_v20 = vmul.f32 %v966_v18, %v1152_v17  ;;  %v982_v21 = vpop.f32.mrf.mxu1 }
  0xd3   : > { %v656_v22 = vmul.f32 %v982_v21, %v1152_v17  ;;  %v504_v23 = vpop.f32.mrf.mxu0 }
  0xd4   : > { %v679_v24 = vadd.f32 %v1157_v19, %v640_v20  ;;  %v638_v25 = vmul.f32 %v1152_v17, %v504_v23  ;;  %v568_v26 = vpop.f32.mrf.mxu1 }
  0xd5   : > { %v695_v27 = vadd.f32 %v1157_v19, %v656_v22  ;;  %v654_v28 = vmul.f32 %v1152_v17, %v568_v26  ;;  %v967_v29 = vpop.f32.mrf.mxu0 }
  0xd6   : > { %v711_v30 = vmax.f32 %v679_v24, 0.0  ;;  %v677_v31 = vadd.f32 %v1157_v19, %v638_v25  ;;  %v641_v32 = vmul.f32 %v967_v29, %v1152_v17  ;;  %v983_v33 = vpop.f32.mrf.mxu1 }
  0xd7   : > { %v727_v34 = vmax.f32 %v695_v27, 0.0  ;;  %v693_v35 = vadd.f32 %v1157_v19, %v654_v28  ;;  %v657_v36 = vmul.f32 %v983_v33, %v1152_v17  ;;  %v507_v37 = vpop.f32.mrf.mxu0 }
  0xd8   : > { %743 = vst.msk [vmem:[%s1167_s7 + $0x10] sm:$0xff] %vm421_vm0, %v711_v30  ;;  %v709_v38 = vmax.f32 %v677_v31, 0.0  ;;  %v680_v39 = vadd.f32 %v1157_v19, %v641_v32  ;;  %v639_v40 = vmul.f32 %v1152_v17, %v507_v37  ;;  %v571_v41 = vpop.f32.mrf.mxu1 }
  0xd9   : > { %759 = vst.msk [vmem:[%s1167_s7 + $0x90] sm:$0xff] %vm421_vm0, %v727_v34  ;;  %v725_v42 = vmax.f32 %v693_v35, 0.0  ;;  %v696_v43 = vadd.f32 %v1157_v19, %v657_v36  ;;  %v655_v44 = vmul.f32 %v1152_v17, %v571_v41  ;;  %v970_v45 = vpop.f32.mrf.mxu0 }
  0xda   : > { %741 = vst.msk [vmem:[%s1167_s7] sm:$0xff] %vm421_vm0, %v709_v38  ;;  %v712_v46 = vmax.f32 %v680_v39, 0.0  ;;  %v678_v47 = vadd.f32 %v1157_v19, %v639_v40  ;;  %v644_v48 = vmul.f32 %v970_v45, %v1152_v17  ;;  %v986_v49 = vpop.f32.mrf.mxu1 }
  0xdb   : > { %757 = vst.msk [vmem:[%s1167_s7 + $0x80] sm:$0xff] %vm421_vm0, %v725_v42  ;;  %v728_v50 = vmax.f32 %v696_v43, 0.0  ;;  %v694_v51 = vadd.f32 %v1157_v19, %v655_v44  ;;  %v660_v52 = vmul.f32 %v986_v49, %v1152_v17  ;;  %v520_v53 = vpop.f32.mrf.mxu0 }
  0xdc   : > { %744 = vst.msk [vmem:[%s1167_s7 + $0x18] sm:$0xff] %vm421_vm0, %v712_v46  ;;  %v710_v54 = vmax.f32 %v678_v47, 0.0  ;;  %v683_v55 = vadd.f32 %v1157_v19, %v644_v48  ;;  %v642_v56 = vmul.f32 %v1152_v17, %v520_v53  ;;  %v584_v57 = vpop.f32.mrf.mxu1 }
  0xdd   : > { %760 = vst.msk [vmem:[%s1167_s7 + $0x98] sm:$0xff] %vm421_vm0, %v728_v50  ;;  %v726_v58 = vmax.f32 %v694_v51, 0.0  ;;  %v699_v59 = vadd.f32 %v1157_v19, %v660_v52  ;;  %v658_v60 = vmul.f32 %v1152_v17, %v584_v57  ;;  %v971_v61 = vpop.f32.mrf.mxu0 }
  0xde   : > { %742 = vst.msk [vmem:[%s1167_s7 + $0x8] sm:$0xff] %vm421_vm0, %v710_v54  ;;  %v715_v62 = vmax.f32 %v683_v55, 0.0  ;;  %v681_v63 = vadd.f32 %v1157_v19, %v642_v56  ;;  %v645_v0 = vmul.f32 %v971_v61, %v1152_v17  ;;  %v987_v1 = vpop.f32.mrf.mxu1 }
  0xdf   : > { %758 = vst.msk [vmem:[%s1167_s7 + $0x88] sm:$0xff] %vm421_vm0, %v726_v58  ;;  %v731_v2 = vmax.f32 %v699_v59, 0.0  ;;  %v697_v3 = vadd.f32 %v1157_v19, %v658_v60  ;;  %v661_v4 = vmul.f32 %v987_v1, %v1152_v17  ;;  %v523_v5 = vpop.f32.mrf.mxu0 }
  0xe0   : > { %747 = vst.msk [vmem:[%s1167_s7 + $0x30] sm:$0xff] %vm421_vm0, %v715_v62  ;;  %v713_v6 = vmax.f32 %v681_v63, 0.0  ;;  %v684_v7 = vadd.f32 %v1157_v19, %v645_v0  ;;  %v643_v8 = vmul.f32 %v1152_v17, %v523_v5  ;;  %v587_v9 = vpop.f32.mrf.mxu1 }
  0xe1   : > { %763 = vst.msk [vmem:[%s1167_s7 + $0xb0] sm:$0xff] %vm421_vm0, %v731_v2  ;;  %v729_v10 = vmax.f32 %v697_v3, 0.0  ;;  %v700_v11 = vadd.f32 %v1157_v19, %v661_v4  ;;  %v659_v12 = vmul.f32 %v1152_v17, %v587_v9  ;;  %v974_v13 = vpop.f32.mrf.mxu0 }
  0xe2   : > { %745 = vst.msk [vmem:[%s1167_s7 + $0x20] sm:$0xff] %vm421_vm0, %v713_v6  ;;  %v716_v14 = vmax.f32 %v684_v7, 0.0  ;;  %v682_v15 = vadd.f32 %v1157_v19, %v643_v8  ;;  %v648_v16 = vmul.f32 %v974_v13, %v1152_v17  ;;  %v990_v18 = vpop.f32.mrf.mxu1 }
  0xe3   : > { %761 = vst.msk [vmem:[%s1167_s7 + $0xa0] sm:$0xff] %vm421_vm0, %v729_v10  ;;  %v732_v20 = vmax.f32 %v700_v11, 0.0  ;;  %v698_v21 = vadd.f32 %v1157_v19, %v659_v12  ;;  %v664_v22 = vmul.f32 %v990_v18, %v1152_v17  ;;  %v536_v23 = vpop.f32.mrf.mxu0 }
  0xe4   : > { %748 = vst.msk [vmem:[%s1167_s7 + $0x38] sm:$0xff] %vm421_vm0, %v716_v14  ;;  %v714_v24 = vmax.f32 %v682_v15, 0.0  ;;  %v687_v25 = vadd.f32 %v1157_v19, %v648_v16  ;;  %v646_v26 = vmul.f32 %v1152_v17, %v536_v23  ;;  %v600_v27 = vpop.f32.mrf.mxu1 }
  0xe5   : > { %764 = vst.msk [vmem:[%s1167_s7 + $0xb8] sm:$0xff] %vm421_vm0, %v732_v20  ;;  %v730_v28 = vmax.f32 %v698_v21, 0.0  ;;  %v703_v29 = vadd.f32 %v1157_v19, %v664_v22  ;;  %v662_v30 = vmul.f32 %v1152_v17, %v600_v27  ;;  %v975_v31 = vpop.f32.mrf.mxu0 }
  0xe6   : > { %746 = vst.msk [vmem:[%s1167_s7 + $0x28] sm:$0xff] %vm421_vm0, %v714_v24  ;;  %v719_v32 = vmax.f32 %v687_v25, 0.0  ;;  %v685_v33 = vadd.f32 %v1157_v19, %v646_v26  ;;  %v649_v34 = vmul.f32 %v975_v31, %v1152_v17  ;;  %v991_v35 = vpop.f32.mrf.mxu1 }
  0xe7   : > { %762 = vst.msk [vmem:[%s1167_s7 + $0xa8] sm:$0xff] %vm421_vm0, %v730_v28  ;;  %v735_v36 = vmax.f32 %v703_v29, 0.0  ;;  %v701_v37 = vadd.f32 %v1157_v19, %v662_v30  ;;  %v665_v38 = vmul.f32 %v991_v35, %v1152_v17  ;;  %v539_v39 = vpop.f32.mrf.mxu0 }
  0xe8   : > { %751 = vst.msk [vmem:[%s1167_s7 + $0x50] sm:$0xff] %vm421_vm0, %v719_v32  ;;  %v717_v40 = vmax.f32 %v685_v33, 0.0  ;;  %v688_v41 = vadd.f32 %v1157_v19, %v649_v34  ;;  %v647_v42 = vmul.f32 %v1152_v17, %v539_v39  ;;  %v603_v43 = vpop.f32.mrf.mxu1 }
  0xe9   : > { %767 = vst.msk [vmem:[%s1167_s7 + $0xd0] sm:$0xff] %vm421_vm0, %v735_v36  ;;  %v733_v44 = vmax.f32 %v701_v37, 0.0  ;;  %v704_v45 = vadd.f32 %v1157_v19, %v665_v38  ;;  %v663_v46 = vmul.f32 %v1152_v17, %v603_v43  ;;  %v978_v47 = vpop.f32.mrf.mxu0 }
  0xea   : > { %749 = vst.msk [vmem:[%s1167_s7 + $0x40] sm:$0xff] %vm421_vm0, %v717_v40  ;;  %v720_v48 = vmax.f32 %v688_v41, 0.0  ;;  %v686_v49 = vadd.f32 %v1157_v19, %v647_v42  ;;  %v652_v50 = vmul.f32 %v978_v47, %v1152_v17  ;;  %v994_v51 = vpop.f32.mrf.mxu1 }
  0xeb   : > { %765 = vst.msk [vmem:[%s1167_s7 + $0xc0] sm:$0xff] %vm421_vm0, %v733_v44  ;;  %v736_v52 = vmax.f32 %v704_v45, 0.0  ;;  %v702_v53 = vadd.f32 %v1157_v19, %v663_v46  ;;  %v668_v54 = vmul.f32 %v994_v51, %v1152_v17  ;;  %v552_v55 = vpop.f32.mrf.mxu0 }
  0xec   : > { %752 = vst.msk [vmem:[%s1167_s7 + $0x58] sm:$0xff] %vm421_vm0, %v720_v48  ;;  %v718_v56 = vmax.f32 %v686_v49, 0.0  ;;  %v691_v57 = vadd.f32 %v1157_v19, %v652_v50  ;;  %v650_v58 = vmul.f32 %v1152_v17, %v552_v55  ;;  %v616_v59 = vpop.f32.mrf.mxu1 }
  0xed   : > { %768 = vst.msk [vmem:[%s1167_s7 + $0xd8] sm:$0xff] %vm421_vm0, %v736_v52  ;;  %v734_v60 = vmax.f32 %v702_v53, 0.0  ;;  %v707_v61 = vadd.f32 %v1157_v19, %v668_v54  ;;  %v666_v62 = vmul.f32 %v1152_v17, %v616_v59  ;;  %v979_v63 = vpop.f32.mrf.mxu0 }
  0xee   : > { %750 = vst.msk [vmem:[%s1167_s7 + $0x48] sm:$0xff] %vm421_vm0, %v718_v56  ;;  %v723_v0 = vmax.f32 %v691_v57, 0.0  ;;  %v689_v1 = vadd.f32 %v1157_v19, %v650_v58  ;;  %v653_v2 = vmul.f32 %v979_v63, %v1152_v17  ;;  %v995_v3 = vpop.f32.mrf.mxu1 }
  0xef   : > { %766 = vst.msk [vmem:[%s1167_s7 + $0xc8] sm:$0xff] %vm421_vm0, %v734_v60  ;;  %v739_v4 = vmax.f32 %v707_v61, 0.0  ;;  %v705_v5 = vadd.f32 %v1157_v19, %v666_v62  ;;  %v669_v6 = vmul.f32 %v995_v3, %v1152_v17  ;;  %v555_v7 = vpop.f32.mrf.mxu0 }
  0xf0   : > { %755 = vst.msk [vmem:[%s1167_s7 + $0x70] sm:$0xff] %vm421_vm0, %v723_v0  ;;  %v721_v8 = vmax.f32 %v689_v1, 0.0  ;;  %v692_v9 = vadd.f32 %v1157_v19, %v653_v2  ;;  %v651_v10 = vmul.f32 %v1152_v17, %v555_v7  ;;  %v619_v11 = vpop.f32.mrf.mxu1 }
  0xf1   : > { %771 = vst.msk [vmem:[%s1167_s7 + $0xf0] sm:$0xff] %vm421_vm0, %v739_v4  ;;  %v737_v12 = vmax.f32 %v705_v5, 0.0  ;;  %v708_v13 = vadd.f32 %v1157_v19, %v669_v6  ;;  %v667_v14 = vmul.f32 %v1152_v17, %v619_v11 }
  0xf2   : > { %753 = vst.msk [vmem:[%s1167_s7 + $0x60] sm:$0xff] %vm421_vm0, %v721_v8  ;;  %v724_v15 = vmax.f32 %v692_v9, 0.0  ;;  %v690_v16 = vadd.f32 %v1157_v19, %v651_v10 }
  0xf3   : > { %769 = vst.msk [vmem:[%s1167_s7 + $0xe0] sm:$0xff] %vm421_vm0, %v737_v12  ;;  %v740_v18 = vmax.f32 %v708_v13, 0.0  ;;  %v706_v20 = vadd.f32 %v1157_v19, %v667_v14 }
  0xf4   : > { %756 = vst.msk [vmem:[%s1167_s7 + $0x78] sm:$0xff] %vm421_vm0, %v724_v15  ;;  %v722_v21 = vmax.f32 %v690_v16, 0.0 }
  0xf5   : > { %772 = vst.msk [vmem:[%s1167_s7 + $0xf8] sm:$0xff] %vm421_vm0, %v740_v18  ;;  %v738_v22 = vmax.f32 %v706_v20, 0.0 }
  0xf6   : > { %754 = vst.msk [vmem:[%s1167_s7 + $0x68] sm:$0xff] %vm421_vm0, %v722_v21 }
  0xf7   : > { %770 = vst.msk [vmem:[%s1167_s7 + $0xe8] sm:$0xff] %vm421_vm0, %v738_v22 }
  0xf8 PF: > { %s14_s17 = sadd.s32 1, %s1061_s17   ;;  %s1307_s15 = smov %s1057_s16 }
  0xf9   : > { %p11_p5 = scmp.ge.s32.totalorder %s14_s17, 4   ;;  %s1308_s16 = smov %s1310_s18 }
  0xfb   :  { %13 = sbr.rel (!%p11_p5) target bundleno = 2 (0x2), region = 75 }

// kernel: _lambda_.25
= control target key start
LH: loop header
LB: loop body
LE: loop exit
PB: predicated region body
PF: predicated region fallthrough
CT: control target
= control target key end

     0   :  { %s1260_s15 = smov 0   ;;  %s1262_s16 = smov 0   ;;  %s1517_s0 = inlined_call_operand.vmem [shape: bf16[512,144], index: 0, kind: input, shape index: {}]   ;;  %s1518_s1 = inlined_call_operand.vmem [shape: bf16[144,16], index: 1, kind: input, shape index: {}]   ;;  %s1519_s2 = inlined_call_operand.vmem [shape: f32[1,16], index: 2, kind: input, shape index: {}]   ;;  %s1520_s3 = inlined_call_operand.vmem [shape: f32[1,16], index: 3, kind: input, shape index: {}]   ;;  %s1521_s4 = inlined_call_operand.vmem [shape: f32[512,16], index: 4, kind: output, shape index: {}]  }
   0x1   :  { %s1264_s17 = smov 0  }
   0x2 LB: > { %s33_s18 = sadd.s32 1, %s1228_s16  ;;  %p1042_p0 = scmp.ge.s32.totalorder %s1232_s17, 1  ;;  %s1232_s17 = sphi %s1264_s17, %s14_s17   ;;  %s1228_s16 = sphi %s1262_s16, %s1523_s16   ;;  %s1224_s15 = sphi %s1260_s15, %s1522_s15  }
   0x3   : > { %p35_p1 = scmp.ge.s32.totalorder %s33_s18, 2  ;;  %p224_p2 = scmp.lt.s32.totalorder %s1232_s17, 3 }
   0x5   : > { %s1525_s18 = smov (%p35_p1, %s33_s18), 0  ;;  %p225_p3 = pnand %p1042_p0, %p224_p2 }
   0x6   : > { %s1043_s21 = sshll.u32 (!%p225_p3), %s1224_s15, 5 }
   0x7   : > { %228 = sbr.rel (%p225_p3) target bundleno = 309 (0x135), region = 36  ;;  %p274_p4 = scmp.lt.s32.totalorder (!%p225_p3), %s1043_s21, 63 }
   0xc   : > { %v1153_v0 = vld [vmem:[%s1518_s1 + $0x38] sm:$0xff]   ;;  %v1234_v1 = vmov 0   ;;  %v1154_v2 = vld [vmem:[%s1518_s1 + $0x30] sm:$0xff]   ;;  %s1527_s21 = smov (!%p274_p4, %s1043_s21), 63  ;;  %v1155_v3 = vld [vmem:[%s1518_s1 + $0x28] sm:$0xff]   ;;  %vm557_vm0 = vcmask 130048  }
   0xd   : > { %606 = vmatprep.subr.bf16.mxu0 %v1234_v1  ;;  %1110 = vmatprep.subr.bf16.mxu1 %v1234_v1  ;;  %s1109_s26 = sshll.u32 %s1527_s21, 3  ;;  %v1156_v4 = vld [vmem:[%s1518_s1 + $0x20] sm:$0xff]   ;;  %v1157_v7 = vld [vmem:[%s1518_s1 + $0x18] sm:$0xff]   ;;  %v1158_v8 = vld [vmem:[%s1518_s1 + $0x10] sm:$0xff]  }
   0xe   : > { %607 = vmatpush1.bf16.msra.mxu0 %v1153_v0  ;;  %1119 = vmatpush1.bf16.msra.mxu1 %v1153_v0  ;;  %s1295_s29 = scalar_lea.vmem %s1517_s0, %s1109_s26  ;;  %v1159_v9 = vld [vmem:[%s1518_s1 + $0x8] sm:$0xff]   ;;  %v1160_v10 = vld [vmem:[%s1518_s1] sm:$0xff]   ;;  %s1382_s27 = scalar_lea.vmem %s1521_s4, %s1109_s26 }
   0xf   : > { %608 = vmatprep.subr.bf16.mxu0 %v1234_v1  ;;  %1111 = vmatprep.subr.bf16.mxu1 %v1234_v1  ;;  %v1164_v5 = vld [vmem:[%s1295_s29 + $0x4] ss:$8 sps:$4 sm:$0xff]   ;;  %v1162_v12 = vld [vmem:[%s1295_s29] ss:$8 sps:$4 sm:$0xff]   ;;  %v1168_v14 = vld [vmem:[%s1295_s29 + $0x14] ss:$8 sps:$4 sm:$0xff]  }
  0x10   : > { %v1167_v6 = vld [vmem:[%s1295_s29 + $0x84] ss:$8 sps:$4 sm:$0xff]   ;;  %1089 = vmatprep.mubr.msk.bf16.mxu0 %vm557_vm0, %v1164_v5  ;;  %v1165_v13 = vld [vmem:[%s1295_s29 + $0x80] ss:$8 sps:$4 sm:$0xff]   ;;  %v1170_v15 = vld [vmem:[%s1295_s29 + $0x94] ss:$8 sps:$4 sm:$0xff]  }
  0x11   : > { %1097 = vmatprep.mubr.msk.bf16.mxu1 %vm557_vm0, %v1167_v6  ;;  %v1161_v11 = vld [vmem:[%s1518_s1 + $0x40] sm:$0xff]   ;;  %v1172_v16 = vld [vmem:[%s1295_s29 + $0x10] ss:$8 sps:$4 sm:$0xff]   ;;  %v1180_v22 = vld [vmem:[%s1295_s29 + $0x34] ss:$8 sps:$4 sm:$0xff]  }
  0x12   : > { %609 = vmatpush1.bf16.msra.mxu0 %v1154_v2  ;;  %1120 = vmatpush1.bf16.msra.mxu1 %v1154_v2  ;;  %v1173_v17 = vld [vmem:[%s1295_s29 + $0x90] ss:$8 sps:$4 sm:$0xff]   ;;  %v1174_v18 = vld [vmem:[%s1295_s29 + $0x24] ss:$8 sps:$4 sm:$0xff]   ;;  %v1178_v20 = vld [vmem:[%s1295_s29 + $0x20] ss:$8 sps:$4 sm:$0xff]  }
  0x13   : > { %610 = vmatprep.subr.bf16.mxu0 %v1234_v1  ;;  %1112 = vmatprep.subr.bf16.mxu1 %v1234_v1  ;;  %v1176_v19 = vld [vmem:[%s1295_s29 + $0xa4] ss:$8 sps:$4 sm:$0xff]   ;;  %v1179_v21 = vld [vmem:[%s1295_s29 + $0xa0] ss:$8 sps:$4 sm:$0xff]   ;;  %v1182_v23 = vld [vmem:[%s1295_s29 + $0xb4] ss:$8 sps:$4 sm:$0xff]  }
  0x14   : > { %v1184_v24 = vld [vmem:[%s1295_s29 + $0x30] ss:$8 sps:$4 sm:$0xff]   ;;  %v1186_v26 = vld [vmem:[%s1295_s29 + $0x44] ss:$8 sps:$4 sm:$0xff]   ;;  %v1190_v28 = vld [vmem:[%s1295_s29 + $0x40] ss:$8 sps:$4 sm:$0xff]  }
  0x15   : > { %v1185_v25 = vld [vmem:[%s1295_s29 + $0xb0] ss:$8 sps:$4 sm:$0xff]   ;;  %v1188_v27 = vld [vmem:[%s1295_s29 + $0xc4] ss:$8 sps:$4 sm:$0xff]   ;;  %v1191_v29 = vld [vmem:[%s1295_s29 + $0xc0] ss:$8 sps:$4 sm:$0xff]  }
  0x16   : > { %611 = vmatpush1.bf16.msra.mxu0 %v1155_v3  ;;  %1121 = vmatpush1.bf16.msra.mxu1 %v1155_v3  ;;  %v1192_v30 = vld [vmem:[%s1295_s29 + $0x54] ss:$8 sps:$4 sm:$0xff]   ;;  %v1196_v32 = vld [vmem:[%s1295_s29 + $0x50] ss:$8 sps:$4 sm:$0xff]   ;;  %v1198_v34 = vld [vmem:[%s1295_s29 + $0x64] ss:$8 sps:$4 sm:$0xff]  }
  0x17   : > { %612 = vmatprep.subr.bf16.mxu0 %v1234_v1  ;;  %1113 = vmatprep.subr.bf16.mxu1 %v1234_v1  ;;  %v1194_v31 = vld [vmem:[%s1295_s29 + $0xd4] ss:$8 sps:$4 sm:$0xff]   ;;  %v1197_v33 = vld [vmem:[%s1295_s29 + $0xd0] ss:$8 sps:$4 sm:$0xff]   ;;  %v1200_v35 = vld [vmem:[%s1295_s29 + $0xe4] ss:$8 sps:$4 sm:$0xff]  }
  0x18   : > { %v1202_v36 = vld [vmem:[%s1295_s29 + $0x60] ss:$8 sps:$4 sm:$0xff]   ;;  %v1204_v38 = vld [vmem:[%s1295_s29 + $0x74] ss:$8 sps:$4 sm:$0xff]   ;;  %v1208_v40 = vld [vmem:[%s1295_s29 + $0x70] ss:$8 sps:$4 sm:$0xff]  }
  0x19   : > { %v1203_v37 = vld [vmem:[%s1295_s29 + $0xe0] ss:$8 sps:$4 sm:$0xff]   ;;  %v1206_v39 = vld [vmem:[%s1295_s29 + $0xf4] ss:$8 sps:$4 sm:$0xff]   ;;  %v1209_v41 = vld [vmem:[%s1295_s29 + $0xf0] ss:$8 sps:$4 sm:$0xff]  }
  0x1a   : > { %613 = vmatpush1.bf16.msra.mxu0 %v1156_v4  ;;  %1122 = vmatpush1.bf16.msra.mxu1 %v1156_v4  ;;  %v1366_v42 = vld [vmem:[%s1519_s2] ss:$0 sm:$0xff] }
  0x1b   : > { %614 = vmatprep.subr.bf16.mxu0 %v1234_v1  ;;  %1114 = vmatprep.subr.bf16.mxu1 %v1234_v1  ;;  %v1371_v44 = vld [vmem:[%s1520_s3] ss:$0 sm:$0xff] }
  0x1e   : > { %615 = vmatpush1.bf16.msra.mxu0 %v1157_v7  ;;  %1123 = vmatpush1.bf16.msra.mxu1 %v1157_v7 }
  0x1f   : > { %616 = vmatprep.subr.bf16.mxu0 %v1234_v1  ;;  %1115 = vmatprep.subr.bf16.mxu1 %v1234_v1 }
  0x22   : > { %617 = vmatpush1.bf16.msra.mxu0 %v1158_v8  ;;  %1124 = vmatpush1.bf16.msra.mxu1 %v1158_v8 }
  0x23   : > { %618 = vmatprep.subr.bf16.mxu0 %v1234_v1  ;;  %1116 = vmatprep.subr.bf16.mxu1 %v1234_v1 }
  0x26   : > { %619 = vmatpush1.bf16.msra.mxu0 %v1159_v9  ;;  %1125 = vmatpush1.bf16.msra.mxu1 %v1159_v9 }
  0x27   : > { %620 = vmatprep.subr.bf16.mxu0 %v1234_v1  ;;  %1117 = vmatprep.subr.bf16.mxu1 %v1234_v1 }
  0x2a   : > { %621 = vmatpush1.bf16.msra.mxu0 %v1160_v10  ;;  %1126 = vmatpush1.bf16.msra.mxu1 %v1160_v10 }
  0x2b   : > { %636 = vmatprep.subr.bf16.mxu0 %v1234_v1  ;;  %1118 = vmatprep.subr.bf16.mxu1 %v1234_v1 }
  0x2e   : > { %637 = vmatpush2.bf16.msra.mxu0 %v1161_v11  ;;  %1127 = vmatpush2.bf16.msra.mxu1 %v1161_v11 }
  0x31   : > { %639 = vmatmul.mubr.bf16.vlgmr.msra.gmra.mxu0 %v1162_v12  ;;  %703 = vmatmul.mubr.bf16.vlgmr.msra.gmra.mxu1 %v1165_v13 }
  0x32   : > { %1090 = vmatprep.mubr.msk.bf16.mxu0 %vm557_vm0, %v1168_v14  ;;  %1098 = vmatprep.mubr.msk.bf16.mxu1 %vm557_vm0, %v1170_v15 }
  0x39   : > { %647 = vmatmul.mubr.bf16.gmra.mxu0 %v1172_v16  ;;  %711 = vmatmul.mubr.bf16.gmra.mxu1 %v1173_v17 }
  0x3a   : > { %1091 = vmatprep.mubr.msk.bf16.mxu0 %vm557_vm0, %v1174_v18  ;;  %1099 = vmatprep.mubr.msk.bf16.mxu1 %vm557_vm0, %v1176_v19 }
  0x41   : > { %655 = vmatmul.mubr.bf16.gmra.mxu0 %v1178_v20  ;;  %719 = vmatmul.mubr.bf16.gmra.mxu1 %v1179_v21 }
  0x42   : > { %1092 = vmatprep.mubr.msk.bf16.mxu0 %vm557_vm0, %v1180_v22  ;;  %1100 = vmatprep.mubr.msk.bf16.mxu1 %vm557_vm0, %v1182_v23 }
  0x49   : > { %663 = vmatmul.mubr.bf16.gmra.mxu0 %v1184_v24  ;;  %727 = vmatmul.mubr.bf16.gmra.mxu1 %v1185_v25 }
  0x4a   : > { %1093 = vmatprep.mubr.msk.bf16.mxu0 %vm557_vm0, %v1186_v26  ;;  %1101 = vmatprep.mubr.msk.bf16.mxu1 %vm557_vm0, %v1188_v27 }
  0x51   : > { %671 = vmatmul.mubr.bf16.gmra.mxu0 %v1190_v28  ;;  %735 = vmatmul.mubr.bf16.gmra.mxu1 %v1191_v29 }
  0x52   : > { %1094 = vmatprep.mubr.msk.bf16.mxu0 %vm557_vm0, %v1192_v30  ;;  %1102 = vmatprep.mubr.msk.bf16.mxu1 %vm557_vm0, %v1194_v31 }
  0x59   : > { %679 = vmatmul.mubr.bf16.gmra.mxu0 %v1196_v32  ;;  %743 = vmatmul.mubr.bf16.gmra.mxu1 %v1197_v33 }
  0x5a   : > { %1095 = vmatprep.mubr.msk.bf16.mxu0 %vm557_vm0, %v1198_v34  ;;  %1103 = vmatprep.mubr.msk.bf16.mxu1 %vm557_vm0, %v1200_v35 }
  0x61   : > { %687 = vmatmul.mubr.bf16.gmra.mxu0 %v1202_v36  ;;  %751 = vmatmul.mubr.bf16.gmra.mxu1 %v1203_v37 }
  0x62   : > { %1096 = vmatprep.mubr.msk.bf16.mxu0 %vm557_vm0, %v1204_v38  ;;  %1104 = vmatprep.mubr.msk.bf16.mxu1 %vm557_vm0, %v1206_v39 }
  0x69   : > { %695 = vmatmul.mubr.bf16.gmra.mxu0 %v1208_v40  ;;  %759 = vmatmul.mubr.bf16.gmra.mxu1 %v1209_v41 }
  0xf1   : > { %v640_v43 = vpop.f32.mrf.mxu0  ;;  %v704_v45 = vpop.f32.mrf.mxu1 }
  0xf2   : > { %v774_v46 = vmul.f32 %v1366_v42, %v640_v43  ;;  %v790_v47 = vmul.f32 %v1366_v42, %v704_v45 }
  0xf3   : > { %v642_v48 = vpop.f32.mrf.mxu0  ;;  %v706_v49 = vpop.f32.mrf.mxu1 }
  0xf4   : > { %v813_v50 = vadd.f32 %v1371_v44, %v774_v46  ;;  %v829_v51 = vadd.f32 %v1371_v44, %v790_v47 }
  0xf5   : > { %v643_v52 = vpop.f32.mrf.mxu0  ;;  %v707_v53 = vpop.f32.mrf.mxu1 }
  0xf6   : > { %v845_v54 = vmax.f32 %v813_v50, 0.0  ;;  %v861_v55 = vmax.f32 %v829_v51, 0.0  ;;  %v775_v56 = vmul.f32 %v1366_v42, %v643_v52  ;;  %v791_v57 = vmul.f32 %v1366_v42, %v707_v53 }
  0xf7   : > { %v645_v58 = vpop.f32.mrf.mxu0  ;;  %v709_v59 = vpop.f32.mrf.mxu1 }
  0xf8   : > { %877 = vst.msk [vmem:[%s1382_s27] sm:$0xff] %vm557_vm0, %v845_v54  ;;  %893 = vst.msk [vmem:[%s1382_s27 + $0x80] sm:$0xff] %vm557_vm0, %v861_v55  ;;  %v814_v60 = vadd.f32 %v1371_v44, %v775_v56  ;;  %v830_v61 = vadd.f32 %v1371_v44, %v791_v57 }
  0xf9   : > { %v648_v62 = vpop.f32.mrf.mxu0  ;;  %v712_v63 = vpop.f32.mrf.mxu1 }
  0xfa   : > { %v846_v0 = vmax.f32 %v814_v60, 0.0  ;;  %v862_v1 = vmax.f32 %v830_v61, 0.0  ;;  %v776_v2 = vmul.f32 %v1366_v42, %v648_v62  ;;  %v792_v3 = vmul.f32 %v1366_v42, %v712_v63 }
  0xfb   : > { %v650_v4 = vpop.f32.mrf.mxu0  ;;  %v714_v5 = vpop.f32.mrf.mxu1 }
  0xfc   : > { %878 = vst.msk [vmem:[%s1382_s27 + $0x8] sm:$0xff] %vm557_vm0, %v846_v0  ;;  %894 = vst.msk [vmem:[%s1382_s27 + $0x88] sm:$0xff] %vm557_vm0, %v862_v1  ;;  %v815_v6 = vadd.f32 %v1371_v44, %v776_v2  ;;  %v831_v7 = vadd.f32 %v1371_v44, %v792_v3 }
  0xfd   : > { %v651_v8 = vpop.f32.mrf.mxu0  ;;  %v715_v9 = vpop.f32.mrf.mxu1 }
  0xfe   : > { %v847_v10 = vmax.f32 %v815_v6, 0.0  ;;  %v863_v11 = vmax.f32 %v831_v7, 0.0  ;;  %v777_v12 = vmul.f32 %v1366_v42, %v651_v8  ;;  %v793_v13 = vmul.f32 %v1366_v42, %v715_v9 }
  0xff   : > { %v653_v14 = vpop.f32.mrf.mxu0  ;;  %v717_v15 = vpop.f32.mrf.mxu1 }
 0x100   : > { %879 = vst.msk [vmem:[%s1382_s27 + $0x10] sm:$0xff] %vm557_vm0, %v847_v10  ;;  %895 = vst.msk [vmem:[%s1382_s27 + $0x90] sm:$0xff] %vm557_vm0, %v863_v11  ;;  %v816_v16 = vadd.f32 %v1371_v44, %v777_v12  ;;  %v832_v17 = vadd.f32 %v1371_v44, %v793_v13 }
 0x101   : > { %v656_v18 = vpop.f32.mrf.mxu0  ;;  %v720_v19 = vpop.f32.mrf.mxu1 }
 0x102   : > { %v848_v20 = vmax.f32 %v816_v16, 0.0  ;;  %v864_v21 = vmax.f32 %v832_v17, 0.0  ;;  %v778_v22 = vmul.f32 %v1366_v42, %v656_v18  ;;  %v794_v23 = vmul.f32 %v1366_v42, %v720_v19 }
 0x103   : > { %v658_v24 = vpop.f32.mrf.mxu0  ;;  %v722_v25 = vpop.f32.mrf.mxu1 }
 0x104   : > { %880 = vst.msk [vmem:[%s1382_s27 + $0x18] sm:$0xff] %vm557_vm0, %v848_v20  ;;  %896 = vst.msk [vmem:[%s1382_s27 + $0x98] sm:$0xff] %vm557_vm0, %v864_v21  ;;  %v817_v26 = vadd.f32 %v1371_v44, %v778_v22  ;;  %v833_v27 = vadd.f32 %v1371_v44, %v794_v23 }
 0x105   : > { %v659_v28 = vpop.f32.mrf.mxu0  ;;  %v723_v29 = vpop.f32.mrf.mxu1 }
 0x106   : > { %v849_v30 = vmax.f32 %v817_v26, 0.0  ;;  %v865_v31 = vmax.f32 %v833_v27, 0.0  ;;  %v779_v32 = vmul.f32 %v1366_v42, %v659_v28  ;;  %v795_v33 = vmul.f32 %v1366_v42, %v723_v29 }
 0x107   : > { %v661_v34 = vpop.f32.mrf.mxu0  ;;  %v725_v35 = vpop.f32.mrf.mxu1 }
 0x108   : > { %881 = vst.msk [vmem:[%s1382_s27 + $0x20] sm:$0xff] %vm557_vm0, %v849_v30  ;;  %897 = vst.msk [vmem:[%s1382_s27 + $0xa0] sm:$0xff] %vm557_vm0, %v865_v31  ;;  %v818_v36 = vadd.f32 %v1371_v44, %v779_v32  ;;  %v834_v37 = vadd.f32 %v1371_v44, %v795_v33 }
 0x109   : > { %v664_v38 = vpop.f32.mrf.mxu0  ;;  %v728_v39 = vpop.f32.mrf.mxu1 }
 0x10a   : > { %v850_v40 = vmax.f32 %v818_v36, 0.0  ;;  %v866_v41 = vmax.f32 %v834_v37, 0.0  ;;  %v780_v43 = vmul.f32 %v1366_v42, %v664_v38  ;;  %v796_v45 = vmul.f32 %v1366_v42, %v728_v39 }
 0x10b   : > { %v666_v46 = vpop.f32.mrf.mxu0  ;;  %v730_v47 = vpop.f32.mrf.mxu1 }
 0x10c   : > { %882 = vst.msk [vmem:[%s1382_s27 + $0x28] sm:$0xff] %vm557_vm0, %v850_v40  ;;  %898 = vst.msk [vmem:[%s1382_s27 + $0xa8] sm:$0xff] %vm557_vm0, %v866_v41  ;;  %v819_v48 = vadd.f32 %v1371_v44, %v780_v43  ;;  %v835_v49 = vadd.f32 %v1371_v44, %v796_v45 }
 0x10d   : > { %v667_v50 = vpop.f32.mrf.mxu0  ;;  %v731_v51 = vpop.f32.mrf.mxu1 }
 0x10e   : > { %v851_v52 = vmax.f32 %v819_v48, 0.0  ;;  %v867_v53 = vmax.f32 %v835_v49, 0.0  ;;  %v781_v54 = vmul.f32 %v1366_v42, %v667_v50  ;;  %v797_v55 = vmul.f32 %v1366_v42, %v731_v51 }
 0x10f   : > { %v669_v56 = vpop.f32.mrf.mxu0  ;;  %v733_v57 = vpop.f32.mrf.mxu1 }
 0x110   : > { %883 = vst.msk [vmem:[%s1382_s27 + $0x30] sm:$0xff] %vm557_vm0, %v851_v52  ;;  %899 = vst.msk [vmem:[%s1382_s27 + $0xb0] sm:$0xff] %vm557_vm0, %v867_v53  ;;  %v820_v58 = vadd.f32 %v1371_v44, %v781_v54  ;;  %v836_v59 = vadd.f32 %v1371_v44, %v797_v55 }
 0x111   : > { %v672_v60 = vpop.f32.mrf.mxu0  ;;  %v736_v61 = vpop.f32.mrf.mxu1 }
 0x112   : > { %v852_v62 = vmax.f32 %v820_v58, 0.0  ;;  %v868_v63 = vmax.f32 %v836_v59, 0.0  ;;  %v782_v0 = vmul.f32 %v1366_v42, %v672_v60  ;;  %v798_v1 = vmul.f32 %v1366_v42, %v736_v61 }
 0x113   : > { %v674_v2 = vpop.f32.mrf.mxu0  ;;  %v738_v3 = vpop.f32.mrf.mxu1 }
 0x114   : > { %884 = vst.msk [vmem:[%s1382_s27 + $0x38] sm:$0xff] %vm557_vm0, %v852_v62  ;;  %900 = vst.msk [vmem:[%s1382_s27 + $0xb8] sm:$0xff] %vm557_vm0, %v868_v63  ;;  %v821_v4 = vadd.f32 %v1371_v44, %v782_v0  ;;  %v837_v5 = vadd.f32 %v1371_v44, %v798_v1 }
 0x115   : > { %v675_v6 = vpop.f32.mrf.mxu0  ;;  %v739_v7 = vpop.f32.mrf.mxu1 }
 0x116   : > { %v853_v8 = vmax.f32 %v821_v4, 0.0  ;;  %v869_v9 = vmax.f32 %v837_v5, 0.0  ;;  %v783_v10 = vmul.f32 %v1366_v42, %v675_v6  ;;  %v799_v11 = vmul.f32 %v1366_v42, %v739_v7 }
 0x117   : > { %v677_v12 = vpop.f32.mrf.mxu0  ;;  %v741_v13 = vpop.f32.mrf.mxu1 }
 0x118   : > { %885 = vst.msk [vmem:[%s1382_s27 + $0x40] sm:$0xff] %vm557_vm0, %v853_v8  ;;  %901 = vst.msk [vmem:[%s1382_s27 + $0xc0] sm:$0xff] %vm557_vm0, %v869_v9  ;;  %v822_v14 = vadd.f32 %v1371_v44, %v783_v10  ;;  %v838_v15 = vadd.f32 %v1371_v44, %v799_v11 }
 0x119   : > { %v680_v16 = vpop.f32.mrf.mxu0  ;;  %v744_v17 = vpop.f32.mrf.mxu1 }
 0x11a   : > { %v854_v18 = vmax.f32 %v822_v14, 0.0  ;;  %v870_v19 = vmax.f32 %v838_v15, 0.0  ;;  %v784_v20 = vmul.f32 %v1366_v42, %v680_v16  ;;  %v800_v21 = vmul.f32 %v1366_v42, %v744_v17 }
 0x11b   : > { %v682_v22 = vpop.f32.mrf.mxu0  ;;  %v746_v23 = vpop.f32.mrf.mxu1 }
 0x11c   : > { %886 = vst.msk [vmem:[%s1382_s27 + $0x48] sm:$0xff] %vm557_vm0, %v854_v18  ;;  %902 = vst.msk [vmem:[%s1382_s27 + $0xc8] sm:$0xff] %vm557_vm0, %v870_v19  ;;  %v823_v24 = vadd.f32 %v1371_v44, %v784_v20  ;;  %v839_v25 = vadd.f32 %v1371_v44, %v800_v21 }
 0x11d   : > { %v683_v26 = vpop.f32.mrf.mxu0  ;;  %v747_v27 = vpop.f32.mrf.mxu1 }
 0x11e   : > { %v855_v28 = vmax.f32 %v823_v24, 0.0  ;;  %v871_v29 = vmax.f32 %v839_v25, 0.0  ;;  %v785_v30 = vmul.f32 %v1366_v42, %v683_v26  ;;  %v801_v31 = vmul.f32 %v1366_v42, %v747_v27 }
 0x11f   : > { %v685_v32 = vpop.f32.mrf.mxu0  ;;  %v749_v33 = vpop.f32.mrf.mxu1 }
 0x120   : > { %887 = vst.msk [vmem:[%s1382_s27 + $0x50] sm:$0xff] %vm557_vm0, %v855_v28  ;;  %903 = vst.msk [vmem:[%s1382_s27 + $0xd0] sm:$0xff] %vm557_vm0, %v871_v29  ;;  %v824_v34 = vadd.f32 %v1371_v44, %v785_v30  ;;  %v840_v35 = vadd.f32 %v1371_v44, %v801_v31 }
 0x121   : > { %v688_v36 = vpop.f32.mrf.mxu0  ;;  %v752_v37 = vpop.f32.mrf.mxu1 }
 0x122   : > { %v856_v38 = vmax.f32 %v824_v34, 0.0  ;;  %v872_v39 = vmax.f32 %v840_v35, 0.0  ;;  %v786_v40 = vmul.f32 %v1366_v42, %v688_v36  ;;  %v802_v41 = vmul.f32 %v1366_v42, %v752_v37 }
 0x123   : > { %v690_v43 = vpop.f32.mrf.mxu0  ;;  %v754_v45 = vpop.f32.mrf.mxu1 }
 0x124   : > { %888 = vst.msk [vmem:[%s1382_s27 + $0x58] sm:$0xff] %vm557_vm0, %v856_v38  ;;  %904 = vst.msk [vmem:[%s1382_s27 + $0xd8] sm:$0xff] %vm557_vm0, %v872_v39  ;;  %v825_v46 = vadd.f32 %v1371_v44, %v786_v40  ;;  %v841_v47 = vadd.f32 %v1371_v44, %v802_v41 }
 0x125   : > { %v691_v48 = vpop.f32.mrf.mxu0  ;;  %v755_v49 = vpop.f32.mrf.mxu1 }
 0x126   : > { %v857_v50 = vmax.f32 %v825_v46, 0.0  ;;  %v873_v51 = vmax.f32 %v841_v47, 0.0  ;;  %v787_v52 = vmul.f32 %v1366_v42, %v691_v48  ;;  %v803_v53 = vmul.f32 %v1366_v42, %v755_v49 }
 0x127   : > { %v693_v54 = vpop.f32.mrf.mxu0  ;;  %v757_v55 = vpop.f32.mrf.mxu1 }
 0x128   : > { %889 = vst.msk [vmem:[%s1382_s27 + $0x60] sm:$0xff] %vm557_vm0, %v857_v50  ;;  %905 = vst.msk [vmem:[%s1382_s27 + $0xe0] sm:$0xff] %vm557_vm0, %v873_v51  ;;  %v826_v56 = vadd.f32 %v1371_v44, %v787_v52  ;;  %v842_v57 = vadd.f32 %v1371_v44, %v803_v53 }
 0x129   : > { %v696_v58 = vpop.f32.mrf.mxu0  ;;  %v760_v59 = vpop.f32.mrf.mxu1 }
 0x12a   : > { %v858_v60 = vmax.f32 %v826_v56, 0.0  ;;  %v874_v61 = vmax.f32 %v842_v57, 0.0  ;;  %v788_v62 = vmul.f32 %v1366_v42, %v696_v58  ;;  %v804_v63 = vmul.f32 %v1366_v42, %v760_v59 }
 0x12b   : > { %v698_v0 = vpop.f32.mrf.mxu0  ;;  %v762_v1 = vpop.f32.mrf.mxu1 }
 0x12c   : > { %890 = vst.msk [vmem:[%s1382_s27 + $0x68] sm:$0xff] %vm557_vm0, %v858_v60  ;;  %906 = vst.msk [vmem:[%s1382_s27 + $0xe8] sm:$0xff] %vm557_vm0, %v874_v61  ;;  %v827_v2 = vadd.f32 %v1371_v44, %v788_v62  ;;  %v843_v3 = vadd.f32 %v1371_v44, %v804_v63 }
 0x12d   : > { %v699_v4 = vpop.f32.mrf.mxu0  ;;  %v763_v5 = vpop.f32.mrf.mxu1 }
 0x12e   : > { %v859_v6 = vmax.f32 %v827_v2, 0.0  ;;  %v875_v7 = vmax.f32 %v843_v3, 0.0  ;;  %v789_v8 = vmul.f32 %v1366_v42, %v699_v4  ;;  %v805_v9 = vmul.f32 %v1366_v42, %v763_v5 }
 0x12f   : > { %v701_v10 = vpop.f32.mrf.mxu0  ;;  %v765_v11 = vpop.f32.mrf.mxu1 }
 0x130   : > { %891 = vst.msk [vmem:[%s1382_s27 + $0x70] sm:$0xff] %vm557_vm0, %v859_v6  ;;  %907 = vst.msk [vmem:[%s1382_s27 + $0xf0] sm:$0xff] %vm557_vm0, %v875_v7  ;;  %v828_v12 = vadd.f32 %v1371_v44, %v789_v8  ;;  %v844_v13 = vadd.f32 %v1371_v44, %v805_v9 }
 0x132   : > { %v860_v14 = vmax.f32 %v828_v12, 0.0  ;;  %v876_v15 = vmax.f32 %v844_v13, 0.0 }
 0x134   : > { %892 = vst.msk [vmem:[%s1382_s27 + $0x78] sm:$0xff] %vm557_vm0, %v860_v14  ;;  %908 = vst.msk [vmem:[%s1382_s27 + $0xf8] sm:$0xff] %vm557_vm0, %v876_v15 }
 0x135 PF: > { %s14_s17 = sadd.s32 1, %s1232_s17   ;;  %s1522_s15 = smov %s1228_s16 }
 0x136   : > { %p11_p5 = scmp.ge.s32.totalorder %s14_s17, 4   ;;  %s1523_s16 = smov %s1525_s18 }
 0x138   :  { %13 = sbr.rel (!%p11_p5) target bundleno = 2 (0x2), region = 75 }

// kernel: _lambda_.35
= control target key start
LH: loop header
LB: loop body
LE: loop exit
PB: predicated region body
PF: predicated region fallthrough
CT: control target
= control target key end

     0   :  { %s1273_s15 = smov 0   ;;  %s1275_s16 = smov 0   ;;  %s1533_s0 = inlined_call_operand.vmem [shape: bf16[512,152], index: 0, kind: input, shape index: {}]   ;;  %s1534_s1 = inlined_call_operand.vmem [shape: bf16[152,4], index: 1, kind: input, shape index: {}]   ;;  %s1535_s2 = inlined_call_operand.vmem [shape: f32[1,4], index: 2, kind: input, shape index: {}]   ;;  %s1536_s3 = inlined_call_operand.vmem [shape: f32[1,4], index: 3, kind: input, shape index: {}]   ;;  %s1537_s4 = inlined_call_operand.vmem [shape: f32[512,4], index: 4, kind: output, shape index: {}]  }
   0x1   :  { %s1277_s17 = smov 0  }
   0x2 LB: > { %s33_s18 = sadd.s32 1, %s1241_s16  ;;  %p1051_p0 = scmp.ge.s32.totalorder %s1245_s17, 1  ;;  %s1245_s17 = sphi %s1277_s17, %s14_s17   ;;  %s1241_s16 = sphi %s1275_s16, %s1539_s16   ;;  %s1237_s15 = sphi %s1273_s15, %s1538_s15  }
   0x3   : > { %p35_p1 = scmp.ge.s32.totalorder %s33_s18, 2  ;;  %p224_p2 = scmp.lt.s32.totalorder %s1245_s17, 3 }
   0x5   : > { %s1541_s18 = smov (%p35_p1, %s33_s18), 0  ;;  %p225_p3 = pnand %p1051_p0, %p224_p2 }
   0x6   : > { %s1052_s23 = sshll.u32 (!%p225_p3), %s1237_s15, 5 }
   0x7   : > { %228 = sbr.rel (%p225_p3) target bundleno = 313 (0x139), region = 36  ;;  %p274_p4 = scmp.lt.s32.totalorder (!%p225_p3), %s1052_s23, 63 }
   0xc   : > { %v1165_v0 = vld [vmem:[%s1534_s1 + $0x38] sm:$0xff]   ;;  %v1247_v1 = vmov 0   ;;  %v1166_v2 = vld [vmem:[%s1534_s1 + $0x30] sm:$0xff]   ;;  %s1543_s23 = smov (!%p274_p4, %s1052_s23), 63  ;;  %v1167_v3 = vld [vmem:[%s1534_s1 + $0x28] sm:$0xff]   ;;  %vm561_vm0 = vcmask 195584  }
   0xd   : > { %614 = vmatprep.subr.bf16.mxu0 %v1247_v1  ;;  %1120 = vmatprep.subr.bf16.mxu1 %v1247_v1  ;;  %s1119_s26 = sshll.u32 %s1543_s23, 3  ;;  %v1168_v4 = vld [vmem:[%s1534_s1 + $0x20] sm:$0xff]   ;;  %v1169_v7 = vld [vmem:[%s1534_s1 + $0x18] sm:$0xff]   ;;  %v1170_v8 = vld [vmem:[%s1534_s1 + $0x10] sm:$0xff]   ;;  %vm610_vm1 = vcmask 1043456   ;;  %vm885_vm2 = vcmask 31744  }
   0xe   : > { %615 = vmatpush1.bf16.msra.mxu0 %v1165_v0  ;;  %1130 = vmatpush1.bf16.msra.mxu1 %v1165_v0  ;;  %s1308_s29 = scalar_lea.vmem %s1533_s0, %s1119_s26  ;;  %v1171_v9 = vld [vmem:[%s1534_s1 + $0x8] sm:$0xff]   ;;  %v1172_v10 = vld [vmem:[%s1534_s1] sm:$0xff]  }
   0xf   : > { %616 = vmatprep.subr.bf16.mxu0 %v1247_v1  ;;  %1121 = vmatprep.subr.bf16.mxu1 %v1247_v1  ;;  %v1177_v5 = vld [vmem:[%s1308_s29 + $0x4] ss:$8 sps:$4 sm:$0xff]   ;;  %v1173_v11 = vld [vmem:[%s1534_s1 + $0x48] ss:$0 sps:$4 sm:$0xff]   ;;  %v1181_v16 = vld [vmem:[%s1308_s29 + $0x14] ss:$8 sps:$4 sm:$0xff]  }
  0x10   : > { %1099 = vmatprep.mubr.msk.bf16.mxu0 %vm561_vm0, %v1177_v5  ;;  %v1180_v6 = vld [vmem:[%s1308_s29 + $0x84] ss:$8 sps:$4 sm:$0xff]   ;;  %v612_v12 = vsel %vm610_vm1, %v1173_v11, 0  ;;  %v1175_v14 = vld [vmem:[%s1308_s29] ss:$8 sps:$4 sm:$0xff]  }
  0x11   : > { %1107 = vmatprep.mubr.msk.bf16.mxu1 %vm561_vm0, %v1180_v6  ;;  %v1174_v13 = vld [vmem:[%s1534_s1 + $0x40] sm:$0xff]   ;;  %v1183_v17 = vld [vmem:[%s1308_s29 + $0x94] ss:$8 sps:$4 sm:$0xff]   ;;  %v1185_v18 = vld [vmem:[%s1308_s29 + $0x10] ss:$8 sps:$4 sm:$0xff]  }
  0x12   : > { %617 = vmatpush1.bf16.msra.mxu0 %v1166_v2  ;;  %1131 = vmatpush1.bf16.msra.mxu1 %v1166_v2  ;;  %v1178_v15 = vld [vmem:[%s1308_s29 + $0x80] ss:$8 sps:$4 sm:$0xff]   ;;  %v1186_v19 = vld [vmem:[%s1308_s29 + $0x90] ss:$8 sps:$4 sm:$0xff]   ;;  %v1187_v20 = vld [vmem:[%s1308_s29 + $0x24] ss:$8 sps:$4 sm:$0xff]  }
  0x13   : > { %618 = vmatprep.subr.bf16.mxu0 %v1247_v1  ;;  %1122 = vmatprep.subr.bf16.mxu1 %v1247_v1  ;;  %v1189_v21 = vld [vmem:[%s1308_s29 + $0xa4] ss:$8 sps:$4 sm:$0xff]   ;;  %v1191_v22 = vld [vmem:[%s1308_s29 + $0x20] ss:$8 sps:$4 sm:$0xff]   ;;  %v1193_v24 = vld [vmem:[%s1308_s29 + $0x34] ss:$8 sps:$4 sm:$0xff]  }
  0x14   : > { %v1192_v23 = vld [vmem:[%s1308_s29 + $0xa0] ss:$8 sps:$4 sm:$0xff]   ;;  %v1195_v25 = vld [vmem:[%s1308_s29 + $0xb4] ss:$8 sps:$4 sm:$0xff]   ;;  %v1197_v26 = vld [vmem:[%s1308_s29 + $0x30] ss:$8 sps:$4 sm:$0xff]  }
  0x15   : > { %v1198_v27 = vld [vmem:[%s1308_s29 + $0xb0] ss:$8 sps:$4 sm:$0xff]   ;;  %v1199_v28 = vld [vmem:[%s1308_s29 + $0x44] ss:$8 sps:$4 sm:$0xff]   ;;  %v1203_v30 = vld [vmem:[%s1308_s29 + $0x40] ss:$8 sps:$4 sm:$0xff]  }
  0x16   : > { %619 = vmatpush1.bf16.msra.mxu0 %v1167_v3  ;;  %1132 = vmatpush1.bf16.msra.mxu1 %v1167_v3  ;;  %v1201_v29 = vld [vmem:[%s1308_s29 + $0xc4] ss:$8 sps:$4 sm:$0xff]   ;;  %v1204_v31 = vld [vmem:[%s1308_s29 + $0xc0] ss:$8 sps:$4 sm:$0xff]   ;;  %v1205_v32 = vld [vmem:[%s1308_s29 + $0x54] ss:$8 sps:$4 sm:$0xff]  }
  0x17   : > { %620 = vmatprep.subr.bf16.mxu0 %v1247_v1  ;;  %1123 = vmatprep.subr.bf16.mxu1 %v1247_v1  ;;  %v1207_v33 = vld [vmem:[%s1308_s29 + $0xd4] ss:$8 sps:$4 sm:$0xff]   ;;  %v1209_v34 = vld [vmem:[%s1308_s29 + $0x50] ss:$8 sps:$4 sm:$0xff]   ;;  %v1211_v36 = vld [vmem:[%s1308_s29 + $0x64] ss:$8 sps:$4 sm:$0xff]  }
  0x18   : > { %v1210_v35 = vld [vmem:[%s1308_s29 + $0xd0] ss:$8 sps:$4 sm:$0xff]   ;;  %v1213_v37 = vld [vmem:[%s1308_s29 + $0xe4] ss:$8 sps:$4 sm:$0xff]   ;;  %v1215_v38 = vld [vmem:[%s1308_s29 + $0x60] ss:$8 sps:$4 sm:$0xff]  }
  0x19   : > { %v1216_v39 = vld [vmem:[%s1308_s29 + $0xe0] ss:$8 sps:$4 sm:$0xff]   ;;  %v1217_v40 = vld [vmem:[%s1308_s29 + $0x74] ss:$8 sps:$4 sm:$0xff]   ;;  %v1221_v42 = vld [vmem:[%s1308_s29 + $0x70] ss:$8 sps:$4 sm:$0xff]  }
  0x1a   : > { %621 = vmatpush1.bf16.msra.mxu0 %v1168_v4  ;;  %1133 = vmatpush1.bf16.msra.mxu1 %v1168_v4  ;;  %v1219_v41 = vld [vmem:[%s1308_s29 + $0xf4] ss:$8 sps:$4 sm:$0xff]   ;;  %v1222_v43 = vld [vmem:[%s1308_s29 + $0xf0] ss:$8 sps:$4 sm:$0xff]   ;;  %v1382_v44 = vld [vmem:[%s1535_s2] ss:$0 sm:$0xff]  ;;  %s1398_s29 = scalar_lea.vmem %s1537_s4, %s1119_s26 }
  0x1b   : > { %622 = vmatprep.subr.bf16.mxu0 %v1247_v1  ;;  %1124 = vmatprep.subr.bf16.mxu1 %v1247_v1  ;;  %v1387_v46 = vld [vmem:[%s1536_s3] ss:$0 sm:$0xff] }
  0x1e   : > { %623 = vmatpush1.bf16.msra.mxu0 %v1169_v7  ;;  %1134 = vmatpush1.bf16.msra.mxu1 %v1169_v7 }
  0x1f   : > { %624 = vmatprep.subr.bf16.mxu0 %v1247_v1  ;;  %1125 = vmatprep.subr.bf16.mxu1 %v1247_v1 }
  0x22   : > { %625 = vmatpush1.bf16.msra.mxu0 %v1170_v8  ;;  %1135 = vmatpush1.bf16.msra.mxu1 %v1170_v8 }
  0x23   : > { %626 = vmatprep.subr.bf16.mxu0 %v1247_v1  ;;  %1126 = vmatprep.subr.bf16.mxu1 %v1247_v1 }
  0x26   : > { %627 = vmatpush1.bf16.msra.mxu0 %v1171_v9  ;;  %1136 = vmatpush1.bf16.msra.mxu1 %v1171_v9 }
  0x27   : > { %628 = vmatprep.subr.bf16.mxu0 %v1247_v1  ;;  %1127 = vmatprep.subr.bf16.mxu1 %v1247_v1 }
  0x2a   : > { %629 = vmatpush1.bf16.msra.mxu0 %v1172_v10  ;;  %1137 = vmatpush1.bf16.msra.mxu1 %v1172_v10 }
  0x2b   : > { %642 = vmatprep.subr.bf16.mxu0 %v1247_v1  ;;  %1128 = vmatprep.subr.bf16.mxu1 %v1247_v1 }
  0x2e   : > { %643 = vmatpush2.bf16.msra.mxu0 %v612_v12  ;;  %1138 = vmatpush2.bf16.msra.mxu1 %v612_v12 }
  0x2f   : > { %644 = vmatprep.subr.bf16.mxu0 %v1247_v1  ;;  %1129 = vmatprep.subr.bf16.mxu1 %v1247_v1 }
  0x32   : > { %645 = vmatpush2.bf16.msra.mxu0 %v1174_v13  ;;  %1139 = vmatpush2.bf16.msra.mxu1 %v1174_v13 }
  0x35   : > { %647 = vmatmul.mubr.bf16.vlgmr.msra.gmra.mxu0 %v1175_v14  ;;  %711 = vmatmul.mubr.bf16.vlgmr.msra.gmra.mxu1 %v1178_v15 }
  0x36   : > { %1100 = vmatprep.mubr.msk.bf16.mxu0 %vm561_vm0, %v1181_v16  ;;  %1108 = vmatprep.mubr.msk.bf16.mxu1 %vm561_vm0, %v1183_v17 }
  0x3d   : > { %655 = vmatmul.mubr.bf16.gmra.mxu0 %v1185_v18  ;;  %719 = vmatmul.mubr.bf16.gmra.mxu1 %v1186_v19 }
  0x3e   : > { %1101 = vmatprep.mubr.msk.bf16.mxu0 %vm561_vm0, %v1187_v20  ;;  %1109 = vmatprep.mubr.msk.bf16.mxu1 %vm561_vm0, %v1189_v21 }
  0x45   : > { %663 = vmatmul.mubr.bf16.gmra.mxu0 %v1191_v22  ;;  %727 = vmatmul.mubr.bf16.gmra.mxu1 %v1192_v23 }
  0x46   : > { %1102 = vmatprep.mubr.msk.bf16.mxu0 %vm561_vm0, %v1193_v24  ;;  %1110 = vmatprep.mubr.msk.bf16.mxu1 %vm561_vm0, %v1195_v25 }
  0x4d   : > { %671 = vmatmul.mubr.bf16.gmra.mxu0 %v1197_v26  ;;  %735 = vmatmul.mubr.bf16.gmra.mxu1 %v1198_v27 }
  0x4e   : > { %1103 = vmatprep.mubr.msk.bf16.mxu0 %vm561_vm0, %v1199_v28  ;;  %1111 = vmatprep.mubr.msk.bf16.mxu1 %vm561_vm0, %v1201_v29 }
  0x55   : > { %679 = vmatmul.mubr.bf16.gmra.mxu0 %v1203_v30  ;;  %743 = vmatmul.mubr.bf16.gmra.mxu1 %v1204_v31 }
  0x56   : > { %1104 = vmatprep.mubr.msk.bf16.mxu0 %vm561_vm0, %v1205_v32  ;;  %1112 = vmatprep.mubr.msk.bf16.mxu1 %vm561_vm0, %v1207_v33 }
  0x5d   : > { %687 = vmatmul.mubr.bf16.gmra.mxu0 %v1209_v34  ;;  %751 = vmatmul.mubr.bf16.gmra.mxu1 %v1210_v35 }
  0x5e   : > { %1105 = vmatprep.mubr.msk.bf16.mxu0 %vm561_vm0, %v1211_v36  ;;  %1113 = vmatprep.mubr.msk.bf16.mxu1 %vm561_vm0, %v1213_v37 }
  0x65   : > { %695 = vmatmul.mubr.bf16.gmra.mxu0 %v1215_v38  ;;  %759 = vmatmul.mubr.bf16.gmra.mxu1 %v1216_v39 }
  0x66   : > { %1106 = vmatprep.mubr.msk.bf16.mxu0 %vm561_vm0, %v1217_v40  ;;  %1114 = vmatprep.mubr.msk.bf16.mxu1 %vm561_vm0, %v1219_v41 }
  0x6d   : > { %703 = vmatmul.mubr.bf16.gmra.mxu0 %v1221_v42  ;;  %767 = vmatmul.mubr.bf16.gmra.mxu1 %v1222_v43 }
  0xf5   : > { %v648_v45 = vpop.f32.mrf.mxu0  ;;  %v712_v47 = vpop.f32.mrf.mxu1 }
  0xf6   : > { %v782_v48 = vmul.f32 %v1382_v44, %v648_v45  ;;  %v798_v49 = vmul.f32 %v1382_v44, %v712_v47 }
  0xf7   : > { %v650_v50 = vpop.f32.mrf.mxu0  ;;  %v714_v51 = vpop.f32.mrf.mxu1 }
  0xf8   : > { %v821_v52 = vadd.f32 %v1387_v46, %v782_v48  ;;  %v837_v53 = vadd.f32 %v1387_v46, %v798_v49 }
  0xf9   : > { %v651_v54 = vpop.f32.mrf.mxu0  ;;  %v715_v55 = vpop.f32.mrf.mxu1 }
  0xfa   : > { %v853_v56 = vmax.f32 %v821_v52, 0.0  ;;  %v869_v57 = vmax.f32 %v837_v53, 0.0  ;;  %v783_v58 = vmul.f32 %v1382_v44, %v651_v54  ;;  %v799_v59 = vmul.f32 %v1382_v44, %v715_v55 }
  0xfb   : > { %v653_v60 = vpop.f32.mrf.mxu0  ;;  %v717_v61 = vpop.f32.mrf.mxu1 }
  0xfc   : > { %886 = vst.msk [vmem:[%s1398_s29] sm:$0xff] %vm885_vm2, %v853_v56  ;;  %902 = vst.msk [vmem:[%s1398_s29 + $0x80] sm:$0xff] %vm885_vm2, %v869_v57  ;;  %v822_v62 = vadd.f32 %v1387_v46, %v783_v58  ;;  %v838_v63 = vadd.f32 %v1387_v46, %v799_v59 }
  0xfd   : > { %v656_v0 = vpop.f32.mrf.mxu0  ;;  %v720_v1 = vpop.f32.mrf.mxu1 }
  0xfe   : > { %v854_v2 = vmax.f32 %v822_v62, 0.0  ;;  %v870_v3 = vmax.f32 %v838_v63, 0.0  ;;  %v784_v4 = vmul.f32 %v1382_v44, %v656_v0  ;;  %v800_v5 = vmul.f32 %v1382_v44, %v720_v1 }
  0xff   : > { %v658_v6 = vpop.f32.mrf.mxu0  ;;  %v722_v7 = vpop.f32.mrf.mxu1 }
 0x100   : > { %887 = vst.msk [vmem:[%s1398_s29 + $0x8] sm:$0xff] %vm885_vm2, %v854_v2  ;;  %903 = vst.msk [vmem:[%s1398_s29 + $0x88] sm:$0xff] %vm885_vm2, %v870_v3  ;;  %v823_v8 = vadd.f32 %v1387_v46, %v784_v4  ;;  %v839_v9 = vadd.f32 %v1387_v46, %v800_v5 }
 0x101   : > { %v659_v10 = vpop.f32.mrf.mxu0  ;;  %v723_v11 = vpop.f32.mrf.mxu1 }
 0x102   : > { %v855_v12 = vmax.f32 %v823_v8, 0.0  ;;  %v871_v13 = vmax.f32 %v839_v9, 0.0  ;;  %v785_v14 = vmul.f32 %v1382_v44, %v659_v10  ;;  %v801_v15 = vmul.f32 %v1382_v44, %v723_v11 }
 0x103   : > { %v661_v16 = vpop.f32.mrf.mxu0  ;;  %v725_v17 = vpop.f32.mrf.mxu1 }
 0x104   : > { %888 = vst.msk [vmem:[%s1398_s29 + $0x10] sm:$0xff] %vm885_vm2, %v855_v12  ;;  %904 = vst.msk [vmem:[%s1398_s29 + $0x90] sm:$0xff] %vm885_vm2, %v871_v13  ;;  %v824_v18 = vadd.f32 %v1387_v46, %v785_v14  ;;  %v840_v19 = vadd.f32 %v1387_v46, %v801_v15 }
 0x105   : > { %v664_v20 = vpop.f32.mrf.mxu0  ;;  %v728_v21 = vpop.f32.mrf.mxu1 }
 0x106   : > { %v856_v22 = vmax.f32 %v824_v18, 0.0  ;;  %v872_v23 = vmax.f32 %v840_v19, 0.0  ;;  %v786_v24 = vmul.f32 %v1382_v44, %v664_v20  ;;  %v802_v25 = vmul.f32 %v1382_v44, %v728_v21 }
 0x107   : > { %v666_v26 = vpop.f32.mrf.mxu0  ;;  %v730_v27 = vpop.f32.mrf.mxu1 }
 0x108   : > { %889 = vst.msk [vmem:[%s1398_s29 + $0x18] sm:$0xff] %vm885_vm2, %v856_v22  ;;  %905 = vst.msk [vmem:[%s1398_s29 + $0x98] sm:$0xff] %vm885_vm2, %v872_v23  ;;  %v825_v28 = vadd.f32 %v1387_v46, %v786_v24  ;;  %v841_v29 = vadd.f32 %v1387_v46, %v802_v25 }
 0x109   : > { %v667_v30 = vpop.f32.mrf.mxu0  ;;  %v731_v31 = vpop.f32.mrf.mxu1 }
 0x10a   : > { %v857_v32 = vmax.f32 %v825_v28, 0.0  ;;  %v873_v33 = vmax.f32 %v841_v29, 0.0  ;;  %v787_v34 = vmul.f32 %v1382_v44, %v667_v30  ;;  %v803_v35 = vmul.f32 %v1382_v44, %v731_v31 }
 0x10b   : > { %v669_v36 = vpop.f32.mrf.mxu0  ;;  %v733_v37 = vpop.f32.mrf.mxu1 }
 0x10c   : > { %890 = vst.msk [vmem:[%s1398_s29 + $0x20] sm:$0xff] %vm885_vm2, %v857_v32  ;;  %906 = vst.msk [vmem:[%s1398_s29 + $0xa0] sm:$0xff] %vm885_vm2, %v873_v33  ;;  %v826_v38 = vadd.f32 %v1387_v46, %v787_v34  ;;  %v842_v39 = vadd.f32 %v1387_v46, %v803_v35 }
 0x10d   : > { %v672_v40 = vpop.f32.mrf.mxu0  ;;  %v736_v41 = vpop.f32.mrf.mxu1 }
 0x10e   : > { %v858_v42 = vmax.f32 %v826_v38, 0.0  ;;  %v874_v43 = vmax.f32 %v842_v39, 0.0  ;;  %v788_v45 = vmul.f32 %v1382_v44, %v672_v40  ;;  %v804_v47 = vmul.f32 %v1382_v44, %v736_v41 }
 0x10f   : > { %v674_v48 = vpop.f32.mrf.mxu0  ;;  %v738_v49 = vpop.f32.mrf.mxu1 }
 0x110   : > { %891 = vst.msk [vmem:[%s1398_s29 + $0x28] sm:$0xff] %vm885_vm2, %v858_v42  ;;  %907 = vst.msk [vmem:[%s1398_s29 + $0xa8] sm:$0xff] %vm885_vm2, %v874_v43  ;;  %v827_v50 = vadd.f32 %v1387_v46, %v788_v45  ;;  %v843_v51 = vadd.f32 %v1387_v46, %v804_v47 }
 0x111   : > { %v675_v52 = vpop.f32.mrf.mxu0  ;;  %v739_v53 = vpop.f32.mrf.mxu1 }
 0x112   : > { %v859_v54 = vmax.f32 %v827_v50, 0.0  ;;  %v875_v55 = vmax.f32 %v843_v51, 0.0  ;;  %v789_v56 = vmul.f32 %v1382_v44, %v675_v52  ;;  %v805_v57 = vmul.f32 %v1382_v44, %v739_v53 }
 0x113   : > { %v677_v58 = vpop.f32.mrf.mxu0  ;;  %v741_v59 = vpop.f32.mrf.mxu1 }
 0x114   : > { %892 = vst.msk [vmem:[%s1398_s29 + $0x30] sm:$0xff] %vm885_vm2, %v859_v54  ;;  %908 = vst.msk [vmem:[%s1398_s29 + $0xb0] sm:$0xff] %vm885_vm2, %v875_v55  ;;  %v828_v60 = vadd.f32 %v1387_v46, %v789_v56  ;;  %v844_v61 = vadd.f32 %v1387_v46, %v805_v57 }
 0x115   : > { %v680_v62 = vpop.f32.mrf.mxu0  ;;  %v744_v63 = vpop.f32.mrf.mxu1 }
 0x116   : > { %v860_v0 = vmax.f32 %v828_v60, 0.0  ;;  %v876_v1 = vmax.f32 %v844_v61, 0.0  ;;  %v790_v2 = vmul.f32 %v1382_v44, %v680_v62  ;;  %v806_v3 = vmul.f32 %v1382_v44, %v744_v63 }
 0x117   : > { %v682_v4 = vpop.f32.mrf.mxu0  ;;  %v746_v5 = vpop.f32.mrf.mxu1 }
 0x118   : > { %893 = vst.msk [vmem:[%s1398_s29 + $0x38] sm:$0xff] %vm885_vm2, %v860_v0  ;;  %909 = vst.msk [vmem:[%s1398_s29 + $0xb8] sm:$0xff] %vm885_vm2, %v876_v1  ;;  %v829_v6 = vadd.f32 %v1387_v46, %v790_v2  ;;  %v845_v7 = vadd.f32 %v1387_v46, %v806_v3 }
 0x119   : > { %v683_v8 = vpop.f32.mrf.mxu0  ;;  %v747_v9 = vpop.f32.mrf.mxu1 }
 0x11a   : > { %v861_v10 = vmax.f32 %v829_v6, 0.0  ;;  %v877_v11 = vmax.f32 %v845_v7, 0.0  ;;  %v791_v12 = vmul.f32 %v1382_v44, %v683_v8  ;;  %v807_v13 = vmul.f32 %v1382_v44, %v747_v9 }
 0x11b   : > { %v685_v14 = vpop.f32.mrf.mxu0  ;;  %v749_v15 = vpop.f32.mrf.mxu1 }
 0x11c   : > { %894 = vst.msk [vmem:[%s1398_s29 + $0x40] sm:$0xff] %vm885_vm2, %v861_v10  ;;  %910 = vst.msk [vmem:[%s1398_s29 + $0xc0] sm:$0xff] %vm885_vm2, %v877_v11  ;;  %v830_v16 = vadd.f32 %v1387_v46, %v791_v12  ;;  %v846_v17 = vadd.f32 %v1387_v46, %v807_v13 }
 0x11d   : > { %v688_v18 = vpop.f32.mrf.mxu0  ;;  %v752_v19 = vpop.f32.mrf.mxu1 }
 0x11e   : > { %v862_v20 = vmax.f32 %v830_v16, 0.0  ;;  %v878_v21 = vmax.f32 %v846_v17, 0.0  ;;  %v792_v22 = vmul.f32 %v1382_v44, %v688_v18  ;;  %v808_v23 = vmul.f32 %v1382_v44, %v752_v19 }
 0x11f   : > { %v690_v24 = vpop.f32.mrf.mxu0  ;;  %v754_v25 = vpop.f32.mrf.mxu1 }
 0x120   : > { %895 = vst.msk [vmem:[%s1398_s29 + $0x48] sm:$0xff] %vm885_vm2, %v862_v20  ;;  %911 = vst.msk [vmem:[%s1398_s29 + $0xc8] sm:$0xff] %vm885_vm2, %v878_v21  ;;  %v831_v26 = vadd.f32 %v1387_v46, %v792_v22  ;;  %v847_v27 = vadd.f32 %v1387_v46, %v808_v23 }
 0x121   : > { %v691_v28 = vpop.f32.mrf.mxu0  ;;  %v755_v29 = vpop.f32.mrf.mxu1 }
 0x122   : > { %v863_v30 = vmax.f32 %v831_v26, 0.0  ;;  %v879_v31 = vmax.f32 %v847_v27, 0.0  ;;  %v793_v32 = vmul.f32 %v1382_v44, %v691_v28  ;;  %v809_v33 = vmul.f32 %v1382_v44, %v755_v29 }
 0x123   : > { %v693_v34 = vpop.f32.mrf.mxu0  ;;  %v757_v35 = vpop.f32.mrf.mxu1 }
 0x124   : > { %896 = vst.msk [vmem:[%s1398_s29 + $0x50] sm:$0xff] %vm885_vm2, %v863_v30  ;;  %912 = vst.msk [vmem:[%s1398_s29 + $0xd0] sm:$0xff] %vm885_vm2, %v879_v31  ;;  %v832_v36 = vadd.f32 %v1387_v46, %v793_v32  ;;  %v848_v37 = vadd.f32 %v1387_v46, %v809_v33 }
 0x125   : > { %v696_v38 = vpop.f32.mrf.mxu0  ;;  %v760_v39 = vpop.f32.mrf.mxu1 }
 0x126   : > { %v864_v40 = vmax.f32 %v832_v36, 0.0  ;;  %v880_v41 = vmax.f32 %v848_v37, 0.0  ;;  %v794_v42 = vmul.f32 %v1382_v44, %v696_v38  ;;  %v810_v43 = vmul.f32 %v1382_v44, %v760_v39 }
 0x127   : > { %v698_v45 = vpop.f32.mrf.mxu0  ;;  %v762_v47 = vpop.f32.mrf.mxu1 }
 0x128   : > { %897 = vst.msk [vmem:[%s1398_s29 + $0x58] sm:$0xff] %vm885_vm2, %v864_v40  ;;  %913 = vst.msk [vmem:[%s1398_s29 + $0xd8] sm:$0xff] %vm885_vm2, %v880_v41  ;;  %v833_v48 = vadd.f32 %v1387_v46, %v794_v42  ;;  %v849_v49 = vadd.f32 %v1387_v46, %v810_v43 }
 0x129   : > { %v699_v50 = vpop.f32.mrf.mxu0  ;;  %v763_v51 = vpop.f32.mrf.mxu1 }
 0x12a   : > { %v865_v52 = vmax.f32 %v833_v48, 0.0  ;;  %v881_v53 = vmax.f32 %v849_v49, 0.0  ;;  %v795_v54 = vmul.f32 %v1382_v44, %v699_v50  ;;  %v811_v55 = vmul.f32 %v1382_v44, %v763_v51 }
 0x12b   : > { %v701_v56 = vpop.f32.mrf.mxu0  ;;  %v765_v57 = vpop.f32.mrf.mxu1 }
 0x12c   : > { %898 = vst.msk [vmem:[%s1398_s29 + $0x60] sm:$0xff] %vm885_vm2, %v865_v52  ;;  %914 = vst.msk [vmem:[%s1398_s29 + $0xe0] sm:$0xff] %vm885_vm2, %v881_v53  ;;  %v834_v58 = vadd.f32 %v1387_v46, %v795_v54  ;;  %v850_v59 = vadd.f32 %v1387_v46, %v811_v55 }
 0x12d   : > { %v704_v60 = vpop.f32.mrf.mxu0  ;;  %v768_v61 = vpop.f32.mrf.mxu1 }
 0x12e   : > { %v866_v62 = vmax.f32 %v834_v58, 0.0  ;;  %v882_v63 = vmax.f32 %v850_v59, 0.0  ;;  %v796_v0 = vmul.f32 %v1382_v44, %v704_v60  ;;  %v812_v1 = vmul.f32 %v1382_v44, %v768_v61 }
 0x12f   : > { %v706_v2 = vpop.f32.mrf.mxu0  ;;  %v770_v3 = vpop.f32.mrf.mxu1 }
 0x130   : > { %899 = vst.msk [vmem:[%s1398_s29 + $0x68] sm:$0xff] %vm885_vm2, %v866_v62  ;;  %915 = vst.msk [vmem:[%s1398_s29 + $0xe8] sm:$0xff] %vm885_vm2, %v882_v63  ;;  %v835_v4 = vadd.f32 %v1387_v46, %v796_v0  ;;  %v851_v5 = vadd.f32 %v1387_v46, %v812_v1 }
 0x131   : > { %v707_v6 = vpop.f32.mrf.mxu0  ;;  %v771_v7 = vpop.f32.mrf.mxu1 }
 0x132   : > { %v867_v8 = vmax.f32 %v835_v4, 0.0  ;;  %v883_v9 = vmax.f32 %v851_v5, 0.0  ;;  %v797_v10 = vmul.f32 %v1382_v44, %v707_v6  ;;  %v813_v11 = vmul.f32 %v1382_v44, %v771_v7 }
 0x133   : > { %v709_v12 = vpop.f32.mrf.mxu0  ;;  %v773_v13 = vpop.f32.mrf.mxu1 }
 0x134   : > { %900 = vst.msk [vmem:[%s1398_s29 + $0x70] sm:$0xff] %vm885_vm2, %v867_v8  ;;  %916 = vst.msk [vmem:[%s1398_s29 + $0xf0] sm:$0xff] %vm885_vm2, %v883_v9  ;;  %v836_v14 = vadd.f32 %v1387_v46, %v797_v10  ;;  %v852_v15 = vadd.f32 %v1387_v46, %v813_v11 }
 0x136   : > { %v868_v16 = vmax.f32 %v836_v14, 0.0  ;;  %v884_v17 = vmax.f32 %v852_v15, 0.0 }
 0x138   : > { %901 = vst.msk [vmem:[%s1398_s29 + $0x78] sm:$0xff] %vm885_vm2, %v868_v16  ;;  %917 = vst.msk [vmem:[%s1398_s29 + $0xf8] sm:$0xff] %vm885_vm2, %v884_v17 }
 0x139 PF: > { %s14_s17 = sadd.s32 1, %s1245_s17   ;;  %s1538_s15 = smov %s1241_s16 }
 0x13a   : > { %p11_p5 = scmp.ge.s32.totalorder %s14_s17, 4   ;;  %s1539_s16 = smov %s1541_s18 }
 0x13c   :  { %13 = sbr.rel (!%p11_p5) target bundleno = 2 (0x2), region = 75 }

// kernel: _lambda_.36
= control target key start
LH: loop header
LB: loop body
LE: loop exit
PB: predicated region body
PF: predicated region fallthrough
CT: control target
= control target key end

     0   :  { %s1081_s15 = smov 0   ;;  %s1083_s16 = smov 0   ;;  %s1295_s0 = inlined_call_operand.vmem [shape: bf16[512,4], index: 0, kind: input, shape index: {}]   ;;  %s1296_s1 = inlined_call_operand.vmem [shape: bf16[4,64], index: 1, kind: input, shape index: {}]   ;;  %s1297_s2 = inlined_call_operand.vmem [shape: f32[1,64], index: 2, kind: input, shape index: {}]   ;;  %s1298_s3 = inlined_call_operand.vmem [shape: f32[1,64], index: 3, kind: input, shape index: {}]   ;;  %s1299_s4 = inlined_call_operand.vmem [shape: f32[512,64], index: 4, kind: output, shape index: {}]  }
   0x1   :  { %s1085_s17 = smov 0  }
   0x2 LB: > { %s33_s18 = sadd.s32 1, %s1050_s16  ;;  %p896_p0 = scmp.ge.s32.totalorder %s1054_s17, 1  ;;  %s1054_s17 = sphi %s1085_s17, %s14_s17   ;;  %s1050_s16 = sphi %s1083_s16, %s1301_s16   ;;  %s1046_s15 = sphi %s1081_s15, %s1300_s15  }
   0x3   : > { %p35_p1 = scmp.ge.s32.totalorder %s33_s18, 2  ;;  %p219_p2 = scmp.lt.s32.totalorder %s1054_s17, 3 }
   0x5   : > { %s1303_s18 = smov (%p35_p1, %s33_s18), 0  ;;  %p220_p3 = pnand %p896_p0, %p219_p2 }
   0x6   : > { %s897_s21 = sshll.u32 (!%p220_p3), %s1046_s15, 5 }
   0x7   : > { %223 = sbr.rel (%p220_p3) target bundleno = 248 (0xf8), region = 36  ;;  %p265_p4 = scmp.lt.s32.totalorder (!%p220_p3), %s897_s21, 63 }
   0xc   : > { %v328_v0 = vld [vmem:[%s1296_s1] sm:$0x3]  ;;  %vm458_vm0 = vcmask 1041408   ;;  %s1305_s21 = smov (!%p265_p4, %s897_s21), 63  ;;  %vm409_vm1 = vcmask 31744   ;;  %vm733_vm2 = vcmask 523264  }
   0xd   : > { %990 = vmatprep.subr.msk.bf16.mxu0 %vm458_vm0, %v328_v0  ;;  %991 = vmatprep.subr.msk.bf16.mxu1 %vm458_vm0, %v328_v0  ;;  %v460_v1 = vsel %vm458_vm0, %v328_v0, 0  ;;  %s898_s22 = sshll.u32 %s1305_s21, 2  ;;  %v1145_v18 = vld [vmem:[%s1297_s2] ss:$0 sm:$0xff]  ;;  %s900_s30 = sshll.u32 %s1305_s21, 3 }
   0xe   : > { %955 = vmatpush3.bf16.msra.mxu0 %v460_v1  ;;  %989 = vmatpush3.bf16.msra.mxu1 %v460_v1  ;;  %s1108_s25 = scalar_lea.vmem %s1295_s0, %s898_s22  ;;  %v1150_v20 = vld [vmem:[%s1298_s3] ss:$0 sm:$0xff]  ;;  %s1160_s7 = scalar_lea.vmem %s1299_s4, %s900_s30 }
   0xf   : > { %v1016_v2 = vld [vmem:[%s1108_s25] sm:$0xff]   ;;  %v1018_v4 = vld [vmem:[%s1108_s25 + $0x8] sm:$0xff]   ;;  %v1020_v6 = vld [vmem:[%s1108_s25 + $0x10] sm:$0xff]  }
  0x10   : > { %v1017_v3 = vld [vmem:[%s1108_s25 + $0x40] sm:$0xff]   ;;  %956 = vmatprep.mubr.msk.bf16.mxu0 %vm409_vm1, %v1016_v2  ;;  %v1019_v5 = vld [vmem:[%s1108_s25 + $0x48] sm:$0xff]   ;;  %v1021_v7 = vld [vmem:[%s1108_s25 + $0x50] sm:$0xff]  }
  0x11   : > { %972 = vmatprep.mubr.msk.bf16.mxu1 %vm409_vm1, %v1017_v3  ;;  %957 = vmatmul.mubr.msk.bf16.vlgmr.msra.gmra.mxu0 %vm409_vm1, %v1018_v4  ;;  %v1022_v8 = vld [vmem:[%s1108_s25 + $0x18] sm:$0xff]   ;;  %v1024_v10 = vld [vmem:[%s1108_s25 + $0x20] sm:$0xff]   ;;  %v1026_v12 = vld [vmem:[%s1108_s25 + $0x28] sm:$0xff]  }
  0x12   : > { %973 = vmatmul.mubr.msk.bf16.vlgmr.msra.gmra.mxu1 %vm409_vm1, %v1019_v5  ;;  %960 = vmatprep.mubr.msk.bf16.mxu0 %vm409_vm1, %v1020_v6  ;;  %v1023_v9 = vld [vmem:[%s1108_s25 + $0x58] sm:$0xff]   ;;  %v1025_v11 = vld [vmem:[%s1108_s25 + $0x60] sm:$0xff]   ;;  %v1027_v13 = vld [vmem:[%s1108_s25 + $0x68] sm:$0xff]  }
  0x13   : > { %976 = vmatprep.mubr.msk.bf16.mxu1 %vm409_vm1, %v1021_v7  ;;  %v1028_v14 = vld [vmem:[%s1108_s25 + $0x30] sm:$0xff]   ;;  %v1030_v16 = vld [vmem:[%s1108_s25 + $0x38] sm:$0xff]  }
  0x14   : > { %v1029_v15 = vld [vmem:[%s1108_s25 + $0x70] sm:$0xff]   ;;  %v1031_v17 = vld [vmem:[%s1108_s25 + $0x78] sm:$0xff]  }
  0x19   : > { %961 = vmatmul.mubr.msk.bf16.gmra.mxu0 %vm409_vm1, %v1022_v8 }
  0x1a   : > { %977 = vmatmul.mubr.msk.bf16.gmra.mxu1 %vm409_vm1, %v1023_v9  ;;  %964 = vmatprep.mubr.msk.bf16.mxu0 %vm409_vm1, %v1024_v10 }
  0x1b   : > { %980 = vmatprep.mubr.msk.bf16.mxu1 %vm409_vm1, %v1025_v11 }
  0x21   : > { %965 = vmatmul.mubr.msk.bf16.gmra.mxu0 %vm409_vm1, %v1026_v12 }
  0x22   : > { %981 = vmatmul.mubr.msk.bf16.gmra.mxu1 %vm409_vm1, %v1027_v13  ;;  %968 = vmatprep.mubr.msk.bf16.mxu0 %vm409_vm1, %v1028_v14 }
  0x23   : > { %984 = vmatprep.mubr.msk.bf16.mxu1 %vm409_vm1, %v1029_v15 }
  0x29   : > { %969 = vmatmul.mubr.msk.bf16.gmra.mxu0 %vm409_vm1, %v1030_v16 }
  0x2a   : > { %985 = vmatmul.mubr.msk.bf16.gmra.mxu1 %vm409_vm1, %v1031_v17 }
  0xd1   : > { %v958_v19 = vpop.f32.mrf.mxu0 }
  0xd2   : > { %v632_v21 = vmul.f32 %v958_v19, %v1145_v18  ;;  %v974_v22 = vpop.f32.mrf.mxu1 }
  0xd3   : > { %v648_v23 = vmul.f32 %v974_v22, %v1145_v18  ;;  %v496_v24 = vpop.f32.mrf.mxu0 }
  0xd4   : > { %v671_v25 = vadd.f32 %v1150_v20, %v632_v21  ;;  %v630_v26 = vmul.f32 %v1145_v18, %v496_v24  ;;  %v560_v27 = vpop.f32.mrf.mxu1 }
  0xd5   : > { %v687_v28 = vadd.f32 %v1150_v20, %v648_v23  ;;  %v646_v29 = vmul.f32 %v1145_v18, %v560_v27  ;;  %v959_v30 = vpop.f32.mrf.mxu0 }
  0xd6   : > { %v703_v31 = vmax.f32 %v671_v25, 0.0  ;;  %v669_v32 = vadd.f32 %v1150_v20, %v630_v26  ;;  %v633_v33 = vmul.f32 %v959_v30, %v1145_v18  ;;  %v975_v34 = vpop.f32.mrf.mxu1 }
  0xd7   : > { %v719_v35 = vmax.f32 %v687_v28, 0.0  ;;  %v685_v36 = vadd.f32 %v1150_v20, %v646_v29  ;;  %v649_v37 = vmul.f32 %v975_v34, %v1145_v18  ;;  %v499_v38 = vpop.f32.mrf.mxu0 }
  0xd8   : > { %736 = vst.msk [vmem:[%s1160_s7 + $0x10] sm:$0xff] %vm733_vm2, %v703_v31  ;;  %v701_v39 = vmax.f32 %v669_v32, 0.0  ;;  %v672_v40 = vadd.f32 %v1150_v20, %v633_v33  ;;  %v631_v41 = vmul.f32 %v1145_v18, %v499_v38  ;;  %v563_v42 = vpop.f32.mrf.mxu1 }
  0xd9   : > { %752 = vst.msk [vmem:[%s1160_s7 + $0x90] sm:$0xff] %vm733_vm2, %v719_v35  ;;  %v717_v43 = vmax.f32 %v685_v36, 0.0  ;;  %v688_v44 = vadd.f32 %v1150_v20, %v649_v37  ;;  %v647_v45 = vmul.f32 %v1145_v18, %v563_v42  ;;  %v962_v46 = vpop.f32.mrf.mxu0 }
  0xda   : > { %734 = vst.msk [vmem:[%s1160_s7] sm:$0xff] %vm733_vm2, %v701_v39  ;;  %v704_v47 = vmax.f32 %v672_v40, 0.0  ;;  %v670_v48 = vadd.f32 %v1150_v20, %v631_v41  ;;  %v636_v49 = vmul.f32 %v962_v46, %v1145_v18  ;;  %v978_v50 = vpop.f32.mrf.mxu1 }
  0xdb   : > { %750 = vst.msk [vmem:[%s1160_s7 + $0x80] sm:$0xff] %vm733_vm2, %v717_v43  ;;  %v720_v51 = vmax.f32 %v688_v44, 0.0  ;;  %v686_v52 = vadd.f32 %v1150_v20, %v647_v45  ;;  %v652_v53 = vmul.f32 %v978_v50, %v1145_v18  ;;  %v512_v54 = vpop.f32.mrf.mxu0 }
  0xdc   : > { %737 = vst.msk [vmem:[%s1160_s7 + $0x18] sm:$0xff] %vm733_vm2, %v704_v47  ;;  %v702_v55 = vmax.f32 %v670_v48, 0.0  ;;  %v675_v56 = vadd.f32 %v1150_v20, %v636_v49  ;;  %v634_v57 = vmul.f32 %v1145_v18, %v512_v54  ;;  %v576_v58 = vpop.f32.mrf.mxu1 }
  0xdd   : > { %753 = vst.msk [vmem:[%s1160_s7 + $0x98] sm:$0xff] %vm733_vm2, %v720_v51  ;;  %v718_v59 = vmax.f32 %v686_v52, 0.0  ;;  %v691_v60 = vadd.f32 %v1150_v20, %v652_v53  ;;  %v650_v61 = vmul.f32 %v1145_v18, %v576_v58  ;;  %v963_v62 = vpop.f32.mrf.mxu0 }
  0xde   : > { %735 = vst.msk [vmem:[%s1160_s7 + $0x8] sm:$0xff] %vm733_vm2, %v702_v55  ;;  %v707_v63 = vmax.f32 %v675_v56, 0.0  ;;  %v673_v0 = vadd.f32 %v1150_v20, %v634_v57  ;;  %v637_v1 = vmul.f32 %v963_v62, %v1145_v18  ;;  %v979_v2 = vpop.f32.mrf.mxu1 }
  0xdf   : > { %751 = vst.msk [vmem:[%s1160_s7 + $0x88] sm:$0xff] %vm733_vm2, %v718_v59  ;;  %v723_v3 = vmax.f32 %v691_v60, 0.0  ;;  %v689_v4 = vadd.f32 %v1150_v20, %v650_v61  ;;  %v653_v5 = vmul.f32 %v979_v2, %v1145_v18  ;;  %v515_v6 = vpop.f32.mrf.mxu0 }
  0xe0   : > { %740 = vst.msk [vmem:[%s1160_s7 + $0x30] sm:$0xff] %vm733_vm2, %v707_v63  ;;  %v705_v7 = vmax.f32 %v673_v0, 0.0  ;;  %v676_v8 = vadd.f32 %v1150_v20, %v637_v1  ;;  %v635_v9 = vmul.f32 %v1145_v18, %v515_v6  ;;  %v579_v10 = vpop.f32.mrf.mxu1 }
  0xe1   : > { %756 = vst.msk [vmem:[%s1160_s7 + $0xb0] sm:$0xff] %vm733_vm2, %v723_v3  ;;  %v721_v11 = vmax.f32 %v689_v4, 0.0  ;;  %v692_v12 = vadd.f32 %v1150_v20, %v653_v5  ;;  %v651_v13 = vmul.f32 %v1145_v18, %v579_v10  ;;  %v966_v14 = vpop.f32.mrf.mxu0 }
  0xe2   : > { %738 = vst.msk [vmem:[%s1160_s7 + $0x20] sm:$0xff] %vm733_vm2, %v705_v7  ;;  %v708_v15 = vmax.f32 %v676_v8, 0.0  ;;  %v674_v16 = vadd.f32 %v1150_v20, %v635_v9  ;;  %v640_v17 = vmul.f32 %v966_v14, %v1145_v18  ;;  %v982_v19 = vpop.f32.mrf.mxu1 }
  0xe3   : > { %754 = vst.msk [vmem:[%s1160_s7 + $0xa0] sm:$0xff] %vm733_vm2, %v721_v11  ;;  %v724_v21 = vmax.f32 %v692_v12, 0.0  ;;  %v690_v22 = vadd.f32 %v1150_v20, %v651_v13  ;;  %v656_v23 = vmul.f32 %v982_v19, %v1145_v18  ;;  %v528_v24 = vpop.f32.mrf.mxu0 }
  0xe4   : > { %741 = vst.msk [vmem:[%s1160_s7 + $0x38] sm:$0xff] %vm733_vm2, %v708_v15  ;;  %v706_v25 = vmax.f32 %v674_v16, 0.0  ;;  %v679_v26 = vadd.f32 %v1150_v20, %v640_v17  ;;  %v638_v27 = vmul.f32 %v1145_v18, %v528_v24  ;;  %v592_v28 = vpop.f32.mrf.mxu1 }
  0xe5   : > { %757 = vst.msk [vmem:[%s1160_s7 + $0xb8] sm:$0xff] %vm733_vm2, %v724_v21  ;;  %v722_v29 = vmax.f32 %v690_v22, 0.0  ;;  %v695_v30 = vadd.f32 %v1150_v20, %v656_v23  ;;  %v654_v31 = vmul.f32 %v1145_v18, %v592_v28  ;;  %v967_v32 = vpop.f32.mrf.mxu0 }
  0xe6   : > { %739 = vst.msk [vmem:[%s1160_s7 + $0x28] sm:$0xff] %vm733_vm2, %v706_v25  ;;  %v711_v33 = vmax.f32 %v679_v26, 0.0  ;;  %v677_v34 = vadd.f32 %v1150_v20, %v638_v27  ;;  %v641_v35 = vmul.f32 %v967_v32, %v1145_v18  ;;  %v983_v36 = vpop.f32.mrf.mxu1 }
  0xe7   : > { %755 = vst.msk [vmem:[%s1160_s7 + $0xa8] sm:$0xff] %vm733_vm2, %v722_v29  ;;  %v727_v37 = vmax.f32 %v695_v30, 0.0  ;;  %v693_v38 = vadd.f32 %v1150_v20, %v654_v31  ;;  %v657_v39 = vmul.f32 %v983_v36, %v1145_v18  ;;  %v531_v40 = vpop.f32.mrf.mxu0 }
  0xe8   : > { %744 = vst.msk [vmem:[%s1160_s7 + $0x50] sm:$0xff] %vm733_vm2, %v711_v33  ;;  %v709_v41 = vmax.f32 %v677_v34, 0.0  ;;  %v680_v42 = vadd.f32 %v1150_v20, %v641_v35  ;;  %v639_v43 = vmul.f32 %v1145_v18, %v531_v40  ;;  %v595_v44 = vpop.f32.mrf.mxu1 }
  0xe9   : > { %760 = vst.msk [vmem:[%s1160_s7 + $0xd0] sm:$0xff] %vm733_vm2, %v727_v37  ;;  %v725_v45 = vmax.f32 %v693_v38, 0.0  ;;  %v696_v46 = vadd.f32 %v1150_v20, %v657_v39  ;;  %v655_v47 = vmul.f32 %v1145_v18, %v595_v44  ;;  %v970_v48 = vpop.f32.mrf.mxu0 }
  0xea   : > { %742 = vst.msk [vmem:[%s1160_s7 + $0x40] sm:$0xff] %vm733_vm2, %v709_v41  ;;  %v712_v49 = vmax.f32 %v680_v42, 0.0  ;;  %v678_v50 = vadd.f32 %v1150_v20, %v639_v43  ;;  %v644_v51 = vmul.f32 %v970_v48, %v1145_v18  ;;  %v986_v52 = vpop.f32.mrf.mxu1 }
  0xeb   : > { %758 = vst.msk [vmem:[%s1160_s7 + $0xc0] sm:$0xff] %vm733_vm2, %v725_v45  ;;  %v728_v53 = vmax.f32 %v696_v46, 0.0  ;;  %v694_v54 = vadd.f32 %v1150_v20, %v655_v47  ;;  %v660_v55 = vmul.f32 %v986_v52, %v1145_v18  ;;  %v544_v56 = vpop.f32.mrf.mxu0 }
  0xec   : > { %745 = vst.msk [vmem:[%s1160_s7 + $0x58] sm:$0xff] %vm733_vm2, %v712_v49  ;;  %v710_v57 = vmax.f32 %v678_v50, 0.0  ;;  %v683_v58 = vadd.f32 %v1150_v20, %v644_v51  ;;  %v642_v59 = vmul.f32 %v1145_v18, %v544_v56  ;;  %v608_v60 = vpop.f32.mrf.mxu1 }
  0xed   : > { %761 = vst.msk [vmem:[%s1160_s7 + $0xd8] sm:$0xff] %vm733_vm2, %v728_v53  ;;  %v726_v61 = vmax.f32 %v694_v54, 0.0  ;;  %v699_v62 = vadd.f32 %v1150_v20, %v660_v55  ;;  %v658_v63 = vmul.f32 %v1145_v18, %v608_v60  ;;  %v971_v0 = vpop.f32.mrf.mxu0 }
  0xee   : > { %743 = vst.msk [vmem:[%s1160_s7 + $0x48] sm:$0xff] %vm733_vm2, %v710_v57  ;;  %v715_v1 = vmax.f32 %v683_v58, 0.0  ;;  %v681_v2 = vadd.f32 %v1150_v20, %v642_v59  ;;  %v645_v3 = vmul.f32 %v971_v0, %v1145_v18  ;;  %v987_v4 = vpop.f32.mrf.mxu1 }
  0xef   : > { %759 = vst.msk [vmem:[%s1160_s7 + $0xc8] sm:$0xff] %vm733_vm2, %v726_v61  ;;  %v731_v5 = vmax.f32 %v699_v62, 0.0  ;;  %v697_v6 = vadd.f32 %v1150_v20, %v658_v63  ;;  %v661_v7 = vmul.f32 %v987_v4, %v1145_v18  ;;  %v547_v8 = vpop.f32.mrf.mxu0 }
  0xf0   : > { %748 = vst.msk [vmem:[%s1160_s7 + $0x70] sm:$0xff] %vm733_vm2, %v715_v1  ;;  %v713_v9 = vmax.f32 %v681_v2, 0.0  ;;  %v684_v10 = vadd.f32 %v1150_v20, %v645_v3  ;;  %v643_v11 = vmul.f32 %v1145_v18, %v547_v8  ;;  %v611_v12 = vpop.f32.mrf.mxu1 }
  0xf1   : > { %764 = vst.msk [vmem:[%s1160_s7 + $0xf0] sm:$0xff] %vm733_vm2, %v731_v5  ;;  %v729_v13 = vmax.f32 %v697_v6, 0.0  ;;  %v700_v14 = vadd.f32 %v1150_v20, %v661_v7  ;;  %v659_v15 = vmul.f32 %v1145_v18, %v611_v12 }
  0xf2   : > { %746 = vst.msk [vmem:[%s1160_s7 + $0x60] sm:$0xff] %vm733_vm2, %v713_v9  ;;  %v716_v16 = vmax.f32 %v684_v10, 0.0  ;;  %v682_v17 = vadd.f32 %v1150_v20, %v643_v11 }
  0xf3   : > { %762 = vst.msk [vmem:[%s1160_s7 + $0xe0] sm:$0xff] %vm733_vm2, %v729_v13  ;;  %v732_v19 = vmax.f32 %v700_v14, 0.0  ;;  %v698_v21 = vadd.f32 %v1150_v20, %v659_v15 }
  0xf4   : > { %749 = vst.msk [vmem:[%s1160_s7 + $0x78] sm:$0xff] %vm733_vm2, %v716_v16  ;;  %v714_v22 = vmax.f32 %v682_v17, 0.0 }
  0xf5   : > { %765 = vst.msk [vmem:[%s1160_s7 + $0xf8] sm:$0xff] %vm733_vm2, %v732_v19  ;;  %v730_v23 = vmax.f32 %v698_v21, 0.0 }
  0xf6   : > { %747 = vst.msk [vmem:[%s1160_s7 + $0x68] sm:$0xff] %vm733_vm2, %v714_v22 }
  0xf7   : > { %763 = vst.msk [vmem:[%s1160_s7 + $0xe8] sm:$0xff] %vm733_vm2, %v730_v23 }
  0xf8 PF: > { %s14_s17 = sadd.s32 1, %s1054_s17   ;;  %s1300_s15 = smov %s1050_s16 }
  0xf9   : > { %p11_p5 = scmp.ge.s32.totalorder %s14_s17, 4   ;;  %s1301_s16 = smov %s1303_s18 }
  0xfb   :  { %13 = sbr.rel (!%p11_p5) target bundleno = 2 (0x2), region = 75 }

// kernel: _lambda_.37
= control target key start
LH: loop header
LB: loop body
LE: loop exit
PB: predicated region body
PF: predicated region fallthrough
CT: control target
= control target key end

     0   :  { %s2564_s15 = smov 0   ;;  %s2566_s16 = smov 0   ;;  %s3184_s0 = inlined_call_operand.vmem [shape: bf16[512,576], index: 0, kind: input, shape index: {}]   ;;  %s3185_s1 = inlined_call_operand.vmem [shape: bf16[576,32], index: 1, kind: input, shape index: {}]   ;;  %s3186_s2 = inlined_call_operand.vmem [shape: f32[1,32], index: 2, kind: input, shape index: {}]   ;;  %s3187_s3 = inlined_call_operand.vmem [shape: f32[1,32], index: 3, kind: input, shape index: {}]   ;;  %s3188_s4 = inlined_call_operand.vmem [shape: f32[512,32], index: 4, kind: output, shape index: {}]  }
   0x1   :  { %s2568_s17 = smov 0  }
   0x2 LB: > { %s33_s18 = sadd.s32 1, %s2533_s16  ;;  %p1901_p0 = scmp.ge.s32.totalorder %s2537_s17, 1  ;;  %s2537_s17 = sphi %s2568_s17, %s14_s17   ;;  %s2533_s16 = sphi %s2566_s16, %s3230_s16   ;;  %s2529_s15 = sphi %s2564_s15, %s3229_s15  }
   0x3   : > { %p35_p1 = scmp.ge.s32.totalorder %s33_s18, 2  ;;  %p224_p2 = scmp.lt.s32.totalorder %s2537_s17, 3 }
   0x5   : > { %s3232_s18 = smov (%p35_p1, %s33_s18), 0  ;;  %p225_p3 = pnand %p1901_p0, %p224_p2 }
   0x7   : > { %228 = sbr.rel (%p225_p3) target bundleno = 409 (0x199), region = 36 }
   0xc   : > { %v2367_v0 = vld [vmem:[%s3185_s1 + $0x78] sm:$0xff]   ;;  %s1902_s21 = sshll.u32 %s2529_s15, 5  ;;  %v2369_v2 = vld [vmem:[%s3185_s1 + $0x70] sm:$0xff]   ;;  %v2371_v4 = vld [vmem:[%s3185_s1 + $0x68] sm:$0xff]   ;;  %vm1093_vm0 = vcmask 523264   ;;  %vm1735_vm1 = vcmask 261120  }
   0xd   : > { %v2368_v1 = vld [vmem:[%s3185_s1 + $0x38] sm:$0xff]   ;;  %2042 = vmatprep.subr.bf16.mxu0 %v2367_v0  ;;  %2326 = vmatprep.subr.bf16.mxu1 %v2367_v0  ;;  %p274_p4 = scmp.lt.s32.totalorder %s1902_s21, 63  ;;  %v2370_v3 = vld [vmem:[%s3185_s1 + $0x30] sm:$0xff]   ;;  %v2372_v5 = vld [vmem:[%s3185_s1 + $0x28] sm:$0xff]  }
   0xe   : > { %2043 = vmatpush3.bf16.msra.mxu0 %v2368_v1  ;;  %2334 = vmatpush3.bf16.msra.mxu1 %v2368_v1  ;;  %v2373_v6 = vld [vmem:[%s3185_s1 + $0x60] sm:$0xff]   ;;  %v2375_v8 = vld [vmem:[%s3185_s1 + $0x58] sm:$0xff]   ;;  %v2377_v10 = vld [vmem:[%s3185_s1 + $0x50] sm:$0xff]  }
   0xf   : > { %2044 = vmatprep.subr.bf16.mxu0 %v2369_v2  ;;  %2327 = vmatprep.subr.bf16.mxu1 %v2369_v2  ;;  %s3234_s21 = smov (!%p274_p4, %s1902_s21), 63  ;;  %v2374_v7 = vld [vmem:[%s3185_s1 + $0x20] sm:$0xff]   ;;  %v2376_v9 = vld [vmem:[%s3185_s1 + $0x18] sm:$0xff]   ;;  %v2378_v13 = vld [vmem:[%s3185_s1 + $0x10] sm:$0xff]  }
  0x10   : > { %s2342_s8 = smul.u32 20, %s3234_s21  ;;  %v2379_v14 = vld [vmem:[%s3185_s1 + $0x48] sm:$0xff]   ;;  %v2381_v16 = vld [vmem:[%s3185_s1 + $0x40] sm:$0xff]   ;;  %v2389_v18 = vld [vmem:[%s3185_s1 + $0xf8] sm:$0xff]   ;;  %s1905_s9 = sshll.u32 %s3234_s21, 3 }
  0x11   : > { %v2380_v15 = vld [vmem:[%s3185_s1 + $0x8] sm:$0xff]   ;;  %v2382_v17 = vld [vmem:[%s3185_s1] sm:$0xff]   ;;  %v2392_v19 = vld [vmem:[%s3185_s1 + $0x118] sm:$0xff]   ;;  %s2958_s21 = scalar_lea.vmem %s3188_s4, %s1905_s9 }
  0x12   : > { %2045 = vmatpush3.bf16.msra.mxu0 %v2370_v3  ;;  %2335 = vmatpush3.bf16.msra.mxu1 %v2370_v3  ;;  %s2615_s15 = scalar_lea.vmem %s3184_s0, %s2342_s8  ;;  %v2390_v22 = vld [vmem:[%s3185_s1 + $0xb8] sm:$0xff]   ;;  %v2391_v23 = vld [vmem:[%s3185_s1 + $0xf0] sm:$0xff]   ;;  %v2400_v28 = vld [vmem:[%s3185_s1 + $0xe8] sm:$0xff]  }
  0x13   : > { %2046 = vmatprep.subr.bf16.mxu0 %v2371_v4  ;;  %2328 = vmatprep.subr.bf16.mxu1 %v2371_v4  ;;  %v2385_v11 = vld [vmem:[%s2615_s15 + $0x4] ss:$20 sps:$4 sm:$0xff]   ;;  %v2383_v20 = vld [vmem:[%s2615_s15] ss:$20 sps:$4 sm:$0xff]   ;;  %v2398_v27 = vld [vmem:[%s2615_s15 + $0x28] ss:$20 sps:$4 sm:$0xff]  }
  0x14   : > { %v2388_v12 = vld [vmem:[%s2615_s15 + $0x1e4] ss:$20 sps:$4 sm:$0xff]   ;;  %1174 = vmatprep.mubr.bf16.mxu0 %v2385_v11  ;;  %v2386_v21 = vld [vmem:[%s2615_s15 + $0x1e0] ss:$20 sps:$4 sm:$0xff]   ;;  %v2399_v29 = vld [vmem:[%s2615_s15 + $0x208] ss:$20 sps:$4 sm:$0xff]  }
  0x15   : > { %1270 = vmatprep.mubr.bf16.mxu1 %v2388_v12  ;;  %v2394_v24 = vld [vmem:[%s2615_s15 + $0x2c] ss:$20 sps:$4 sm:$0xff]   ;;  %v2393_v26 = vld [vmem:[%s3185_s1 + $0xb0] sm:$0xff]   ;;  %v2410_v37 = vld [vmem:[%s3185_s1 + $0xd8] sm:$0xff]  }
  0x16   : > { %2047 = vmatpush3.bf16.msra.mxu0 %v2372_v5  ;;  %2336 = vmatpush3.bf16.msra.mxu1 %v2372_v5  ;;  %v2396_v25 = vld [vmem:[%s2615_s15 + $0x20c] ss:$20 sps:$4 sm:$0xff]   ;;  %v2404_v32 = vld [vmem:[%s2615_s15 + $0x54] ss:$20 sps:$4 sm:$0xff]   ;;  %v2408_v36 = vld [vmem:[%s2615_s15 + $0x50] ss:$20 sps:$4 sm:$0xff]  }
  0x17   : > { %2048 = vmatprep.subr.bf16.mxu0 %v2373_v6  ;;  %2329 = vmatprep.subr.bf16.mxu1 %v2373_v6  ;;  %v2401_v30 = vld [vmem:[%s3185_s1 + $0xa8] sm:$0xff]   ;;  %v2402_v31 = vld [vmem:[%s3185_s1 + $0xe0] sm:$0xff]   ;;  %v2423_v35 = vld [vmem:[%s3185_s1 + $0x110] sm:$0xff]  }
  0x18   : > { %v2406_v33 = vld [vmem:[%s2615_s15 + $0x234] ss:$20 sps:$4 sm:$0xff]   ;;  %v2403_v34 = vld [vmem:[%s3185_s1 + $0xa0] sm:$0xff]   ;;  %v2411_v39 = vld [vmem:[%s3185_s1 + $0x98] sm:$0xff]  }
  0x19   : > { %v2409_v38 = vld [vmem:[%s2615_s15 + $0x230] ss:$20 sps:$4 sm:$0xff]   ;;  %v2418_v44 = vld [vmem:[%s2615_s15 + $0x78] ss:$20 sps:$4 sm:$0xff]   ;;  %v2427_v53 = vld [vmem:[%s2615_s15 + $0x8] ss:$20 sps:$4 sm:$0xff]  }
  0x1a   : > { %2049 = vmatpush3.bf16.msra.mxu0 %v2374_v7  ;;  %2337 = vmatpush3.bf16.msra.mxu1 %v2374_v7  ;;  %v2412_v40 = vld [vmem:[%s3185_s1 + $0xd0] sm:$0xff]   ;;  %v2419_v45 = vld [vmem:[%s2615_s15 + $0x258] ss:$20 sps:$4 sm:$0xff]   ;;  %v2422_v49 = vld [vmem:[%s3185_s1 + $0xc0] sm:$0xff]  }
  0x1b   : > { %2050 = vmatprep.subr.bf16.mxu0 %v2375_v8  ;;  %2330 = vmatprep.subr.bf16.mxu1 %v2375_v8  ;;  %v2414_v41 = vld [vmem:[%s2615_s15 + $0x7c] ss:$20 sps:$4 sm:$0xff]   ;;  %v2420_v46 = vld [vmem:[%s3185_s1 + $0xc8] sm:$0xff]   ;;  %v2425_v50 = vld [vmem:[%s2615_s15 + $0xa4] ss:$20 sps:$4 sm:$0xff]  }
  0x1c   : > { %v2416_v42 = vld [vmem:[%s2615_s15 + $0x25c] ss:$20 sps:$4 sm:$0xff]   ;;  %v2443_v47 = vld [vmem:[%s3185_s1 + $0x108] sm:$0xff]   ;;  %v2424_v52 = vld [vmem:[%s3185_s1 + $0x80] sm:$0xff]  }
  0x1d   : > { %v2413_v43 = vld [vmem:[%s3185_s1 + $0x90] sm:$0xff]   ;;  %v2421_v48 = vld [vmem:[%s3185_s1 + $0x88] sm:$0xff]   ;;  %v2462_v56 = vld [vmem:[%s3185_s1 + $0x100] sm:$0xff]  }
  0x1e   : > { %2051 = vmatpush3.bf16.msra.mxu0 %v2376_v9  ;;  %2338 = vmatpush3.bf16.msra.mxu1 %v2376_v9  ;;  %v2429_v51 = vld [vmem:[%s2615_s15 + $0xc] ss:$20 sps:$4 sm:$0xff]   ;;  %v2433_v57 = vld [vmem:[%s2615_s15 + $0x34] ss:$20 sps:$4 sm:$0xff]   ;;  %v2436_v59 = vld [vmem:[%s2615_s15 + $0x30] ss:$20 sps:$4 sm:$0xff]  }
  0x1f   : > { %2052 = vmatprep.subr.bf16.mxu0 %v2377_v10  ;;  %2331 = vmatprep.subr.bf16.mxu1 %v2377_v10  ;;  %v2430_v54 = vld [vmem:[%s2615_s15 + $0xa0] ss:$20 sps:$4 sm:$0xff]   ;;  %v2435_v58 = vld [vmem:[%s2615_s15 + $0xc8] ss:$20 sps:$4 sm:$0xff]   ;;  %v2441_v62 = vld [vmem:[%s2615_s15 + $0xf0] ss:$20 sps:$4 sm:$0xff]  }
  0x20   : > { %v2431_v55 = vld [vmem:[%s2615_s15 + $0xcc] ss:$20 sps:$4 sm:$0xff]   ;;  %v2437_v60 = vld [vmem:[%s2615_s15 + $0xf4] ss:$20 sps:$4 sm:$0xff]   ;;  %v2439_v61 = vld [vmem:[%s2615_s15 + $0x5c] ss:$20 sps:$4 sm:$0xff]  }
  0x21   : > { %v2442_v63 = vld [vmem:[%s2615_s15 + $0x58] ss:$20 sps:$4 sm:$0xff]   ;;  %v2444_v0 = vld [vmem:[%s2615_s15 + $0x11c] ss:$20 sps:$4 sm:$0xff]   ;;  %v2449_v3 = vld [vmem:[%s2615_s15 + $0x80] ss:$20 sps:$4 sm:$0xff]  }
  0x22   : > { %2053 = vmatpush3.bf16.msra.mxu0 %v2378_v13  ;;  %2339 = vmatpush3.bf16.msra.mxu1 %v2378_v13  ;;  %v2446_v1 = vld [vmem:[%s2615_s15 + $0x84] ss:$20 sps:$4 sm:$0xff]   ;;  %v2452_v5 = vld [vmem:[%s2615_s15 + $0xac] ss:$20 sps:$4 sm:$0xff]   ;;  %v2455_v7 = vld [vmem:[%s2615_s15 + $0xa8] ss:$20 sps:$4 sm:$0xff]  }
  0x23   : > { %2054 = vmatprep.subr.bf16.mxu0 %v2379_v14  ;;  %2332 = vmatprep.subr.bf16.mxu1 %v2379_v14  ;;  %v2448_v2 = vld [vmem:[%s2615_s15 + $0x118] ss:$20 sps:$4 sm:$0xff]   ;;  %v2454_v6 = vld [vmem:[%s2615_s15 + $0x140] ss:$20 sps:$4 sm:$0xff]   ;;  %v2460_v10 = vld [vmem:[%s2615_s15 + $0x168] ss:$20 sps:$4 sm:$0xff]  }
  0x24   : > { %v2450_v4 = vld [vmem:[%s2615_s15 + $0x144] ss:$20 sps:$4 sm:$0xff]   ;;  %v2456_v8 = vld [vmem:[%s2615_s15 + $0x16c] ss:$20 sps:$4 sm:$0xff]   ;;  %v2458_v9 = vld [vmem:[%s2615_s15 + $0xd4] ss:$20 sps:$4 sm:$0xff]  }
  0x25   : > { %v2461_v11 = vld [vmem:[%s2615_s15 + $0xd0] ss:$20 sps:$4 sm:$0xff]   ;;  %v2463_v12 = vld [vmem:[%s2615_s15 + $0x194] ss:$20 sps:$4 sm:$0xff]  }
  0x26   : > { %2055 = vmatpush3.bf16.msra.mxu0 %v2380_v15  ;;  %2340 = vmatpush3.bf16.msra.mxu1 %v2380_v15  ;;  %v2465_v13 = vld [vmem:[%s2615_s15 + $0xfc] ss:$20 sps:$4 sm:$0xff]   ;;  %v2468_v15 = vld [vmem:[%s2615_s15 + $0xf8] ss:$20 sps:$4 sm:$0xff]  }
  0x27   : > { %2056 = vmatprep.subr.bf16.mxu0 %v2381_v16  ;;  %2333 = vmatprep.subr.bf16.mxu1 %v2381_v16  ;;  %v2467_v14 = vld [vmem:[%s2615_s15 + $0x190] ss:$20 sps:$4 sm:$0xff]  }
  0x28   : > { %v2469_v16 = vld [vmem:[%s2615_s15 + $0x1bc] ss:$20 sps:$4 sm:$0xff]  }
  0x2a   : > { %2057 = vmatpush3.bf16.msra.mxu0 %v2382_v17  ;;  %2341 = vmatpush3.bf16.msra.mxu1 %v2382_v17  ;;  %v2471_v17 = vld [vmem:[%s2615_s15 + $0x124] ss:$20 sps:$4 sm:$0xff]  }
  0x2b   : > { %2154 = vmatprep.subr.bf16.mxu1 %v2389_v18  ;;  %2286 = vmatprep.subr.bf16.mxu0 %v2392_v19  ;;  %v2473_v18 = vld [vmem:[%s2615_s15 + $0x1b8] ss:$20 sps:$4 sm:$0xff]  }
  0x2d   : > { %1175 = vmatmul.mubr.bf16.vlgmr.msra.gmra.mxu0 %v2383_v20  ;;  %1271 = vmatmul.mubr.bf16.vlgmr.msra.gmra.mxu1 %v2386_v21  ;;  %v2475_v20 = vld [vmem:[%s2615_s15 + $0x14c] ss:$20 sps:$4 sm:$0xff]   ;;  %v2477_v21 = vld [vmem:[%s2615_s15 + $0x10] ss:$20 sps:$4 sm:$0xff]  }
  0x2e   : > { %2155 = vmatpush3.bf16.msra.mxu1 %v2390_v22  ;;  %2287 = vmatpush3.bf16.msra.mxu0 %v2392_v19  ;;  %v2474_v19 = vld [vmem:[%s2615_s15 + $0x120] ss:$20 sps:$4 sm:$0xff]   ;;  %v2478_v22 = vld [vmem:[%s2615_s15 + $0x148] ss:$20 sps:$4 sm:$0xff]  }
  0x2f   : > { %2156 = vmatprep.subr.bf16.mxu1 %v2391_v23  ;;  %1182 = vmatprep.mubr.bf16.mxu0 %v2394_v24  ;;  %v2479_v23 = vld [vmem:[%s2615_s15 + $0x38] ss:$20 sps:$4 sm:$0xff]   ;;  %v2480_v24 = vld [vmem:[%s2615_s15 + $0x174] ss:$20 sps:$4 sm:$0xff]  }
  0x30   : > { %1278 = vmatprep.mubr.bf16.mxu1 %v2396_v25  ;;  %2288 = vmatprep.subr.bf16.mxu0 %v2423_v35  ;;  %v2482_v25 = vld [vmem:[%s2615_s15 + $0x60] ss:$20 sps:$4 sm:$0xff]  }
  0x32   : > { %2157 = vmatpush3.bf16.msra.mxu1 %v2393_v26  ;;  %2289 = vmatpush3.bf16.msra.mxu0 %v2423_v35  ;;  %v2483_v26 = vld [vmem:[%s2615_s15 + $0x170] ss:$20 sps:$4 sm:$0xff]   ;;  %v2494_v35 = vld [vmem:[%s2615_s15 + $0x128] ss:$20 sps:$4 sm:$0xff]  }
  0x33   : > { %2158 = vmatprep.subr.bf16.mxu1 %v2400_v28  ;;  %2290 = vmatprep.subr.bf16.mxu0 %v2443_v47  ;;  %v2485_v28 = vld [vmem:[%s2615_s15 + $0x19c] ss:$20 sps:$4 sm:$0xff]  }
  0x35   : > { %1183 = vmatmul.mubr.bf16.gmra.mxu0 %v2398_v27  ;;  %1279 = vmatmul.mubr.bf16.gmra.mxu1 %v2399_v29  ;;  %v2484_v27 = vld [vmem:[%s2615_s15 + $0x88] ss:$20 sps:$4 sm:$0xff]   ;;  %v2487_v29 = vld [vmem:[%s2615_s15 + $0xb0] ss:$20 sps:$4 sm:$0xff]  }
  0x36   : > { %2159 = vmatpush3.bf16.msra.mxu1 %v2401_v30  ;;  %1190 = vmatprep.mubr.bf16.mxu0 %v2404_v32  ;;  %v2488_v30 = vld [vmem:[%s2615_s15 + $0x198] ss:$20 sps:$4 sm:$0xff]  }
  0x37   : > { %2160 = vmatprep.subr.bf16.mxu1 %v2402_v31  ;;  %1286 = vmatprep.mubr.bf16.mxu1 %v2406_v33  ;;  %v2489_v31 = vld [vmem:[%s2615_s15 + $0xd8] ss:$20 sps:$4 sm:$0xff]   ;;  %v2492_v33 = vld [vmem:[%s2615_s15 + $0x100] ss:$20 sps:$4 sm:$0xff]  }
  0x38   : > { %2291 = vmatpush3.bf16.msra.mxu0 %v2443_v47  ;;  %v2490_v32 = vld [vmem:[%s2615_s15 + $0x1c4] ss:$20 sps:$4 sm:$0xff]  }
  0x39   : > { %2292 = vmatprep.subr.bf16.mxu0 %v2462_v56  ;;  %v2509_v47 = vld [vmem:[%s2615_s15 + $0x218] ss:$20 sps:$4 sm:$0xff]  }
  0x3a   : > { %2161 = vmatpush3.bf16.msra.mxu1 %v2403_v34  ;;  %v2493_v34 = vld [vmem:[%s2615_s15 + $0x1c0] ss:$20 sps:$4 sm:$0xff]  }
  0x3b   : > { %2162 = vmatprep.subr.bf16.mxu1 %v2410_v37  ;;  %v2497_v37 = vld [vmem:[%s2615_s15 + $0x150] ss:$20 sps:$4 sm:$0xff]  }
  0x3c   : > { %2293 = vmatpush3.bf16.msra.mxu0 %v2462_v56 }
  0x3d   : > { %1191 = vmatmul.mubr.bf16.gmra.mxu0 %v2408_v36  ;;  %1287 = vmatmul.mubr.bf16.gmra.mxu1 %v2409_v38  ;;  %v2495_v36 = vld [vmem:[%s2615_s15 + $0x1ec] ss:$20 sps:$4 sm:$0xff]   ;;  %v2498_v38 = vld [vmem:[%s2615_s15 + $0x1e8] ss:$20 sps:$4 sm:$0xff]  }
  0x3e   : > { %2163 = vmatpush3.bf16.msra.mxu1 %v2411_v39  ;;  %1198 = vmatprep.mubr.bf16.mxu0 %v2414_v41  ;;  %v2499_v39 = vld [vmem:[%s2615_s15 + $0x178] ss:$20 sps:$4 sm:$0xff]   ;;  %v2502_v41 = vld [vmem:[%s2615_s15 + $0x1a0] ss:$20 sps:$4 sm:$0xff]  }
  0x3f   : > { %2164 = vmatprep.subr.bf16.mxu1 %v2412_v40  ;;  %1294 = vmatprep.mubr.bf16.mxu1 %v2416_v42  ;;  %v2500_v40 = vld [vmem:[%s2615_s15 + $0x214] ss:$20 sps:$4 sm:$0xff]   ;;  %v2503_v42 = vld [vmem:[%s2615_s15 + $0x210] ss:$20 sps:$4 sm:$0xff]  }
  0x42   : > { %2165 = vmatpush3.bf16.msra.mxu1 %v2413_v43  ;;  %v2504_v43 = vld [vmem:[%s2615_s15 + $0x1c8] ss:$20 sps:$4 sm:$0xff]  }
  0x43   : > { %2166 = vmatprep.subr.bf16.mxu1 %v2420_v46  ;;  %v2508_v46 = vld [vmem:[%s2615_s15 + $0x238] ss:$20 sps:$4 sm:$0xff]  }
  0x45   : > { %1199 = vmatmul.mubr.bf16.gmra.mxu0 %v2418_v44  ;;  %1295 = vmatmul.mubr.bf16.gmra.mxu1 %v2419_v45  ;;  %v2505_v44 = vld [vmem:[%s2615_s15 + $0x23c] ss:$20 sps:$4 sm:$0xff]  }
  0x46   : > { %2167 = vmatpush3.bf16.msra.mxu1 %v2421_v48  ;;  %1206 = vmatprep.mubr.bf16.mxu0 %v2425_v50  ;;  %v2507_v45 = vld [vmem:[%s2615_s15 + $0x1f0] ss:$20 sps:$4 sm:$0xff]   ;;  %v2513_v50 = vld [vmem:[%s2615_s15 + $0x260] ss:$20 sps:$4 sm:$0xff]  }
  0x47   : > { %2168 = vmatprep.subr.bf16.mxu1 %v2422_v49  ;;  %1335 = vmatprep.mubr.bf16.mxu1 %v2429_v51  ;;  %v2510_v48 = vld [vmem:[%s2615_s15 + $0x264] ss:$20 sps:$4 sm:$0xff]   ;;  %v2512_v49 = vld [vmem:[%s2615_s15 + $0x240] ss:$20 sps:$4 sm:$0xff]   ;;  %v2514_v51 = vld [vmem:[%s2615_s15 + $0x268] ss:$20 sps:$4 sm:$0xff]  }
  0x4a   : > { %2169 = vmatpush3.bf16.msra.mxu1 %v2424_v52 }
  0x4d   : > { %1207 = vmatmul.mubr.bf16.gmra.mxu0 %v2430_v54  ;;  %1336 = vmatmul.mubr.bf16.vlgmr.msra.gmra.mxu1 %v2427_v53 }
  0x4e   : > { %1214 = vmatprep.mubr.bf16.mxu0 %v2431_v55  ;;  %1343 = vmatprep.mubr.bf16.mxu1 %v2433_v57 }
  0x55   : > { %1215 = vmatmul.mubr.bf16.gmra.mxu0 %v2435_v58  ;;  %1344 = vmatmul.mubr.bf16.gmra.mxu1 %v2436_v59 }
  0x56   : > { %1222 = vmatprep.mubr.bf16.mxu0 %v2437_v60  ;;  %1351 = vmatprep.mubr.bf16.mxu1 %v2439_v61 }
  0x5d   : > { %1223 = vmatmul.mubr.bf16.gmra.mxu0 %v2441_v62  ;;  %1352 = vmatmul.mubr.bf16.gmra.mxu1 %v2442_v63 }
  0x5e   : > { %1230 = vmatprep.mubr.bf16.mxu0 %v2444_v0  ;;  %1359 = vmatprep.mubr.bf16.mxu1 %v2446_v1 }
  0x65   : > { %1231 = vmatmul.mubr.bf16.gmra.mxu0 %v2448_v2  ;;  %1360 = vmatmul.mubr.bf16.gmra.mxu1 %v2449_v3 }
  0x66   : > { %1238 = vmatprep.mubr.bf16.mxu0 %v2450_v4  ;;  %1367 = vmatprep.mubr.bf16.mxu1 %v2452_v5 }
  0x6d   : > { %1239 = vmatmul.mubr.bf16.gmra.mxu0 %v2454_v6  ;;  %1368 = vmatmul.mubr.bf16.gmra.mxu1 %v2455_v7 }
  0x6e   : > { %1246 = vmatprep.mubr.bf16.mxu0 %v2456_v8  ;;  %1375 = vmatprep.mubr.bf16.mxu1 %v2458_v9 }
  0x75   : > { %1247 = vmatmul.mubr.bf16.gmra.mxu0 %v2460_v10  ;;  %1376 = vmatmul.mubr.bf16.gmra.mxu1 %v2461_v11 }
  0x76   : > { %1254 = vmatprep.mubr.bf16.mxu0 %v2463_v12  ;;  %1383 = vmatprep.mubr.bf16.mxu1 %v2465_v13 }
  0x7d   : > { %1255 = vmatmul.mubr.bf16.gmra.mxu0 %v2467_v14  ;;  %1384 = vmatmul.mubr.bf16.gmra.mxu1 %v2468_v15 }
  0x7e   : > { %1262 = vmatprep.mubr.bf16.mxu0 %v2469_v16  ;;  %1391 = vmatprep.mubr.bf16.mxu1 %v2471_v17 }
  0x85   : > { %1263 = vmatmul.mubr.bf16.gmra.mxu0 %v2473_v18  ;;  %1392 = vmatmul.mubr.bf16.gmra.mxu1 %v2474_v19 }
  0x86   : > { %1399 = vmatprep.mubr.bf16.mxu1 %v2475_v20  ;;  %2294 = vmatprep.mubr.msk.bf16.mxu0 %vm1093_vm0, %v2477_v21 }
  0x8d   : > { %1400 = vmatmul.mubr.bf16.gmra.mxu1 %v2478_v22  ;;  %2295 = vmatmul.mubr.msk.bf16.vlgmr.msra.gmra.mxu0 %vm1093_vm0, %v2479_v23 }
  0x8e   : > { %1407 = vmatprep.mubr.bf16.mxu1 %v2480_v24  ;;  %2298 = vmatprep.mubr.msk.bf16.mxu0 %vm1093_vm0, %v2482_v25 }
  0x95   : > { %1408 = vmatmul.mubr.bf16.gmra.mxu1 %v2483_v26  ;;  %2299 = vmatmul.mubr.msk.bf16.gmra.mxu0 %vm1093_vm0, %v2484_v27 }
  0x96   : > { %1415 = vmatprep.mubr.bf16.mxu1 %v2485_v28  ;;  %2302 = vmatprep.mubr.msk.bf16.mxu0 %vm1093_vm0, %v2487_v29 }
  0x9d   : > { %1416 = vmatmul.mubr.bf16.gmra.mxu1 %v2488_v30  ;;  %2303 = vmatmul.mubr.msk.bf16.gmra.mxu0 %vm1093_vm0, %v2489_v31 }
  0x9e   : > { %1423 = vmatprep.mubr.bf16.mxu1 %v2490_v32  ;;  %2306 = vmatprep.mubr.msk.bf16.mxu0 %vm1093_vm0, %v2492_v33 }
  0xa5   : > { %1424 = vmatmul.mubr.bf16.gmra.mxu1 %v2493_v34  ;;  %2307 = vmatmul.mubr.msk.bf16.gmra.mxu0 %vm1093_vm0, %v2494_v35 }
  0xa6   : > { %1431 = vmatprep.mubr.bf16.mxu1 %v2495_v36  ;;  %2310 = vmatprep.mubr.msk.bf16.mxu0 %vm1093_vm0, %v2497_v37 }
  0xad   : > { %1432 = vmatmul.mubr.bf16.gmra.mxu1 %v2498_v38  ;;  %2311 = vmatmul.mubr.msk.bf16.gmra.mxu0 %vm1093_vm0, %v2499_v39 }
  0xae   : > { %1439 = vmatprep.mubr.bf16.mxu1 %v2500_v40  ;;  %2314 = vmatprep.mubr.msk.bf16.mxu0 %vm1093_vm0, %v2502_v41 }
  0xb5   : > { %1440 = vmatmul.mubr.bf16.gmra.mxu1 %v2503_v42  ;;  %2315 = vmatmul.mubr.msk.bf16.gmra.mxu0 %vm1093_vm0, %v2504_v43 }
  0xb6   : > { %1447 = vmatprep.mubr.bf16.mxu1 %v2505_v44  ;;  %2318 = vmatprep.mubr.msk.bf16.mxu0 %vm1093_vm0, %v2507_v45 }
  0xbd   : > { %1448 = vmatmul.mubr.bf16.gmra.mxu1 %v2508_v46  ;;  %2319 = vmatmul.mubr.msk.bf16.gmra.mxu0 %vm1093_vm0, %v2509_v47 }
  0xbe   : > { %1455 = vmatprep.mubr.bf16.mxu1 %v2510_v48  ;;  %2322 = vmatprep.mubr.msk.bf16.mxu0 %vm1093_vm0, %v2512_v49 }
  0xc5   : > { %1456 = vmatmul.mubr.bf16.gmra.mxu1 %v2513_v50  ;;  %2323 = vmatmul.mubr.msk.bf16.gmra.mxu0 %vm1093_vm0, %v2514_v51 }
  0xed   : > { %v2058_v52 = vpop.f32.mrf.mxu0  ;;  %v2130_v53 = vpop.f32.mrf.mxu1 }
  0xef   : > { %v2059_v54 = vpop.f32.mrf.mxu0  ;;  %v2131_v55 = vpop.f32.mrf.mxu1 }
  0xf0   : > { %v2794_v56 = vadd.f32 %v2059_v54, %v2058_v52  ;;  %v2796_v57 = vadd.f32 %v2131_v55, %v2130_v53 }
  0xf1   : > { %v2061_v58 = vpop.f32.mrf.mxu0  ;;  %v2133_v59 = vpop.f32.mrf.mxu1 }
  0xf2   : > { %3189 = vst [vmem:[#allocation2_spill] sm:$0xff] %v2796_v57 }
  0xf3   : > { %v2062_v60 = vpop.f32.mrf.mxu0  ;;  %v2134_v61 = vpop.f32.mrf.mxu1 }
  0xf4   : > { %v2798_v62 = vadd.f32 %v2062_v60, %v2061_v58  ;;  %v2800_v63 = vadd.f32 %v2134_v61, %v2133_v59 }
  0xf5   : > { %v2064_v0 = vpop.f32.mrf.mxu0  ;;  %v2136_v1 = vpop.f32.mrf.mxu1 }
  0xf6   : > { %3190 = vst [vmem:[#allocation3_spill] sm:$0xff] %v2800_v63 }
  0xf7   : > { %v2065_v2 = vpop.f32.mrf.mxu0  ;;  %v2137_v3 = vpop.f32.mrf.mxu1 }
  0xf8   : > { %v2802_v4 = vadd.f32 %v2065_v2, %v2064_v0  ;;  %v2804_v5 = vadd.f32 %v2137_v3, %v2136_v1 }
  0xf9   : > { %v2067_v6 = vpop.f32.mrf.mxu0  ;;  %v2139_v7 = vpop.f32.mrf.mxu1 }
  0xfa   : > { %3191 = vst [vmem:[#allocation4_spill] sm:$0xff] %v2804_v5 }
  0xfb   : > { %v2068_v8 = vpop.f32.mrf.mxu0  ;;  %v2140_v9 = vpop.f32.mrf.mxu1 }
  0xfc   : > { %v2806_v10 = vadd.f32 %v2068_v8, %v2067_v6  ;;  %v2808_v11 = vadd.f32 %v2140_v9, %v2139_v7 }
  0xfd   : > { %v2070_v12 = vpop.f32.mrf.mxu0  ;;  %v2142_v13 = vpop.f32.mrf.mxu1 }
  0xfe   : > { %3192 = vst [vmem:[#allocation5_spill] sm:$0xff] %v2808_v11 }
  0xff   : > { %v2071_v14 = vpop.f32.mrf.mxu0  ;;  %v2143_v15 = vpop.f32.mrf.mxu1 }
 0x100   : > { %v2810_v16 = vadd.f32 %v2071_v14, %v2070_v12  ;;  %v2812_v17 = vadd.f32 %v2143_v15, %v2142_v13 }
 0x101   : > { %v2073_v18 = vpop.f32.mrf.mxu0  ;;  %v2145_v19 = vpop.f32.mrf.mxu1 }
 0x102   : > { %3193 = vst [vmem:[#allocation6_spill] sm:$0xff] %v2812_v17 }
 0x103   : > { %v2074_v20 = vpop.f32.mrf.mxu0  ;;  %v2146_v21 = vpop.f32.mrf.mxu1 }
 0x104   : > { %v2814_v22 = vadd.f32 %v2074_v20, %v2073_v18  ;;  %v2816_v23 = vadd.f32 %v2146_v21, %v2145_v19 }
 0x105   : > { %v2076_v24 = vpop.f32.mrf.mxu0  ;;  %v2148_v25 = vpop.f32.mrf.mxu1 }
 0x106   : > { %3194 = vst [vmem:[#allocation7_spill] sm:$0xff] %v2816_v23 }
 0x107   : > { %v2077_v26 = vpop.f32.mrf.mxu0  ;;  %v2149_v27 = vpop.f32.mrf.mxu1 }
 0x108   : > { %v2818_v28 = vadd.f32 %v2077_v26, %v2076_v24  ;;  %v2820_v29 = vadd.f32 %v2149_v27, %v2148_v25 }
 0x109   : > { %v2079_v30 = vpop.f32.mrf.mxu0  ;;  %v2151_v31 = vpop.f32.mrf.mxu1 }
 0x10a   : > { %3195 = vst [vmem:[#allocation8_spill] sm:$0xff] %v2820_v29 }
 0x10b   : > { %v2080_v32 = vpop.f32.mrf.mxu0  ;;  %v2152_v33 = vpop.f32.mrf.mxu1 }
 0x10c   : > { %v2822_v34 = vadd.f32 %v2080_v32, %v2079_v30  ;;  %v2824_v35 = vadd.f32 %v2152_v33, %v2151_v31 }
 0x10d   : > { %v2082_v36 = vpop.f32.mrf.mxu0  ;;  %v2826_v37 = vpop.f32.mrf.mxu1 }
 0x10e   : > { %3196 = vst [vmem:[#allocation9_spill] sm:$0xff] %v2824_v35 }
 0x10f   : > { %v2083_v38 = vpop.f32.mrf.mxu0  ;;  %v2828_v39 = vpop.f32.mrf.mxu1 }
 0x110   : > { %v2830_v40 = vadd.f32 %v2083_v38, %v2082_v36 }
 0x111   : > { %v2085_v41 = vpop.f32.mrf.mxu0  ;;  %v2832_v42 = vpop.f32.mrf.mxu1 }
 0x113   : > { %v2086_v43 = vpop.f32.mrf.mxu0  ;;  %v2834_v44 = vpop.f32.mrf.mxu1 }
 0x114   : > { %v2836_v45 = vadd.f32 %v2086_v43, %v2085_v41 }
 0x115   : > { %v2088_v46 = vpop.f32.mrf.mxu0  ;;  %v2176_v47 = vpop.f32.mrf.mxu1 }
 0x117   : > { %v2089_v48 = vpop.f32.mrf.mxu0  ;;  %v2177_v49 = vpop.f32.mrf.mxu1 }
 0x118   : > { %v2838_v50 = vadd.f32 %v2089_v48, %v2088_v46  ;;  %v2178_v57 = vadd.f32 %v2177_v49, %v2176_v47  ;;  %v2934_v47 = vld [vmem:[%s3186_s2] ss:$0 sm:$0xff] }
 0x119   : > { %v2091_v51 = vpop.f32.mrf.mxu0  ;;  %v2179_v52 = vpop.f32.mrf.mxu1 }
 0x11b   : > { %v2092_v53 = vpop.f32.mrf.mxu0  ;;  %v2180_v54 = vpop.f32.mrf.mxu1 }
 0x11c   : > { %v2840_v55 = vadd.f32 %v2092_v53, %v2091_v51 }
 0x11d   : > { %v2094_v58 = vpop.f32.mrf.mxu0  ;;  %v2842_v59 = vpop.f32.mrf.mxu1 }
 0x11f   : > { %v2095_v60 = vpop.f32.mrf.mxu0  ;;  %v2844_v61 = vpop.f32.mrf.mxu1 }
 0x120   : > { %v2846_v0 = vadd.f32 %v2095_v60, %v2094_v58 }
 0x121   : > { %v2097_v1 = vpop.f32.mrf.mxu0  ;;  %v2848_v2 = vpop.f32.mrf.mxu1 }
 0x123   : > { %v2098_v3 = vpop.f32.mrf.mxu0  ;;  %v2850_v6 = vpop.f32.mrf.mxu1 }
 0x124   : > { %v2852_v7 = vadd.f32 %v2098_v3, %v2097_v1 }
 0x125   : > { %v2854_v8 = vpop.f32.mrf.mxu0  ;;  %v2188_v9 = vpop.f32.mrf.mxu1 }
 0x127   : > { %v2856_v12 = vpop.f32.mrf.mxu0  ;;  %v2189_v13 = vpop.f32.mrf.mxu1 }
 0x129   : > { %v2858_v14 = vpop.f32.mrf.mxu0  ;;  %v2191_v15 = vpop.f32.mrf.mxu1 }
 0x12b   : > { %v2860_v18 = vpop.f32.mrf.mxu0  ;;  %v2192_v19 = vpop.f32.mrf.mxu1 }
 0x12d   : > { %v2862_v20 = vpop.f32.mrf.mxu0  ;;  %v2864_v21 = vpop.f32.mrf.mxu1 }
 0x12f   : > { %v2866_v24 = vpop.f32.mrf.mxu0  ;;  %v2868_v25 = vpop.f32.mrf.mxu1 }
 0x131   : > { %v2870_v26 = vpop.f32.mrf.mxu0  ;;  %v2872_v27 = vpop.f32.mrf.mxu1 }
 0x132   : > { %3197 = vst [vmem:[#allocation10_spill] sm:$0xff] %v2870_v26 }
 0x133   : > { %v2874_v30 = vpop.f32.mrf.mxu0  ;;  %v2876_v31 = vpop.f32.mrf.mxu1 }
 0x134   : > { %3198 = vst [vmem:[#allocation11_spill] sm:$0xff] %v2874_v30  ;;  %v1346_v30 = vadd.f32 %v2178_v57, %v2802_v4 }
 0x135   : > { %v2878_v32 = vpop.f32.mrf.mxu0  ;;  %v2880_v33 = vpop.f32.mrf.mxu1 }
 0x137   : > { %v2882_v36 = vpop.f32.mrf.mxu0  ;;  %v2884_v38 = vpop.f32.mrf.mxu1 }
 0x139   : > { %v2886_v41 = vpop.f32.mrf.mxu0  ;;  %v2888_v43 = vpop.f32.mrf.mxu1 }
 0x13a   : > { %3199 = vst [vmem:[#allocation12_spill] sm:$0xff] %v2886_v41  ;;  %v2193_v41 = vadd.f32 %v2192_v19, %v2191_v15 }
 0x13b   : > { %v2890_v46 = vpop.f32.mrf.mxu0  ;;  %v2892_v48 = vpop.f32.mrf.mxu1 }
 0x13c   : > { %3200 = vst [vmem:[#allocation13_spill] sm:$0xff] %v2890_v46 }
 0x13d   : > { %v2894_v51 = vpop.f32.mrf.mxu0  ;;  %v2896_v53 = vpop.f32.mrf.mxu1 }
 0x13e   : > { %3201 = vst [vmem:[#allocation14_spill] sm:$0xff] %v2894_v51 }
 0x13f   : > { %v2898_v58 = vpop.f32.mrf.mxu0  ;;  %v2900_v60 = vpop.f32.mrf.mxu1 }
 0x140   : > { %3202 = vst [vmem:[#allocation15_spill] sm:$0xff] %v2898_v58 }
 0x141   : > { %v2902_v1 = vpop.f32.mrf.mxu0  ;;  %v2904_v3 = vpop.f32.mrf.mxu1 }
 0x142   : > { %3203 = vst [vmem:[#allocation16_spill] sm:$0xff] %v2902_v1  ;;  %v2172_v1 = vadd.f32 %v2828_v39, %v2826_v37  ;;  %v2175_v37 = vadd.f32 %v2834_v44, %v2832_v42  ;;  %v2942_v39 = vld [vmem:[%s3187_s3] ss:$0 sm:$0xff]  ;;  %v2184_v42 = vadd.f32 %v2844_v61, %v2842_v59 }
 0x143   : > { %v2906_v35 = vpop.f32.mrf.mxu0  ;;  %v2908_v23 = vpop.f32.mrf.mxu1 }
 0x144   : > { %3204 = vst [vmem:[#allocation17_spill] sm:$0xff] %v2906_v35 }
 0x145   : > { %v2910_v29 = vpop.f32.mrf.mxu0  ;;  %v2912_v17 = vpop.f32.mrf.mxu1 }
 0x146   : > { %3205 = vst [vmem:[#allocation18_spill] sm:$0xff] %v2910_v29  ;;  %v2181_v29 = vadd.f32 %v2180_v54, %v2179_v52  ;;  %v2190_v52 = vadd.f32 %v2189_v13, %v2188_v9 }
 0x147   : > { %v2914_v63 = vpop.f32.mrf.mxu0  ;;  %v2916_v11 = vpop.f32.mrf.mxu1 }
 0x148   : > { %3206 = vst [vmem:[#allocation19_spill] sm:$0xff] %v2914_v63 }
 0x149   : > { %v2918_v5 = vpop.f32.mrf.mxu0  ;;  %v2920_v58 = vpop.f32.mrf.mxu1 }
 0x14a   : > { %3207 = vst [vmem:[#allocation20_spill] sm:$0xff] %v2918_v5  ;;  %v1338_v5 = vadd.f32 %v2172_v1, %v2794_v56 }
 0x14b   : > { %v2924_v35 = vpop.f32.mrf.mxu0  ;;  %v2926_v51 = vpop.f32.mrf.mxu1 }
 0x14c   : > { %3208 = vst [vmem:[#allocation21_spill] sm:$0xff] %v2924_v35 }
 0x14d   : > { %v2929_v26 = vpop.f32.mrf.mxu1  ;;  %v2296_v63 = vpop.f32.mrf.mxu0 }
 0x14e   : > { %v1507_v49 = vadd.f32 %v2296_v63, %v1346_v30  ;;  %v1349_v63 = vadd.f32 %v2181_v29, %v2806_v10  ;;  %v1341_v10 = vadd.f32 %v2175_v37, %v2798_v62  ;;  %v1354_v62 = vadd.f32 %v2184_v42, %v2810_v16 }
 0x14f   : > { %v2944_v57 = vpop.f32.mrf.mxu1  ;;  %v1498_v4 = vpop.f32.mrf.mxu0  ;;  %v2187_v37 = vadd.f32 %v2850_v6, %v2848_v2  ;;  %v2196_v6 = vadd.f32 %v2868_v25, %v2864_v21 }
 0x150   : > { %v1634_v54 = vmul.f32 %v2934_v47, %v1507_v49  ;;  %v1499_v35 = vadd.f32 %v1498_v4, %v1338_v5 }
 0x151   : > { %v2949_v30 = vpop.f32.mrf.mxu1  ;;  %v2297_v56 = vpop.f32.mrf.mxu0 }
 0x152   : > { %v1673_v44 = vadd.f32 %v2942_v39, %v1634_v54  ;;  %v1632_v1 = vmul.f32 %v2934_v47, %v1499_v35  ;;  %v1510_v46 = vadd.f32 %v2297_v56, %v1349_v63  ;;  %v1362_v35 = vadd.f32 %v2190_v52, %v2818_v28 }
 0x153   : > { %v2960_v5 = vpop.f32.mrf.mxu1  ;;  %v1501_v29 = vpop.f32.mrf.mxu0  ;;  %v1365_v52 = vadd.f32 %v2193_v41, %v2822_v34  ;;  %v2202_v56 = vadd.f32 %v2884_v38, %v2880_v33  ;;  %v2205_v41 = vadd.f32 %v2892_v48, %v2888_v43 }
 0x154   : > { %v1705_v9 = vmax.f32 %v1673_v44, 0.0  ;;  %v1671_v59 = vadd.f32 %v2942_v39, %v1632_v1  ;;  %v1635_v61 = vmul.f32 %v2934_v47, %v1510_v46  ;;  %v1502_v13 = vadd.f32 %v1501_v29, %v1341_v10 }
 0x155   : > { %v2966_v15 = vpop.f32.mrf.mxu1  ;;  %v2300_v19 = vpop.f32.mrf.mxu0 }
 0x156   : > { %1738 = vst.msk [vmem:[%s2958_s21 + $0x10] sm:$0xff] %vm1735_vm1, %v1705_v9  ;;  %v1703_v49 = vmax.f32 %v1671_v59, 0.0  ;;  %v1674_v4 = vadd.f32 %v2942_v39, %v1635_v61  ;;  %v1523_v54 = vadd.f32 %v2300_v19, %v1362_v35  ;;  %v1633_v46 = vmul.f32 %v2934_v47, %v1502_v13 }
 0x157   : > { %v2975_v63 = vpop.f32.mrf.mxu1  ;;  %v1514_v28 = vpop.f32.mrf.mxu0  ;;  %v1357_v59 = vadd.f32 %v2187_v37, %v2814_v22  ;;  %v1378_v13 = vadd.f32 %v2202_v56, %v2838_v50 }
 0x158   : > { %1736 = vst.msk [vmem:[%s2958_s21] sm:$0xff] %vm1735_vm1, %v1703_v49  ;;  %v1706_v44 = vmax.f32 %v1674_v4, 0.0  ;;  %v1638_v1 = vmul.f32 %v2934_v47, %v1523_v54  ;;  %v1515_v10 = vadd.f32 %v1514_v28, %v1354_v62  ;;  %v1672_v16 = vadd.f32 %v2942_v39, %v1633_v46 }
 0x159   : > { %v2984_v42 = vpop.f32.mrf.mxu1  ;;  %v2301_v2 = vpop.f32.mrf.mxu0  ;;  %v1370_v54 = vadd.f32 %v2196_v6, %v2830_v40  ;;  %v2199_v62 = vadd.f32 %v2876_v31, %v2872_v27  ;;  %v1381_v28 = vadd.f32 %v2205_v41, %v2840_v55  ;;  %v2208_v55 = vadd.f32 %v2900_v60, %v2896_v53 }
 0x15a   : > { %1739 = vst.msk [vmem:[%s2958_s21 + $0x18] sm:$0xff] %vm1735_vm1, %v1706_v44  ;;  %v1677_v34 = vadd.f32 %v2942_v39, %v1638_v1  ;;  %v1636_v33 = vmul.f32 %v2934_v47, %v1515_v10  ;;  %v1526_v38 = vadd.f32 %v2301_v2, %v1365_v52  ;;  %v1704_v29 = vmax.f32 %v1672_v16, 0.0 }
 0x15b   : > { %v2994_v9 = vpop.f32.mrf.mxu1  ;;  %v1517_v61 = vpop.f32.mrf.mxu0  ;;  %v2214_v52 = vadd.f32 %v2916_v11, %v2912_v17  ;;  %v2102_v1 = vadd.f32 %v2856_v12, %v2854_v8  ;;  %v2217_v8 = vadd.f32 %v2926_v51, %v2920_v58  ;;  %v1373_v6 = vadd.f32 %v2199_v62, %v2836_v45 }
 0x15c   : > { %v1709_v35 = vmax.f32 %v1677_v34, 0.0  ;;  %v1675_v21 = vadd.f32 %v2942_v39, %v1636_v33  ;;  %v1639_v25 = vmul.f32 %v2934_v47, %v1526_v38  ;;  %1737 = vst.msk [vmem:[%s2958_s21 + $0x8] sm:$0xff] %vm1735_vm1, %v1704_v29  ;;  %v1518_v19 = vadd.f32 %v1517_v61, %v1357_v59 }
 0x15d   : > { %v3002_v49 = vpop.f32.mrf.mxu1  ;;  %v2304_v43 = vpop.f32.mrf.mxu0  ;;  %v1394_v38 = vadd.f32 %v2214_v52, %v2102_v1  ;;  %v2105_v41 = vadd.f32 %v2860_v18, %v2858_v14  ;;  %v3210_v1 = vld [vmem:[#allocation13_spill] sm:$0xff] }
 0x15e   : > { %1742 = vst.msk [vmem:[%s2958_s21 + $0x30] sm:$0xff] %vm1735_vm1, %v1709_v35  ;;  %v1707_v48 = vmax.f32 %v1675_v21, 0.0  ;;  %v1678_v22 = vadd.f32 %v2942_v39, %v1639_v25  ;;  %v1539_v4 = vadd.f32 %v2304_v43, %v1378_v13  ;;  %v1637_v50 = vmul.f32 %v2934_v47, %v1518_v19 }
 0x15f   : > { %v3011_v37 = vpop.f32.mrf.mxu1  ;;  %v1530_v46 = vpop.f32.mrf.mxu0  ;;  %v1386_v35 = vadd.f32 %v2208_v55, %v2846_v0  ;;  %v2211_v21 = vadd.f32 %v2908_v23, %v2904_v3  ;;  %v1397_v13 = vadd.f32 %v2217_v8, %v2105_v41  ;;  %v2226_v19 = vadd.f32 %v2975_v63, %v2966_v15 }
 0x160   : > { %1740 = vst.msk [vmem:[%s2958_s21 + $0x20] sm:$0xff] %vm1735_vm1, %v1707_v48  ;;  %v1710_v56 = vmax.f32 %v1678_v22, 0.0  ;;  %v1642_v44 = vmul.f32 %v2934_v47, %v1539_v4  ;;  %v1531_v40 = vadd.f32 %v1530_v46, %v1370_v54  ;;  %v1676_v27 = vadd.f32 %v2942_v39, %v1637_v50 }
 0x161   : > { %v3022_v31 = vpop.f32.mrf.mxu1  ;;  %v2305_v10 = vpop.f32.mrf.mxu0  ;;  %v2114_v0 = vadd.f32 %v2882_v36, %v2878_v32  ;;  %v2220_v54 = vadd.f32 %v2944_v57, %v2929_v26  ;;  %v2108_v50 = vadd.f32 %v2866_v24, %v2862_v20  ;;  %v2229_v32 = vadd.f32 %v2994_v9, %v2984_v42 }
 0x162   : > { %1743 = vst.msk [vmem:[%s2958_s21 + $0x38] sm:$0xff] %vm1735_vm1, %v1710_v56  ;;  %v1681_v11 = vadd.f32 %v2942_v39, %v1642_v44  ;;  %v1640_v17 = vmul.f32 %v2934_v47, %v1531_v40  ;;  %v1542_v16 = vadd.f32 %v2305_v10, %v1381_v28  ;;  %v1708_v12 = vmax.f32 %v1676_v27, 0.0  ;;  %v3209_v40 = vld [vmem:[#allocation12_spill] sm:$0xff] }
 0x163   : > { %v3032_v2 = vpop.f32.mrf.mxu1  ;;  %v1533_v34 = vpop.f32.mrf.mxu0  ;;  %v1389_v28 = vadd.f32 %v2211_v21, %v2852_v7  ;;  %v1410_v44 = vadd.f32 %v2226_v19, %v2114_v0  ;;  %v2117_v27 = vadd.f32 %v3210_v1, %v3209_v40  ;;  %v1402_v55 = vadd.f32 %v2220_v54, %v2108_v50  ;;  %v3218_v54 = vld [vmem:[#allocation21_spill] sm:$0xff] }
 0x164   : > { %v1713_v33 = vmax.f32 %v1681_v11, 0.0  ;;  %v1679_v53 = vadd.f32 %v2942_v39, %v1640_v17  ;;  %v1643_v60 = vmul.f32 %v2934_v47, %v1542_v16  ;;  %1741 = vst.msk [vmem:[%s2958_s21 + $0x28] sm:$0xff] %vm1735_vm1, %v1708_v12  ;;  %v1534_v29 = vadd.f32 %v1533_v34, %v1373_v6 }
 0x165   : > { %v2236_v51 = vpop.f32.mrf.mxu1  ;;  %v2308_v58 = vpop.f32.mrf.mxu0  ;;  %v2223_v11 = vadd.f32 %v2960_v5, %v2949_v30  ;;  %v1413_v12 = vadd.f32 %v2229_v32, %v2117_v27 }
 0x166   : > { %1746 = vst.msk [vmem:[%s2958_s21 + $0x50] sm:$0xff] %vm1735_vm1, %v1713_v33  ;;  %v1711_v59 = vmax.f32 %v1679_v53, 0.0  ;;  %v1682_v45 = vadd.f32 %v2942_v39, %v1643_v60  ;;  %v1555_v61 = vadd.f32 %v2308_v58, %v1394_v38  ;;  %v1641_v14 = vmul.f32 %v2934_v47, %v1534_v29  ;;  %v3211_v60 = vld [vmem:[#allocation10_spill] sm:$0xff]  ;;  %v3212_v38 = vld [vmem:[#allocation11_spill] sm:$0xff] }
 0x167   : > { %v2237_v18 = vpop.f32.mrf.mxu1  ;;  %v1546_v25 = vpop.f32.mrf.mxu0  ;;  %v2111_v41 = vadd.f32 %v3212_v38, %v3211_v60  ;;  %v3213_v29 = vld [vmem:[#allocation18_spill] sm:$0xff]  ;;  %v3214_v58 = vld [vmem:[#allocation19_spill] sm:$0xff] }
 0x168   : > { %1744 = vst.msk [vmem:[%s2958_s21 + $0x40] sm:$0xff] %vm1735_vm1, %v1711_v59  ;;  %v1714_v43 = vmax.f32 %v1682_v45, 0.0  ;;  %v1646_v48 = vmul.f32 %v2934_v47, %v1555_v61  ;;  %v1547_v22 = vadd.f32 %v1546_v25, %v1386_v35  ;;  %v1680_v4 = vadd.f32 %v2942_v39, %v1641_v14  ;;  %v3215_v14 = vld [vmem:[#allocation14_spill] sm:$0xff] }
 0x169   : > { %v2239_v23 = vpop.f32.mrf.mxu1  ;;  %v2309_v3 = vpop.f32.mrf.mxu0  ;;  %v2238_v6 = vadd.f32 %v2237_v18, %v2236_v51  ;;  %v2126_v59 = vadd.f32 %v3214_v58, %v3213_v29  ;;  %v2232_v51 = vadd.f32 %v3011_v37, %v3002_v49  ;;  %v3216_v18 = vld [vmem:[#allocation15_spill] sm:$0xff] }
 0x16a   : > { %1747 = vst.msk [vmem:[%s2958_s21 + $0x58] sm:$0xff] %vm1735_vm1, %v1714_v43  ;;  %v1685_v15 = vadd.f32 %v2942_v39, %v1646_v48  ;;  %v1644_v63 = vmul.f32 %v2934_v47, %v1547_v22  ;;  %v1558_v62 = vadd.f32 %v2309_v3, %v1397_v13  ;;  %v1712_v36 = vmax.f32 %v1680_v4, 0.0  ;;  %v3217_v3 = vld [vmem:[#allocation20_spill] sm:$0xff] }
 0x16b   : > { %v2240_v46 = vpop.f32.mrf.mxu1  ;;  %v1549_v26 = vpop.f32.mrf.mxu0  ;;  %v2120_v25 = vadd.f32 %v3216_v18, %v3215_v14  ;;  %v1405_v48 = vadd.f32 %v2223_v11, %v2111_v41  ;;  %v1426_v4 = vadd.f32 %v2238_v6, %v2126_v59 }
 0x16c   : > { %v1717_v57 = vmax.f32 %v1685_v15, 0.0  ;;  %v1683_v52 = vadd.f32 %v2942_v39, %v1644_v63  ;;  %v1647_v56 = vmul.f32 %v2934_v47, %v1558_v62  ;;  %1745 = vst.msk [vmem:[%s2958_s21 + $0x48] sm:$0xff] %vm1735_vm1, %v1712_v36  ;;  %v1550_v20 = vadd.f32 %v1549_v26, %v1389_v28 }
 0x16d   : > { %v2242_v24 = vpop.f32.mrf.mxu1  ;;  %v2312_v42 = vpop.f32.mrf.mxu0  ;;  %v2241_v13 = vadd.f32 %v2240_v46, %v2239_v23  ;;  %v2129_v15 = vadd.f32 %v3218_v54, %v3217_v3  ;;  %v1418_v46 = vadd.f32 %v2232_v51, %v2120_v25  ;;  %v2235_v28 = vadd.f32 %v3032_v2, %v3022_v31  ;;  %v3222_v51 = vld [vmem:[#allocation2_spill] sm:$0xff] }
 0x16e   : > { %1750 = vst.msk [vmem:[%s2958_s21 + $0x70] sm:$0xff] %vm1735_vm1, %v1717_v57  ;;  %v1715_v9 = vmax.f32 %v1683_v52, 0.0  ;;  %v1686_v7 = vadd.f32 %v2942_v39, %v1647_v56  ;;  %v1571_v10 = vadd.f32 %v2312_v42, %v1410_v44  ;;  %v1645_v17 = vmul.f32 %v2934_v47, %v1550_v20  ;;  %v3219_v20 = vld [vmem:[#allocation16_spill] sm:$0xff]  ;;  %v3220_v42 = vld [vmem:[#allocation17_spill] sm:$0xff] }
 0x16f   : > { %v2243_v16 = vpop.f32.mrf.mxu1  ;;  %v1562_v8 = vpop.f32.mrf.mxu0  ;;  %v1429_v56 = vadd.f32 %v2241_v13, %v2129_v15 }
 0x170   : > { %1748 = vst.msk [vmem:[%s2958_s21 + $0x60] sm:$0xff] %vm1735_vm1, %v1715_v9  ;;  %v1718_v34 = vmax.f32 %v1686_v7, 0.0  ;;  %v1650_v33 = vmul.f32 %v2934_v47, %v1571_v10  ;;  %v1563_v53 = vadd.f32 %v1562_v8, %v1402_v55  ;;  %v1684_v30 = vadd.f32 %v2942_v39, %v1645_v17 }
 0x171   : > { %v3087_v5 = vpop.f32.mrf.mxu1  ;;  %v2313_v45 = vpop.f32.mrf.mxu0  ;;  %v2123_v9 = vadd.f32 %v3220_v42, %v3219_v20  ;;  %v2244_v2 = vadd.f32 %v2243_v16, %v2242_v24 }
 0x172   : > { %1751 = vst.msk [vmem:[%s2958_s21 + $0x78] sm:$0xff] %vm1735_vm1, %v1718_v34  ;;  %v1689_v61 = vadd.f32 %v2942_v39, %v1650_v33  ;;  %v1648_v35 = vmul.f32 %v2934_v47, %v1563_v53  ;;  %v1574_v21 = vadd.f32 %v2313_v45, %v1413_v12  ;;  %v1716_v19 = vmax.f32 %v1684_v30, 0.0  ;;  %v3221_v33 = vld [vmem:[#allocation4_spill] sm:$0xff] }
 0x173   : > { %v2246_v43 = vpop.f32.mrf.mxu1  ;;  %v1565_v22 = vpop.f32.mrf.mxu0  ;;  %v1421_v6 = vadd.f32 %v2235_v28, %v2123_v9 }
 0x174   : > { %v1721_v0 = vmax.f32 %v1689_v61, 0.0  ;;  %v1687_v49 = vadd.f32 %v2942_v39, %v1648_v35  ;;  %v1651_v37 = vmul.f32 %v2934_v47, %v1574_v21  ;;  %1749 = vst.msk [vmem:[%s2958_s21 + $0x68] sm:$0xff] %vm1735_vm1, %v1716_v19  ;;  %v1566_v63 = vadd.f32 %v1565_v22, %v1405_v48  ;;  %v3223_v48 = vld [vmem:[#allocation5_spill] sm:$0xff] }
 0x175   : > { %v2248_v62 = vpop.f32.mrf.mxu1  ;;  %v2316_v50 = vpop.f32.mrf.mxu0  ;;  %v1434_v61 = vadd.f32 %v2244_v2, %v3222_v51  ;;  %v2247_v35 = vadd.f32 %v2246_v43, %v3087_v5 }
 0x176   : > { %1754 = vst.msk [vmem:[%s2958_s21 + $0x90] sm:$0xff] %vm1735_vm1, %v1721_v0  ;;  %v1719_v23 = vmax.f32 %v1687_v49, 0.0  ;;  %v1690_v32 = vadd.f32 %v2942_v39, %v1651_v37  ;;  %v1587_v36 = vadd.f32 %v2316_v50, %v1426_v4  ;;  %v1649_v26 = vmul.f32 %v2934_v47, %v1566_v63  ;;  %v3224_v63 = vld [vmem:[#allocation3_spill] sm:$0xff] }
 0x177   : > { %v2249_v57 = vpop.f32.mrf.mxu1  ;;  %v1578_v52 = vpop.f32.mrf.mxu0 }
 0x178   : > { %1752 = vst.msk [vmem:[%s2958_s21 + $0x80] sm:$0xff] %vm1735_vm1, %v1719_v23  ;;  %v1722_v44 = vmax.f32 %v1690_v32, 0.0  ;;  %v1654_v40 = vmul.f32 %v2934_v47, %v1587_v36  ;;  %v2250_v1 = vadd.f32 %v2249_v57, %v2248_v62  ;;  %v1579_v27 = vadd.f32 %v1578_v52, %v1418_v46 }
 0x179   : > { %v1688_v7 = vadd.f32 %v2942_v39, %v1649_v26  ;;  %v2251_v10 = vpop.f32.mrf.mxu1  ;;  %v2317_v31 = vpop.f32.mrf.mxu0  ;;  %v1437_v62 = vadd.f32 %v2247_v35, %v3224_v63 }
 0x17a   : > { %1755 = vst.msk [vmem:[%s2958_s21 + $0x98] sm:$0xff] %vm1735_vm1, %v1722_v44  ;;  %v1693_v55 = vadd.f32 %v2942_v39, %v1654_v40  ;;  %v1652_v11 = vmul.f32 %v2934_v47, %v1579_v27  ;;  %v1590_v17 = vadd.f32 %v2317_v31, %v1429_v56  ;;  %v1442_v53 = vadd.f32 %v2250_v1, %v3221_v33  ;;  %v3225_v44 = vld [vmem:[#allocation6_spill] sm:$0xff] }
 0x17b   : > { %v1720_v8 = vmax.f32 %v1688_v7, 0.0  ;;  %v2252_v12 = vpop.f32.mrf.mxu1  ;;  %v1581_v34 = vpop.f32.mrf.mxu0 }
 0x17c   : > { %v1725_v60 = vmax.f32 %v1693_v55, 0.0  ;;  %v1691_v38 = vadd.f32 %v2942_v39, %v1652_v11  ;;  %v1655_v24 = vmul.f32 %v2934_v47, %v1590_v17  ;;  %v2253_v16 = vadd.f32 %v2252_v12, %v2251_v10  ;;  %v3226_v55 = vld [vmem:[#allocation8_spill] sm:$0xff] }
 0x17d   : > { %1753 = vst.msk [vmem:[%s2958_s21 + $0x88] sm:$0xff] %vm1735_vm1, %v1720_v8  ;;  %v1582_v41 = vadd.f32 %v1581_v34, %v1421_v6  ;;  %v2254_v29 = vpop.f32.mrf.mxu1  ;;  %v2320_v58 = vpop.f32.mrf.mxu0  ;;  %v3227_v8 = vld [vmem:[#allocation7_spill] sm:$0xff] }
 0x17e   : > { %1758 = vst.msk [vmem:[%s2958_s21 + $0xb0] sm:$0xff] %vm1735_vm1, %v1725_v60  ;;  %v1723_v59 = vmax.f32 %v1691_v38, 0.0  ;;  %v1694_v30 = vadd.f32 %v2942_v39, %v1655_v24  ;;  %v1603_v45 = vadd.f32 %v2320_v58, %v1442_v53  ;;  %v1445_v22 = vadd.f32 %v2253_v16, %v3223_v48 }
 0x17f   : > { %v1653_v21 = vmul.f32 %v2934_v47, %v1582_v41  ;;  %v2255_v14 = vpop.f32.mrf.mxu1  ;;  %v1594_v18 = vpop.f32.mrf.mxu0 }
 0x180   : > { %1756 = vst.msk [vmem:[%s2958_s21 + $0xa0] sm:$0xff] %vm1735_vm1, %v1723_v59  ;;  %v1726_v25 = vmax.f32 %v1694_v30, 0.0  ;;  %v1658_v13 = vmul.f32 %v2934_v47, %v1603_v45  ;;  %v1595_v19 = vadd.f32 %v1594_v18, %v1434_v61  ;;  %v2256_v43 = vadd.f32 %v2255_v14, %v2254_v29  ;;  %v3228_v29 = vld [vmem:[#allocation9_spill] sm:$0xff] }
 0x181   : > { %v1692_v0 = vadd.f32 %v2942_v39, %v1653_v21  ;;  %v2257_v49 = vpop.f32.mrf.mxu1  ;;  %v2321_v37 = vpop.f32.mrf.mxu0 }
 0x182   : > { %1759 = vst.msk [vmem:[%s2958_s21 + $0xb8] sm:$0xff] %vm1735_vm1, %v1726_v25  ;;  %v1697_v5 = vadd.f32 %v2942_v39, %v1658_v13  ;;  %v1656_v4 = vmul.f32 %v2934_v47, %v1595_v19  ;;  %v1606_v3 = vadd.f32 %v2321_v37, %v1445_v22  ;;  %v1450_v40 = vadd.f32 %v2256_v43, %v3225_v44 }
 0x183   : > { %v1724_v54 = vmax.f32 %v1692_v0, 0.0  ;;  %v2258_v15 = vpop.f32.mrf.mxu1  ;;  %v1597_v50 = vpop.f32.mrf.mxu0 }
 0x184   : > { %v1729_v23 = vmax.f32 %v1697_v5, 0.0  ;;  %v1695_v32 = vadd.f32 %v2942_v39, %v1656_v4  ;;  %v1659_v36 = vmul.f32 %v2934_v47, %v1606_v3  ;;  %v1598_v46 = vadd.f32 %v1597_v50, %v1437_v62 }
 0x185   : > { %1757 = vst.msk [vmem:[%s2958_s21 + $0xa8] sm:$0xff] %vm1735_vm1, %v1724_v54  ;;  %v2260_v28 = vpop.f32.mrf.mxu1  ;;  %v2324_v26 = vpop.f32.mrf.mxu0  ;;  %v2259_v56 = vadd.f32 %v2258_v15, %v2257_v49 }
 0x186   : > { %1762 = vst.msk [vmem:[%s2958_s21 + $0xd0] sm:$0xff] %vm1735_vm1, %v1729_v23  ;;  %v1727_v57 = vmax.f32 %v1695_v32, 0.0  ;;  %v1698_v52 = vadd.f32 %v2942_v39, %v1659_v36  ;;  %v1657_v1 = vmul.f32 %v2934_v47, %v1598_v46 }
 0x187   : > { %v2261_v27 = vpop.f32.mrf.mxu1  ;;  %v1610_v20 = vpop.f32.mrf.mxu0  ;;  %v1453_v12 = vadd.f32 %v2259_v56, %v3227_v8 }
 0x188   : > { %1760 = vst.msk [vmem:[%s2958_s21 + $0xc0] sm:$0xff] %vm1735_vm1, %v1727_v57  ;;  %v1730_v42 = vmax.f32 %v1698_v52, 0.0  ;;  %v2262_v9 = vadd.f32 %v2261_v27, %v2260_v28  ;;  %v1611_v7 = vadd.f32 %v1610_v20, %v1450_v40  ;;  %v1696_v10 = vadd.f32 %v2942_v39, %v1657_v1 }
 0x189   : > { %v2263_v31 = vpop.f32.mrf.mxu1  ;;  %v2325_v2 = vpop.f32.mrf.mxu0 }
 0x18a   : > { %1763 = vst.msk [vmem:[%s2958_s21 + $0xd8] sm:$0xff] %vm1735_vm1, %v1730_v42  ;;  %v1458_v11 = vadd.f32 %v2262_v9, %v3226_v55  ;;  %v1660_v17 = vmul.f32 %v2934_v47, %v1611_v7  ;;  %v1728_v6 = vmax.f32 %v1696_v10, 0.0 }
 0x18b   : > { %v2264_v34 = vpop.f32.mrf.mxu1  ;;  %v1613_v33 = vpop.f32.mrf.mxu0 }
 0x18c   : > { %v1619_v53 = vadd.f32 %v2324_v26, %v1458_v11  ;;  %v1699_v60 = vadd.f32 %v2942_v39, %v1660_v17  ;;  %v2265_v38 = vadd.f32 %v2264_v34, %v2263_v31  ;;  %v1614_v24 = vadd.f32 %v1613_v33, %v1453_v12  ;;  %1761 = vst.msk [vmem:[%s2958_s21 + $0xc8] sm:$0xff] %vm1735_vm1, %v1728_v6 }
 0x18e   : > { %v1662_v16 = vmul.f32 %v2934_v47, %v1619_v53  ;;  %v1731_v41 = vmax.f32 %v1699_v60, 0.0  ;;  %v1461_v58 = vadd.f32 %v2265_v38, %v3228_v29  ;;  %v1661_v59 = vmul.f32 %v2934_v47, %v1614_v24 }
 0x190   : > { %v1701_v30 = vadd.f32 %v2942_v39, %v1662_v16  ;;  %1764 = vst.msk [vmem:[%s2958_s21 + $0xe0] sm:$0xff] %vm1735_vm1, %v1731_v41  ;;  %v1622_v45 = vadd.f32 %v2325_v2, %v1461_v58  ;;  %v1700_v51 = vadd.f32 %v2942_v39, %v1661_v59 }
 0x192   : > { %v1733_v61 = vmax.f32 %v1701_v30, 0.0  ;;  %v1663_v35 = vmul.f32 %v2934_v47, %v1622_v45  ;;  %v1732_v21 = vmax.f32 %v1700_v51, 0.0 }
 0x194   : > { %1766 = vst.msk [vmem:[%s2958_s21 + $0xf0] sm:$0xff] %vm1735_vm1, %v1733_v61  ;;  %v1702_v14 = vadd.f32 %v2942_v39, %v1663_v35  ;;  %1765 = vst.msk [vmem:[%s2958_s21 + $0xe8] sm:$0xff] %vm1735_vm1, %v1732_v21 }
 0x196   : > { %v1734_v18 = vmax.f32 %v1702_v14, 0.0 }
 0x198   : > { %1767 = vst.msk [vmem:[%s2958_s21 + $0xf8] sm:$0xff] %vm1735_vm1, %v1734_v18 }
 0x199 PF: > { %s14_s17 = sadd.s32 1, %s2537_s17   ;;  %s3229_s15 = smov %s2533_s16 }
 0x19a   : > { %p11_p5 = scmp.ge.s32.totalorder %s14_s17, 4   ;;  %s3230_s16 = smov %s3232_s18 }
 0x19c   :  { %13 = sbr.rel (!%p11_p5) target bundleno = 2 (0x2), region = 75 }

// kernel: squeeze.3
= control target key start
LH: loop header
LB: loop body
LE: loop exit
PB: predicated region body
PF: predicated region fallthrough
CT: control target
= control target key end

     0   :  { %s8_s6 = smov 3  ;;  %s11_s7 = smov 12  ;;  %vm13_vm0 = vcmask 1043458   ;;  %vm3_vm1 = vcmask 130048   ;;  %vm17_vm2 = vcmask 1048448   ;;  %vm31_vm3 = vcmask 917248   ;;  %s216_s0 = inlined_call_operand.vmem [shape: f32[2,16,16], index: 0, kind: input, shape index: {}]   ;;  %s217_s1 = inlined_call_operand.vmem [shape: f32[2,256], index: 1, kind: output, shape index: {}]  }
   0x1   :  { %v119_v0 = vld [vmem:[%s216_s0 + $0x7] ss:$16 sm:%s8_s6]   ;;  %v120_v1 = vld [vmem:[%s216_s0 - $0x11] ss:$16 sm:%s11_s7]   ;;  %s36_s12 = smov 3  ;;  %s39_s15 = smov 12 }
   0x2   :  { %v14_v2 = vsel %vm13_vm0, %v120_v1, %v119_v0  ;;  %v123_v3 = vld [vmem:[%s216_s0 + $0x5] ss:$16 sm:%s36_s12]   ;;  %s141_s16 = smov 112   ;;  %v124_v4 = vld [vmem:[%s216_s0 - $0x13] ss:$16 sm:%s39_s15]   ;;  %s22_s19 = smov 3 }
   0x3   :  { %15 = vrot.lane.b32.xlu0 %v14_v2, %s141_s16  ;;  %s25_s20 = smov 12  ;;  %v42_v5 = vsel %vm13_vm0, %v124_v4, %v123_v3  ;;  %v121_v6 = vld [vmem:[%s216_s0 + $0x6] ss:$16 sm:%s22_s19]   ;;  %s50_s25 = smov 3  ;;  %vm45_vm4 = vcmask 786048   ;;  %vm59_vm5 = vcmask 654848  }
   0x4   :  { %v122_v7 = vld [vmem:[%s216_s0 - $0x12] ss:$16 sm:%s25_s20]   ;;  %s142_s26 = smov 80   ;;  %v125_v9 = vld [vmem:[%s216_s0 + $0x4] ss:$16 sm:%s50_s25]   ;;  %s53_s29 = smov 12 }
   0x5   :  { %43 = vrot.lane.b32.xlu1 %v42_v5, %s142_s26  ;;  %v28_v8 = vsel %vm13_vm0, %v122_v7, %v121_v6  ;;  %v126_v10 = vld [vmem:[%s216_s0 - $0x14] ss:$16 sm:%s53_s29]   ;;  %s64_s3 = smov 3  ;;  %s67_s4 = smov 12  ;;  %vm73_vm6 = vcmask 523648   ;;  %vm87_vm7 = vcmask 392448  }
   0x6   :  { %s143_s5 = smov 96   ;;  %v56_v11 = vsel %vm13_vm0, %v126_v10, %v125_v9  ;;  %v127_v12 = vld [vmem:[%s216_s0 + $0x3] ss:$16 sm:%s64_s3]   ;;  %s78_s8 = smov 3  ;;  %v128_v13 = vld [vmem:[%s216_s0 - $0x15] ss:$16 sm:%s67_s4]  }
   0x7   :  { %29 = vrot.lane.b32.xlu0 %v28_v8, %s143_s5  ;;  %v129_v14 = vld [vmem:[%s216_s0 + $0x2] ss:$16 sm:%s78_s8]   ;;  %s81_s13 = smov 12  ;;  %s144_s14 = smov 64   ;;  %v70_v15 = vsel %vm13_vm0, %v128_v13, %v127_v12  ;;  %vm101_vm8 = vcmask 261248  }
   0x8   :  { %v130_v16 = vld [vmem:[%s216_s0 - $0x16] ss:$16 sm:%s81_s13]   ;;  %s92_s17 = smov 3  ;;  %s95_s18 = smov 12 }
   0x9   :  { %57 = vrot.lane.b32.xlu1 %v56_v11, %s144_s14  ;;  %v84_v17 = vsel %vm13_vm0, %v130_v16, %v129_v14  ;;  %v131_v18 = vld [vmem:[%s216_s0 + $0x1] ss:$16 sm:%s92_s17]   ;;  %s145_s23 = smov 48   ;;  %v2_v20 = vld [vmem:[%s216_s0] ss:$8 sm:$0xf]  }
   0xa   :  { %v132_v19 = vld [vmem:[%s216_s0 - $0x17] ss:$16 sm:%s95_s18]   ;;  %4 = vst.msk [vmem:[#allocation0] ss:$8 sm:$0x3] %vm3_vm1, %v2_v20   ;;  %s146_s0 = smov 32  }
   0xb   :  { %71 = vrot.lane.b32.xlu0 %v70_v15, %s145_s23  ;;  %v98_v21 = vsel %vm13_vm0, %v132_v19, %v131_v18  ;;  %6 = vst.msk [vmem:[#allocation0 - $0xf] ss:$8 sm:$0xc] %vm3_vm1, %v2_v20   ;;  %s147_s26 = smov 16  }
   0xd   :  { %85 = vrot.lane.b32.xlu1 %v84_v17, %s146_s0 }
   0xf   :  { %99 = vrot.lane.b32.xlu0 %v98_v21, %s147_s26 }
  0x75   :  { %v16_v22 = vpop.permute.xlu0 %15  }
  0x76   :  { %18 = vst.msk [vmem:[#allocation0] sm:$0x3] %vm17_vm2, %v16_v22   ;;  %20 = vst.msk [vmem:[#allocation0 + $0x6] sm:$0xc] %vm17_vm2, %v16_v22  }
  0x77   :  { %v44_v23 = vpop.permute.xlu1 %43  }
  0x79   :  { %v30_v24 = vpop.permute.xlu0 %29  }
  0x7a   :  { %32 = vst.msk [vmem:[#allocation0] sm:$0x3] %vm31_vm3, %v30_v24   ;;  %34 = vst.msk [vmem:[#allocation0 + $0x6] sm:$0xc] %vm31_vm3, %v30_v24  }
  0x7b   :  { %46 = vst.msk [vmem:[#allocation0] sm:$0x3] %vm45_vm4, %v44_v23   ;;  %48 = vst.msk [vmem:[#allocation0 + $0x6] sm:$0xc] %vm45_vm4, %v44_v23   ;;  %v58_v25 = vpop.permute.xlu1 %57  }
  0x7c   :  { %60 = vst.msk [vmem:[#allocation0] sm:$0x3] %vm59_vm5, %v58_v25   ;;  %62 = vst.msk [vmem:[#allocation0 + $0x6] sm:$0xc] %vm59_vm5, %v58_v25  }
  0x7d   :  { %v72_v26 = vpop.permute.xlu0 %71  }
  0x7e   :  { %74 = vst.msk [vmem:[#allocation0] sm:$0x3] %vm73_vm6, %v72_v26   ;;  %76 = vst.msk [vmem:[#allocation0 + $0x6] sm:$0xc] %vm73_vm6, %v72_v26  }
  0x7f   :  { %v86_v27 = vpop.permute.xlu1 %85  }
  0x80   :  { %88 = vst.msk [vmem:[#allocation0] sm:$0x3] %vm87_vm7, %v86_v27   ;;  %90 = vst.msk [vmem:[#allocation0 + $0x6] sm:$0xc] %vm87_vm7, %v86_v27  }
  0x81   :  { %v100_v28 = vpop.permute.xlu0 %99  }
  0x82   :  { %102 = vst.msk [vmem:[#allocation0] sm:$0x3] %vm101_vm8, %v100_v28   ;;  %104 = vst.msk [vmem:[#allocation0 + $0x6] sm:$0xc] %vm101_vm8, %v100_v28  }
  0x89   :  { %v109_v29 = vld [vmem:[#allocation0] sm:$0x3]  ;;  %v114_v30 = vld [vmem:[#allocation0 + $0x8] sm:$0x3] }
  0x8a   :  { %112 = vst [vmem:[%s217_s1] sm:$0x3] %v109_v29  ;;  %133 = vst [vmem:[%s217_s1 + $0x2] sm:$0x3] %v114_v30 }

// kernel: _lambda_.38
= control target key start
LH: loop header
LB: loop body
LE: loop exit
PB: predicated region body
PF: predicated region fallthrough
CT: control target
= control target key end

     0   :  { %s1833_s15 = smov 0   ;;  %s1835_s16 = smov 0   ;;  %s2172_s0 = inlined_call_operand.vmem [shape: bf16[512,288], index: 0, kind: input, shape index: {}]   ;;  %s2173_s1 = inlined_call_operand.vmem [shape: bf16[288,2], index: 1, kind: input, shape index: {}]   ;;  %s2174_s2 = inlined_call_operand.vmem [shape: f32[1,2], index: 2, kind: input, shape index: {}]   ;;  %s2175_s3 = inlined_call_operand.vmem [shape: f32[1,2], index: 3, kind: input, shape index: {}]   ;;  %s2176_s4 = inlined_call_operand.vmem [shape: f32[512,2], index: 4, kind: output, shape index: {}]  }
   0x1   :  { %s1837_s17 = smov 0  }
   0x2 LB: > { %s33_s18 = sadd.s32 1, %s1802_s16  ;;  %p1404_p0 = scmp.ge.s32.totalorder %s1806_s17, 1  ;;  %s1806_s17 = sphi %s1837_s17, %s14_s17   ;;  %s1802_s16 = sphi %s1835_s16, %s2178_s16   ;;  %s1798_s15 = sphi %s1833_s15, %s2177_s15  }
   0x3   : > { %p35_p1 = scmp.ge.s32.totalorder %s33_s18, 2  ;;  %p224_p2 = scmp.lt.s32.totalorder %s1806_s17, 3 }
   0x5   : > { %s2180_s18 = smov (%p35_p1, %s33_s18), 0  ;;  %p225_p3 = pnand %p1404_p0, %p224_p2 }
   0x6   : > { %s1405_s21 = sshll.u32 (!%p225_p3), %s1798_s15, 5 }
   0x7   : > { %228 = sbr.rel (%p225_p3) target bundleno = 343 (0x157), region = 36  ;;  %p274_p4 = scmp.lt.s32.totalorder (!%p225_p3), %s1405_s21, 63 }
   0xc   : > { %v1702_v0 = vld [vmem:[%s2173_s1 + $0x78] sm:$0xff]   ;;  %v1704_v2 = vld [vmem:[%s2173_s1 + $0x70] sm:$0xff]   ;;  %v1706_v4 = vld [vmem:[%s2173_s1 + $0x68] sm:$0xff]   ;;  %s2182_s21 = smov (!%p274_p4, %s1405_s21), 63  ;;  %vm757_vm0 = vcmask 261120   ;;  %vm1238_vm1 = vcmask 15360  }
   0xd   : > { %v1703_v1 = vld [vmem:[%s2173_s1 + $0x38] sm:$0xff]   ;;  %1495 = vmatprep.subr.bf16.mxu0 %v1702_v0  ;;  %1661 = vmatprep.subr.bf16.mxu1 %v1702_v0  ;;  %v1705_v3 = vld [vmem:[%s2173_s1 + $0x30] sm:$0xff]   ;;  %v1707_v5 = vld [vmem:[%s2173_s1 + $0x28] sm:$0xff]   ;;  %s1677_s8 = smul.u32 12, %s2182_s21  ;;  %s1408_s19 = sshll.u32 %s2182_s21, 3 }
   0xe   : > { %1496 = vmatpush3.bf16.msra.mxu0 %v1703_v1  ;;  %1669 = vmatpush3.bf16.msra.mxu1 %v1703_v1  ;;  %v1708_v6 = vld [vmem:[%s2173_s1 + $0x60] sm:$0xff]   ;;  %v1710_v8 = vld [vmem:[%s2173_s1 + $0x58] sm:$0xff]   ;;  %v1712_v10 = vld [vmem:[%s2173_s1 + $0x50] sm:$0xff]   ;;  %s2018_s23 = scalar_lea.vmem %s2176_s4, %s1408_s19 }
   0xf   : > { %1497 = vmatprep.subr.bf16.mxu0 %v1704_v2  ;;  %1662 = vmatprep.subr.bf16.mxu1 %v1704_v2  ;;  %v1709_v7 = vld [vmem:[%s2173_s1 + $0x20] sm:$0xff]   ;;  %s1884_s15 = scalar_lea.vmem %s2172_s0, %s1677_s8  ;;  %v1711_v9 = vld [vmem:[%s2173_s1 + $0x18] sm:$0xff]   ;;  %v1713_v13 = vld [vmem:[%s2173_s1 + $0x10] sm:$0xff]  }
  0x10   : > { %v1720_v11 = vld [vmem:[%s1884_s15 + $0x4] ss:$12 sps:$4 sm:$0xff]   ;;  %v1714_v14 = vld [vmem:[%s2173_s1 + $0x48] sm:$0xff]   ;;  %v1731_v26 = vld [vmem:[%s1884_s15 + $0x34] ss:$12 sps:$4 sm:$0xff]  }
  0x11   : > { %v1723_v12 = vld [vmem:[%s1884_s15 + $0x124] ss:$12 sps:$4 sm:$0xff]   ;;  %838 = vmatprep.mubr.bf16.mxu0 %v1720_v11  ;;  %v1715_v15 = vld [vmem:[%s2173_s1 + $0x8] sm:$0xff]   ;;  %v1733_v27 = vld [vmem:[%s1884_s15 + $0x154] ss:$12 sps:$4 sm:$0xff]  }
  0x12   : > { %1498 = vmatpush3.bf16.msra.mxu0 %v1705_v3  ;;  %1670 = vmatpush3.bf16.msra.mxu1 %v1705_v3  ;;  %v1716_v16 = vld [vmem:[%s2173_s1 + $0x40] sm:$0xff]   ;;  %v1724_v18 = vld [vmem:[%s2173_s1 + $0x88] sm:$0xff]   ;;  %v1735_v28 = vld [vmem:[%s1884_s15 + $0x30] ss:$12 sps:$4 sm:$0xff]  }
  0x13   : > { %1499 = vmatprep.subr.bf16.mxu0 %v1706_v4  ;;  %1663 = vmatprep.subr.bf16.mxu1 %v1706_v4  ;;  %v1717_v17 = vld [vmem:[%s2173_s1] sm:$0xff]   ;;  %v1725_v21 = vld [vmem:[%s1884_s15 + $0x1c] ss:$12 sps:$4 sm:$0xff]   ;;  %v1738_v30 = vld [vmem:[%s1884_s15 + $0x4c] ss:$12 sps:$4 sm:$0xff]  }
  0x14   : > { %934 = vmatprep.mubr.bf16.mxu1 %v1723_v12  ;;  %v1718_v19 = vld [vmem:[%s1884_s15] ss:$12 sps:$4 sm:$0xff]   ;;  %v1727_v22 = vld [vmem:[%s1884_s15 + $0x13c] ss:$12 sps:$4 sm:$0xff]   ;;  %v1729_v24 = vld [vmem:[%s1884_s15 + $0x18] ss:$12 sps:$4 sm:$0xff]  }
  0x15   : > { %v1721_v20 = vld [vmem:[%s1884_s15 + $0x120] ss:$12 sps:$4 sm:$0xff]   ;;  %v1730_v25 = vld [vmem:[%s1884_s15 + $0x138] ss:$12 sps:$4 sm:$0xff]   ;;  %v1736_v29 = vld [vmem:[%s1884_s15 + $0x150] ss:$12 sps:$4 sm:$0xff]  }
  0x16   : > { %1500 = vmatpush3.bf16.msra.mxu0 %v1707_v5  ;;  %1671 = vmatpush3.bf16.msra.mxu1 %v1707_v5  ;;  %v1737_v23 = vld [vmem:[%s2173_s1 + $0x80] sm:$0xff]   ;;  %v1740_v31 = vld [vmem:[%s1884_s15 + $0x16c] ss:$12 sps:$4 sm:$0xff]   ;;  %v1742_v32 = vld [vmem:[%s1884_s15 + $0x48] ss:$12 sps:$4 sm:$0xff]  }
  0x17   : > { %1501 = vmatprep.subr.bf16.mxu0 %v1708_v6  ;;  %1664 = vmatprep.subr.bf16.mxu1 %v1708_v6  ;;  %v1743_v33 = vld [vmem:[%s1884_s15 + $0x168] ss:$12 sps:$4 sm:$0xff]   ;;  %v1744_v34 = vld [vmem:[%s1884_s15 + $0x64] ss:$12 sps:$4 sm:$0xff]   ;;  %v1747_v36 = vld [vmem:[%s1884_s15 + $0x60] ss:$12 sps:$4 sm:$0xff]  }
  0x18   : > { %v1746_v35 = vld [vmem:[%s1884_s15 + $0x8] ss:$12 sps:$4 sm:$0xff]   ;;  %v1748_v37 = vld [vmem:[%s1884_s15 + $0x20] ss:$12 sps:$4 sm:$0xff]   ;;  %v1751_v39 = vld [vmem:[%s1884_s15 + $0x38] ss:$12 sps:$4 sm:$0xff]  }
  0x19   : > { %v1749_v38 = vld [vmem:[%s1884_s15 + $0x7c] ss:$12 sps:$4 sm:$0xff]   ;;  %v1752_v40 = vld [vmem:[%s1884_s15 + $0x78] ss:$12 sps:$4 sm:$0xff]   ;;  %v1754_v42 = vld [vmem:[%s1884_s15 + $0x94] ss:$12 sps:$4 sm:$0xff]  }
  0x1a   : > { %1502 = vmatpush3.bf16.msra.mxu0 %v1709_v7  ;;  %1672 = vmatpush3.bf16.msra.mxu1 %v1709_v7  ;;  %v1753_v41 = vld [vmem:[%s1884_s15 + $0x50] ss:$12 sps:$4 sm:$0xff]   ;;  %v1756_v43 = vld [vmem:[%s1884_s15 + $0x68] ss:$12 sps:$4 sm:$0xff]   ;;  %v1758_v45 = vld [vmem:[%s1884_s15 + $0x80] ss:$12 sps:$4 sm:$0xff]  }
  0x1b   : > { %1503 = vmatprep.subr.bf16.mxu0 %v1710_v8  ;;  %1665 = vmatprep.subr.bf16.mxu1 %v1710_v8  ;;  %v1757_v44 = vld [vmem:[%s1884_s15 + $0x90] ss:$12 sps:$4 sm:$0xff]   ;;  %v1759_v46 = vld [vmem:[%s1884_s15 + $0xac] ss:$12 sps:$4 sm:$0xff]   ;;  %v1762_v48 = vld [vmem:[%s1884_s15 + $0xa8] ss:$12 sps:$4 sm:$0xff]  }
  0x1c   : > { %v1761_v47 = vld [vmem:[%s1884_s15 + $0x98] ss:$12 sps:$4 sm:$0xff]   ;;  %v1763_v49 = vld [vmem:[%s1884_s15 + $0xb0] ss:$12 sps:$4 sm:$0xff]   ;;  %v1766_v51 = vld [vmem:[%s1884_s15 + $0xc8] ss:$12 sps:$4 sm:$0xff]  }
  0x1d   : > { %v1764_v50 = vld [vmem:[%s1884_s15 + $0xc4] ss:$12 sps:$4 sm:$0xff]   ;;  %v1767_v52 = vld [vmem:[%s1884_s15 + $0xc0] ss:$12 sps:$4 sm:$0xff]   ;;  %v1769_v54 = vld [vmem:[%s1884_s15 + $0xdc] ss:$12 sps:$4 sm:$0xff]  }
  0x1e   : > { %1504 = vmatpush3.bf16.msra.mxu0 %v1711_v9  ;;  %1673 = vmatpush3.bf16.msra.mxu1 %v1711_v9  ;;  %v1768_v53 = vld [vmem:[%s1884_s15 + $0xe0] ss:$12 sps:$4 sm:$0xff]   ;;  %v1771_v55 = vld [vmem:[%s1884_s15 + $0xf8] ss:$12 sps:$4 sm:$0xff]   ;;  %v1773_v57 = vld [vmem:[%s1884_s15 + $0x110] ss:$12 sps:$4 sm:$0xff]  }
  0x1f   : > { %1505 = vmatprep.subr.bf16.mxu0 %v1712_v10  ;;  %1666 = vmatprep.subr.bf16.mxu1 %v1712_v10  ;;  %v1772_v56 = vld [vmem:[%s1884_s15 + $0xd8] ss:$12 sps:$4 sm:$0xff]   ;;  %v1774_v58 = vld [vmem:[%s1884_s15 + $0xf4] ss:$12 sps:$4 sm:$0xff]   ;;  %v1777_v60 = vld [vmem:[%s1884_s15 + $0xf0] ss:$12 sps:$4 sm:$0xff]  }
  0x20   : > { %v1776_v59 = vld [vmem:[%s1884_s15 + $0x128] ss:$12 sps:$4 sm:$0xff]   ;;  %v1778_v61 = vld [vmem:[%s1884_s15 + $0x140] ss:$12 sps:$4 sm:$0xff]   ;;  %v1781_v63 = vld [vmem:[%s1884_s15 + $0x158] ss:$12 sps:$4 sm:$0xff]  }
  0x21   : > { %v1779_v62 = vld [vmem:[%s1884_s15 + $0x10c] ss:$12 sps:$4 sm:$0xff]   ;;  %v1782_v0 = vld [vmem:[%s1884_s15 + $0x108] ss:$12 sps:$4 sm:$0xff]   ;;  %v1783_v1 = vld [vmem:[%s1884_s15 + $0x170] ss:$12 sps:$4 sm:$0xff]  }
  0x22   : > { %1506 = vmatpush3.bf16.msra.mxu0 %v1713_v13  ;;  %1674 = vmatpush3.bf16.msra.mxu1 %v1713_v13 }
  0x23   : > { %1507 = vmatprep.subr.bf16.mxu0 %v1714_v14  ;;  %1667 = vmatprep.subr.bf16.mxu1 %v1714_v14 }
  0x26   : > { %1508 = vmatpush3.bf16.msra.mxu0 %v1715_v15  ;;  %1675 = vmatpush3.bf16.msra.mxu1 %v1715_v15 }
  0x27   : > { %1509 = vmatprep.subr.bf16.mxu0 %v1716_v16  ;;  %1668 = vmatprep.subr.bf16.mxu1 %v1716_v16 }
  0x2a   : > { %1510 = vmatpush3.bf16.msra.mxu0 %v1717_v17  ;;  %1676 = vmatpush3.bf16.msra.mxu1 %v1717_v17 }
  0x2b   : > { %1625 = vmatprep.subr.bf16.mxu1 %v1724_v18 }
  0x2d   : > { %839 = vmatmul.mubr.bf16.vlgmr.msra.gmra.mxu0 %v1718_v19  ;;  %935 = vmatmul.mubr.bf16.vlgmr.msra.gmra.mxu1 %v1721_v20 }
  0x2e   : > { %1626 = vmatpush3.bf16.msra.mxu1 %v1724_v18  ;;  %846 = vmatprep.mubr.bf16.mxu0 %v1725_v21 }
  0x2f   : > { %942 = vmatprep.mubr.bf16.mxu1 %v1727_v22  ;;  %1627 = vmatprep.subr.bf16.mxu1 %v1737_v23 }
  0x32   : > { %1628 = vmatpush3.bf16.msra.mxu1 %v1737_v23 }
  0x35   : > { %847 = vmatmul.mubr.bf16.gmra.mxu0 %v1729_v24  ;;  %943 = vmatmul.mubr.bf16.gmra.mxu1 %v1730_v25 }
  0x36   : > { %854 = vmatprep.mubr.bf16.mxu0 %v1731_v26  ;;  %950 = vmatprep.mubr.bf16.mxu1 %v1733_v27 }
  0x3d   : > { %855 = vmatmul.mubr.bf16.gmra.mxu0 %v1735_v28  ;;  %951 = vmatmul.mubr.bf16.gmra.mxu1 %v1736_v29 }
  0x3e   : > { %862 = vmatprep.mubr.bf16.mxu0 %v1738_v30  ;;  %958 = vmatprep.mubr.bf16.mxu1 %v1740_v31 }
  0x45   : > { %863 = vmatmul.mubr.bf16.gmra.mxu0 %v1742_v32  ;;  %959 = vmatmul.mubr.bf16.gmra.mxu1 %v1743_v33 }
  0x46   : > { %870 = vmatprep.mubr.bf16.mxu0 %v1744_v34  ;;  %1629 = vmatprep.mubr.msk.bf16.mxu1 %vm757_vm0, %v1746_v35 }
  0x4d   : > { %871 = vmatmul.mubr.bf16.gmra.mxu0 %v1747_v36  ;;  %1630 = vmatmul.mubr.msk.bf16.vlgmr.msra.gmra.mxu1 %vm757_vm0, %v1748_v37 }
  0x4e   : > { %878 = vmatprep.mubr.bf16.mxu0 %v1749_v38  ;;  %1633 = vmatprep.mubr.msk.bf16.mxu1 %vm757_vm0, %v1751_v39 }
  0x55   : > { %879 = vmatmul.mubr.bf16.gmra.mxu0 %v1752_v40  ;;  %1634 = vmatmul.mubr.msk.bf16.gmra.mxu1 %vm757_vm0, %v1753_v41 }
  0x56   : > { %886 = vmatprep.mubr.bf16.mxu0 %v1754_v42  ;;  %1637 = vmatprep.mubr.msk.bf16.mxu1 %vm757_vm0, %v1756_v43  ;;  %v2002_v43 = vld [vmem:[%s2174_s2] ss:$0 sm:$0xff] }
  0x5d   : > { %887 = vmatmul.mubr.bf16.gmra.mxu0 %v1757_v44  ;;  %1638 = vmatmul.mubr.msk.bf16.gmra.mxu1 %vm757_vm0, %v1758_v45 }
  0x5e   : > { %894 = vmatprep.mubr.bf16.mxu0 %v1759_v46  ;;  %1641 = vmatprep.mubr.msk.bf16.mxu1 %vm757_vm0, %v1761_v47  ;;  %v2007_v46 = vld [vmem:[%s2175_s3] ss:$0 sm:$0xff] }
  0x65   : > { %895 = vmatmul.mubr.bf16.gmra.mxu0 %v1762_v48  ;;  %1642 = vmatmul.mubr.msk.bf16.gmra.mxu1 %vm757_vm0, %v1763_v49 }
  0x66   : > { %902 = vmatprep.mubr.bf16.mxu0 %v1764_v50  ;;  %1645 = vmatprep.mubr.msk.bf16.mxu1 %vm757_vm0, %v1766_v51 }
  0x6d   : > { %903 = vmatmul.mubr.bf16.gmra.mxu0 %v1767_v52  ;;  %1646 = vmatmul.mubr.msk.bf16.gmra.mxu1 %vm757_vm0, %v1768_v53 }
  0x6e   : > { %910 = vmatprep.mubr.bf16.mxu0 %v1769_v54  ;;  %1649 = vmatprep.mubr.msk.bf16.mxu1 %vm757_vm0, %v1771_v55 }
  0x75   : > { %911 = vmatmul.mubr.bf16.gmra.mxu0 %v1772_v56  ;;  %1650 = vmatmul.mubr.msk.bf16.gmra.mxu1 %vm757_vm0, %v1773_v57 }
  0x76   : > { %918 = vmatprep.mubr.bf16.mxu0 %v1774_v58  ;;  %1653 = vmatprep.mubr.msk.bf16.mxu1 %vm757_vm0, %v1776_v59 }
  0x7d   : > { %919 = vmatmul.mubr.bf16.gmra.mxu0 %v1777_v60  ;;  %1654 = vmatmul.mubr.msk.bf16.gmra.mxu1 %vm757_vm0, %v1778_v61 }
  0x7e   : > { %926 = vmatprep.mubr.bf16.mxu0 %v1779_v62  ;;  %1657 = vmatprep.mubr.msk.bf16.mxu1 %vm757_vm0, %v1781_v63 }
  0x85   : > { %927 = vmatmul.mubr.bf16.gmra.mxu0 %v1782_v0  ;;  %1658 = vmatmul.mubr.msk.bf16.gmra.mxu1 %vm757_vm0, %v1783_v1 }
  0xed   : > { %v1511_v2 = vpop.f32.mrf.mxu0  ;;  %v1583_v3 = vpop.f32.mrf.mxu1 }
  0xef   : > { %v1512_v4 = vpop.f32.mrf.mxu0  ;;  %v1584_v5 = vpop.f32.mrf.mxu1 }
  0xf0   : > { %v1977_v6 = vadd.f32 %v1584_v5, %v1583_v3  ;;  %v1513_v44 = vadd.f32 %v1512_v4, %v1511_v2 }
  0xf1   : > { %v1514_v7 = vpop.f32.mrf.mxu0  ;;  %v1586_v8 = vpop.f32.mrf.mxu1 }
  0xf3   : > { %v1515_v9 = vpop.f32.mrf.mxu0  ;;  %v1587_v10 = vpop.f32.mrf.mxu1 }
  0xf4   : > { %v1979_v11 = vadd.f32 %v1587_v10, %v1586_v8  ;;  %v1516_v57 = vadd.f32 %v1515_v9, %v1514_v7 }
  0xf5   : > { %v1517_v12 = vpop.f32.mrf.mxu0  ;;  %v1589_v13 = vpop.f32.mrf.mxu1 }
  0xf7   : > { %v1518_v14 = vpop.f32.mrf.mxu0  ;;  %v1590_v15 = vpop.f32.mrf.mxu1 }
  0xf8   : > { %v1981_v16 = vadd.f32 %v1590_v15, %v1589_v13  ;;  %v1519_v40 = vadd.f32 %v1518_v14, %v1517_v12 }
  0xf9   : > { %v1520_v17 = vpop.f32.mrf.mxu0  ;;  %v1592_v18 = vpop.f32.mrf.mxu1 }
  0xfb   : > { %v1521_v19 = vpop.f32.mrf.mxu0  ;;  %v1593_v20 = vpop.f32.mrf.mxu1 }
  0xfc   : > { %v1983_v21 = vadd.f32 %v1593_v20, %v1592_v18  ;;  %v1522_v49 = vadd.f32 %v1521_v19, %v1520_v17 }
  0xfd   : > { %v1523_v22 = vpop.f32.mrf.mxu0  ;;  %v1595_v23 = vpop.f32.mrf.mxu1 }
  0xff   : > { %v1524_v24 = vpop.f32.mrf.mxu0  ;;  %v1596_v25 = vpop.f32.mrf.mxu1 }
 0x100   : > { %v1985_v26 = vadd.f32 %v1596_v25, %v1595_v23  ;;  %v1525_v3 = vadd.f32 %v1524_v24, %v1523_v22 }
 0x101   : > { %v1987_v27 = vpop.f32.mrf.mxu0  ;;  %v1598_v28 = vpop.f32.mrf.mxu1 }
 0x103   : > { %v1527_v29 = vpop.f32.mrf.mxu0  ;;  %v1599_v30 = vpop.f32.mrf.mxu1 }
 0x104   : > { %v1989_v31 = vadd.f32 %v1599_v30, %v1598_v28  ;;  %v1528_v24 = vadd.f32 %v1527_v29, %v1987_v27 }
 0x105   : > { %v1529_v32 = vpop.f32.mrf.mxu0  ;;  %v1991_v33 = vpop.f32.mrf.mxu1 }
 0x107   : > { %v1530_v34 = vpop.f32.mrf.mxu0  ;;  %v1993_v35 = vpop.f32.mrf.mxu1 }
 0x108   : > { %v1531_v60 = vadd.f32 %v1530_v34, %v1529_v32 }
 0x109   : > { %v1532_v36 = vpop.f32.mrf.mxu0  ;;  %v1995_v37 = vpop.f32.mrf.mxu1 }
 0x10b   : > { %v1533_v38 = vpop.f32.mrf.mxu0  ;;  %v1997_v39 = vpop.f32.mrf.mxu1 }
 0x10c   : > { %v1534_v12 = vadd.f32 %v1533_v38, %v1532_v36 }
 0x10d   : > { %v1535_v41 = vpop.f32.mrf.mxu0  ;;  %v1631_v42 = vpop.f32.mrf.mxu1 }
 0x10e   : > { %v1010_v45 = vadd.f32 %v1631_v42, %v1519_v40 }
 0x10f   : > { %v1536_v47 = vpop.f32.mrf.mxu0  ;;  %v1001_v48 = vpop.f32.mrf.mxu1 }
 0x110   : > { %v1137_v50 = vmul.f32 %v2002_v43, %v1010_v45  ;;  %v1002_v51 = vadd.f32 %v1513_v44, %v1001_v48  ;;  %v1537_v45 = vadd.f32 %v1536_v47, %v1535_v41 }
 0x111   : > { %v2011_v52 = vpop.f32.mrf.mxu0  ;;  %v1632_v53 = vpop.f32.mrf.mxu1 }
 0x112   : > { %v1176_v54 = vadd.f32 %v2007_v46, %v1137_v50  ;;  %v1135_v55 = vmul.f32 %v2002_v43, %v1002_v51  ;;  %v1013_v56 = vadd.f32 %v1632_v53, %v1522_v49 }
 0x113   : > { %v1539_v58 = vpop.f32.mrf.mxu0  ;;  %v1004_v59 = vpop.f32.mrf.mxu1 }
 0x114   : > { %v1208_v61 = vmax.f32 %v1176_v54, 0.0  ;;  %v1174_v62 = vadd.f32 %v2007_v46, %v1135_v55  ;;  %v1138_v63 = vmul.f32 %v2002_v43, %v1013_v56  ;;  %v1005_v0 = vadd.f32 %v1516_v57, %v1004_v59 }
 0x115   : > { %v1541_v1 = vpop.f32.mrf.mxu0  ;;  %v1635_v2 = vpop.f32.mrf.mxu1 }
 0x116   : > { %1241 = vst.msk [vmem:[%s2018_s23 + $0x10] sm:$0xff] %vm1238_vm1, %v1208_v61  ;;  %v1206_v4 = vmax.f32 %v1174_v62, 0.0  ;;  %v1177_v5 = vadd.f32 %v2007_v46, %v1138_v63  ;;  %v1026_v7 = vadd.f32 %v1635_v2, %v1531_v60  ;;  %v1136_v8 = vmul.f32 %v2002_v43, %v1005_v0 }
 0x117   : > { %v1542_v9 = vpop.f32.mrf.mxu0  ;;  %v1017_v10 = vpop.f32.mrf.mxu1  ;;  %v1540_v62 = vadd.f32 %v1539_v58, %v2011_v52 }
 0x118   : > { %1239 = vst.msk [vmem:[%s2018_s23] sm:$0xff] %vm1238_vm1, %v1206_v4  ;;  %v1209_v13 = vmax.f32 %v1177_v5, 0.0  ;;  %v1141_v14 = vmul.f32 %v2002_v43, %v1026_v7  ;;  %v1018_v15 = vadd.f32 %v1525_v3, %v1017_v10  ;;  %v1175_v17 = vadd.f32 %v2007_v46, %v1136_v8 }
 0x119   : > { %v1544_v18 = vpop.f32.mrf.mxu0  ;;  %v1636_v19 = vpop.f32.mrf.mxu1  ;;  %v1543_v34 = vadd.f32 %v1542_v9, %v1541_v1 }
 0x11a   : > { %1242 = vst.msk [vmem:[%s2018_s23 + $0x18] sm:$0xff] %vm1238_vm1, %v1209_v13  ;;  %v1180_v20 = vadd.f32 %v2007_v46, %v1141_v14  ;;  %v1139_v22 = vmul.f32 %v2002_v43, %v1018_v15  ;;  %v1029_v23 = vadd.f32 %v1636_v19, %v1534_v12  ;;  %v1207_v25 = vmax.f32 %v1175_v17, 0.0 }
 0x11b   : > { %v1545_v28 = vpop.f32.mrf.mxu0  ;;  %v1020_v30 = vpop.f32.mrf.mxu1 }
 0x11c   : > { %v1212_v32 = vmax.f32 %v1180_v20, 0.0  ;;  %v1178_v36 = vadd.f32 %v2007_v46, %v1139_v22  ;;  %v1142_v38 = vmul.f32 %v2002_v43, %v1029_v23  ;;  %1240 = vst.msk [vmem:[%s2018_s23 + $0x8] sm:$0xff] %vm1238_vm1, %v1207_v25  ;;  %v1021_v40 = vadd.f32 %v1528_v24, %v1020_v30 }
 0x11d   : > { %v1547_v42 = vpop.f32.mrf.mxu0  ;;  %v1639_v44 = vpop.f32.mrf.mxu1  ;;  %v1546_v54 = vadd.f32 %v1545_v28, %v1544_v18 }
 0x11e   : > { %1245 = vst.msk [vmem:[%s2018_s23 + $0x30] sm:$0xff] %vm1238_vm1, %v1212_v32  ;;  %v1210_v27 = vmax.f32 %v1178_v36, 0.0  ;;  %v1181_v29 = vadd.f32 %v2007_v46, %v1142_v38  ;;  %v1042_v48 = vadd.f32 %v1639_v44, %v1543_v34  ;;  %v1140_v49 = vmul.f32 %v2002_v43, %v1021_v40 }
 0x11f   : > { %v1548_v50 = vpop.f32.mrf.mxu0  ;;  %v1033_v51 = vpop.f32.mrf.mxu1 }
 0x120   : > { %1243 = vst.msk [vmem:[%s2018_s23 + $0x20] sm:$0xff] %vm1238_vm1, %v1210_v27  ;;  %v1213_v53 = vmax.f32 %v1181_v29, 0.0  ;;  %v1145_v55 = vmul.f32 %v2002_v43, %v1042_v48  ;;  %v1034_v56 = vadd.f32 %v1537_v45, %v1033_v51  ;;  %v1179_v41 = vadd.f32 %v2007_v46, %v1140_v49 }
 0x121   : > { %v1550_v47 = vpop.f32.mrf.mxu0  ;;  %v1640_v57 = vpop.f32.mrf.mxu1  ;;  %v1549_v9 = vadd.f32 %v1548_v50, %v1547_v42 }
 0x122   : > { %1246 = vst.msk [vmem:[%s2018_s23 + $0x38] sm:$0xff] %vm1238_vm1, %v1213_v53  ;;  %v1184_v59 = vadd.f32 %v2007_v46, %v1145_v55  ;;  %v1143_v60 = vmul.f32 %v2002_v43, %v1034_v56  ;;  %v1045_v61 = vadd.f32 %v1640_v57, %v1546_v54  ;;  %v1211_v63 = vmax.f32 %v1179_v41, 0.0 }
 0x123   : > { %v1551_v0 = vpop.f32.mrf.mxu0  ;;  %v1036_v1 = vpop.f32.mrf.mxu1 }
 0x124   : > { %v1216_v2 = vmax.f32 %v1184_v59, 0.0  ;;  %v1182_v3 = vadd.f32 %v2007_v46, %v1143_v60  ;;  %v1146_v4 = vmul.f32 %v2002_v43, %v1045_v61  ;;  %1244 = vst.msk [vmem:[%s2018_s23 + $0x28] sm:$0xff] %vm1238_vm1, %v1211_v63  ;;  %v1037_v5 = vadd.f32 %v1540_v62, %v1036_v1 }
 0x125   : > { %v1553_v7 = vpop.f32.mrf.mxu0  ;;  %v1643_v8 = vpop.f32.mrf.mxu1  ;;  %v1552_v22 = vadd.f32 %v1551_v0, %v1550_v47 }
 0x126   : > { %1249 = vst.msk [vmem:[%s2018_s23 + $0x50] sm:$0xff] %vm1238_vm1, %v1216_v2  ;;  %v1214_v10 = vmax.f32 %v1182_v3, 0.0  ;;  %v1185_v52 = vadd.f32 %v2007_v46, %v1146_v4  ;;  %v1144_v58 = vmul.f32 %v2002_v43, %v1037_v5 }
 0x127   : > { %v1554_v12 = vpop.f32.mrf.mxu0  ;;  %v1049_v13 = vpop.f32.mrf.mxu1 }
 0x128   : > { %1247 = vst.msk [vmem:[%s2018_s23 + $0x40] sm:$0xff] %vm1238_vm1, %v1214_v10  ;;  %v1217_v14 = vmax.f32 %v1185_v52, 0.0  ;;  %v1555_v15 = vadd.f32 %v1554_v12, %v1553_v7  ;;  %v1050_v17 = vadd.f32 %v1549_v9, %v1049_v13  ;;  %v1183_v18 = vadd.f32 %v2007_v46, %v1144_v58 }
 0x129   : > { %v1556_v19 = vpop.f32.mrf.mxu0  ;;  %v1644_v20 = vpop.f32.mrf.mxu1 }
 0x12a   : > { %1250 = vst.msk [vmem:[%s2018_s23 + $0x58] sm:$0xff] %vm1238_vm1, %v1217_v14  ;;  %v1058_v23 = vadd.f32 %v1643_v8, %v1555_v15  ;;  %v1147_v24 = vmul.f32 %v2002_v43, %v1050_v17  ;;  %v1215_v25 = vmax.f32 %v1183_v18, 0.0 }
 0x12b   : > { %v1557_v28 = vpop.f32.mrf.mxu0  ;;  %v1052_v30 = vpop.f32.mrf.mxu1 }
 0x12c   : > { %v1149_v32 = vmul.f32 %v2002_v43, %v1058_v23  ;;  %v1186_v34 = vadd.f32 %v2007_v46, %v1147_v24  ;;  %v1558_v36 = vadd.f32 %v1557_v28, %v1556_v19  ;;  %v1053_v38 = vadd.f32 %v1552_v22, %v1052_v30  ;;  %1248 = vst.msk [vmem:[%s2018_s23 + $0x48] sm:$0xff] %vm1238_vm1, %v1215_v25 }
 0x12d   : > { %v1559_v40 = vpop.f32.mrf.mxu0  ;;  %v1647_v42 = vpop.f32.mrf.mxu1 }
 0x12e   : > { %v1188_v44 = vadd.f32 %v2007_v46, %v1149_v32  ;;  %v1218_v45 = vmax.f32 %v1186_v34, 0.0  ;;  %v1061_v27 = vadd.f32 %v1644_v20, %v1558_v36  ;;  %v1148_v29 = vmul.f32 %v2002_v43, %v1053_v38 }
 0x12f   : > { %v1560_v48 = vpop.f32.mrf.mxu0  ;;  %v1065_v49 = vpop.f32.mrf.mxu1 }
 0x130   : > { %v1220_v50 = vmax.f32 %v1188_v44, 0.0  ;;  %1251 = vst.msk [vmem:[%s2018_s23 + $0x60] sm:$0xff] %vm1238_vm1, %v1218_v45  ;;  %v1150_v51 = vmul.f32 %v2002_v43, %v1061_v27  ;;  %v1187_v53 = vadd.f32 %v2007_v46, %v1148_v29  ;;  %v1561_v54 = vadd.f32 %v1560_v48, %v1559_v40 }
 0x131   : > { %v1562_v55 = vpop.f32.mrf.mxu0  ;;  %v1648_v56 = vpop.f32.mrf.mxu1  ;;  %v1603_v29 = vadd.f32 %v1993_v35, %v1991_v33 }
 0x132   : > { %1253 = vst.msk [vmem:[%s2018_s23 + $0x70] sm:$0xff] %vm1238_vm1, %v1220_v50  ;;  %v1189_v41 = vadd.f32 %v2007_v46, %v1150_v51  ;;  %v1219_v47 = vmax.f32 %v1187_v53, 0.0  ;;  %v1066_v57 = vadd.f32 %v1561_v54, %v1065_v49 }
 0x133   : > { %v1563_v59 = vpop.f32.mrf.mxu0  ;;  %v1068_v60 = vpop.f32.mrf.mxu1 }
 0x134   : > { %v1221_v61 = vmax.f32 %v1189_v41, 0.0  ;;  %1252 = vst.msk [vmem:[%s2018_s23 + $0x68] sm:$0xff] %vm1238_vm1, %v1219_v47  ;;  %v1151_v62 = vmul.f32 %v2002_v43, %v1066_v57  ;;  %v1564_v63 = vadd.f32 %v1563_v59, %v1562_v55  ;;  %v1606_v59 = vadd.f32 %v1997_v39, %v1995_v37 }
 0x135   : > { %v1565_v0 = vpop.f32.mrf.mxu0  ;;  %v2082_v1 = vpop.f32.mrf.mxu1 }
 0x136   : > { %1254 = vst.msk [vmem:[%s2018_s23 + $0x78] sm:$0xff] %vm1238_vm1, %v1221_v61  ;;  %v1190_v2 = vadd.f32 %v2007_v46, %v1151_v62  ;;  %v1069_v3 = vadd.f32 %v1564_v63, %v1068_v60 }
 0x137   : > { %v1566_v4 = vpop.f32.mrf.mxu0  ;;  %v1081_v5 = vpop.f32.mrf.mxu1 }
 0x138   : > { %v1222_v7 = vmax.f32 %v1190_v2, 0.0  ;;  %v1152_v8 = vmul.f32 %v2002_v43, %v1069_v3  ;;  %v1567_v9 = vadd.f32 %v1566_v4, %v1565_v0 }
 0x139   : > { %v1568_v10 = vpop.f32.mrf.mxu0  ;;  %v2088_v52 = vpop.f32.mrf.mxu1 }
 0x13a   : > { %1255 = vst.msk [vmem:[%s2018_s23 + $0x80] sm:$0xff] %vm1238_vm1, %v1222_v7  ;;  %v1191_v58 = vadd.f32 %v2007_v46, %v1152_v8  ;;  %v1074_v12 = vadd.f32 %v1647_v42, %v1567_v9 }
 0x13b   : > { %v1569_v13 = vpop.f32.mrf.mxu0  ;;  %v1084_v14 = vpop.f32.mrf.mxu1 }
 0x13c   : > { %v1223_v15 = vmax.f32 %v1191_v58, 0.0  ;;  %v1153_v17 = vmul.f32 %v2002_v43, %v1074_v12  ;;  %v1570_v18 = vadd.f32 %v1569_v13, %v1568_v10 }
 0x13d   : > { %v1571_v19 = vpop.f32.mrf.mxu0  ;;  %v1655_v20 = vpop.f32.mrf.mxu1 }
 0x13e   : > { %1256 = vst.msk [vmem:[%s2018_s23 + $0x88] sm:$0xff] %vm1238_vm1, %v1223_v15  ;;  %v1192_v22 = vadd.f32 %v2007_v46, %v1153_v17  ;;  %v1077_v23 = vadd.f32 %v1648_v56, %v1570_v18  ;;  %v1106_v24 = vadd.f32 %v1655_v20, %v1981_v16 }
 0x13f   : > { %v1572_v25 = vpop.f32.mrf.mxu0  ;;  %v1097_v28 = vpop.f32.mrf.mxu1 }
 0x140   : > { %v1224_v30 = vmax.f32 %v1192_v22, 0.0  ;;  %v1154_v32 = vmul.f32 %v2002_v43, %v1077_v23  ;;  %v1161_v34 = vmul.f32 %v2002_v43, %v1106_v24  ;;  %v1573_v36 = vadd.f32 %v1572_v25, %v1571_v19 }
 0x141   : > { %v1098_v38 = vadd.f32 %v1977_v6, %v1097_v28  ;;  %v1574_v40 = vpop.f32.mrf.mxu0  ;;  %v1656_v42 = vpop.f32.mrf.mxu1 }
 0x142   : > { %1257 = vst.msk [vmem:[%s2018_s23 + $0x90] sm:$0xff] %vm1238_vm1, %v1224_v30  ;;  %v1193_v44 = vadd.f32 %v2007_v46, %v1154_v32  ;;  %v1200_v45 = vadd.f32 %v2007_v46, %v1161_v34  ;;  %v1082_v16 = vadd.f32 %v1573_v36, %v1081_v5  ;;  %v1109_v27 = vadd.f32 %v1656_v42, %v1983_v21 }
 0x143   : > { %v1159_v48 = vmul.f32 %v2002_v43, %v1098_v38  ;;  %v1575_v49 = vpop.f32.mrf.mxu0  ;;  %v1100_v6 = vpop.f32.mrf.mxu1 }
 0x144   : > { %v1225_v50 = vmax.f32 %v1193_v44, 0.0  ;;  %v1232_v51 = vmax.f32 %v1200_v45, 0.0  ;;  %v1155_v53 = vmul.f32 %v2002_v43, %v1082_v16  ;;  %v1162_v54 = vmul.f32 %v2002_v43, %v1109_v27 }
 0x145   : > { %v1198_v55 = vadd.f32 %v2007_v46, %v1159_v48  ;;  %v1576_v56 = vadd.f32 %v1575_v49, %v1574_v40  ;;  %v1101_v41 = vadd.f32 %v1979_v11, %v1100_v6  ;;  %v1577_v47 = vpop.f32.mrf.mxu0  ;;  %v1659_v21 = vpop.f32.mrf.mxu1 }
 0x146   : > { %1258 = vst.msk [vmem:[%s2018_s23 + $0x98] sm:$0xff] %vm1238_vm1, %v1225_v50  ;;  %1265 = vst.msk [vmem:[%s2018_s23 + $0xd0] sm:$0xff] %vm1238_vm1, %v1232_v51  ;;  %v1194_v33 = vadd.f32 %v2007_v46, %v1155_v53  ;;  %v1201_v35 = vadd.f32 %v2007_v46, %v1162_v54  ;;  %v1122_v57 = vadd.f32 %v1659_v21, %v1603_v29 }
 0x147   : > { %v1230_v60 = vmax.f32 %v1198_v55, 0.0  ;;  %v1085_v61 = vadd.f32 %v1576_v56, %v1084_v14  ;;  %v1160_v11 = vmul.f32 %v2002_v43, %v1101_v41  ;;  %v1578_v62 = vpop.f32.mrf.mxu0  ;;  %v1113_v63 = vpop.f32.mrf.mxu1 }
 0x148   : > { %v1226_v0 = vmax.f32 %v1194_v33, 0.0  ;;  %v1233_v2 = vmax.f32 %v1201_v35, 0.0  ;;  %v1165_v3 = vmul.f32 %v2002_v43, %v1122_v57  ;;  %v1579_v4 = vadd.f32 %v1578_v62, %v1577_v47 }
 0x149   : > { %1263 = vst.msk [vmem:[%s2018_s23 + $0xc0] sm:$0xff] %vm1238_vm1, %v1230_v60  ;;  %v1156_v5 = vmul.f32 %v2002_v43, %v1085_v61  ;;  %v1199_v7 = vadd.f32 %v2007_v46, %v1160_v11  ;;  %v1114_v37 = vadd.f32 %v1985_v26, %v1113_v63  ;;  %v1580_v39 = vpop.f32.mrf.mxu0  ;;  %v1660_v8 = vpop.f32.mrf.mxu1 }
 0x14a   : > { %1259 = vst.msk [vmem:[%s2018_s23 + $0xa0] sm:$0xff] %vm1238_vm1, %v1226_v0  ;;  %1266 = vst.msk [vmem:[%s2018_s23 + $0xd8] sm:$0xff] %vm1238_vm1, %v1233_v2  ;;  %v1204_v9 = vadd.f32 %v2007_v46, %v1165_v3  ;;  %v1090_v10 = vadd.f32 %v2082_v1, %v1579_v4  ;;  %v1125_v58 = vadd.f32 %v1660_v8, %v1606_v59 }
 0x14b   : > { %v1195_v12 = vadd.f32 %v2007_v46, %v1156_v5  ;;  %v1231_v13 = vmax.f32 %v1199_v7, 0.0  ;;  %v1163_v14 = vmul.f32 %v2002_v43, %v1114_v37  ;;  %v1581_v26 = vpop.f32.mrf.mxu0  ;;  %v1116_v15 = vpop.f32.mrf.mxu1 }
 0x14c   : > { %v1236_v17 = vmax.f32 %v1204_v9, 0.0  ;;  %v1157_v18 = vmul.f32 %v2002_v43, %v1090_v10  ;;  %v1166_v19 = vmul.f32 %v2002_v43, %v1125_v58  ;;  %v1582_v20 = vadd.f32 %v1581_v26, %v1580_v39 }
 0x14d   : > { %v1227_v22 = vmax.f32 %v1195_v12, 0.0  ;;  %1264 = vst.msk [vmem:[%s2018_s23 + $0xc8] sm:$0xff] %vm1238_vm1, %v1231_v13  ;;  %v1202_v1 = vadd.f32 %v2007_v46, %v1163_v14  ;;  %v1117_v23 = vadd.f32 %v1989_v31, %v1116_v15 }
 0x14e   : > { %1269 = vst.msk [vmem:[%s2018_s23 + $0xf0] sm:$0xff] %vm1238_vm1, %v1236_v17  ;;  %v1196_v24 = vadd.f32 %v2007_v46, %v1157_v18  ;;  %v1205_v25 = vadd.f32 %v2007_v46, %v1166_v19  ;;  %v1093_v28 = vadd.f32 %v2088_v52, %v1582_v20 }
 0x14f   : > { %1260 = vst.msk [vmem:[%s2018_s23 + $0xa8] sm:$0xff] %vm1238_vm1, %v1227_v22  ;;  %v1234_v30 = vmax.f32 %v1202_v1, 0.0  ;;  %v1164_v32 = vmul.f32 %v2002_v43, %v1117_v23 }
 0x150   : > { %v1228_v34 = vmax.f32 %v1196_v24, 0.0  ;;  %v1237_v36 = vmax.f32 %v1205_v25, 0.0  ;;  %v1158_v38 = vmul.f32 %v2002_v43, %v1093_v28 }
 0x151   : > { %1267 = vst.msk [vmem:[%s2018_s23 + $0xe0] sm:$0xff] %vm1238_vm1, %v1234_v30  ;;  %v1203_v31 = vadd.f32 %v2007_v46, %v1164_v32 }
 0x152   : > { %1261 = vst.msk [vmem:[%s2018_s23 + $0xb0] sm:$0xff] %vm1238_vm1, %v1228_v34  ;;  %1270 = vst.msk [vmem:[%s2018_s23 + $0xf8] sm:$0xff] %vm1238_vm1, %v1237_v36  ;;  %v1197_v40 = vadd.f32 %v2007_v46, %v1158_v38 }
 0x153   : > { %v1235_v52 = vmax.f32 %v1203_v31, 0.0 }
 0x154   : > { %v1229_v42 = vmax.f32 %v1197_v40, 0.0 }
 0x155   : > { %1268 = vst.msk [vmem:[%s2018_s23 + $0xe8] sm:$0xff] %vm1238_vm1, %v1235_v52 }
 0x156   : > { %1262 = vst.msk [vmem:[%s2018_s23 + $0xb8] sm:$0xff] %vm1238_vm1, %v1229_v42 }
 0x157 PF: > { %s14_s17 = sadd.s32 1, %s1806_s17   ;;  %s2177_s15 = smov %s1802_s16 }
 0x158   : > { %p11_p5 = scmp.ge.s32.totalorder %s14_s17, 4   ;;  %s2178_s16 = smov %s2180_s18 }
 0x15a   :  { %13 = sbr.rel (!%p11_p5) target bundleno = 2 (0x2), region = 75 }

// kernel: _lambda_.39
= control target key start
LH: loop header
LB: loop body
LE: loop exit
PB: predicated region body
PF: predicated region fallthrough
CT: control target
= control target key end

     0   :  { %v18_v0 = vlaneseq  ;;  %v60_v2 = vmov 1983009808   ;;  %vm25_vm0 = vcmask 1041408   ;;  %vm51_vm1 = vcmask 1024   ;;  %s85_s1 = inlined_call_operand.vmem [shape: f32[2,256], index: 1, kind: input, shape index: {}]   ;;  %s86_s0 = inlined_call_operand.vmem [shape: f32[2,256], index: 0, kind: input, shape index: {}]   ;;  %s87_s2 = inlined_call_operand.vmem [shape: f32[2,1], index: 2, kind: output, shape index: {}]  }
   0x1   :  { %v11_v1 = vld [vmem:[%s85_s1] sm:$0xf]  ;;  %v16_v3 = vunpack.c.l.s4 %v60_v2 }
   0x2   :  { %v12_v4 = vmax.f32 %v11_v1, 0.0  ;;  %v19_v5 = vshrl.u32 %v18_v0, 7  ;;  %v31_v7 = vld [vmem:[%s86_s0] sm:$0xf] }
   0x3   :  { %v17_v6 = vunpack.c.0.s8 %v16_v3 }
   0x4   :  { %v13_v8 = vadd.f32 1e-08, %v12_v4 }
   0x5   :  { %v20_v9 = vsub.s32 %v17_v6, %v19_v5 }
   0x6   :  { %v32_v10 = vmul.f32 %v31_v7, %v13_v8 }
   0x7   :  { %v21_v11 = vrot.slane %v13_v8, %v20_v9 }
   0x8   :  { %v40_v12 = vrot.slane %v32_v10, %v20_v9 }
   0x9   :  { %v22_v13 = vcombine.high %v21_v11, %v21_v11  ;;  %v26_v14 = vsel %vm25_vm0, %v21_v11, 0.0 }
   0xa   :  { %v41_v15 = vcombine.high %v40_v12, %v40_v12  ;;  %v44_v17 = vsel %vm25_vm0, %v40_v12, 0.0 }
   0xb   :  { %v27_v16 = vsel %vm25_vm0, %v22_v13, 0.0 }
   0xc   :  { %v28_v18 = vadd.f32 %v27_v16, %v26_v14  ;;  %v45_v19 = vsel %vm25_vm0, %v41_v15, 0.0 }
   0xd   :  { %v46_v20 = vadd.f32 %v45_v19, %v44_v17 }
   0xe   :  { %29 = vadd.xlane.f32.xlu0 %v28_v18 }
  0x12   :  { %47 = vadd.xlane.f32.xlu0 %v46_v20 }
  0x97   :  { %v30_v21 = vpop.xlane.xlu0 %29 }
  0x98   :  { %58 = vrcp.f32 %v30_v21 }
  0x9b   :  { %v48_v22 = vpop.xlane.xlu0 %47 }
  0xa5   :  { %v59_v23 = vpop.eup %58 }
  0xa6   :  { %v50_v24 = vmul.f32 %v59_v23, %v48_v22 }
  0xa8   :  { %52 = vst.msk [vmem:[%s87_s2] sm:$0x3] %vm51_vm1, %v50_v24 }

</bundles_post_ra>
